<compile_context>
chip_gen: v6e
topology: v6e:2x2x1
jax: 0.10.0
libtpu: 0.0.40
codegen_flags: <defaults>
</compile_context>

<pallas_src>
import jax
import jax.numpy as jnp
from jax import lax
from jax.experimental import pallas as pl
from jax.experimental.pallas import tpu as pltpu

N_DIMS = 2                       # (t, x)
HIDDEN = 32
POLY_ORDER = 2
DIFF_ORDER = 2
N_FEATURES = (POLY_ORDER + 1) * (DIFF_ORDER + 1)   # 9
OUT_W = 16                       # [u | u_t | theta(9) | pad(5)] fused output width


def _fused_linear(h, d_t, d_x, d_xx, w, b):
    """Linear layer applied to the value stream and the three derivative
    streams with a single MXU pass (streams stacked along the sample axis)."""
    tn = h.shape[0]
    stacked = jnp.concatenate([h, d_t, d_x, d_xx], axis=0)          # (4*tn, fan_in)
    out = jnp.dot(stacked, w, preferred_element_type=jnp.float32)    # (4*tn, fan_out)
    z = out[:tn] + b
    return z, out[tn:2 * tn], out[2 * tn:3 * tn], out[3 * tn:]


def _tanh_prop(z, dz_t, dz_x, dz_xx):
    """tanh nonlinearity + forward-mode propagation of (d/dt, d/dx, d2/dx2)."""
    a = jnp.tanh(z)
    s = 1.0 - a * a                              # sech^2
    da_t = s * dz_t
    da_x = s * dz_x
    da_xx = s * dz_xx - 2.0 * a * s * dz_x * dz_x
    return a, da_t, da_x, da_xx


def deepmod_kernel(x_ref, w1_ref, b1_ref, w2_ref, b2_ref, w3_ref, b3_ref,
                   out_ref):
    coords = x_ref[...]                                  # (TN, 2)
    tn = coords.shape[0]

    # ---- layer 1: K=2 linear layer as two VPU broadcast FMAs; derivatives are
    # analytically just rows of w1 (no MXU, no iota/compare/zeros). ----
    w1 = w1_ref[...]                                     # (2, H)
    w1t = w1[0:1, :]                                     # d z1 / dt   (1, H)
    w1x = w1[1:2, :]                                     # d z1 / dx   (1, H)
    z1 = coords[:, 0:1] * w1t + coords[:, 1:2] * w1x + b1_ref[...]

    a1 = jnp.tanh(z1)
    s1 = 1.0 - a1 * a1
    h = a1
    d_t = s1 * w1t                                       # broadcast (1,H) -> (TN,H)
    d_x = s1 * w1x
    d_xx = -2.0 * a1 * s1 * (w1x * w1x)                  # dz1_xx == 0

    # ---- layer 2 (fused 4-stream matmul) + tanh prop ----
    h, d_t, d_x, d_xx = _fused_linear(h, d_t, d_x, d_xx, w2_ref[...], b2_ref[...])
    h, d_t, d_x, d_xx = _tanh_prop(h, d_t, d_x, d_xx)

    # ---- layer 3 (fused 4-stream matmul), output width 1 ----
    u, u_t, u_x, u_xx = _fused_linear(h, d_t, d_x, d_xx, w3_ref[...], b3_ref[...])

    # ---- Library1D: theta columns = poly (outer) x derivative (inner) ----
    ones = jnp.ones_like(u)
    derivs3 = jnp.concatenate([ones, u_x, u_xx], axis=1)             # (TN, 3)
    pad = jnp.zeros((tn, OUT_W - 2 - N_FEATURES), jnp.float32)
    # fused output: [u | u_t | 1,u_x,u_xx | u*{...} | u^2*{...} | pad]
    out_ref[...] = jnp.concatenate(
        [u, u_t, derivs3, u * derivs3, (u * u) * derivs3, pad], axis=1)


def _pick_tile(n, max_tile=1024):
    """Largest tile <= max_tile dividing n (multiple of 8), preferring grid >= 2
    so both v7x TensorCores get work."""
    fallback = None
    for t in range(min(max_tile, n), 7, -1):
        if n % t == 0 and t % 8 == 0:
            if n // t >= 2:
                return t
            if fallback is None:
                fallback = t
    if fallback is not None:
        return fallback
    raise ValueError(f"n_samples={n} must be a multiple of 8")


def deepmod_forward(coords, params, tile=None):
    """Returns (prediction, time_derivs, thetas, coeff_vectors, norms) like
    DeepMoD.forward (coeffs / norms are side effects in torch)."""
    n = coords.shape[0]
    if tile is None:
        tile = _pick_tile(n)
    assert n % tile == 0 and tile % 8 == 0
    w1, b1, w2, b2, w3, b3 = params

    def wspec(shape):
        return pl.BlockSpec(shape, lambda i: (0, 0))

    fused = pl.pallas_call(
        deepmod_kernel,
        out_shape=jax.ShapeDtypeStruct((n, OUT_W), jnp.float32),
        grid_spec=pltpu.PrefetchScalarGridSpec(
            num_scalar_prefetch=0,
            grid=(n // tile,),
            in_specs=[
                pl.BlockSpec((tile, N_DIMS), lambda i: (i, 0)),
                wspec(w1.shape), wspec(b1.shape),
                wspec(w2.shape), wspec(b2.shape),
                wspec(w3.shape), wspec(b3.shape),
            ],
            out_specs=pl.BlockSpec((tile, OUT_W), lambda i: (i, 0)),
        ),
        compiler_params=pltpu.CompilerParams(
            dimension_semantics=("parallel",)),
    )(coords, w1, b1, w2, b2, w3, b3)

    prediction = fused[:, 0:1]
    time_deriv = fused[:, 1:2]
    theta = fused[:, 2:2 + N_FEATURES]

    # Library side effect: norms = ||time_deriv|| / ||theta_col||  (glue)
    norms = jnp.linalg.norm(time_deriv) / jnp.linalg.norm(theta, axis=0)
    # Constraint (LeastSquares, all-ones sparsity mask): tiny 9x1 solve (glue).
    # TODO(synk): sparse-estimator path (sklearn-style fit on numpy) is
    # non-differentiable host code in the original and is not a kernel op.
    coeff_vectors = jnp.linalg.lstsq(theta, time_deriv)[0]

    return prediction, [time_deriv], [theta], [coeff_vectors], [norms]


# ---------------- pure-JAX reference (for correctness check) ----------------
def _mlp_scalar(params, tx):
    w1, b1, w2, b2, w3, b3 = params
    h = jnp.tanh(tx @ w1 + b1[0])
    h = jnp.tanh(h @ w2 + b2[0])
    return (h @ w3 + b3[0])[0]


def _reference(coords, params):
    u_fn = lambda tx: _mlp_scalar(params, tx)
    u = jax.vmap(u_fn)(coords)[:, None]
    grads = jax.vmap(jax.grad(u_fn))(coords)             # (N, 2) -> (u_t, u_x)
    u_t = grads[:, 0:1]
    u_x = grads[:, 1:2]
    u_xx = jax.vmap(lambda tx: jax.hessian(u_fn)(tx)[1, 1])(coords)[:, None]
    ones = jnp.ones_like(u)
    derivs = [ones, u_x, u_xx]
    poly = [ones, u, u * u]
    theta = jnp.concatenate(
        [poly[i] * derivs[j] for i in range(3) for j in range(3)], axis=1)
    return u, u_t, theta


def init_params(key):
    k1, k2, k3 = jax.random.split(key, 3)
    w1 = jax.random.normal(k1, (N_DIMS, HIDDEN), jnp.float32) / jnp.sqrt(N_DIMS)
    b1 = jnp.zeros((1, HIDDEN), jnp.float32)
    w2 = jax.random.normal(k2, (HIDDEN, HIDDEN), jnp.float32) / jnp.sqrt(HIDDEN)
    b2 = jnp.zeros((1, HIDDEN), jnp.float32)
    w3 = jax.random.normal(k3, (HIDDEN, 1), jnp.float32) / jnp.sqrt(HIDDEN)
    b3 = jnp.zeros((1, 1), jnp.float32)
    return (w1, b1, w2, b2, w3, b3)


if __name__ == "__main__":
    key = jax.random.PRNGKey(0)
    pkey, xkey = jax.random.split(key)
    params = init_params(pkey)

    n_samples = 1024                                     # tile=512, grid=2
    coords = jax.random.uniform(xkey, (n_samples, N_DIMS), jnp.float32,
                                minval=-1.0, maxval=1.0)   # columns: (t, x)

    prediction, time_derivs, thetas, coeffs, norms = deepmod_forward(
        coords, params)
    jax.block_until_ready((prediction, time_derivs, thetas, coeffs, norms))

    # correctness check against autodiff reference
    u_ref, ut_ref, theta_ref = _reference(coords, params)
    assert jnp.allclose(prediction, u_ref, atol=5e-4, rtol=5e-4)
    assert jnp.allclose(time_derivs[0], ut_ref, atol=5e-4, rtol=5e-4)
    assert jnp.allclose(thetas[0], theta_ref, atol=5e-4, rtol=5e-4)

    print("KERNEL_OK")
</pallas_src>

<mosaic_0001>
module attributes {stable_mosaic.version = 11 : i64} {
  func.func @deepmod_kernel(%arg0: i32, %arg1: memref<512x2xf32, #tpu.memory_space<vmem>>, %arg2: memref<2x32xf32, #tpu.memory_space<vmem>>, %arg3: memref<1x32xf32, #tpu.memory_space<vmem>>, %arg4: memref<32x32xf32, #tpu.memory_space<vmem>>, %arg5: memref<1x32xf32, #tpu.memory_space<vmem>>, %arg6: memref<32x1xf32, #tpu.memory_space<vmem>>, %arg7: memref<1x1xf32, #tpu.memory_space<vmem>>, %arg8: memref<512x16xf32, #tpu.memory_space<vmem>>) attributes {dimension_semantics = [#tpu.dimension_semantics<parallel>], iteration_bounds = array<i64: 2>, scalar_prefetch = 0 : i64, scratch_operands = 0 : i64, tpu.core_type = #tpu.core_type<tc>, window_params = [{transform_indices = @transform_0, window_bounds = array<i64: 512, 2>}, {pipeline_mode = #tpu.pipeline_mode<synchronous>, transform_indices = @transform_1, window_bounds = array<i64: 2, 32>}, {pipeline_mode = #tpu.pipeline_mode<synchronous>, transform_indices = @transform_2, window_bounds = array<i64: 1, 32>}, {pipeline_mode = #tpu.pipeline_mode<synchronous>, transform_indices = @transform_3, window_bounds = array<i64: 32, 32>}, {pipeline_mode = #tpu.pipeline_mode<synchronous>, transform_indices = @transform_4, window_bounds = array<i64: 1, 32>}, {pipeline_mode = #tpu.pipeline_mode<synchronous>, transform_indices = @transform_5, window_bounds = array<i64: 32, 1>}, {pipeline_mode = #tpu.pipeline_mode<synchronous>, transform_indices = @transform_6, window_bounds = array<i64: 1, 1>}, {transform_indices = @transform_7, window_bounds = array<i64: 512, 16>}]} {
    %c0 = arith.constant 0 : index
    %c0_0 = arith.constant 0 : index
    %0 = vector.load %arg1[%c0, %c0_0] : memref<512x2xf32, #tpu.memory_space<vmem>>, vector<512x2xf32>
    %c0_1 = arith.constant 0 : index
    %c0_2 = arith.constant 0 : index
    %1 = vector.load %arg2[%c0_1, %c0_2] : memref<2x32xf32, #tpu.memory_space<vmem>>, vector<2x32xf32>
    %2 = vector.extract_strided_slice %1 {offsets = [0, 0], sizes = [1, 32], strides = [1, 1]} : vector<2x32xf32> to vector<1x32xf32>
    %3 = vector.extract_strided_slice %1 {offsets = [1, 0], sizes = [1, 32], strides = [1, 1]} : vector<2x32xf32> to vector<1x32xf32>
    %4 = vector.extract_strided_slice %0 {offsets = [0, 0], sizes = [512, 1], strides = [1, 1]} : vector<512x2xf32> to vector<512x1xf32>
    %5 = vector.broadcast %4 : vector<512x1xf32> to vector<512x32xf32>
    %6 = vector.broadcast %2 : vector<1x32xf32> to vector<512x32xf32>
    %7 = arith.mulf %5, %6 : vector<512x32xf32>
    %8 = vector.extract_strided_slice %0 {offsets = [0, 1], sizes = [512, 1], strides = [1, 1]} : vector<512x2xf32> to vector<512x1xf32>
    %9 = vector.broadcast %8 : vector<512x1xf32> to vector<512x32xf32>
    %10 = vector.broadcast %3 : vector<1x32xf32> to vector<512x32xf32>
    %11 = arith.mulf %9, %10 : vector<512x32xf32>
    %12 = arith.addf %7, %11 : vector<512x32xf32>
    %c0_3 = arith.constant 0 : index
    %c0_4 = arith.constant 0 : index
    %13 = vector.load %arg3[%c0_3, %c0_4] : memref<1x32xf32, #tpu.memory_space<vmem>>, vector<1x32xf32>
    %14 = vector.broadcast %13 : vector<1x32xf32> to vector<512x32xf32>
    %15 = arith.addf %12, %14 : vector<512x32xf32>
    %16 = math.tanh %15 : vector<512x32xf32>
    %17 = arith.mulf %16, %16 : vector<512x32xf32>
    %cst = arith.constant 1.000000e+00 : f32
    %18 = vector.broadcast %cst : f32 to vector<512x32xf32>
    %19 = arith.subf %18, %17 : vector<512x32xf32>
    %20 = vector.broadcast %2 : vector<1x32xf32> to vector<512x32xf32>
    %21 = arith.mulf %19, %20 : vector<512x32xf32>
    %22 = vector.broadcast %3 : vector<1x32xf32> to vector<512x32xf32>
    %23 = arith.mulf %19, %22 : vector<512x32xf32>
    %cst_5 = arith.constant -2.000000e+00 : f32
    %24 = vector.broadcast %cst_5 : f32 to vector<512x32xf32>
    %25 = arith.mulf %24, %16 : vector<512x32xf32>
    %26 = arith.mulf %25, %19 : vector<512x32xf32>
    %27 = arith.mulf %3, %3 : vector<1x32xf32>
    %28 = vector.broadcast %27 : vector<1x32xf32> to vector<512x32xf32>
    %29 = arith.mulf %26, %28 : vector<512x32xf32>
    %c0_6 = arith.constant 0 : index
    %c0_7 = arith.constant 0 : index
    %30 = vector.load %arg4[%c0_6, %c0_7] : memref<32x32xf32, #tpu.memory_space<vmem>>, vector<32x32xf32>
    %c0_8 = arith.constant 0 : index
    %c0_9 = arith.constant 0 : index
    %31 = vector.load %arg5[%c0_8, %c0_9] : memref<1x32xf32, #tpu.memory_space<vmem>>, vector<1x32xf32>
    %32 = tpu.concatenate %16, %21, %23, %29 in 0 : vector<512x32xf32>, vector<512x32xf32>, vector<512x32xf32>, vector<512x32xf32> -> vector<2048x32xf32>
    %cst_10 = arith.constant dense<0.000000e+00> : vector<2048x32xf32>
    %33 = tpu.matmul %32, %30, %cst_10 {dimension_numbers = #tpu.dot_dimension_numbers<[1], [0], [0], [1], [0, 0, 1, 1], [], []>} : vector<2048x32xf32>, vector<32x32xf32>, vector<2048x32xf32> -> vector<2048x32xf32>
    %34 = vector.extract_strided_slice %33 {offsets = [0, 0], sizes = [512, 32], strides = [1, 1]} : vector<2048x32xf32> to vector<512x32xf32>
    %35 = vector.broadcast %31 : vector<1x32xf32> to vector<512x32xf32>
    %36 = arith.addf %34, %35 : vector<512x32xf32>
    %37 = vector.extract_strided_slice %33 {offsets = [512, 0], sizes = [512, 32], strides = [1, 1]} : vector<2048x32xf32> to vector<512x32xf32>
    %38 = vector.extract_strided_slice %33 {offsets = [1024, 0], sizes = [512, 32], strides = [1, 1]} : vector<2048x32xf32> to vector<512x32xf32>
    %39 = vector.extract_strided_slice %33 {offsets = [1536, 0], sizes = [512, 32], strides = [1, 1]} : vector<2048x32xf32> to vector<512x32xf32>
    %40 = math.tanh %36 : vector<512x32xf32>
    %41 = arith.mulf %40, %40 : vector<512x32xf32>
    %cst_11 = arith.constant 1.000000e+00 : f32
    %42 = vector.broadcast %cst_11 : f32 to vector<512x32xf32>
    %43 = arith.subf %42, %41 : vector<512x32xf32>
    %44 = arith.mulf %43, %37 : vector<512x32xf32>
    %45 = arith.mulf %43, %38 : vector<512x32xf32>
    %46 = arith.mulf %43, %39 : vector<512x32xf32>
    %cst_12 = arith.constant 2.000000e+00 : f32
    %47 = vector.broadcast %cst_12 : f32 to vector<512x32xf32>
    %48 = arith.mulf %47, %40 : vector<512x32xf32>
    %49 = arith.mulf %48, %43 : vector<512x32xf32>
    %50 = arith.mulf %49, %38 : vector<512x32xf32>
    %51 = arith.mulf %50, %38 : vector<512x32xf32>
    %52 = arith.subf %46, %51 : vector<512x32xf32>
    %c0_13 = arith.constant 0 : index
    %c0_14 = arith.constant 0 : index
    %53 = vector.load %arg6[%c0_13, %c0_14] : memref<32x1xf32, #tpu.memory_space<vmem>>, vector<32x1xf32>
    %c0_15 = arith.constant 0 : index
    %c0_16 = arith.constant 0 : index
    %54 = vector.load %arg7[%c0_15, %c0_16] : memref<1x1xf32, #tpu.memory_space<vmem>>, vector<1x1xf32>
    %55 = tpu.concatenate %40, %44, %45, %52 in 0 : vector<512x32xf32>, vector<512x32xf32>, vector<512x32xf32>, vector<512x32xf32> -> vector<2048x32xf32>
    %cst_17 = arith.constant dense<0.000000e+00> : vector<2048x1xf32>
    %56 = tpu.matmul %55, %53, %cst_17 {dimension_numbers = #tpu.dot_dimension_numbers<[1], [0], [0], [1], [0, 0, 1, 1], [], []>} : vector<2048x32xf32>, vector<32x1xf32>, vector<2048x1xf32> -> vector<2048x1xf32>
    %57 = vector.extract_strided_slice %56 {offsets = [0, 0], sizes = [512, 1], strides = [1, 1]} : vector<2048x1xf32> to vector<512x1xf32>
    %58 = vector.broadcast %54 : vector<1x1xf32> to vector<512x1xf32>
    %59 = arith.addf %57, %58 : vector<512x1xf32>
    %60 = vector.extract_strided_slice %56 {offsets = [512, 0], sizes = [512, 1], strides = [1, 1]} : vector<2048x1xf32> to vector<512x1xf32>
    %61 = vector.extract_strided_slice %56 {offsets = [1024, 0], sizes = [512, 1], strides = [1, 1]} : vector<2048x1xf32> to vector<512x1xf32>
    %62 = vector.extract_strided_slice %56 {offsets = [1536, 0], sizes = [512, 1], strides = [1, 1]} : vector<2048x1xf32> to vector<512x1xf32>
    %cst_18 = arith.constant 1.000000e+00 : f32
    %63 = vector.broadcast %cst_18 : f32 to vector<512x1xf32>
    %64 = tpu.concatenate %63, %61, %62 in 1 : vector<512x1xf32>, vector<512x1xf32>, vector<512x1xf32> -> vector<512x3xf32>
    %cst_19 = arith.constant 0.000000e+00 : f32
    %65 = vector.broadcast %cst_19 : f32 to vector<512x5xf32>
    %66 = vector.broadcast %59 : vector<512x1xf32> to vector<512x3xf32>
    %67 = arith.mulf %66, %64 : vector<512x3xf32>
    %68 = arith.mulf %59, %59 : vector<512x1xf32>
    %69 = vector.broadcast %68 : vector<512x1xf32> to vector<512x3xf32>
    %70 = arith.mulf %69, %64 : vector<512x3xf32>
    %71 = tpu.concatenate %59, %60, %64, %67, %70, %65 in 1 : vector<512x1xf32>, vector<512x1xf32>, vector<512x3xf32>, vector<512x3xf32>, vector<512x3xf32>, vector<512x5xf32> -> vector<512x16xf32>
    %c0_20 = arith.constant 0 : index
    %c0_21 = arith.constant 0 : index
    %72 = vector.load %arg8[%c0_20, %c0_21] : memref<512x16xf32, #tpu.memory_space<vmem>>, vector<512x16xf32>
    tpu.vector_store %arg8[%c0_20, %c0_21], %71 {strides = array<i32>} : memref<512x16xf32, #tpu.memory_space<vmem>>, vector<512x16xf32>,
    return
  }
  func.func @transform_0(%arg0: i32) -> (i32, i32) {
    %c0_i32 = arith.constant 0 : i32
    %c0_i32_0 = arith.constant 0 : i32
    return %arg0, %c0_i32 : i32, i32
  }
  func.func @transform_1(%arg0: i32) -> (i32, i32) {
    %c0_i32 = arith.constant 0 : i32
    %c0_i32_0 = arith.constant 0 : i32
    %c0_i32_1 = arith.constant 0 : i32
    return %c0_i32, %c0_i32_0 : i32, i32
  }
  func.func @transform_2(%arg0: i32) -> (i32, i32) {
    %c0_i32 = arith.constant 0 : i32
    %c0_i32_0 = arith.constant 0 : i32
    %c0_i32_1 = arith.constant 0 : i32
    return %c0_i32, %c0_i32_0 : i32, i32
  }
  func.func @transform_3(%arg0: i32) -> (i32, i32) {
    %c0_i32 = arith.constant 0 : i32
    %c0_i32_0 = arith.constant 0 : i32
    %c0_i32_1 = arith.constant 0 : i32
    return %c0_i32, %c0_i32_0 : i32, i32
  }
  func.func @transform_4(%arg0: i32) -> (i32, i32) {
    %c0_i32 = arith.constant 0 : i32
    %c0_i32_0 = arith.constant 0 : i32
    %c0_i32_1 = arith.constant 0 : i32
    return %c0_i32, %c0_i32_0 : i32, i32
  }
  func.func @transform_5(%arg0: i32) -> (i32, i32) {
    %c0_i32 = arith.constant 0 : i32
    %c0_i32_0 = arith.constant 0 : i32
    %c0_i32_1 = arith.constant 0 : i32
    return %c0_i32, %c0_i32_0 : i32, i32
  }
  func.func @transform_6(%arg0: i32) -> (i32, i32) {
    %c0_i32 = arith.constant 0 : i32
    %c0_i32_0 = arith.constant 0 : i32
    %c0_i32_1 = arith.constant 0 : i32
    return %c0_i32, %c0_i32_0 : i32, i32
  }
  func.func @transform_7(%arg0: i32) -> (i32, i32) {
    %c0_i32 = arith.constant 0 : i32
    %c0_i32_0 = arith.constant 0 : i32
    return %arg0, %c0_i32 : i32, i32
  }
}

</mosaic_0001>

<bundles_post_ra>
// kernel: tpu_custom_call.1
= control target key start
LH: loop header
LB: loop body
LE: loop exit
PB: predicated region body
PF: predicated region fallthrough
CT: control target
= control target key end

     0   :  { %s11901_s26 = smov 0   ;;  %s18697_s0 = inlined_call_operand.vmem [shape: f32[1024,2], index: 0, kind: input, shape index: {}]   ;;  %s18698_s1 = inlined_call_operand.vmem [shape: f32[2,32], index: 1, kind: input, shape index: {}]   ;;  %s18699_s2 = inlined_call_operand.vmem [shape: f32[1,32], index: 2, kind: input, shape index: {}]   ;;  %s18700_s3 = inlined_call_operand.vmem [shape: f32[32,32], index: 3, kind: input, shape index: {}]   ;;  %s18701_s4 = inlined_call_operand.vmem [shape: f32[1,32], index: 4, kind: input, shape index: {}]   ;;  %s18702_s5 = inlined_call_operand.vmem [shape: f32[32,1], index: 5, kind: input, shape index: {}]   ;;  %s18703_s6 = inlined_call_operand.<no memory space> [shape: f32[1,1], index: 6, kind: input, shape index: {}]   ;;  %s18704_s7 = inlined_call_operand.vmem [shape: f32[1024,16], index: 7, kind: output, shape index: {}]  }
   0x1   :  { %v12_v0 = vstv %s18703_s6 }
   0x2   :  { %13 = vst [vmem:[#allocation2] sm:$0x1] %v12_v0 }
   0x3 LB: > { %s9736_s27 = sadd.s32 4294967295, %s11850_s26   ;;  %p9740_p0 = scmp.ge.s32.totalorder %s11850_s26, 1  ;;  %s11850_s26 = sphi %s11901_s26, %s19_s26  }
   0x4   : > { %p240_p1 = scmp.lt.s32.totalorder %s11850_s26, 3 }
   0x6   : > { %p241_p2 = pnand %p9740_p0, %p240_p1 }
   0x8   : > { %244 = sbr.rel (%p241_p2) target bundleno = 1865 (0x749), region = 48 }
   0xd   : > { %s9741_s28 = sshll.u32 %s9736_s27, 6  ;;  %v11852_v1 = vmov 1   ;;  %v18705_v2 = vmov 0   ;;  %v669_v9 = vlaneseq  ;;  %v11940_v13 = vld [vmem:[%s18698_s1] sm:$0x3]  ;;  %v1716_v55 = vld [vmem:[%s18700_s3 + $0x18] sm:$0xff] }
   0xe   : > { %11581 = vset.pattern.permute.xlu0 %v11852_v1  ;;  %11580 = vset.pattern.permute.xlu1 %v18705_v2  ;;  %p273_p3 = scmp.lt.s32.totalorder %s9741_s28, 127  ;;  %v1644_v15 = vmul.f32 %v11940_v13, %v11940_v13  ;;  %v1715_v59 = vld [vmem:[%s18700_s3 + $0x10] sm:$0xff]  ;;  %v1714_v60 = vld [vmem:[%s18700_s3 + $0x8] sm:$0xff]  ;;  %v1713_v0 = vld [vmem:[%s18700_s3] sm:$0xff]  ;;  %vm1718_vm0 = vcmask 261120   ;;  %s11854_s12 = smov 1  }
   0xf   : > { %v11934_v11 = vshrl.u32 %v669_v9, 7  ;;  %10782 = vmatprep.subr.mxu0 %v1716_v55  ;;  %s11855_s13 = smov 2   ;;  %vm7371_vm1 = vcmask 15360   ;;  %vm7306_vm2 = vcmask 7168   ;;  %s11856_s14 = smov 5   ;;  %vm9420_vm3 = vcmask 39936  }
  0x10   : > { %s20580_s28 = smov (!%p273_p3, %s9741_s28), 127  ;;  %10783 = vmatpush3.msra.mxu0 %v1716_v55  ;;  %s11857_s15 = smov 8   ;;  %vm9485_vm4 = vcmask 64512   ;;  %vm9550_vm5 = vcmask 89088   ;;  %vm9615_vm6 = vcmask 130048  }
  0x11   : > { %s9742_s6 = sshll.u32 %s20580_s28, 3  ;;  %v18706_v14 = vsub.s32 1, %v11934_v11  ;;  %10784 = vmatprep.subr.mxu0 %v1715_v59 }
  0x12   : > { %s11919_s8 = scalar_lea.vmem %s18697_s0, %s9742_s6  ;;  %10785 = vmatpush3.msra.mxu0 %v1715_v59  ;;  %s17310_s18 = scalar_lea.vmem %s18704_s7, %s9742_s6 }
  0x13   : > { %v11922_v3 = vld [vmem:[%s11919_s8 + $0x10] sm:$0xff]  ;;  %v11925_v4 = vld [vmem:[%s11919_s8] sm:$0xff]  ;;  %v287_v5 = vld [vmem:[%s11919_s8 + $0x18] sm:$0xff]  ;;  %v11948_v17 = vrot.slane %v1644_v15, %v18706_v14  ;;  %10786 = vmatprep.subr.mxu0 %v1714_v60 }
  0x14   : > { %361 = vperm.xlu1 %11580, %v11922_v3   ;;  %738 = vperm.xlu0 %11581, %v11925_v4   ;;  %v289_v6 = vld [vmem:[%s11919_s8 + $0x28] sm:$0xff]  ;;  %v291_v7 = vld [vmem:[%s11919_s8 + $0x38] sm:$0xff]  ;;  %v288_v49 = vld [vmem:[%s11919_s8 + $0x20] sm:$0xff] }
  0x15   : > { %v293_v8 = vld [vmem:[%s11919_s8 + $0x48] sm:$0xff]  ;;  %v295_v10 = vld [vmem:[%s11919_s8 + $0x58] sm:$0xff]  ;;  %19104 = vst [vmem:[#allocation3_spill] sm:$0xff] %v11948_v17  ;;  %v290_v52 = vld [vmem:[%s11919_s8 + $0x30] sm:$0xff]  ;;  %10787 = vmatpush3.msra.mxu0 %v1714_v60 }
  0x16   : > { %v297_v12 = vld [vmem:[%s11919_s8 + $0x68] sm:$0xff]  ;;  %v299_v16 = vld [vmem:[%s11919_s8 + $0x78] sm:$0xff]  ;;  %v292_v56 = vld [vmem:[%s11919_s8 + $0x40] sm:$0xff]  ;;  %10788 = vmatprep.subr.mxu0 %v1713_v0 }
  0x17   : > { %v301_v18 = vld [vmem:[%s11919_s8 + $0x88] sm:$0xff]  ;;  %v303_v19 = vld [vmem:[%s11919_s8 + $0x98] sm:$0xff]  ;;  %v294_v61 = vld [vmem:[%s11919_s8 + $0x50] sm:$0xff]  ;;  %10789 = vmatpush3.msra.mxu0 %v1713_v0 }
  0x18   : > { %366 = vperm.xlu1 %11580, %v287_v5   ;;  %750 = vperm.xlu0 %11581, %v287_v5   ;;  %v305_v20 = vld [vmem:[%s11919_s8 + $0xa8] sm:$0xff]  ;;  %v307_v21 = vld [vmem:[%s11919_s8 + $0xb8] sm:$0xff]  ;;  %v298_v5 = vld [vmem:[%s11919_s8 + $0x70] sm:$0xff] }
  0x19   : > { %v309_v22 = vld [vmem:[%s11919_s8 + $0xc8] sm:$0xff]  ;;  %v311_v23 = vld [vmem:[%s11919_s8 + $0xd8] sm:$0xff]  ;;  %v322_v55 = vld [vmem:[%s11919_s8 + $0x130] sm:$0xff] }
  0x1a   : > { %v313_v24 = vld [vmem:[%s11919_s8 + $0xe8] sm:$0xff]  ;;  %v315_v25 = vld [vmem:[%s11919_s8 + $0xf8] sm:$0xff]  ;;  %v324_v60 = vld [vmem:[%s11919_s8 + $0x140] sm:$0xff] }
  0x1b   : > { %v317_v26 = vld [vmem:[%s11919_s8 + $0x108] sm:$0xff]  ;;  %v319_v27 = vld [vmem:[%s11919_s8 + $0x118] sm:$0xff]  ;;  %v340_v17 = vld [vmem:[%s11919_s8 + $0x1c0] sm:$0xff] }
  0x1c   : > { %376 = vperm.xlu1 %11580, %v289_v6   ;;  %758 = vperm.xlu0 %11581, %v289_v6   ;;  %v321_v28 = vld [vmem:[%s11919_s8 + $0x128] sm:$0xff]  ;;  %v323_v29 = vld [vmem:[%s11919_s8 + $0x138] sm:$0xff] }
  0x1d   : > { %v325_v30 = vld [vmem:[%s11919_s8 + $0x148] sm:$0xff]  ;;  %v327_v31 = vld [vmem:[%s11919_s8 + $0x158] sm:$0xff] }
  0x1e   : > { %v329_v32 = vld [vmem:[%s11919_s8 + $0x168] sm:$0xff]  ;;  %v331_v33 = vld [vmem:[%s11919_s8 + $0x178] sm:$0xff] }
  0x1f   : > { %v333_v34 = vld [vmem:[%s11919_s8 + $0x188] sm:$0xff]  ;;  %v335_v35 = vld [vmem:[%s11919_s8 + $0x198] sm:$0xff] }
  0x20   : > { %386 = vperm.xlu1 %11580, %v291_v7   ;;  %766 = vperm.xlu0 %11581, %v291_v7   ;;  %v337_v36 = vld [vmem:[%s11919_s8 + $0x1a8] sm:$0xff]  ;;  %v339_v37 = vld [vmem:[%s11919_s8 + $0x1b8] sm:$0xff] }
  0x21   : > { %v341_v38 = vld [vmem:[%s11919_s8 + $0x1c8] sm:$0xff]  ;;  %v343_v39 = vld [vmem:[%s11919_s8 + $0x1d8] sm:$0xff] }
  0x22   : > { %v345_v40 = vld [vmem:[%s11919_s8 + $0x1e8] sm:$0xff]  ;;  %v347_v41 = vld [vmem:[%s11919_s8 + $0x1f8] sm:$0xff] }
  0x23   : > { %v285_v44 = vld [vmem:[%s11919_s8 + $0x8] sm:$0xff] }
  0x24   : > { %396 = vperm.xlu1 %11580, %v293_v8   ;;  %774 = vperm.xlu0 %11581, %v293_v8   ;;  %v300_v8 = vld [vmem:[%s11919_s8 + $0x80] sm:$0xff] }
  0x28   : > { %406 = vperm.xlu1 %11580, %v295_v10   ;;  %782 = vperm.xlu0 %11581, %v295_v10  }
  0x2c   : > { %416 = vperm.xlu1 %11580, %v297_v12   ;;  %790 = vperm.xlu0 %11581, %v297_v12   ;;  %v302_v12 = vld [vmem:[%s11919_s8 + $0x90] sm:$0xff] }
  0x30   : > { %426 = vperm.xlu1 %11580, %v299_v16   ;;  %798 = vperm.xlu0 %11581, %v299_v16  }
  0x34   : > { %436 = vperm.xlu1 %11580, %v301_v18   ;;  %806 = vperm.xlu0 %11581, %v301_v18   ;;  %v304_v18 = vld [vmem:[%s11919_s8 + $0xa0] sm:$0xff] }
  0x38   : > { %446 = vperm.xlu1 %11580, %v303_v19   ;;  %814 = vperm.xlu0 %11581, %v303_v19  }
  0x3c   : > { %456 = vperm.xlu1 %11580, %v305_v20   ;;  %822 = vperm.xlu0 %11581, %v305_v20  }
  0x40   : > { %466 = vperm.xlu1 %11580, %v307_v21   ;;  %830 = vperm.xlu0 %11581, %v307_v21   ;;  %v306_v21 = vld [vmem:[%s11919_s8 + $0xb0] sm:$0xff] }
  0x44   : > { %476 = vperm.xlu1 %11580, %v309_v22   ;;  %838 = vperm.xlu0 %11581, %v309_v22  }
  0x48   : > { %486 = vperm.xlu1 %11580, %v311_v23   ;;  %846 = vperm.xlu0 %11581, %v311_v23  }
  0x4c   : > { %496 = vperm.xlu1 %11580, %v313_v24   ;;  %854 = vperm.xlu0 %11581, %v313_v24   ;;  %v308_v24 = vld [vmem:[%s11919_s8 + $0xc0] sm:$0xff] }
  0x50   : > { %506 = vperm.xlu1 %11580, %v315_v25   ;;  %862 = vperm.xlu0 %11581, %v315_v25  }
  0x54   : > { %516 = vperm.xlu1 %11580, %v317_v26   ;;  %870 = vperm.xlu0 %11581, %v317_v26  }
  0x58   : > { %526 = vperm.xlu1 %11580, %v319_v27   ;;  %878 = vperm.xlu0 %11581, %v319_v27   ;;  %v310_v27 = vld [vmem:[%s11919_s8 + $0xd0] sm:$0xff] }
  0x5c   : > { %536 = vperm.xlu1 %11580, %v321_v28   ;;  %886 = vperm.xlu0 %11581, %v321_v28  }
  0x60   : > { %546 = vperm.xlu1 %11580, %v323_v29   ;;  %894 = vperm.xlu0 %11581, %v323_v29  }
  0x64   : > { %556 = vperm.xlu1 %11580, %v325_v30   ;;  %902 = vperm.xlu0 %11581, %v325_v30   ;;  %v312_v30 = vld [vmem:[%s11919_s8 + $0xe0] sm:$0xff] }
  0x68   : > { %566 = vperm.xlu1 %11580, %v327_v31   ;;  %910 = vperm.xlu0 %11581, %v327_v31  }
  0x6c   : > { %576 = vperm.xlu1 %11580, %v329_v32   ;;  %918 = vperm.xlu0 %11581, %v329_v32  }
  0x70   : > { %586 = vperm.xlu1 %11580, %v331_v33   ;;  %926 = vperm.xlu0 %11581, %v331_v33   ;;  %v314_v33 = vld [vmem:[%s11919_s8 + $0xf0] sm:$0xff] }
  0x74   : > { %596 = vperm.xlu1 %11580, %v333_v34   ;;  %934 = vperm.xlu0 %11581, %v333_v34  }
  0x78   : > { %606 = vperm.xlu1 %11580, %v335_v35   ;;  %942 = vperm.xlu0 %11581, %v335_v35  }
  0x7c   : > { %616 = vperm.xlu1 %11580, %v337_v36   ;;  %950 = vperm.xlu0 %11581, %v337_v36   ;;  %v316_v36 = vld [vmem:[%s11919_s8 + $0x100] sm:$0xff] }
  0x80   : > { %626 = vperm.xlu1 %11580, %v339_v37   ;;  %958 = vperm.xlu0 %11581, %v339_v37  }
  0x84   : > { %636 = vperm.xlu1 %11580, %v341_v38   ;;  %966 = vperm.xlu0 %11581, %v341_v38  }
  0x88   : > { %646 = vperm.xlu1 %11580, %v343_v39   ;;  %974 = vperm.xlu0 %11581, %v343_v39   ;;  %v318_v39 = vld [vmem:[%s11919_s8 + $0x110] sm:$0xff] }
  0x8c   : > { %656 = vperm.xlu1 %11580, %v345_v40   ;;  %982 = vperm.xlu0 %11581, %v345_v40  }
  0x8f   : > { %v11974_v42 = vpop.permute.xlu1 %361  ;;  %v11976_v43 = vpop.permute.xlu0 %738 }
  0x90   : > { %666 = vperm.xlu1 %11580, %v347_v41   ;;  %990 = vperm.xlu0 %11581, %v347_v41  }
  0x93   : > { %v11979_v45 = vpop.permute.xlu1 %366  ;;  %v11981_v46 = vpop.permute.xlu0 %750 }
  0x94   : > { %11582 = vset.pattern.permute.xlu1 %v11852_v1  ;;  %11583 = vset.pattern.permute.xlu0 %v18705_v2  ;;  %v296_v1 = vld [vmem:[%s11919_s8 + $0x60] sm:$0xff]  ;;  %v338_v2 = vld [vmem:[%s11919_s8 + $0x1b0] sm:$0xff] }
  0x95   : > { %742 = vperm.xlu1 %11582, %v285_v44   ;;  %351 = vperm.xlu0 %11583, %v11925_v4  }
  0x97   : > { %v11986_v47 = vpop.permute.xlu1 %376  ;;  %v11988_v48 = vpop.permute.xlu0 %758 }
  0x99   : > { %746 = vperm.xlu1 %11582, %v11922_v3   ;;  %356 = vperm.xlu0 %11583, %v285_v44   ;;  %v320_v44 = vld [vmem:[%s11919_s8 + $0x120] sm:$0xff] }
  0x9b   : > { %v11992_v50 = vpop.permute.xlu1 %386  ;;  %v11994_v51 = vpop.permute.xlu0 %766 }
  0x9d   : > { %754 = vperm.xlu1 %11582, %v288_v49   ;;  %371 = vperm.xlu0 %11583, %v288_v49  }
  0x9f   : > { %v11997_v53 = vpop.permute.xlu1 %396  ;;  %v11999_v54 = vpop.permute.xlu0 %774 }
  0xa1   : > { %762 = vperm.xlu1 %11582, %v290_v52   ;;  %381 = vperm.xlu0 %11583, %v290_v52  }
  0xa3   : > { %v12005_v57 = vpop.permute.xlu1 %406  ;;  %v12007_v58 = vpop.permute.xlu0 %782 }
  0xa5   : > { %770 = vperm.xlu1 %11582, %v292_v56   ;;  %391 = vperm.xlu0 %11583, %v292_v56  }
  0xa7   : > { %v12016_v62 = vpop.permute.xlu1 %416  ;;  %v12018_v63 = vpop.permute.xlu0 %790 }
  0xa9   : > { %778 = vperm.xlu1 %11582, %v294_v61   ;;  %401 = vperm.xlu0 %11583, %v294_v61  }
  0xab   : > { %v12024_v3 = vpop.permute.xlu1 %426  ;;  %v12026_v4 = vpop.permute.xlu0 %798 }
  0xad   : > { %786 = vperm.xlu1 %11582, %v296_v1   ;;  %411 = vperm.xlu0 %11583, %v296_v1   ;;  %v326_v1 = vld [vmem:[%s11919_s8 + $0x150] sm:$0xff] }
  0xaf   : > { %v12029_v6 = vpop.permute.xlu1 %436  ;;  %v12031_v7 = vpop.permute.xlu0 %806 }
  0xb1   : > { %794 = vperm.xlu1 %11582, %v298_v5   ;;  %421 = vperm.xlu0 %11583, %v298_v5  }
  0xb3   : > { %v12034_v9 = vpop.permute.xlu1 %446  ;;  %v12036_v10 = vpop.permute.xlu0 %814 }
  0xb5   : > { %802 = vperm.xlu1 %11582, %v300_v8   ;;  %431 = vperm.xlu0 %11583, %v300_v8  }
  0xb7   : > { %v12039_v15 = vpop.permute.xlu1 %456  ;;  %v12041_v16 = vpop.permute.xlu0 %822 }
  0xb9   : > { %810 = vperm.xlu1 %11582, %v302_v12   ;;  %441 = vperm.xlu0 %11583, %v302_v12   ;;  %v328_v12 = vld [vmem:[%s11919_s8 + $0x160] sm:$0xff] }
  0xbb   : > { %v12044_v19 = vpop.permute.xlu1 %466  ;;  %v12046_v20 = vpop.permute.xlu0 %830 }
  0xbd   : > { %818 = vperm.xlu1 %11582, %v304_v18   ;;  %451 = vperm.xlu0 %11583, %v304_v18  }
  0xbf   : > { %v12049_v22 = vpop.permute.xlu1 %476  ;;  %v12051_v23 = vpop.permute.xlu0 %838 }
  0xc1   : > { %826 = vperm.xlu1 %11582, %v306_v21   ;;  %461 = vperm.xlu0 %11583, %v306_v21  }
  0xc3   : > { %v12054_v25 = vpop.permute.xlu1 %486  ;;  %v12056_v26 = vpop.permute.xlu0 %846 }
  0xc5   : > { %834 = vperm.xlu1 %11582, %v308_v24   ;;  %471 = vperm.xlu0 %11583, %v308_v24   ;;  %v330_v24 = vld [vmem:[%s11919_s8 + $0x170] sm:$0xff] }
  0xc7   : > { %v12059_v28 = vpop.permute.xlu1 %496  ;;  %v12061_v29 = vpop.permute.xlu0 %854 }
  0xc9   : > { %842 = vperm.xlu1 %11582, %v310_v27   ;;  %481 = vperm.xlu0 %11583, %v310_v27  }
  0xcb   : > { %v12064_v31 = vpop.permute.xlu1 %506  ;;  %v12066_v32 = vpop.permute.xlu0 %862 }
  0xcd   : > { %850 = vperm.xlu1 %11582, %v312_v30   ;;  %491 = vperm.xlu0 %11583, %v312_v30  }
  0xcf   : > { %v12069_v34 = vpop.permute.xlu1 %516  ;;  %v12071_v35 = vpop.permute.xlu0 %870 }
  0xd1   : > { %858 = vperm.xlu1 %11582, %v314_v33   ;;  %501 = vperm.xlu0 %11583, %v314_v33   ;;  %v332_v33 = vld [vmem:[%s11919_s8 + $0x180] sm:$0xff] }
  0xd3   : > { %v12074_v37 = vpop.permute.xlu1 %526  ;;  %v12076_v38 = vpop.permute.xlu0 %878 }
  0xd5   : > { %866 = vperm.xlu1 %11582, %v316_v36   ;;  %511 = vperm.xlu0 %11583, %v316_v36  }
  0xd7   : > { %v12079_v40 = vpop.permute.xlu1 %536  ;;  %v12081_v41 = vpop.permute.xlu0 %886 }
  0xd9   : > { %874 = vperm.xlu1 %11582, %v318_v39   ;;  %521 = vperm.xlu0 %11583, %v318_v39  }
  0xdb   : > { %v12084_v49 = vpop.permute.xlu1 %546  ;;  %v12086_v52 = vpop.permute.xlu0 %894 }
  0xdd   : > { %882 = vperm.xlu1 %11582, %v320_v44   ;;  %531 = vperm.xlu0 %11583, %v320_v44   ;;  %v334_v44 = vld [vmem:[%s11919_s8 + $0x190] sm:$0xff] }
  0xdf   : > { %v12089_v56 = vpop.permute.xlu1 %556  ;;  %v12091_v59 = vpop.permute.xlu0 %902 }
  0xe1   : > { %890 = vperm.xlu1 %11582, %v322_v55   ;;  %541 = vperm.xlu0 %11583, %v322_v55  }
  0xe3   : > { %v12094_v61 = vpop.permute.xlu1 %566  ;;  %v12096_v0 = vpop.permute.xlu0 %910 }
  0xe5   : > { %898 = vperm.xlu1 %11582, %v324_v60   ;;  %551 = vperm.xlu0 %11583, %v324_v60  }
  0xe7   : > { %v12099_v5 = vpop.permute.xlu1 %576  ;;  %v12101_v8 = vpop.permute.xlu0 %918 }
  0xe9   : > { %906 = vperm.xlu1 %11582, %v326_v1   ;;  %561 = vperm.xlu0 %11583, %v326_v1   ;;  %v336_v1 = vld [vmem:[%s11919_s8 + $0x1a0] sm:$0xff] }
  0xeb   : > { %v12104_v18 = vpop.permute.xlu1 %586  ;;  %v12106_v21 = vpop.permute.xlu0 %926 }
  0xec   : > { %19105 = vst [vmem:[#allocation4_spill] sm:$0xff] %v12104_v18  ;;  %19106 = vst [vmem:[#allocation5_spill] sm:$0xff] %v12106_v21 }
  0xed   : > { %914 = vperm.xlu1 %11582, %v328_v12   ;;  %571 = vperm.xlu0 %11583, %v328_v12  }
  0xef   : > { %v12109_v27 = vpop.permute.xlu1 %596  ;;  %v12111_v30 = vpop.permute.xlu0 %934 }
  0xf0   : > { %19107 = vst [vmem:[#allocation6_spill] sm:$0xff] %v12109_v27  ;;  %19108 = vst [vmem:[#allocation7_spill] sm:$0xff] %v12111_v30 }
  0xf1   : > { %922 = vperm.xlu1 %11582, %v330_v24   ;;  %581 = vperm.xlu0 %11583, %v330_v24  }
  0xf3   : > { %v12114_v36 = vpop.permute.xlu1 %606  ;;  %v12116_v39 = vpop.permute.xlu0 %942 }
  0xf4   : > { %19109 = vst [vmem:[#allocation8_spill] sm:$0xff] %v12114_v36  ;;  %19110 = vst [vmem:[#allocation9_spill] sm:$0xff] %v12116_v39  ;;  %v19125_v36 = vmov 0  }
  0xf5   : > { %930 = vperm.xlu1 %11582, %v332_v33   ;;  %591 = vperm.xlu0 %11583, %v332_v33  }
  0xf7   : > { %v12119_v55 = vpop.permute.xlu1 %616  ;;  %v12121_v60 = vpop.permute.xlu0 %950 }
  0xf8   : > { %19111 = vst [vmem:[#allocation10_spill] sm:$0xff] %v12119_v55  ;;  %19112 = vst [vmem:[#allocation11_spill] sm:$0xff] %v12121_v60 }
  0xf9   : > { %938 = vperm.xlu1 %11582, %v334_v44   ;;  %601 = vperm.xlu0 %11583, %v334_v44  }
  0xfb   : > { %v12124_v12 = vpop.permute.xlu1 %626  ;;  %v12126_v24 = vpop.permute.xlu0 %958 }
  0xfc   : > { %19113 = vst [vmem:[#allocation12_spill] sm:$0xff] %v12124_v12  ;;  %19114 = vst [vmem:[#allocation13_spill] sm:$0xff] %v12126_v24  ;;  %v342_v12 = vld [vmem:[%s11919_s8 + $0x1d0] sm:$0xff] }
  0xfd   : > { %946 = vperm.xlu1 %11582, %v336_v1   ;;  %611 = vperm.xlu0 %11583, %v336_v1  }
  0xff   : > { %v12129_v14 = vpop.permute.xlu1 %636  ;;  %v12131_v33 = vpop.permute.xlu0 %966 }
 0x100   : > { %19115 = vst [vmem:[#allocation14_spill] sm:$0xff] %v12129_v14  ;;  %19116 = vst [vmem:[#allocation15_spill] sm:$0xff] %v12131_v33  ;;  %v344_v14 = vld [vmem:[%s11919_s8 + $0x1e0] sm:$0xff]  ;;  %v671_v33 = vsub.s32 0, %v11934_v11 }
 0x101   : > { %954 = vperm.xlu1 %11582, %v338_v2   ;;  %621 = vperm.xlu0 %11583, %v338_v2  }
 0x103   : > { %v12134_v60 = vpop.permute.xlu1 %646  ;;  %v12136_v44 = vpop.permute.xlu0 %974 }
 0x104   : > { %19117 = vst [vmem:[#allocation16_spill] sm:$0xff] %v12134_v60  ;;  %19118 = vst [vmem:[#allocation17_spill] sm:$0xff] %v12136_v44  ;;  %v19123_v60 = vsub.s32 1, %v11934_v11 }
 0x105   : > { %962 = vperm.xlu1 %11582, %v340_v17   ;;  %631 = vperm.xlu0 %11583, %v340_v17   ;;  %v346_v17 = vld [vmem:[%s11919_s8 + $0x1f0] sm:$0xff] }
 0x106   : > { %v12152_v44 = vrot.slane %v11940_v13, %v19123_v60 }
 0x107   : > { %v12139_v24 = vpop.permute.xlu1 %656  ;;  %v12141_v1 = vpop.permute.xlu0 %982 }
 0x108   : > { %19119 = vst [vmem:[#allocation18_spill] sm:$0xff] %v12139_v24  ;;  %19120 = vst [vmem:[#allocation19_spill] sm:$0xff] %v12141_v1  ;;  %v12156_v24 = vrot.slane %v11940_v13, %v671_v33  ;;  %v997_v39 = vmul.f32 %v12152_v44, %v11976_v43  ;;  %v12167_v13 = vld [vmem:[%s18699_s2] ss:$0 sm:$0xff]  ;;  %v1002_v33 = vmul.f32 %v12152_v44, %v11988_v48 }
 0x109   : > { %970 = vperm.xlu1 %11582, %v342_v12   ;;  %641 = vperm.xlu0 %11583, %v342_v12   ;;  %19124 = vst [vmem:[#allocation22_spill] sm:$0xff] %v12152_v44 }
 0x10a   : > { %v676_v60 = vmul.f32 %v12156_v24, %v11979_v45  ;;  %v678_v43 = vmul.f32 %v12156_v24, %v11986_v47  ;;  %v1004_v47 = vmul.f32 %v12152_v44, %v11994_v51 }
 0x10b   : > { %v12145_v55 = vpop.permute.xlu1 %666  ;;  %v12147_v2 = vpop.permute.xlu0 %990 }
 0x10c   : > { %19121 = vst [vmem:[#allocation20_spill] sm:$0xff] %v12145_v55  ;;  %19122 = vst [vmem:[#allocation21_spill] sm:$0xff] %v12147_v2  ;;  %v1066_v21 = vadd.f32 %v1002_v33, %v678_v43 }
 0x10d   : > { %978 = vperm.xlu1 %11582, %v344_v14   ;;  %651 = vperm.xlu0 %11583, %v344_v14   ;;  %v1000_v14 = vmul.f32 %v12152_v44, %v11981_v46  ;;  %v680_v46 = vmul.f32 %v12156_v24, %v11992_v50 }
 0x10f   : > { %v1064_v27 = vadd.f32 %v1000_v14, %v676_v60 }
 0x110   : > { %v743_v1 = vpop.permute.xlu1 %742  ;;  %v352_v12 = vpop.permute.xlu0 %351 }
 0x111   : > { %v673_v55 = vmul.f32 %v12156_v24, %v352_v12  ;;  %986 = vperm.xlu1 %11582, %v346_v17   ;;  %661 = vperm.xlu0 %11583, %v346_v17   ;;  %v998_v11 = vmul.f32 %v12152_v44, %v743_v1 }
 0x113   : > { %v1061_v2 = vadd.f32 %v997_v39, %v673_v55  ;;  %v675_v39 = vmul.f32 %v12156_v24, %v11974_v42  ;;  %v682_v42 = vmul.f32 %v12156_v24, %v11997_v53  ;;  %v1008_v53 = vmul.f32 %v12152_v44, %v12007_v58 }
 0x114   : > { %v747_v17 = vpop.permute.xlu1 %746  ;;  %v357_v1 = vpop.permute.xlu0 %356 }
 0x115   : > { %v1132_v45 = vadd.f32 %v12167_v13, %v1061_v2  ;;  %v999_v55 = vmul.f32 %v12152_v44, %v747_v17  ;;  %v674_v12 = vmul.f32 %v12156_v24, %v357_v1  ;;  %11584 = vset.pattern.permute.xlu1 %v19125_v36  ;;  %v1006_v2 = vmul.f32 %v12152_v44, %v11999_v54 }
 0x116   : > { %v1135_v54 = vadd.f32 %v12167_v13, %v1064_v27 }
 0x117   : > { %11585 = vtanh.f32 %v1132_v45  ;;  %v1063_v48 = vadd.f32 %v999_v55, %v675_v39  ;;  %v1062_v30 = vadd.f32 %v998_v11, %v674_v12  ;;  %v1068_v39 = vadd.f32 %v1004_v47, %v680_v46 }
 0x118   : > { %v755_v17 = vpop.permute.xlu1 %754  ;;  %v372_v1 = vpop.permute.xlu0 %371  ;;  %v684_v11 = vmul.f32 %v12156_v24, %v12005_v57  ;;  %v1070_v14 = vadd.f32 %v1006_v2, %v682_v42 }
 0x119   : > { %v1134_v36 = vadd.f32 %v12167_v13, %v1063_v48  ;;  %v1133_v50 = vadd.f32 %v12167_v13, %v1062_v30  ;;  %v1001_v18 = vmul.f32 %v12152_v44, %v755_v17  ;;  %v677_v51 = vmul.f32 %v12156_v24, %v372_v1 }
 0x11a   : > { %v1137_v30 = vadd.f32 %v12167_v13, %v1066_v21  ;;  %v1139_v57 = vadd.f32 %v12167_v13, %v1068_v39  ;;  %v1072_v46 = vadd.f32 %v1008_v53, %v684_v11 }
 0x11b   : > { %11587 = vtanh.f32 %v1134_v36  ;;  %v1065_v60 = vadd.f32 %v1001_v18, %v677_v51  ;;  %v1141_v18 = vadd.f32 %v12167_v13, %v1070_v14  ;;  %v686_v36 = vmul.f32 %v12156_v24, %v12016_v62 }
 0x11c   : > { %11589 = vtanh.f32 %v1133_v50  ;;  %v763_v43 = vpop.permute.xlu1 %762  ;;  %v382_v33 = vpop.permute.xlu0 %381  ;;  %v1143_v2 = vadd.f32 %v12167_v13, %v1072_v46  ;;  %v1010_v50 = vmul.f32 %v12152_v44, %v12018_v63  ;;  %v688_v63 = vmul.f32 %v12156_v24, %v12024_v3 }
 0x11d   : > { %v1136_v45 = vadd.f32 %v12167_v13, %v1065_v60  ;;  %v1003_v55 = vmul.f32 %v12152_v44, %v763_v43  ;;  %v679_v12 = vmul.f32 %v12156_v24, %v382_v33  ;;  %v690_v46 = vmul.f32 %v12156_v24, %v12029_v6 }
 0x11e   : > { %v1074_v33 = vadd.f32 %v1010_v50, %v686_v36 }
 0x11f   : > { %11591 = vtanh.f32 %v1136_v45  ;;  %v1067_v58 = vadd.f32 %v1003_v55, %v679_v12 }
 0x120   : > { %11593 = vtanh.f32 %v1135_v54  ;;  %v771_v27 = vpop.permute.xlu1 %770  ;;  %v392_v47 = vpop.permute.xlu0 %391 }
 0x121   : > { %11595 = vtanh.f32 %v1137_v30  ;;  %v1138_v48 = vadd.f32 %v12167_v13, %v1067_v58  ;;  %v1005_v21 = vmul.f32 %v12152_v44, %v771_v27  ;;  %v681_v42 = vmul.f32 %v12156_v24, %v392_v47 }
 0x122   : > { %11597 = vtanh.f32 %v1139_v57  ;;  %v1012_v30 = vmul.f32 %v12152_v44, %v12026_v4  ;;  %v1014_v47 = vmul.f32 %v12152_v44, %v12031_v7 }
 0x123   : > { %11599 = vtanh.f32 %v1138_v48  ;;  %v1069_v17 = vadd.f32 %v1005_v21, %v681_v42  ;;  %v1145_v42 = vadd.f32 %v12167_v13, %v1074_v33  ;;  %v692_v33 = vmul.f32 %v12156_v24, %v12034_v9 }
 0x124   : > { %v11586_v1 = vpop.eup %11585  ;;  %11601 = vtanh.f32 %v1141_v18  ;;  %v779_v51 = vpop.permute.xlu1 %778  ;;  %v694_v9 = vmul.f32 %v12156_v24, %v12039_v15 }
 0x125   : > { %v402_v39 = vpop.permute.xlu0 %401  ;;  %v1140_v11 = vadd.f32 %v12167_v13, %v1069_v17  ;;  %v1007_v53 = vmul.f32 %v12152_v44, %v779_v51  ;;  %10790 = vmatprep.mubr.msk.f32.mxu0 %vm1718_vm0, %v11586_v1  ;;  %v1260_v54 = vmul.f32 %v11586_v1, %v11586_v1  ;;  %11603 = vtanh.f32 %v1143_v2 }
 0x126   : > { %v683_v60 = vmul.f32 %v12156_v24, %v402_v39  ;;  %v1516_v12 = vmul.f32 -2.0, %v11586_v1 }
 0x127   : > { %11605 = vtanh.f32 %v1140_v11  ;;  %v12216_v43 = vsub.f32 1.0, %v1260_v54  ;;  %v1076_v54 = vadd.f32 %v1012_v30, %v688_v63  ;;  %v1016_v30 = vmul.f32 %v12152_v44, %v12036_v10 }
 0x128   : > { %v1071_v14 = vadd.f32 %v1007_v53, %v683_v60  ;;  %v11588_v62 = vpop.eup %11587  ;;  %v787_v45 = vpop.permute.xlu1 %786 }
 0x129   : > { %v412_v55 = vpop.permute.xlu0 %411  ;;  %v11590_v57 = vpop.eup %11589  ;;  %v1009_v18 = vmul.f32 %v12152_v44, %v787_v45  ;;  %v1262_v4 = vmul.f32 %v11588_v62, %v11588_v62  ;;  %v12231_v48 = vmul.f32 %v1516_v12, %v12216_v43  ;;  %v1518_v45 = vmul.f32 -2.0, %v11588_v62 }
 0x12a   : > { %v1142_v58 = vadd.f32 %v12167_v13, %v1071_v14  ;;  %v685_v27 = vmul.f32 %v12156_v24, %v412_v55  ;;  %10791 = vmatmul.mubr.msk.f32.vlgmr.msra.gmra.mxu0 %vm1718_vm0, %v11590_v57  ;;  %v1261_v3 = vmul.f32 %v11590_v57, %v11590_v57  ;;  %v1517_v7 = vmul.f32 -2.0, %v11590_v57 }
 0x12b   : > { %19126 = vst [vmem:[#allocation23_spill] sm:$0xff] %v12231_v48  ;;  %10793 = vmatprep.mubr.msk.f32.mxu0 %vm1718_vm0, %v11588_v62  ;;  %v12237_v36 = vsub.f32 1.0, %v1262_v4  ;;  %v1078_v14 = vadd.f32 %v1014_v47, %v690_v46  ;;  %v1018_v62 = vmul.f32 %v12152_v44, %v12041_v16  ;;  %v1147_v15 = vadd.f32 %v12167_v13, %v1076_v54 }
 0x12c   : > { %11607 = vtanh.f32 %v1142_v58  ;;  %v1073_v21 = vadd.f32 %v1009_v18, %v685_v27  ;;  %v11592_v6 = vpop.eup %11591  ;;  %v795_v2 = vpop.permute.xlu1 %794  ;;  %v12235_v1 = vsub.f32 1.0, %v1261_v3 }
 0x12d   : > { %v422_v17 = vpop.permute.xlu0 %421  ;;  %v12239_v50 = vpop.eup %11593  ;;  %v1011_v39 = vmul.f32 %v12152_v44, %v795_v2  ;;  %v1264_v53 = vmul.f32 %v11592_v6, %v11592_v6  ;;  %v12265_v27 = vmul.f32 %v1518_v45, %v12237_v36  ;;  %v1520_v10 = vmul.f32 -2.0, %v11592_v6 }
 0x12e   : > { %19127 = vst [vmem:[#allocation24_spill] sm:$0xff] %v12239_v50  ;;  %v1144_v51 = vadd.f32 %v12167_v13, %v1073_v21  ;;  %v687_v11 = vmul.f32 %v12156_v24, %v422_v17  ;;  %v12244_v60 = vpop.eup %11595  ;;  %10794 = vmatmul.mubr.msk.f32.gmra.mxu0 %vm1718_vm0, %v12239_v50  ;;  %v12256_v58 = vmul.f32 %v1517_v7, %v12235_v1 }
 0x12f   : > { %19128 = vst [vmem:[#allocation25_spill] sm:$0xff] %v12244_v60  ;;  %v12250_v55 = vpop.eup %11597  ;;  %10796 = vmatprep.mubr.msk.f32.mxu0 %vm1718_vm0, %v11592_v6  ;;  %v12253_v57 = vsub.f32 1.0, %v1264_v53  ;;  %19131 = vst [vmem:[#allocation28_spill] sm:$0xff] %v12265_v27  ;;  %v1149_v17 = vadd.f32 %v12167_v13, %v1078_v14  ;;  %v1080_v6 = vadd.f32 %v1016_v30, %v692_v33 }
 0x130   : > { %19129 = vst [vmem:[#allocation26_spill] sm:$0xff] %v12250_v55  ;;  %11609 = vtanh.f32 %v1144_v51  ;;  %v1075_v12 = vadd.f32 %v1011_v39, %v687_v11  ;;  %19130 = vst [vmem:[#allocation27_spill] sm:$0xff] %v12256_v58  ;;  %v11600_v63 = vpop.eup %11599  ;;  %v803_v46 = vpop.permute.xlu1 %802 }
 0x131   : > { %v432_v18 = vpop.permute.xlu0 %431  ;;  %v12267_v47 = vpop.eup %11601  ;;  %v1013_v4 = vmul.f32 %v12152_v44, %v803_v46  ;;  %11611 = vtanh.f32 %v1145_v42  ;;  %v1266_v16 = vmul.f32 %v11600_v63, %v11600_v63  ;;  %v12280_v51 = vmul.f32 %v1520_v10, %v12253_v57 }
 0x132   : > { %19132 = vst [vmem:[#allocation29_spill] sm:$0xff] %v12267_v47  ;;  %v1146_v3 = vadd.f32 %v12167_v13, %v1075_v12  ;;  %v689_v21 = vmul.f32 %v12156_v24, %v432_v18  ;;  %10797 = vmatmul.mubr.msk.f32.gmra.mxu0 %vm1718_vm0, %v12244_v60  ;;  %v12275_v2 = vpop.eup %11603  ;;  %v1082_v42 = vadd.f32 %v1018_v62, %v694_v9  ;;  %v1522_v45 = vmul.f32 -2.0, %v11600_v63 }
 0x133   : > { %19133 = vst [vmem:[#allocation30_spill] sm:$0xff] %v12275_v2  ;;  %10799 = vmatprep.mubr.msk.f32.mxu0 %vm1718_vm0, %v11600_v63  ;;  %19134 = vst [vmem:[#allocation31_spill] sm:$0xff] %v12280_v51  ;;  %v12282_v54 = vsub.f32 1.0, %v1266_v16  ;;  %v1151_v9 = vadd.f32 %v12167_v13, %v1080_v6  ;;  %v698_v6 = vmul.f32 %v12156_v24, %v12049_v22  ;;  %v19171_v51 = vld [vmem:[#allocation9_spill] sm:$0xff] }
 0x134   : > { %11613 = vtanh.f32 %v1146_v3  ;;  %v1077_v7 = vadd.f32 %v1013_v4, %v689_v21  ;;  %v11606_v39 = vpop.eup %11605  ;;  %v811_v11 = vpop.permute.xlu1 %810  ;;  %v1153_v10 = vadd.f32 %v12167_v13, %v1082_v42  ;;  %v1022_v42 = vmul.f32 %v12152_v44, %v12051_v23 }
 0x135   : > { %v442_v53 = vpop.permute.xlu0 %441  ;;  %v1015_v46 = vmul.f32 %v12152_v44, %v811_v11  ;;  %v1268_v18 = vmul.f32 %v11606_v39, %v11606_v39  ;;  %11615 = vtanh.f32 %v1147_v15  ;;  %v12290_v3 = vmul.f32 %v1522_v45, %v12282_v54 }
 0x136   : > { %v1148_v12 = vadd.f32 %v12167_v13, %v1077_v7  ;;  %v691_v14 = vmul.f32 %v12156_v24, %v442_v53  ;;  %10800 = vmatmul.mubr.msk.f32.gmra.mxu0 %vm1718_vm0, %v12250_v55  ;;  %v1524_v21 = vmul.f32 -2.0, %v11606_v39  ;;  %v696_v11 = vmul.f32 %v12156_v24, %v12044_v19 }
 0x137   : > { %19135 = vst [vmem:[#allocation32_spill] sm:$0xff] %v12290_v3  ;;  %10802 = vmatprep.mubr.msk.f32.mxu0 %vm1718_vm0, %v11606_v39  ;;  %v12293_v30 = vsub.f32 1.0, %v1268_v18  ;;  %v1020_v53 = vmul.f32 %v12152_v44, %v12046_v20  ;;  %v700_v20 = vmul.f32 %v12156_v24, %v12054_v25  ;;  %v19170_v3 = vld [vmem:[#allocation8_spill] sm:$0xff] }
 0x138   : > { %11617 = vtanh.f32 %v1148_v12  ;;  %v1079_v33 = vadd.f32 %v1015_v46, %v691_v14  ;;  %v819_v62 = vpop.permute.xlu1 %818  ;;  %v1024_v12 = vmul.f32 %v12152_v44, %v12056_v26 }
 0x139   : > { %v11608_v63 = vpop.eup %11607  ;;  %11619 = vtanh.f32 %v1149_v17  ;;  %v452_v4 = vpop.permute.xlu0 %451  ;;  %v1017_v16 = vmul.f32 %v12152_v44, %v819_v62  ;;  %v12307_v39 = vmul.f32 %v1524_v21, %v12293_v30 }
 0x13a   : > { %v1150_v15 = vadd.f32 %v12167_v13, %v1079_v33  ;;  %v693_v7 = vmul.f32 %v12156_v24, %v452_v4  ;;  %10803 = vmatmul.mubr.msk.f32.gmra.mxu0 %vm1718_vm0, %v12267_v47  ;;  %v1270_v17 = vmul.f32 %v11608_v63, %v11608_v63  ;;  %v1526_v33 = vmul.f32 -2.0, %v11608_v63 }
 0x13b   : > { %19136 = vst [vmem:[#allocation33_spill] sm:$0xff] %v12307_v39  ;;  %10805 = vmatprep.mubr.msk.f32.mxu0 %vm1718_vm0, %v11608_v63 }
 0x13c   : > { %11621 = vtanh.f32 %v1150_v15  ;;  %v1081_v45 = vadd.f32 %v1017_v16, %v693_v7  ;;  %v827_v46 = vpop.permute.xlu1 %826  ;;  %v12318_v18 = vsub.f32 1.0, %v1270_v17  ;;  %v1084_v16 = vadd.f32 %v1020_v53, %v696_v11 }
 0x13d   : > { %v11610_v19 = vpop.eup %11609  ;;  %v462_v14 = vpop.permute.xlu0 %461  ;;  %v1019_v23 = vmul.f32 %v12152_v44, %v827_v46  ;;  %11623 = vtanh.f32 %v1151_v9  ;;  %v1086_v7 = vadd.f32 %v1022_v42, %v698_v6  ;;  %v1088_v46 = vadd.f32 %v1024_v12, %v700_v20 }
 0x13e   : > { %v1152_v22 = vadd.f32 %v12167_v13, %v1081_v45  ;;  %v695_v62 = vmul.f32 %v12156_v24, %v462_v14  ;;  %v1272_v4 = vmul.f32 %v11610_v19, %v11610_v19  ;;  %10806 = vmatmul.mubr.msk.f32.gmra.mxu0 %vm1718_vm0, %v12275_v2  ;;  %v12326_v25 = vmul.f32 %v1526_v33, %v12318_v18  ;;  %v12328_v26 = vpop.eup %11611 }
 0x13f   : > { %19138 = vst [vmem:[#allocation35_spill] sm:$0xff] %v12328_v26  ;;  %10808 = vmatprep.mubr.msk.f32.mxu0 %vm1718_vm0, %v11610_v19  ;;  %v1528_v45 = vmul.f32 -2.0, %v11610_v19  ;;  %v1155_v19 = vadd.f32 %v12167_v13, %v1084_v16 }
 0x140   : > { %19137 = vst [vmem:[#allocation34_spill] sm:$0xff] %v12326_v25  ;;  %11625 = vtanh.f32 %v1152_v22  ;;  %v1083_v21 = vadd.f32 %v1019_v23, %v695_v62  ;;  %v12331_v63 = vsub.f32 1.0, %v1272_v4  ;;  %v835_v17 = vpop.permute.xlu1 %834  ;;  %v702_v22 = vmul.f32 %v12156_v24, %v12059_v28 }
 0x141   : > { %v11614_v15 = vpop.eup %11613  ;;  %11627 = vtanh.f32 %v1153_v10  ;;  %v472_v9 = vpop.permute.xlu0 %471  ;;  %v1021_v33 = vmul.f32 %v12152_v44, %v835_v17  ;;  %v1026_v23 = vmul.f32 %v12152_v44, %v12061_v29  ;;  %v1157_v28 = vadd.f32 %v12167_v13, %v1086_v7 }
 0x142   : > { %v1154_v14 = vadd.f32 %v12167_v13, %v1083_v21  ;;  %v697_v25 = vmul.f32 %v12156_v24, %v472_v9  ;;  %10809 = vmatmul.mubr.msk.f32.gmra.mxu0 %vm1718_vm0, %v12328_v26  ;;  %v1274_v10 = vmul.f32 %v11614_v15, %v11614_v15  ;;  %v12343_v11 = vmul.f32 %v1528_v45, %v12331_v63  ;;  %v12345_v53 = vpop.eup %11615 }
 0x143   : > { %19140 = vst [vmem:[#allocation37_spill] sm:$0xff] %v12345_v53  ;;  %10811 = vmatprep.mubr.msk.f32.mxu0 %vm1718_vm0, %v11614_v15  ;;  %v1530_v62 = vmul.f32 -2.0, %v11614_v15  ;;  %v1159_v45 = vadd.f32 %v12167_v13, %v1088_v46 }
 0x144   : > { %19139 = vst [vmem:[#allocation36_spill] sm:$0xff] %v12343_v11  ;;  %11629 = vtanh.f32 %v1154_v14  ;;  %v1085_v6 = vadd.f32 %v1021_v33, %v697_v25  ;;  %v843_v20 = vpop.permute.xlu1 %842  ;;  %v12350_v12 = vsub.f32 1.0, %v1274_v10  ;;  %v1090_v14 = vadd.f32 %v1026_v23, %v702_v22 }
 0x145   : > { %v11618_v42 = vpop.eup %11617  ;;  %v482_v29 = vpop.permute.xlu0 %481  ;;  %v1023_v17 = vmul.f32 %v12152_v44, %v843_v20 }
 0x146   : > { %v12352_v4 = vpop.eup %11619  ;;  %v1156_v21 = vadd.f32 %v12167_v13, %v1085_v6  ;;  %v699_v25 = vmul.f32 %v12156_v24, %v482_v29  ;;  %v1276_v9 = vmul.f32 %v11618_v42, %v11618_v42  ;;  %10812 = vmatmul.mubr.msk.f32.gmra.mxu0 %vm1718_vm0, %v12345_v53  ;;  %v12361_v16 = vmul.f32 %v1530_v62, %v12350_v12 }
 0x147   : > { %19141 = vst [vmem:[#allocation38_spill] sm:$0xff] %v12352_v4  ;;  %10814 = vmatprep.mubr.msk.f32.mxu0 %vm1718_vm0, %v11618_v42  ;;  %v1532_v20 = vmul.f32 -2.0, %v11618_v42  ;;  %v1161_v29 = vadd.f32 %v12167_v13, %v1090_v14  ;;  %v704_v42 = vmul.f32 %v12156_v24, %v12064_v31 }
 0x148   : > { %19142 = vst [vmem:[#allocation39_spill] sm:$0xff] %v12361_v16  ;;  %11631 = vtanh.f32 %v1156_v21  ;;  %v1087_v15 = vadd.f32 %v1023_v17, %v699_v25  ;;  %v12364_v7 = vsub.f32 1.0, %v1276_v9  ;;  %v851_v10 = vpop.permute.xlu1 %850  ;;  %v706_v9 = vmul.f32 %v12156_v24, %v12069_v34 }
 0x149   : > { %v11622_v33 = vpop.eup %11621  ;;  %11633 = vtanh.f32 %v1155_v19  ;;  %v492_v6 = vpop.permute.xlu0 %491  ;;  %v1025_v22 = vmul.f32 %v12152_v44, %v851_v10  ;;  %v1032_v16 = vmul.f32 %v12152_v44, %v12076_v38 }
 0x14a   : > { %11635 = vtanh.f32 %v1157_v28  ;;  %v1158_v46 = vadd.f32 %v12167_v13, %v1087_v15  ;;  %v701_v23 = vmul.f32 %v12156_v24, %v492_v6  ;;  %10815 = vmatmul.mubr.msk.f32.gmra.mxu0 %vm1718_vm0, %v12352_v4  ;;  %v1278_v62 = vmul.f32 %v11622_v33, %v11622_v33  ;;  %v12375_v19 = vpop.eup %11623 }
 0x14b   : > { %11637 = vtanh.f32 %v1159_v45  ;;  %v12373_v21 = vmul.f32 %v1532_v20, %v12364_v7  ;;  %19144 = vst [vmem:[#allocation41_spill] sm:$0xff] %v12375_v19  ;;  %v1028_v28 = vmul.f32 %v12152_v44, %v12066_v32  ;;  %10817 = vmatprep.mubr.msk.f32.mxu0 %vm1718_vm0, %v11622_v33  ;;  %v1030_v45 = vmul.f32 %v12152_v44, %v12071_v35 }
 0x14c   : > { %11639 = vtanh.f32 %v1158_v46  ;;  %v1089_v17 = vadd.f32 %v1025_v22, %v701_v23  ;;  %v859_v14 = vpop.permute.xlu1 %858  ;;  %v12386_v10 = vsub.f32 1.0, %v1278_v62  ;;  %v1534_v6 = vmul.f32 -2.0, %v11622_v33 }
 0x14d   : > { %19143 = vst [vmem:[#allocation40_spill] sm:$0xff] %v12373_v21  ;;  %v11626_v25 = vpop.eup %11625  ;;  %v502_v15 = vpop.permute.xlu0 %501  ;;  %v1027_v20 = vmul.f32 %v12152_v44, %v859_v14  ;;  %11641 = vtanh.f32 %v1161_v29  ;;  %v1092_v62 = vadd.f32 %v1028_v28, %v704_v42  ;;  %v708_v14 = vmul.f32 %v12156_v24, %v12074_v37 }
 0x14e   : > { %v12388_v31 = vpop.eup %11627  ;;  %v1160_v32 = vadd.f32 %v12167_v13, %v1089_v17  ;;  %v703_v46 = vmul.f32 %v12156_v24, %v502_v15  ;;  %v1280_v22 = vmul.f32 %v11626_v25, %v11626_v25  ;;  %10818 = vmatmul.mubr.msk.f32.gmra.mxu0 %vm1718_vm0, %v12375_v19  ;;  %v12396_v34 = vmul.f32 %v1534_v6, %v12386_v10 }
 0x14f   : > { %19145 = vst [vmem:[#allocation42_spill] sm:$0xff] %v12388_v31  ;;  %10820 = vmatprep.mubr.msk.f32.mxu0 %vm1718_vm0, %v11626_v25  ;;  %v1094_v17 = vadd.f32 %v1030_v45, %v706_v9  ;;  %v1536_v21 = vmul.f32 -2.0, %v11626_v25  ;;  %v1034_v42 = vmul.f32 %v12152_v44, %v12081_v41  ;;  %v1163_v9 = vadd.f32 %v12167_v13, %v1092_v62 }
 0x150   : > { %19146 = vst [vmem:[#allocation43_spill] sm:$0xff] %v12396_v34  ;;  %11643 = vtanh.f32 %v1160_v32  ;;  %v1091_v35 = vadd.f32 %v1027_v20, %v703_v46  ;;  %v12399_v33 = vsub.f32 1.0, %v1280_v22  ;;  %v867_v15 = vpop.permute.xlu1 %866  ;;  %v710_v46 = vmul.f32 %v12156_v24, %v12079_v40 }
 0x151   : > { %v11630_v23 = vpop.eup %11629  ;;  %v512_v29 = vpop.permute.xlu0 %511  ;;  %v1029_v32 = vmul.f32 %v12152_v44, %v867_v15  ;;  %v1165_v45 = vadd.f32 %v12167_v13, %v1094_v17 }
 0x152   : > { %v1162_v6 = vadd.f32 %v12167_v13, %v1091_v35  ;;  %v705_v20 = vmul.f32 %v12156_v24, %v512_v29  ;;  %10821 = vmatmul.mubr.msk.f32.gmra.mxu0 %vm1718_vm0, %v12388_v31  ;;  %v1282_v37 = vmul.f32 %v11630_v23, %v11630_v23  ;;  %v12415_v28 = vmul.f32 %v1536_v21, %v12399_v33 }
 0x153   : > { %10823 = vmatprep.mubr.msk.f32.mxu0 %vm1718_vm0, %v11630_v23  ;;  %v1538_v41 = vmul.f32 -2.0, %v11630_v23  ;;  %v1098_v62 = vadd.f32 %v1034_v42, %v710_v46 }
 0x154   : > { %19147 = vst [vmem:[#allocation44_spill] sm:$0xff] %v12415_v28  ;;  %11645 = vtanh.f32 %v1162_v6  ;;  %v1093_v38 = vadd.f32 %v1029_v32, %v705_v20  ;;  %v875_v40 = vpop.permute.xlu1 %874  ;;  %v12420_v35 = vsub.f32 1.0, %v1282_v37  ;;  %v1096_v28 = vadd.f32 %v1032_v16, %v708_v14 }
 0x155   : > { %v11632_v25 = vpop.eup %11631  ;;  %v522_v22 = vpop.permute.xlu0 %521  ;;  %v1031_v21 = vmul.f32 %v12152_v44, %v875_v40 }
 0x156   : > { %v12422_v15 = vpop.eup %11633  ;;  %v1164_v29 = vadd.f32 %v12167_v13, %v1093_v38  ;;  %v707_v6 = vmul.f32 %v12156_v24, %v522_v22  ;;  %v1284_v32 = vmul.f32 %v11632_v25, %v11632_v25  ;;  %v12432_v17 = vmul.f32 %v1538_v41, %v12420_v35 }
 0x157   : > { %19148 = vst [vmem:[#allocation45_spill] sm:$0xff] %v12422_v15  ;;  %v12427_v20 = vpop.eup %11635  ;;  %10824 = vmatmul.mubr.msk.f32.gmra.mxu0 %vm1718_vm0, %v12422_v15  ;;  %v1540_v16 = vmul.f32 -2.0, %v11632_v25  ;;  %v1167_v41 = vadd.f32 %v12167_v13, %v1096_v28 }
 0x158   : > { %19149 = vst [vmem:[#allocation46_spill] sm:$0xff] %v12427_v20  ;;  %19150 = vst [vmem:[#allocation47_spill] sm:$0xff] %v12432_v17  ;;  %v12434_v23 = vpop.eup %11637  ;;  %11647 = vtanh.f32 %v1164_v29  ;;  %v1095_v37 = vadd.f32 %v1031_v21, %v707_v6  ;;  %10826 = vmatprep.mubr.msk.f32.mxu0 %vm1718_vm0, %v11632_v25  ;;  %v12437_v38 = vsub.f32 1.0, %v1284_v32  ;;  %v883_v22 = vpop.permute.xlu1 %882  ;;  %v1169_v29 = vadd.f32 %v12167_v13, %v1098_v62 }
 0x159   : > { %19151 = vst [vmem:[#allocation48_spill] sm:$0xff] %v12434_v23  ;;  %v11640_v40 = vpop.eup %11639  ;;  %11649 = vtanh.f32 %v1163_v9  ;;  %v532_v34 = vpop.permute.xlu0 %531  ;;  %v1033_v46 = vmul.f32 %v12152_v44, %v883_v22  ;;  %v712_v25 = vmul.f32 %v12156_v24, %v12084_v49  ;;  %v714_v32 = vmul.f32 %v12156_v24, %v12089_v56 }
 0x15a   : > { %11651 = vtanh.f32 %v1165_v45  ;;  %v1166_v14 = vadd.f32 %v12167_v13, %v1095_v37  ;;  %v709_v42 = vmul.f32 %v12156_v24, %v532_v34  ;;  %v1286_v21 = vmul.f32 %v11640_v40, %v11640_v40  ;;  %v12449_v6 = vpop.eup %11641 }
 0x15b   : > { %10827 = vmatmul.mubr.msk.f32.gmra.mxu0 %vm1718_vm0, %v12427_v20  ;;  %v12447_v9 = vmul.f32 %v1540_v16, %v12437_v38  ;;  %19153 = vst [vmem:[#allocation50_spill] sm:$0xff] %v12449_v6  ;;  %v1036_v45 = vmul.f32 %v12152_v44, %v12086_v52  ;;  %v1038_v62 = vmul.f32 %v12152_v44, %v12091_v59 }
 0x15c   : > { %11653 = vtanh.f32 %v1166_v14  ;;  %v1097_v34 = vadd.f32 %v1033_v46, %v709_v42  ;;  %10829 = vmatprep.mubr.msk.f32.mxu0 %vm1718_vm0, %v11640_v40  ;;  %v891_v37 = vpop.permute.xlu1 %890  ;;  %v12460_v16 = vsub.f32 1.0, %v1286_v21 }
 0x15d   : > { %19152 = vst [vmem:[#allocation49_spill] sm:$0xff] %v12447_v9  ;;  %v11644_v28 = vpop.eup %11643  ;;  %v542_v22 = vpop.permute.xlu0 %541  ;;  %v1542_v9 = vmul.f32 -2.0, %v11640_v40  ;;  %v1035_v52 = vmul.f32 %v12152_v44, %v891_v37  ;;  %v1100_v21 = vadd.f32 %v1036_v45, %v712_v25 }
 0x15e   : > { %v1168_v49 = vadd.f32 %v12167_v13, %v1097_v34  ;;  %v711_v14 = vmul.f32 %v12156_v24, %v542_v22  ;;  %v1288_v46 = vmul.f32 %v11644_v28, %v11644_v28  ;;  %v1102_v34 = vadd.f32 %v1038_v62, %v714_v32 }
 0x15f   : > { %10830 = vmatmul.mubr.msk.f32.gmra.mxu0 %vm1718_vm0, %v12434_v23  ;;  %v12468_v56 = vmul.f32 %v1542_v9, %v12460_v16  ;;  %v1544_v22 = vmul.f32 -2.0, %v11644_v28 }
 0x160   : > { %11655 = vtanh.f32 %v1168_v49  ;;  %v1099_v59 = vadd.f32 %v1035_v52, %v711_v14  ;;  %10832 = vmatprep.mubr.msk.f32.mxu0 %vm1718_vm0, %v11644_v28  ;;  %v12471_v42 = vsub.f32 1.0, %v1288_v46  ;;  %v899_v37 = vpop.permute.xlu1 %898  ;;  %v716_v49 = vmul.f32 %v12156_v24, %v12094_v61 }
 0x161   : > { %19154 = vst [vmem:[#allocation51_spill] sm:$0xff] %v12468_v56  ;;  %v11646_v40 = vpop.eup %11645  ;;  %11657 = vtanh.f32 %v1167_v41  ;;  %v552_v17 = vpop.permute.xlu0 %551  ;;  %v1037_v39 = vmul.f32 %v12152_v44, %v899_v37  ;;  %v1040_v52 = vmul.f32 %v12152_v44, %v12096_v0  ;;  %v1173_v28 = vadd.f32 %v12167_v13, %v1102_v34 }
 0x162   : > { %11659 = vtanh.f32 %v1169_v29  ;;  %v1170_v11 = vadd.f32 %v12167_v13, %v1099_v59  ;;  %v713_v9 = vmul.f32 %v12156_v24, %v552_v17  ;;  %v1290_v41 = vmul.f32 %v11646_v40, %v11646_v40 }
 0x163   : > { %10833 = vmatmul.mubr.msk.f32.gmra.mxu0 %vm1718_vm0, %v12449_v6  ;;  %v12483_v25 = vmul.f32 %v1544_v22, %v12471_v42  ;;  %v1171_v17 = vadd.f32 %v12167_v13, %v1100_v21  ;;  %v1546_v0 = vmul.f32 -2.0, %v11646_v40  ;;  %v1104_v22 = vadd.f32 %v1040_v52, %v716_v49 }
 0x164   : > { %11661 = vtanh.f32 %v1170_v11  ;;  %v1101_v29 = vadd.f32 %v1037_v39, %v713_v9  ;;  %10835 = vmatprep.mubr.msk.f32.mxu0 %vm1718_vm0, %v11646_v40  ;;  %v907_v61 = vpop.permute.xlu1 %906  ;;  %v12488_v62 = vsub.f32 1.0, %v1290_v41  ;;  %v718_v21 = vmul.f32 %v12156_v24, %v12099_v5 }
 0x165   : > { %19155 = vst [vmem:[#allocation52_spill] sm:$0xff] %v12483_v25  ;;  %v11648_v45 = vpop.eup %11647  ;;  %v562_v32 = vpop.permute.xlu0 %561  ;;  %v1039_v59 = vmul.f32 %v12152_v44, %v907_v61  ;;  %v1042_v34 = vmul.f32 %v12152_v44, %v12101_v8 }
 0x166   : > { %v12490_v14 = vpop.eup %11649  ;;  %v1172_v46 = vadd.f32 %v12167_v13, %v1101_v29  ;;  %v715_v39 = vmul.f32 %v12156_v24, %v562_v32  ;;  %v1292_v11 = vmul.f32 %v11648_v45, %v11648_v45  ;;  %v12504_v40 = vmul.f32 %v1546_v0, %v12488_v62 }
 0x167   : > { %19156 = vst [vmem:[#allocation53_spill] sm:$0xff] %v12490_v14  ;;  %v12495_v37 = vpop.eup %11651  ;;  %10836 = vmatmul.mubr.msk.f32.gmra.mxu0 %vm1718_vm0, %v12490_v14  ;;  %v1548_v5 = vmul.f32 -2.0, %v11648_v45  ;;  %v1175_v0 = vadd.f32 %v12167_v13, %v1104_v22  ;;  %v19163_v22 = vld [vmem:[#allocation6_spill] sm:$0xff] }
 0x168   : > { %19157 = vst [vmem:[#allocation54_spill] sm:$0xff] %v12495_v37  ;;  %19158 = vst [vmem:[#allocation55_spill] sm:$0xff] %v12504_v40  ;;  %11663 = vtanh.f32 %v1172_v46  ;;  %v1103_v9 = vadd.f32 %v1039_v59, %v715_v39  ;;  %10838 = vmatprep.mubr.msk.f32.mxu0 %vm1718_vm0, %v11648_v45  ;;  %v12507_v41 = vsub.f32 1.0, %v1292_v11  ;;  %v915_v49 = vpop.permute.xlu1 %914  ;;  %v1106_v46 = vadd.f32 %v1042_v34, %v718_v21  ;;  %v19164_v34 = vld [vmem:[#allocation7_spill] sm:$0xff] }
 0x169   : > { %v11654_v29 = vpop.eup %11653  ;;  %11665 = vtanh.f32 %v1171_v17  ;;  %v572_v52 = vpop.permute.xlu0 %571  ;;  %v1041_v61 = vmul.f32 %v12152_v44, %v915_v49  ;;  %v19161_v17 = vld [vmem:[#allocation4_spill] sm:$0xff]  ;;  %v722_v21 = vmul.f32 %v12156_v24, %v19163_v22 }
 0x16a   : > { %19159 = vst [vmem:[#allocation56_spill] sm:$0xff] %v12507_v41  ;;  %11667 = vtanh.f32 %v1173_v28  ;;  %v1174_v8 = vadd.f32 %v12167_v13, %v1103_v9  ;;  %v717_v32 = vmul.f32 %v12156_v24, %v572_v52  ;;  %v1294_v59 = vmul.f32 %v11654_v29, %v11654_v29  ;;  %v19162_v28 = vld [vmem:[#allocation5_spill] sm:$0xff] }
 0x16b   : > { %10839 = vmatmul.mubr.msk.f32.gmra.mxu0 %vm1718_vm0, %v12495_v37  ;;  %v12516_v39 = vmul.f32 %v1548_v5, %v12507_v41  ;;  %v720_v45 = vmul.f32 %v12156_v24, %v19161_v17  ;;  %v1044_v11 = vmul.f32 %v12152_v44, %v19162_v28  ;;  %v1046_v52 = vmul.f32 %v12152_v44, %v19164_v34 }
 0x16c   : > { %11669 = vtanh.f32 %v1174_v8  ;;  %v1105_v9 = vadd.f32 %v1041_v61, %v717_v32  ;;  %10841 = vmatprep.mubr.msk.f32.mxu0 %vm1718_vm0, %v11654_v29  ;;  %v923_v40 = vpop.permute.xlu1 %922  ;;  %v1550_v25 = vmul.f32 -2.0, %v11654_v29  ;;  %v1177_v22 = vadd.f32 %v12167_v13, %v1106_v46 }
 0x16d   : > { %19160 = vst [vmem:[#allocation57_spill] sm:$0xff] %v12516_v39  ;;  %v11656_v49 = vpop.eup %11655  ;;  %v582_v5 = vpop.permute.xlu0 %581  ;;  %v12527_v39 = vsub.f32 1.0, %v1294_v59  ;;  %v1043_v8 = vmul.f32 %v12152_v44, %v923_v40  ;;  %11671 = vtanh.f32 %v1175_v0  ;;  %v1108_v29 = vadd.f32 %v1044_v11, %v720_v45 }
 0x16e   : > { %v12529_v17 = vpop.eup %11657  ;;  %v1176_v28 = vadd.f32 %v12167_v13, %v1105_v9  ;;  %v719_v61 = vmul.f32 %v12156_v24, %v582_v5  ;;  %v1296_v32 = vmul.f32 %v11656_v49, %v11656_v49  ;;  %v1110_v5 = vadd.f32 %v1046_v52, %v722_v21 }
 0x16f   : > { %19165 = vst [vmem:[#allocation4_spill] sm:$0xff] %v12527_v39  ;;  %19166 = vst [vmem:[#allocation5_spill] sm:$0xff] %v12529_v17  ;;  %v12534_v56 = vpop.eup %11659  ;;  %10842 = vmatmul.mubr.msk.f32.gmra.mxu0 %vm1718_vm0, %v12529_v17  ;;  %v12540_v59 = vmul.f32 %v1550_v25, %v12527_v39  ;;  %v724_v0 = vmul.f32 %v12156_v24, %v19170_v3  ;;  %v1048_v46 = vmul.f32 %v12152_v44, %v19171_v51 }
 0x170   : > { %19167 = vst [vmem:[#allocation6_spill] sm:$0xff] %v12534_v56  ;;  %11673 = vtanh.f32 %v1176_v28  ;;  %v1107_v34 = vadd.f32 %v1043_v8, %v719_v61  ;;  %10844 = vmatprep.mubr.msk.f32.mxu0 %vm1718_vm0, %v11656_v49  ;;  %v12543_v40 = vsub.f32 1.0, %v1296_v32  ;;  %v931_v27 = vpop.permute.xlu1 %930  ;;  %v1552_v48 = vmul.f32 -2.0, %v11656_v49 }
 0x171   : > { %19168 = vst [vmem:[#allocation7_spill] sm:$0xff] %v12540_v59  ;;  %v11662_v9 = vpop.eup %11661  ;;  %v592_v58 = vpop.permute.xlu0 %591  ;;  %v1045_v45 = vmul.f32 %v12152_v44, %v931_v27  ;;  %11675 = vtanh.f32 %v1177_v22  ;;  %v1179_v3 = vadd.f32 %v12167_v13, %v1108_v29  ;;  %v1181_v28 = vadd.f32 %v12167_v13, %v1110_v5 }
 0x172   : > { %19169 = vst [vmem:[#allocation58_spill] sm:$0xff] %v12543_v40  ;;  %v1178_v25 = vadd.f32 %v12167_v13, %v1107_v34  ;;  %v721_v11 = vmul.f32 %v12156_v24, %v592_v58  ;;  %v1298_v21 = vmul.f32 %v11662_v9, %v11662_v9  ;;  %v12555_v52 = vmul.f32 %v1552_v48, %v12543_v40 }
 0x173   : > { %10845 = vmatmul.mubr.msk.f32.gmra.mxu0 %vm1718_vm0, %v12534_v56  ;;  %v1112_v27 = vadd.f32 %v1048_v46, %v724_v0  ;;  %v1554_v32 = vmul.f32 -2.0, %v11662_v9  ;;  %v19176_v0 = vld [vmem:[#allocation10_spill] sm:$0xff] }
 0x174   : > { %19172 = vst [vmem:[#allocation8_spill] sm:$0xff] %v12555_v52  ;;  %11677 = vtanh.f32 %v1178_v25  ;;  %v1109_v51 = vadd.f32 %v1045_v45, %v721_v11  ;;  %10847 = vmatprep.mubr.msk.f32.mxu0 %vm1718_vm0, %v11662_v9  ;;  %v939_v8 = vpop.permute.xlu1 %938  ;;  %v12560_v61 = vsub.f32 1.0, %v1298_v21  ;;  %v4609_v25 = vld [vmem:[%s18702_s5 + $0x18] sm:$0xff]  ;;  %v726_v46 = vmul.f32 %v12156_v24, %v19176_v0  ;;  %v19177_v11 = vld [vmem:[#allocation11_spill] sm:$0xff] }
 0x175   : > { %v11664_v49 = vpop.eup %11663  ;;  %v602_v58 = vpop.permute.xlu0 %601  ;;  %v1047_v34 = vmul.f32 %v12152_v44, %v939_v8  ;;  %v1050_v9 = vmul.f32 %v12152_v44, %v19177_v11  ;;  %11174 = vmatprep.subr.mxu1 %v4609_v25 }
 0x176   : > { %19173 = vst [vmem:[#allocation9_spill] sm:$0xff] %v12560_v61  ;;  %v12562_v22 = vpop.eup %11665  ;;  %v1180_v48 = vadd.f32 %v12167_v13, %v1109_v51  ;;  %v723_v29 = vmul.f32 %v12156_v24, %v602_v58  ;;  %v1300_v45 = vmul.f32 %v11664_v49, %v11664_v49  ;;  %v12579_v21 = vmul.f32 %v1554_v32, %v12560_v61  ;;  %v4608_v58 = vld [vmem:[%s18702_s5 + $0x10] sm:$0xff] }
 0x177   : > { %19174 = vst [vmem:[#allocation59_spill] sm:$0xff] %v12562_v22  ;;  %v12570_v5 = vpop.eup %11667  ;;  %10848 = vmatmul.mubr.msk.f32.gmra.mxu0 %vm1718_vm0, %v12562_v22  ;;  %11175 = vmatpush3.msra.mxu1 %v4609_v25  ;;  %v1556_v59 = vmul.f32 -2.0, %v11664_v49  ;;  %v1183_v32 = vadd.f32 %v12167_v13, %v1112_v27  ;;  %v4607_v25 = vld [vmem:[%s18702_s5 + $0x8] sm:$0xff] }
 0x178   : > { %19175 = vst [vmem:[#allocation60_spill] sm:$0xff] %v12570_v5  ;;  %19178 = vst [vmem:[#allocation10_spill] sm:$0xff] %v12579_v21  ;;  %11679 = vtanh.f32 %v1180_v48  ;;  %v1111_v51 = vadd.f32 %v1047_v34, %v723_v29  ;;  %10850 = vmatprep.mubr.msk.f32.mxu0 %vm1718_vm0, %v11664_v49  ;;  %v12582_v8 = vsub.f32 1.0, %v1300_v45  ;;  %v947_v11 = vpop.permute.xlu1 %946  ;;  %11176 = vmatprep.subr.mxu1 %v4608_v58 }
 0x179   : > { %v11670_v0 = vpop.eup %11669  ;;  %11681 = vtanh.f32 %v1179_v3  ;;  %v612_v52 = vpop.permute.xlu0 %611  ;;  %v1049_v34 = vmul.f32 %v12152_v44, %v947_v11  ;;  %11177 = vmatpush3.msra.mxu1 %v4608_v58  ;;  %v1114_v45 = vadd.f32 %v1050_v9, %v726_v46  ;;  %v19183_v58 = vld [vmem:[#allocation13_spill] sm:$0xff] }
 0x17a   : > { %19179 = vst [vmem:[#allocation11_spill] sm:$0xff] %v12582_v8  ;;  %v1182_v48 = vadd.f32 %v12167_v13, %v1111_v51  ;;  %v725_v29 = vmul.f32 %v12156_v24, %v612_v52  ;;  %11683 = vtanh.f32 %v1181_v28  ;;  %11178 = vmatprep.subr.mxu1 %v4607_v25  ;;  %v1302_v3 = vmul.f32 %v11670_v0, %v11670_v0  ;;  %v12599_v27 = vpop.eup %11671  ;;  %v19182_v51 = vld [vmem:[#allocation12_spill] sm:$0xff]  ;;  %v4606_v28 = vld [vmem:[%s18702_s5] sm:$0xff] }
 0x17b   : > { %10851 = vmatmul.mubr.msk.f32.gmra.mxu0 %vm1718_vm0, %v12570_v5  ;;  %v12597_v49 = vmul.f32 %v1556_v59, %v12582_v8  ;;  %19181 = vst [vmem:[#allocation62_spill] sm:$0xff] %v12599_v27  ;;  %v728_v52 = vmul.f32 %v12156_v24, %v19182_v51  ;;  %v1052_v11 = vmul.f32 %v12152_v44, %v19183_v58  ;;  %v19184_v59 = vld [vmem:[#allocation14_spill] sm:$0xff] }
 0x17c   : > { %11685 = vtanh.f32 %v1182_v48  ;;  %v1113_v21 = vadd.f32 %v1049_v34, %v725_v29  ;;  %10853 = vmatprep.mubr.msk.f32.mxu0 %vm1718_vm0, %v11670_v0  ;;  %11179 = vmatpush3.msra.mxu1 %v4607_v25  ;;  %v730_v9 = vmul.f32 %v12156_v24, %v19184_v59  ;;  %v955_v51 = vpop.permute.xlu1 %954  ;;  %v12613_v5 = vsub.f32 1.0, %v1302_v3 }
 0x17d   : > { %19180 = vst [vmem:[#allocation61_spill] sm:$0xff] %v12597_v49  ;;  %v11674_v46 = vpop.eup %11673  ;;  %v19185_v49 = vld [vmem:[#allocation15_spill] sm:$0xff]  ;;  %v622_v61 = vpop.permute.xlu0 %621  ;;  %11180 = vmatprep.subr.mxu1 %v4606_v28  ;;  %v1558_v48 = vmul.f32 -2.0, %v11670_v0  ;;  %v1051_v29 = vmul.f32 %v12152_v44, %v955_v51 }
 0x17e   : > { %v1054_v8 = vmul.f32 %v12152_v44, %v19185_v49  ;;  %19186 = vst [vmem:[#allocation12_spill] sm:$0xff] %v12613_v5  ;;  %v1184_v34 = vadd.f32 %v12167_v13, %v1113_v21  ;;  %v727_v25 = vmul.f32 %v12156_v24, %v622_v61  ;;  %11181 = vmatpush3.msra.mxu1 %v4606_v28  ;;  %v12623_v49 = vpop.eup %11675  ;;  %v12631_v61 = vld [vmem:[%s18699_s2] ss:$0 sm:$0xff] }
 0x17f   : > { %v1304_v58 = vmul.f32 %v11674_v46, %v11674_v46  ;;  %10854 = vmatmul.mubr.msk.f32.gmra.mxu0 %vm1718_vm0, %v12599_v27  ;;  %v12621_v59 = vmul.f32 %v1558_v48, %v12613_v5  ;;  %19188 = vst [vmem:[#allocation14_spill] sm:$0xff] %v12623_v49  ;;  %v1185_v21 = vadd.f32 %v12631_v61, %v1114_v45  ;;  %v19191_v27 = vld [vmem:[#allocation17_spill] sm:$0xff] }
 0x180   : > { %11687 = vtanh.f32 %v1184_v34  ;;  %v1115_v3 = vadd.f32 %v1051_v29, %v727_v25  ;;  %10856 = vmatprep.mubr.msk.f32.mxu0 %vm1718_vm0, %v11674_v46  ;;  %v1116_v28 = vadd.f32 %v1052_v11, %v728_v52  ;;  %v963_v51 = vpop.permute.xlu1 %962  ;;  %v1118_v5 = vadd.f32 %v1054_v8, %v730_v9 }
 0x181   : > { %19187 = vst [vmem:[#allocation13_spill] sm:$0xff] %v12621_v59  ;;  %v12626_v0 = vsub.f32 1.0, %v1304_v58  ;;  %v11678_v13 = vpop.eup %11677  ;;  %11689 = vtanh.f32 %v1183_v32  ;;  %v632_v48 = vpop.permute.xlu0 %631  ;;  %v1560_v59 = vmul.f32 -2.0, %v11674_v46  ;;  %v1053_v29 = vmul.f32 %v12152_v44, %v963_v51  ;;  %v19190_v58 = vld [vmem:[#allocation16_spill] sm:$0xff] }
 0x182   : > { %v1186_v34 = vadd.f32 %v12631_v61, %v1115_v3  ;;  %v729_v25 = vmul.f32 %v12156_v24, %v632_v48  ;;  %v732_v32 = vmul.f32 %v12156_v24, %v19190_v58  ;;  %v1056_v40 = vmul.f32 %v12152_v44, %v19191_v27 }
 0x183   : > { %19189 = vst [vmem:[#allocation15_spill] sm:$0xff] %v12626_v0  ;;  %10857 = vmatmul.mubr.msk.f32.gmra.mxu0 %vm1718_vm0, %v12623_v49  ;;  %v1306_v45 = vmul.f32 %v11678_v13, %v11678_v13  ;;  %v12644_v52 = vmul.f32 %v1560_v59, %v12626_v0  ;;  %v1187_v46 = vadd.f32 %v12631_v61, %v1116_v28  ;;  %v1562_v27 = vmul.f32 -2.0, %v11678_v13 }
 0x184   : > { %11691 = vtanh.f32 %v1186_v34  ;;  %v1117_v8 = vadd.f32 %v1053_v29, %v729_v25  ;;  %10859 = vmatprep.mubr.msk.f32.mxu0 %vm1718_vm0, %v11678_v13  ;;  %v971_v9 = vpop.permute.xlu1 %970  ;;  %v1189_v25 = vadd.f32 %v12631_v61, %v1118_v5 }
 0x185   : > { %19192 = vst [vmem:[#allocation16_spill] sm:$0xff] %v12644_v52  ;;  %v11680_v11 = vpop.eup %11679  ;;  %11693 = vtanh.f32 %v1185_v21  ;;  %v642_v3 = vpop.permute.xlu0 %641  ;;  %v12648_v51 = vsub.f32 1.0, %v1306_v45  ;;  %v1055_v59 = vmul.f32 %v12152_v44, %v971_v9  ;;  %v1120_v52 = vadd.f32 %v1056_v40, %v732_v32  ;;  %v19195_v21 = vld [vmem:[#allocation18_spill] sm:$0xff] }
 0x186   : > { %v12650_v48 = vpop.eup %11681  ;;  %v1188_v58 = vadd.f32 %v12631_v61, %v1117_v8  ;;  %v731_v34 = vmul.f32 %v12156_v24, %v642_v3  ;;  %v1308_v29 = vmul.f32 %v11680_v11, %v11680_v11  ;;  %v734_v28 = vmul.f32 %v12156_v24, %v19195_v21  ;;  %v19198_v8 = vld [vmem:[#allocation19_spill] sm:$0xff] }
 0x187   : > { %19193 = vst [vmem:[#allocation17_spill] sm:$0xff] %v12648_v51  ;;  %19194 = vst [vmem:[#allocation63_spill] sm:$0xff] %v12650_v48  ;;  %10860 = vmatmul.mubr.msk.f32.gmra.mxu0 %vm1718_vm0, %v12650_v48  ;;  %v12661_v13 = vmul.f32 %v1562_v27, %v12648_v51  ;;  %v12663_v45 = vpop.eup %11683  ;;  %v1058_v9 = vmul.f32 %v12152_v44, %v19198_v8  ;;  %v1564_v0 = vmul.f32 -2.0, %v11680_v11  ;;  %v19201_v8 = vld [vmem:[#allocation20_spill] sm:$0xff] }
 0x188   : > { %19197 = vst [vmem:[#allocation64_spill] sm:$0xff] %v12663_v45  ;;  %11695 = vtanh.f32 %v1188_v58  ;;  %v1119_v3 = vadd.f32 %v1055_v59, %v731_v34  ;;  %10862 = vmatprep.mubr.msk.f32.mxu0 %vm1718_vm0, %v11680_v11  ;;  %v12668_v5 = vsub.f32 1.0, %v1308_v29  ;;  %v979_v32 = vpop.permute.xlu1 %978  ;;  %v1191_v34 = vadd.f32 %v12631_v61, %v1120_v52 }
 0x189   : > { %19196 = vst [vmem:[#allocation18_spill] sm:$0xff] %v12661_v13  ;;  %v11686_v40 = vpop.eup %11685  ;;  %11697 = vtanh.f32 %v1187_v46  ;;  %v652_v21 = vpop.permute.xlu0 %651  ;;  %v1057_v27 = vmul.f32 %v12152_v44, %v979_v32  ;;  %v1122_v46 = vadd.f32 %v1058_v9, %v734_v28  ;;  %v19202_v32 = vld [vmem:[#allocation21_spill] sm:$0xff] }
 0x18a   : > { %19199 = vst [vmem:[#allocation19_spill] sm:$0xff] %v12668_v5  ;;  %v1190_v48 = vadd.f32 %v12631_v61, %v1119_v3  ;;  %v733_v13 = vmul.f32 %v12156_v24, %v652_v21  ;;  %11699 = vtanh.f32 %v1189_v25  ;;  %v1310_v58 = vmul.f32 %v11686_v40, %v11686_v40 }
 0x18b   : > { %10863 = vmatmul.mubr.msk.f32.gmra.mxu0 %vm1718_vm0, %v12663_v45  ;;  %v12676_v59 = vmul.f32 %v1564_v0, %v12668_v5  ;;  %v736_v3 = vmul.f32 %v12156_v24, %v19201_v8  ;;  %v1060_v25 = vmul.f32 %v12152_v44, %v19202_v32  ;;  %v1566_v0 = vmul.f32 -2.0, %v11686_v40 }
 0x18c   : > { %11701 = vtanh.f32 %v1190_v48  ;;  %v1121_v29 = vadd.f32 %v1057_v27, %v733_v13  ;;  %10865 = vmatprep.mubr.msk.f32.mxu0 %vm1718_vm0, %v11686_v40  ;;  %v987_v21 = vpop.permute.xlu1 %986  ;;  %v12684_v45 = vsub.f32 1.0, %v1310_v58 }
 0x18d   : > { %19200 = vst [vmem:[#allocation65_spill] sm:$0xff] %v12676_v59  ;;  %v11688_v11 = vpop.eup %11687  ;;  %v662_v51 = vpop.permute.xlu0 %661  ;;  %v1059_v48 = vmul.f32 %v12152_v44, %v987_v21  ;;  %v1124_v8 = vadd.f32 %v1060_v25, %v736_v3 }
 0x18e   : > { %19203 = vst [vmem:[#allocation20_spill] sm:$0xff] %v12684_v45  ;;  %v12686_v59 = vpop.eup %11689  ;;  %v1192_v52 = vadd.f32 %v12631_v61, %v1121_v29  ;;  %v735_v28 = vmul.f32 %v12156_v24, %v662_v51  ;;  %v1312_v13 = vmul.f32 %v11688_v11, %v11688_v11  ;;  %v12694_v9 = vmul.f32 %v1566_v0, %v12684_v45 }
 0x18f   : > { %19204 = vst [vmem:[#allocation21_spill] sm:$0xff] %v12686_v59  ;;  %10866 = vmatmul.mubr.msk.f32.gmra.mxu0 %vm1718_vm0, %v12686_v59  ;;  %v1193_v29 = vadd.f32 %v12631_v61, %v1122_v46  ;;  %v1568_v32 = vmul.f32 -2.0, %v11688_v11 }
 0x190   : > { %19205 = vst [vmem:[#allocation66_spill] sm:$0xff] %v12694_v9  ;;  %11703 = vtanh.f32 %v1192_v52  ;;  %v1123_v27 = vadd.f32 %v1059_v48, %v735_v28  ;;  %10868 = vmatprep.mubr.msk.f32.mxu0 %vm1718_vm0, %v11688_v11  ;;  %v12697_v40 = vsub.f32 1.0, %v1312_v13  ;;  %v1195_v11 = vadd.f32 %v12631_v61, %v1124_v8 }
 0x191   : > { %v11692_v58 = vpop.eup %11691  ;;  %11705 = vtanh.f32 %v1191_v34 }
 0x192   : > { %19206 = vst [vmem:[#allocation67_spill] sm:$0xff] %v12697_v40  ;;  %v12700_v51 = vpop.eup %11693  ;;  %v1194_v21 = vadd.f32 %v12631_v61, %v1123_v27  ;;  %v1314_v44 = vmul.f32 %v11692_v58, %v11692_v58  ;;  %v12706_v0 = vmul.f32 %v1568_v32, %v12697_v40  ;;  %v1570_v34 = vmul.f32 -2.0, %v11692_v58 }
 0x193   : > { %19207 = vst [vmem:[#allocation68_spill] sm:$0xff] %v12700_v51  ;;  %10869 = vmatmul.mubr.msk.f32.gmra.mxu0 %vm1718_vm0, %v12700_v51 }
 0x194   : > { %19208 = vst [vmem:[#allocation69_spill] sm:$0xff] %v12706_v0  ;;  %11707 = vtanh.f32 %v1194_v21  ;;  %10871 = vmatprep.mubr.msk.f32.mxu0 %vm1718_vm0, %v11692_v58  ;;  %v12709_v52 = vsub.f32 1.0, %v1314_v44 }
 0x195   : > { %v11696_v46 = vpop.eup %11695  ;;  %11709 = vtanh.f32 %v1193_v29 }
 0x196   : > { %19209 = vst [vmem:[#allocation70_spill] sm:$0xff] %v12709_v52  ;;  %v12712_v3 = vpop.eup %11697  ;;  %v1316_v25 = vmul.f32 %v11696_v46, %v11696_v46  ;;  %v12715_v48 = vmul.f32 %v1570_v34, %v12709_v52  ;;  %v1572_v13 = vmul.f32 -2.0, %v11696_v46  ;;  %11711 = vtanh.f32 %v1195_v11 }
 0x197   : > { %19210 = vst [vmem:[#allocation71_spill] sm:$0xff] %v12712_v3  ;;  %10872 = vmatmul.mubr.msk.f32.gmra.mxu0 %vm1718_vm0, %v12712_v3  ;;  %v12719_v28 = vpop.eup %11699 }
 0x198   : > { %19211 = vst [vmem:[#allocation72_spill] sm:$0xff] %v12715_v48  ;;  %19212 = vst [vmem:[#allocation73_spill] sm:$0xff] %v12719_v28  ;;  %10874 = vmatprep.mubr.msk.f32.mxu0 %vm1718_vm0, %v11696_v46  ;;  %v12722_v44 = vsub.f32 1.0, %v1316_v25 }
 0x199   : > { %v11702_v27 = vpop.eup %11701 }
 0x19a   : > { %19213 = vst [vmem:[#allocation74_spill] sm:$0xff] %v12722_v44  ;;  %v1318_v58 = vmul.f32 %v11702_v27, %v11702_v27  ;;  %v12725_v61 = vmul.f32 %v1572_v13, %v12722_v44  ;;  %v1574_v8 = vmul.f32 -2.0, %v11702_v27 }
 0x19b   : > { %10875 = vmatmul.mubr.msk.f32.gmra.mxu0 %vm1718_vm0, %v12719_v28 }
 0x19c   : > { %19214 = vst [vmem:[#allocation75_spill] sm:$0xff] %v12725_v61  ;;  %10877 = vmatprep.mubr.msk.f32.mxu0 %vm1718_vm0, %v11702_v27  ;;  %v12730_v29 = vsub.f32 1.0, %v1318_v58 }
 0x19d   : > { %v11704_v32 = vpop.eup %11703 }
 0x19e   : > { %19215 = vst [vmem:[#allocation76_spill] sm:$0xff] %v12730_v29  ;;  %v12732_v21 = vpop.eup %11705  ;;  %v1320_v34 = vmul.f32 %v11704_v32, %v11704_v32  ;;  %v12735_v46 = vmul.f32 %v1574_v8, %v12730_v29  ;;  %v1576_v25 = vmul.f32 -2.0, %v11704_v32 }
 0x19f   : > { %19216 = vst [vmem:[#allocation77_spill] sm:$0xff] %v12732_v21  ;;  %10878 = vmatmul.mubr.msk.f32.gmra.mxu0 %vm1718_vm0, %v12732_v21 }
 0x1a0   : > { %19217 = vst [vmem:[#allocation78_spill] sm:$0xff] %v12735_v46  ;;  %10880 = vmatprep.mubr.msk.f32.mxu0 %vm1718_vm0, %v11704_v32  ;;  %v12740_v11 = vsub.f32 1.0, %v1320_v34  ;;  %v1263_v34 = vmul.f32 %v12239_v50, %v12239_v50  ;;  %v1388_v32 = vmul.f32 %v12216_v43, %v12156_v24  ;;  %v1299_v50 = vmul.f32 %v12562_v22, %v12562_v22 }
 0x1a1   : > { %v11708_v13 = vpop.eup %11707 }
 0x1a2   : > { %19218 = vst [vmem:[#allocation79_spill] sm:$0xff] %v12740_v11  ;;  %v12742_v61 = vpop.eup %11709  ;;  %v1322_v58 = vmul.f32 %v11708_v13, %v11708_v13  ;;  %v12745_v27 = vmul.f32 %v1576_v25, %v12740_v11  ;;  %v1578_v46 = vmul.f32 -2.0, %v11708_v13  ;;  %v1389_v25 = vmul.f32 %v12235_v1, %v12156_v24 }
 0x1a3   : > { %19219 = vst [vmem:[#allocation80_spill] sm:$0xff] %v12742_v61  ;;  %10881 = vmatmul.mubr.msk.f32.gmra.mxu0 %vm1718_vm0, %v12742_v61  ;;  %v12754_v48 = vpop.eup %11711 }
 0x1a4   : > { %19220 = vst [vmem:[#allocation81_spill] sm:$0xff] %v12745_v27  ;;  %10883 = vmatprep.mubr.msk.f32.mxu0 %vm1718_vm0, %v11708_v13  ;;  %v12750_v8 = vsub.f32 1.0, %v1322_v58  ;;  %19222 = vst [vmem:[#allocation83_spill] sm:$0xff] %v12754_v48  ;;  %v12766_v13 = vsub.f32 1.0, %v1263_v34  ;;  %v1265_v58 = vmul.f32 %v12244_v60, %v12244_v60  ;;  %v1390_v27 = vmul.f32 %v12237_v36, %v12156_v24 }
 0x1a5   : > { %v1392_v34 = vmul.f32 %v12253_v57, %v12156_v24 }
 0x1a6   : > { %19221 = vst [vmem:[#allocation82_spill] sm:$0xff] %v12750_v8  ;;  %v12759_v0 = vmul.f32 %v1578_v46, %v12750_v8  ;;  %19224 = vst [vmem:[#allocation85_spill] sm:$0xff] %v12766_v13  ;;  %v1391_v46 = vmul.f32 %v12766_v13, %v12156_v24 }
 0x1a7   : > { %10884 = vmatmul.mubr.msk.f32.gmra.mxu0 %vm1718_vm0, %v12754_v48 }
 0x1a8   : > { %19223 = vst [vmem:[#allocation84_spill] sm:$0xff] %v12759_v0  ;;  %10886 = vmatprep.mubr.msk.f32.mxu0 %vm1718_vm0, %v1388_v32  ;;  %v12776_v0 = vsub.f32 1.0, %v1265_v58  ;;  %v1267_v32 = vmul.f32 %v12250_v55, %v12250_v55  ;;  %v1394_v58 = vmul.f32 %v12282_v54, %v12156_v24 }
 0x1aa   : > { %19225 = vst [vmem:[#allocation86_spill] sm:$0xff] %v12776_v0  ;;  %v12786_v9 = vsub.f32 1.0, %v1267_v32  ;;  %v1396_v32 = vmul.f32 %v12293_v30, %v12156_v24 }
 0x1ab   : > { %10887 = vmatmul.mubr.msk.f32.gmra.mxu0 %vm1718_vm0, %v1389_v25  ;;  %v1393_v25 = vmul.f32 %v12776_v0, %v12156_v24 }
 0x1ac   : > { %10889 = vmatprep.mubr.msk.f32.mxu0 %vm1718_vm0, %v1390_v27  ;;  %19226 = vst [vmem:[#allocation87_spill] sm:$0xff] %v12786_v9  ;;  %v1269_v27 = vmul.f32 %v12267_v47, %v12267_v47 }
 0x1ae   : > { %v12796_v55 = vsub.f32 1.0, %v1269_v27  ;;  %v1398_v27 = vmul.f32 %v12318_v18, %v12156_v24 }
 0x1af   : > { %10890 = vmatmul.mubr.msk.f32.gmra.mxu0 %vm1718_vm0, %v1391_v46  ;;  %v1395_v46 = vmul.f32 %v12786_v9, %v12156_v24 }
 0x1b0   : > { %10892 = vmatprep.mubr.msk.f32.mxu0 %vm1718_vm0, %v1392_v34  ;;  %19227 = vst [vmem:[#allocation88_spill] sm:$0xff] %v12796_v55  ;;  %v1271_v34 = vmul.f32 %v12275_v2, %v12275_v2 }
 0x1b2   : > { %v12806_v47 = vsub.f32 1.0, %v1271_v34  ;;  %v1400_v34 = vmul.f32 %v12331_v63, %v12156_v24 }
 0x1b3   : > { %10893 = vmatmul.mubr.msk.f32.gmra.mxu0 %vm1718_vm0, %v1393_v25  ;;  %v1397_v25 = vmul.f32 %v12796_v55, %v12156_v24 }
 0x1b4   : > { %10895 = vmatprep.mubr.msk.f32.mxu0 %vm1718_vm0, %v1394_v58  ;;  %19228 = vst [vmem:[#allocation89_spill] sm:$0xff] %v12806_v47  ;;  %v1273_v58 = vmul.f32 %v12328_v26, %v12328_v26 }
 0x1b6   : > { %v12816_v2 = vsub.f32 1.0, %v1273_v58  ;;  %v1402_v58 = vmul.f32 %v12350_v12, %v12156_v24 }
 0x1b7   : > { %10896 = vmatmul.mubr.msk.f32.gmra.mxu0 %vm1718_vm0, %v1395_v46  ;;  %v1399_v46 = vmul.f32 %v12806_v47, %v12156_v24 }
 0x1b8   : > { %10898 = vmatprep.mubr.msk.f32.mxu0 %vm1718_vm0, %v1396_v32  ;;  %19229 = vst [vmem:[#allocation90_spill] sm:$0xff] %v12816_v2  ;;  %v1275_v32 = vmul.f32 %v12345_v53, %v12345_v53 }
 0x1ba   : > { %v12826_v26 = vsub.f32 1.0, %v1275_v32  ;;  %v1404_v32 = vmul.f32 %v12364_v7, %v12156_v24 }
 0x1bb   : > { %10899 = vmatmul.mubr.msk.f32.gmra.mxu0 %vm1718_vm0, %v1397_v25  ;;  %v1401_v25 = vmul.f32 %v12816_v2, %v12156_v24 }
 0x1bc   : > { %10901 = vmatprep.mubr.msk.f32.mxu0 %vm1718_vm0, %v1398_v27  ;;  %19230 = vst [vmem:[#allocation91_spill] sm:$0xff] %v12826_v26  ;;  %v1277_v27 = vmul.f32 %v12352_v4, %v12352_v4 }
 0x1be   : > { %v12836_v53 = vsub.f32 1.0, %v1277_v27  ;;  %v1406_v27 = vmul.f32 %v12386_v10, %v12156_v24 }
 0x1bf   : > { %10902 = vmatmul.mubr.msk.f32.gmra.mxu0 %vm1718_vm0, %v1399_v46  ;;  %v1403_v46 = vmul.f32 %v12826_v26, %v12156_v24 }
 0x1c0   : > { %10904 = vmatprep.mubr.msk.f32.mxu0 %vm1718_vm0, %v1400_v34  ;;  %19231 = vst [vmem:[#allocation92_spill] sm:$0xff] %v12836_v53  ;;  %v1279_v34 = vmul.f32 %v12375_v19, %v12375_v19 }
 0x1c2   : > { %v12846_v4 = vsub.f32 1.0, %v1279_v34  ;;  %v1408_v34 = vmul.f32 %v12399_v33, %v12156_v24 }
 0x1c3   : > { %10905 = vmatmul.mubr.msk.f32.gmra.mxu0 %vm1718_vm0, %v1401_v25  ;;  %v1405_v25 = vmul.f32 %v12836_v53, %v12156_v24 }
 0x1c4   : > { %10907 = vmatprep.mubr.msk.f32.mxu0 %vm1718_vm0, %v1402_v58  ;;  %19232 = vst [vmem:[#allocation93_spill] sm:$0xff] %v12846_v4  ;;  %v1281_v58 = vmul.f32 %v12388_v31, %v12388_v31 }
 0x1c6   : > { %v12856_v19 = vsub.f32 1.0, %v1281_v58  ;;  %v1410_v58 = vmul.f32 %v12420_v35, %v12156_v24 }
 0x1c7   : > { %10908 = vmatmul.mubr.msk.f32.gmra.mxu0 %vm1718_vm0, %v1403_v46  ;;  %v1407_v46 = vmul.f32 %v12846_v4, %v12156_v24 }
 0x1c8   : > { %10910 = vmatprep.mubr.msk.f32.mxu0 %vm1718_vm0, %v1404_v32  ;;  %19233 = vst [vmem:[#allocation94_spill] sm:$0xff] %v12856_v19  ;;  %v1283_v32 = vmul.f32 %v12422_v15, %v12422_v15 }
 0x1ca   : > { %v12866_v31 = vsub.f32 1.0, %v1283_v32  ;;  %v1412_v32 = vmul.f32 %v12437_v38, %v12156_v24 }
 0x1cb   : > { %10911 = vmatmul.mubr.msk.f32.gmra.mxu0 %vm1718_vm0, %v1405_v25  ;;  %v1409_v25 = vmul.f32 %v12856_v19, %v12156_v24 }
 0x1cc   : > { %10913 = vmatprep.mubr.msk.f32.mxu0 %vm1718_vm0, %v1406_v27  ;;  %19234 = vst [vmem:[#allocation95_spill] sm:$0xff] %v12866_v31  ;;  %v1285_v27 = vmul.f32 %v12427_v20, %v12427_v20 }
 0x1ce   : > { %v12876_v15 = vsub.f32 1.0, %v1285_v27  ;;  %v1414_v27 = vmul.f32 %v12460_v16, %v12156_v24 }
 0x1cf   : > { %10914 = vmatmul.mubr.msk.f32.gmra.mxu0 %vm1718_vm0, %v1407_v46  ;;  %v1411_v46 = vmul.f32 %v12866_v31, %v12156_v24 }
 0x1d0   : > { %10916 = vmatprep.mubr.msk.f32.mxu0 %vm1718_vm0, %v1408_v34  ;;  %19235 = vst [vmem:[#allocation96_spill] sm:$0xff] %v12876_v15  ;;  %v1287_v34 = vmul.f32 %v12434_v23, %v12434_v23 }
 0x1d2   : > { %v12886_v20 = vsub.f32 1.0, %v1287_v34  ;;  %v1416_v34 = vmul.f32 %v12471_v42, %v12156_v24 }
 0x1d3   : > { %10917 = vmatmul.mubr.msk.f32.gmra.mxu0 %vm1718_vm0, %v1409_v25  ;;  %v1413_v25 = vmul.f32 %v12876_v15, %v12156_v24 }
 0x1d4   : > { %10919 = vmatprep.mubr.msk.f32.mxu0 %vm1718_vm0, %v1410_v58  ;;  %19236 = vst [vmem:[#allocation97_spill] sm:$0xff] %v12886_v20  ;;  %v1289_v58 = vmul.f32 %v12449_v6, %v12449_v6 }
 0x1d6   : > { %v12896_v23 = vsub.f32 1.0, %v1289_v58  ;;  %v1418_v58 = vmul.f32 %v12488_v62, %v12156_v24 }
 0x1d7   : > { %10920 = vmatmul.mubr.msk.f32.gmra.mxu0 %vm1718_vm0, %v1411_v46  ;;  %v1415_v46 = vmul.f32 %v12886_v20, %v12156_v24 }
 0x1d8   : > { %10922 = vmatprep.mubr.msk.f32.mxu0 %vm1718_vm0, %v1412_v32  ;;  %19237 = vst [vmem:[#allocation98_spill] sm:$0xff] %v12896_v23  ;;  %v1291_v32 = vmul.f32 %v12490_v14, %v12490_v14 }
 0x1da   : > { %v12906_v6 = vsub.f32 1.0, %v1291_v32  ;;  %v1420_v32 = vmul.f32 %v12507_v41, %v12156_v24 }
 0x1db   : > { %10923 = vmatmul.mubr.msk.f32.gmra.mxu0 %vm1718_vm0, %v1413_v25  ;;  %v1417_v25 = vmul.f32 %v12896_v23, %v12156_v24 }
 0x1dc   : > { %10925 = vmatprep.mubr.msk.f32.mxu0 %vm1718_vm0, %v1414_v27  ;;  %19238 = vst [vmem:[#allocation99_spill] sm:$0xff] %v12906_v6  ;;  %v1293_v27 = vmul.f32 %v12495_v37, %v12495_v37 }
 0x1de   : > { %v12916_v14 = vsub.f32 1.0, %v1293_v27  ;;  %v12933_v27 = vld [vmem:[%s18701_s4] ss:$0 sm:$0xff] }
 0x1df   : > { %10926 = vmatmul.mubr.msk.f32.gmra.mxu0 %vm1718_vm0, %v1415_v46  ;;  %v1419_v46 = vmul.f32 %v12906_v6, %v12156_v24 }
 0x1e0   : > { %10928 = vmatprep.mubr.msk.f32.mxu0 %vm1718_vm0, %v1416_v34  ;;  %19239 = vst [vmem:[#allocation100_spill] sm:$0xff] %v12916_v14  ;;  %v1295_v34 = vmul.f32 %v12529_v17, %v12529_v17  ;;  %v1422_v17 = vmul.f32 %v12527_v39, %v12156_v24  ;;  %v19242_v39 = vld [vmem:[#allocation58_spill] sm:$0xff] }
 0x1e1   : > { %v1424_v41 = vmul.f32 %v19242_v39, %v12156_v24 }
 0x1e2   : > { %v12926_v37 = vsub.f32 1.0, %v1295_v34 }
 0x1e3   : > { %10929 = vmatmul.mubr.msk.f32.gmra.mxu0 %vm1718_vm0, %v1417_v25  ;;  %v1421_v25 = vmul.f32 %v12916_v14, %v12156_v24 }
 0x1e4   : > { %10931 = vmatprep.mubr.msk.f32.mxu0 %vm1718_vm0, %v1418_v58  ;;  %19240 = vst [vmem:[#allocation101_spill] sm:$0xff] %v12926_v37  ;;  %v1297_v58 = vmul.f32 %v12534_v56, %v12534_v56 }
 0x1e6   : > { %v12942_v56 = vsub.f32 1.0, %v1297_v58 }
 0x1e7   : > { %10932 = vmatmul.mubr.msk.f32.gmra.mxu0 %vm1718_vm0, %v1419_v46 }
 0x1e8   : > { %10934 = vmatprep.mubr.msk.f32.mxu0 %vm1718_vm0, %v1420_v32  ;;  %v1423_v32 = vmul.f32 %v12926_v37, %v12156_v24  ;;  %19241 = vst [vmem:[#allocation102_spill] sm:$0xff] %v12942_v56  ;;  %v1425_v22 = vmul.f32 %v12942_v56, %v12156_v24  ;;  %v19245_v37 = vld [vmem:[#allocation9_spill] sm:$0xff]  ;;  %v19248_v56 = vld [vmem:[#allocation11_spill] sm:$0xff] }
 0x1ea   : > { %v10792_v60 = vpop.f32.mrf.mxu0 }
 0x1eb   : > { %10935 = vmatmul.mubr.msk.f32.gmra.mxu0 %vm1718_vm0, %v1421_v25  ;;  %v3839_v46 = vadd.f32 %v10792_v60, %v12933_v27  ;;  %v19243_v60 = vld [vmem:[#allocation60_spill] sm:$0xff] }
 0x1ec   : > { %10937 = vmatprep.mubr.msk.f32.mxu0 %vm1718_vm0, %v1422_v17  ;;  %v2553_v34 = vpop.f32.mrf.mxu0  ;;  %v1301_v17 = vmul.f32 %v19243_v60, %v19243_v60  ;;  %v19247_v60 = vld [vmem:[#allocation62_spill] sm:$0xff] }
 0x1ed   : > { %v3838_v14 = vadd.f32 %v12933_v27, %v2553_v34  ;;  %v12956_v34 = vsub.f32 1.0, %v1299_v50 }
 0x1ee   : > { %v10795_v6 = vpop.f32.mrf.mxu0 }
 0x1ef   : > { %10938 = vmatmul.mubr.msk.f32.gmra.mxu0 %vm1718_vm0, %v1423_v32  ;;  %11713 = vtanh.f32 %v3838_v14  ;;  %v3841_v25 = vadd.f32 %v10795_v6, %v12933_v27  ;;  %19244 = vst [vmem:[#allocation103_spill] sm:$0xff] %v12956_v34  ;;  %v1426_v32 = vmul.f32 %v19245_v37, %v12156_v24  ;;  %v1427_v50 = vmul.f32 %v12956_v34, %v12156_v24 }
 0x1f0   : > { %10940 = vmatprep.mubr.msk.f32.mxu0 %vm1718_vm0, %v1424_v41  ;;  %11715 = vtanh.f32 %v3839_v46  ;;  %v2563_v58 = vpop.f32.mrf.mxu0  ;;  %v12963_v41 = vsub.f32 1.0, %v1301_v17 }
 0x1f1   : > { %v3840_v39 = vadd.f32 %v12933_v27, %v2563_v58  ;;  %v1303_v58 = vmul.f32 %v19247_v60, %v19247_v60 }
 0x1f2   : > { %v10798_v14 = vpop.f32.mrf.mxu0  ;;  %19246 = vst [vmem:[#allocation104_spill] sm:$0xff] %v12963_v41  ;;  %v1429_v17 = vmul.f32 %v12963_v41, %v12156_v24 }
 0x1f3   : > { %10941 = vmatmul.mubr.msk.f32.gmra.mxu0 %vm1718_vm0, %v1425_v22  ;;  %11717 = vtanh.f32 %v3840_v39  ;;  %v3843_v6 = vadd.f32 %v10798_v14, %v12933_v27  ;;  %v1428_v22 = vmul.f32 %v19248_v56, %v12156_v24  ;;  %v12978_v14 = vsub.f32 1.0, %v1303_v58  ;;  %v19250_v56 = vld [vmem:[#allocation12_spill] sm:$0xff] }
 0x1f4   : > { %10943 = vmatprep.mubr.msk.f32.mxu0 %vm1718_vm0, %v1426_v32  ;;  %11719 = vtanh.f32 %v3841_v25  ;;  %v2573_v46 = vpop.f32.mrf.mxu0 }
 0x1f5   : > { %v3842_v37 = vadd.f32 %v12933_v27, %v2573_v46  ;;  %19249 = vst [vmem:[#allocation105_spill] sm:$0xff] %v12978_v14  ;;  %v1305_v46 = vmul.f32 %v12623_v49, %v12623_v49 }
 0x1f6   : > { %v10801_v39 = vpop.f32.mrf.mxu0 }
 0x1f7   : > { %10944 = vmatmul.mubr.msk.f32.gmra.mxu0 %vm1718_vm0, %v1427_v50  ;;  %11721 = vtanh.f32 %v3842_v37  ;;  %v3845_v25 = vadd.f32 %v10801_v39, %v12933_v27  ;;  %v1430_v50 = vmul.f32 %v19250_v56, %v12156_v24  ;;  %v12994_v41 = vsub.f32 1.0, %v1305_v46 }
 0x1f8   : > { %10946 = vmatprep.mubr.msk.f32.mxu0 %vm1718_vm0, %v1428_v22  ;;  %11723 = vtanh.f32 %v3843_v6  ;;  %v2583_v32 = vpop.f32.mrf.mxu0  ;;  %v19251_v6 = vld [vmem:[#allocation63_spill] sm:$0xff] }
 0x1f9   : > { %v3844_v60 = vadd.f32 %v12933_v27, %v2583_v32  ;;  %v1307_v22 = vmul.f32 %v19251_v6, %v19251_v6  ;;  %v1431_v32 = vmul.f32 %v12978_v14, %v12156_v24  ;;  %19253 = vst [vmem:[#allocation107_spill] sm:$0xff] %v12994_v41  ;;  %v19258_v14 = vld [vmem:[#allocation64_spill] sm:$0xff] }
 0x1fa   : > { %v10804_v37 = vpop.f32.mrf.mxu0 }
 0x1fb   : > { %10947 = vmatmul.mubr.msk.f32.gmra.mxu0 %vm1718_vm0, %v1429_v17  ;;  %11725 = vtanh.f32 %v3844_v60  ;;  %v3847_v58 = vadd.f32 %v10804_v37, %v12933_v27  ;;  %v19255_v17 = vld [vmem:[#allocation15_spill] sm:$0xff] }
 0x1fc   : > { %10949 = vmatprep.mubr.msk.f32.mxu0 %vm1718_vm0, %v1430_v50  ;;  %v12989_v39 = vpop.eup %11713  ;;  %11727 = vtanh.f32 %v3845_v25  ;;  %v2593_v49 = vpop.f32.mrf.mxu0  ;;  %v1432_v50 = vmul.f32 %v19255_v17, %v12156_v24  ;;  %v13007_v25 = vsub.f32 1.0, %v1307_v22  ;;  %v1433_v17 = vmul.f32 %v12994_v41, %v12156_v24  ;;  %v19260_v22 = vld [vmem:[#allocation17_spill] sm:$0xff] }
 0x1fd   : > { %19252 = vst [vmem:[#allocation106_spill] sm:$0xff] %v12989_v39  ;;  %v12996_v56 = vpop.eup %11715  ;;  %v3846_v60 = vadd.f32 %v12933_v27, %v2593_v49  ;;  %11182 = vmatprep.mubr.msk.f32.mxu1 %vm1718_vm0, %v12989_v39 }
 0x1fe   : > { %19254 = vst [vmem:[#allocation108_spill] sm:$0xff] %v12996_v56  ;;  %v10807_v6 = vpop.f32.mrf.mxu0  ;;  %11183 = vmatmul.mubr.msk.f32.vlgmr.msra.gmra.mxu1 %vm1718_vm0, %v12996_v56  ;;  %19256 = vst [vmem:[#allocation109_spill] sm:$0xff] %v13007_v25 }
 0x1ff   : > { %10950 = vmatmul.mubr.msk.f32.gmra.mxu0 %vm1718_vm0, %v1431_v32  ;;  %11729 = vtanh.f32 %v3846_v60  ;;  %v3849_v49 = vadd.f32 %v10807_v6, %v12933_v27  ;;  %v1309_v32 = vmul.f32 %v19258_v14, %v19258_v14  ;;  %v1435_v6 = vmul.f32 %v13007_v25, %v12156_v24 }
 0x200   : > { %10952 = vmatprep.mubr.msk.f32.mxu0 %vm1718_vm0, %v1432_v50  ;;  %v13009_v46 = vpop.eup %11717  ;;  %11731 = vtanh.f32 %v3847_v58  ;;  %v2603_v37 = vpop.f32.mrf.mxu0  ;;  %v1434_v50 = vmul.f32 %v19260_v22, %v12156_v24 }
 0x201   : > { %19257 = vst [vmem:[#allocation110_spill] sm:$0xff] %v13009_v46  ;;  %v13016_v34 = vpop.eup %11719  ;;  %v3848_v60 = vadd.f32 %v12933_v27, %v2603_v37  ;;  %11185 = vmatprep.mubr.msk.f32.mxu1 %vm1718_vm0, %v13009_v46  ;;  %v13032_v46 = vsub.f32 1.0, %v1309_v32 }
 0x202   : > { %19259 = vst [vmem:[#allocation111_spill] sm:$0xff] %v13016_v34  ;;  %v10810_v58 = vpop.f32.mrf.mxu0  ;;  %11186 = vmatmul.mubr.msk.f32.gmra.mxu1 %vm1718_vm0, %v13016_v34 }
 0x203   : > { %10953 = vmatmul.mubr.msk.f32.gmra.mxu0 %vm1718_vm0, %v1433_v17  ;;  %11733 = vtanh.f32 %v3848_v60  ;;  %v3851_v37 = vadd.f32 %v10810_v58, %v12933_v27  ;;  %19262 = vst [vmem:[#allocation113_spill] sm:$0xff] %v13032_v46  ;;  %v1311_v17 = vmul.f32 %v12686_v59, %v12686_v59  ;;  %v1437_v59 = vmul.f32 %v13032_v46, %v12156_v24 }
 0x204   : > { %10955 = vmatprep.mubr.msk.f32.mxu0 %vm1718_vm0, %v1434_v50  ;;  %v13029_v14 = vpop.eup %11721  ;;  %11735 = vtanh.f32 %v3849_v49  ;;  %v2613_v41 = vpop.f32.mrf.mxu0  ;;  %v1436_v50 = vmul.f32 %v12668_v5, %v12156_v24  ;;  %v1313_v49 = vmul.f32 %v12700_v51, %v12700_v51 }
 0x205   : > { %19261 = vst [vmem:[#allocation112_spill] sm:$0xff] %v13029_v14  ;;  %v13036_v22 = vpop.eup %11723  ;;  %v3850_v60 = vadd.f32 %v12933_v27, %v2613_v41  ;;  %11188 = vmatprep.mubr.msk.f32.mxu1 %vm1718_vm0, %v13029_v14  ;;  %v13054_v5 = vsub.f32 1.0, %v1311_v17 }
 0x206   : > { %v10813_v25 = vpop.f32.mrf.mxu0  ;;  %11189 = vmatmul.mubr.msk.f32.gmra.mxu1 %vm1718_vm0, %v13036_v22 }
 0x207   : > { %10956 = vmatmul.mubr.msk.f32.gmra.mxu0 %vm1718_vm0, %v1435_v6  ;;  %11737 = vtanh.f32 %v3850_v60  ;;  %v3853_v41 = vadd.f32 %v10813_v25, %v12933_v27  ;;  %19264 = vst [vmem:[#allocation115_spill] sm:$0xff] %v13054_v5  ;;  %v13067_v25 = vsub.f32 1.0, %v1313_v49  ;;  %v1440_v49 = vmul.f32 %v12697_v40, %v12156_v24 }
 0x208   : > { %10958 = vmatprep.mubr.msk.f32.mxu0 %vm1718_vm0, %v1436_v50  ;;  %v13049_v32 = vpop.eup %11725  ;;  %11739 = vtanh.f32 %v3851_v37  ;;  %v2623_v58 = vpop.f32.mrf.mxu0  ;;  %v1438_v50 = vmul.f32 %v12684_v45, %v12156_v24  ;;  %v1439_v45 = vmul.f32 %v13054_v5, %v12156_v24 }
 0x209   : > { %19263 = vst [vmem:[#allocation114_spill] sm:$0xff] %v13049_v32  ;;  %v13056_v6 = vpop.eup %11727  ;;  %v3852_v60 = vadd.f32 %v12933_v27, %v2623_v58  ;;  %11191 = vmatprep.mubr.msk.f32.mxu1 %vm1718_vm0, %v13049_v32  ;;  %19266 = vst [vmem:[#allocation117_spill] sm:$0xff] %v13067_v25 }
 0x20a   : > { %19265 = vst [vmem:[#allocation116_spill] sm:$0xff] %v13056_v6  ;;  %v10816_v51 = vpop.f32.mrf.mxu0  ;;  %11192 = vmatmul.mubr.msk.f32.gmra.mxu1 %vm1718_vm0, %v13056_v6 }
 0x20b   : > { %10959 = vmatmul.mubr.msk.f32.gmra.mxu0 %vm1718_vm0, %v1437_v59  ;;  %11741 = vtanh.f32 %v3852_v60  ;;  %v3855_v17 = vadd.f32 %v10816_v51, %v12933_v27  ;;  %v1315_v59 = vmul.f32 %v12712_v3, %v12712_v3  ;;  %v1441_v51 = vmul.f32 %v13067_v25, %v12156_v24 }
 0x20c   : > { %10961 = vmatprep.mubr.msk.f32.mxu0 %vm1718_vm0, %v1438_v50  ;;  %v13069_v37 = vpop.eup %11729  ;;  %11743 = vtanh.f32 %v3853_v41  ;;  %v2633_v58 = vpop.f32.mrf.mxu0 }
 0x20d   : > { %19267 = vst [vmem:[#allocation118_spill] sm:$0xff] %v13069_v37  ;;  %v13076_v46 = vpop.eup %11731  ;;  %v3854_v60 = vadd.f32 %v12933_v27, %v2633_v58  ;;  %11194 = vmatprep.mubr.msk.f32.mxu1 %vm1718_vm0, %v13069_v37  ;;  %v13092_v5 = vsub.f32 1.0, %v1315_v59 }
 0x20e   : > { %v10819_v41 = vpop.f32.mrf.mxu0  ;;  %11195 = vmatmul.mubr.msk.f32.gmra.mxu1 %vm1718_vm0, %v13076_v46 }
 0x20f   : > { %10962 = vmatmul.mubr.msk.f32.gmra.mxu0 %vm1718_vm0, %v1439_v45  ;;  %11745 = vtanh.f32 %v3854_v60  ;;  %v3857_v58 = vadd.f32 %v10819_v41, %v12933_v27  ;;  %19269 = vst [vmem:[#allocation120_spill] sm:$0xff] %v13092_v5  ;;  %v1317_v45 = vmul.f32 %v12719_v28, %v12719_v28  ;;  %v1443_v28 = vmul.f32 %v13092_v5, %v12156_v24 }
 0x210   : > { %10964 = vmatprep.mubr.msk.f32.mxu0 %vm1718_vm0, %v1440_v49  ;;  %v13089_v50 = vpop.eup %11733  ;;  %11747 = vtanh.f32 %v3855_v17  ;;  %v2643_v3 = vpop.f32.mrf.mxu0  ;;  %v1442_v49 = vmul.f32 %v12709_v52, %v12156_v24  ;;  %v1319_v17 = vmul.f32 %v12732_v21, %v12732_v21 }
 0x211   : > { %19268 = vst [vmem:[#allocation119_spill] sm:$0xff] %v13089_v50  ;;  %v13096_v40 = vpop.eup %11735  ;;  %v3856_v60 = vadd.f32 %v12933_v27, %v2643_v3  ;;  %11197 = vmatprep.mubr.msk.f32.mxu1 %vm1718_vm0, %v13089_v50  ;;  %v13114_v52 = vsub.f32 1.0, %v1317_v45 }
 0x212   : > { %19270 = vst [vmem:[#allocation121_spill] sm:$0xff] %v13096_v40  ;;  %v10822_v25 = vpop.f32.mrf.mxu0  ;;  %11198 = vmatmul.mubr.msk.f32.gmra.mxu1 %vm1718_vm0, %v13096_v40 }
 0x213   : > { %10965 = vmatmul.mubr.msk.f32.gmra.mxu0 %vm1718_vm0, %v1441_v51  ;;  %11749 = vtanh.f32 %v3856_v60  ;;  %v3859_v3 = vadd.f32 %v10822_v25, %v12933_v27  ;;  %19272 = vst [vmem:[#allocation123_spill] sm:$0xff] %v13114_v52  ;;  %v13127_v25 = vsub.f32 1.0, %v1319_v17  ;;  %v1446_v17 = vmul.f32 %v12730_v29, %v12156_v24 }
 0x214   : > { %10967 = vmatprep.mubr.msk.f32.mxu0 %vm1718_vm0, %v1442_v49  ;;  %v13109_v59 = vpop.eup %11737  ;;  %11751 = vtanh.f32 %v3857_v58  ;;  %v2653_v41 = vpop.f32.mrf.mxu0  ;;  %v1444_v49 = vmul.f32 %v12722_v44, %v12156_v24  ;;  %v1445_v44 = vmul.f32 %v13114_v52, %v12156_v24 }
 0x215   : > { %19271 = vst [vmem:[#allocation122_spill] sm:$0xff] %v13109_v59  ;;  %v13116_v51 = vpop.eup %11739  ;;  %v3858_v60 = vadd.f32 %v12933_v27, %v2653_v41  ;;  %11200 = vmatprep.mubr.msk.f32.mxu1 %vm1718_vm0, %v13109_v59  ;;  %19274 = vst [vmem:[#allocation125_spill] sm:$0xff] %v13127_v25 }
 0x216   : > { %19273 = vst [vmem:[#allocation124_spill] sm:$0xff] %v13116_v51  ;;  %11201 = vmatmul.mubr.msk.f32.gmra.mxu1 %vm1718_vm0, %v13116_v51 }
 0x217   : > { %v10825_v21 = vpop.f32.mrf.mxu0  ;;  %10968 = vmatmul.mubr.msk.f32.gmra.mxu0 %vm1718_vm0, %v1443_v28  ;;  %11753 = vtanh.f32 %v3858_v60  ;;  %v1321_v28 = vmul.f32 %v12742_v61, %v12742_v61 }
 0x218   : > { %10970 = vmatprep.mubr.msk.f32.mxu0 %vm1718_vm0, %v1444_v49  ;;  %v13129_v58 = vpop.eup %11741  ;;  %11755 = vtanh.f32 %v3859_v3  ;;  %v3861_v45 = vadd.f32 %v10825_v21, %v12933_v27  ;;  %v1447_v21 = vmul.f32 %v13127_v25, %v12156_v24 }
 0x219   : > { %19275 = vst [vmem:[#allocation126_spill] sm:$0xff] %v13129_v58  ;;  %v2663_v41 = vpop.f32.mrf.mxu0  ;;  %v13136_v5 = vpop.eup %11743  ;;  %11203 = vmatprep.mubr.msk.f32.mxu1 %vm1718_vm0, %v13129_v58  ;;  %v13152_v52 = vsub.f32 1.0, %v1321_v28 }
 0x21a   : > { %19276 = vst [vmem:[#allocation127_spill] sm:$0xff] %v13136_v5  ;;  %v3860_v60 = vadd.f32 %v12933_v27, %v2663_v41  ;;  %11204 = vmatmul.mubr.msk.f32.gmra.mxu1 %vm1718_vm0, %v13136_v5 }
 0x21b   : > { %v10828_v3 = vpop.f32.mrf.mxu0  ;;  %10971 = vmatmul.mubr.msk.f32.gmra.mxu0 %vm1718_vm0, %v1445_v44  ;;  %19278 = vst [vmem:[#allocation129_spill] sm:$0xff] %v13152_v52  ;;  %v1323_v44 = vmul.f32 %v12754_v48, %v12754_v48 }
 0x21c   : > { %11757 = vtanh.f32 %v3860_v60  ;;  %10973 = vmatprep.mubr.msk.f32.mxu0 %vm1718_vm0, %v1446_v17  ;;  %v13149_v49 = vpop.eup %11745  ;;  %v3863_v41 = vadd.f32 %v10828_v3, %v12933_v27  ;;  %v1448_v17 = vmul.f32 %v12740_v11, %v12156_v24  ;;  %v1449_v3 = vmul.f32 %v13152_v52, %v12156_v24 }
 0x21d   : > { %19277 = vst [vmem:[#allocation128_spill] sm:$0xff] %v13149_v49  ;;  %11759 = vtanh.f32 %v3861_v45  ;;  %v2673_v61 = vpop.f32.mrf.mxu0  ;;  %v13156_v29 = vpop.eup %11747  ;;  %11206 = vmatprep.mubr.msk.f32.mxu1 %vm1718_vm0, %v13149_v49  ;;  %v13172_v48 = vsub.f32 1.0, %v1323_v44 }
 0x21e   : > { %19279 = vst [vmem:[#allocation130_spill] sm:$0xff] %v13156_v29  ;;  %v3862_v60 = vadd.f32 %v12933_v27, %v2673_v61  ;;  %11207 = vmatmul.mubr.msk.f32.gmra.mxu1 %vm1718_vm0, %v13156_v29 }
 0x21f   : > { %v10831_v25 = vpop.f32.mrf.mxu0  ;;  %10974 = vmatmul.mubr.msk.f32.gmra.mxu0 %vm1718_vm0, %v1447_v21  ;;  %19281 = vst [vmem:[#allocation132_spill] sm:$0xff] %v13172_v48 }
 0x220   : > { %11761 = vtanh.f32 %v3862_v60  ;;  %10976 = vmatprep.mubr.msk.f32.mxu0 %vm1718_vm0, %v1448_v17  ;;  %v13167_v45 = vpop.eup %11749  ;;  %v3865_v61 = vadd.f32 %v10831_v25, %v12933_v27  ;;  %v1450_v60 = vmul.f32 %v12750_v8, %v12156_v24 }
 0x221   : > { %19280 = vst [vmem:[#allocation131_spill] sm:$0xff] %v13167_v45  ;;  %11763 = vtanh.f32 %v3863_v41  ;;  %v2683_v28 = vpop.f32.mrf.mxu0  ;;  %v13174_v11 = vpop.eup %11751  ;;  %11209 = vmatprep.mubr.msk.f32.mxu1 %vm1718_vm0, %v13167_v45 }
 0x222   : > { %19282 = vst [vmem:[#allocation133_spill] sm:$0xff] %v13174_v11  ;;  %v3864_v21 = vadd.f32 %v12933_v27, %v2683_v28  ;;  %11210 = vmatmul.mubr.msk.f32.gmra.mxu1 %vm1718_vm0, %v13174_v11  ;;  %v1451_v28 = vmul.f32 %v13172_v48, %v12156_v24 }
 0x223   : > { %v10834_v17 = vpop.f32.mrf.mxu0  ;;  %10977 = vmatmul.mubr.msk.f32.gmra.mxu0 %vm1718_vm0, %v1449_v3  ;;  %v19285_v3 = vld [vmem:[#allocation22_spill] sm:$0xff] }
 0x224   : > { %11765 = vtanh.f32 %v3864_v21  ;;  %10979 = vmatprep.mubr.msk.f32.mxu0 %vm1718_vm0, %v1450_v60  ;;  %v13185_v25 = vpop.eup %11753  ;;  %v3867_v41 = vadd.f32 %v10834_v17, %v12933_v27  ;;  %v1452_v21 = vmul.f32 %v12216_v43, %v19285_v3 }
 0x225   : > { %19283 = vst [vmem:[#allocation134_spill] sm:$0xff] %v13185_v25  ;;  %11767 = vtanh.f32 %v3865_v61  ;;  %v2693_v44 = vpop.f32.mrf.mxu0  ;;  %v13190_v52 = vpop.eup %11755  ;;  %11212 = vmatprep.mubr.msk.f32.mxu1 %vm1718_vm0, %v13185_v25 }
 0x226   : > { %19284 = vst [vmem:[#allocation135_spill] sm:$0xff] %v13190_v52  ;;  %v3866_v8 = vadd.f32 %v12933_v27, %v2693_v44  ;;  %11213 = vmatmul.mubr.msk.f32.gmra.mxu1 %vm1718_vm0, %v13190_v52  ;;  %v1453_v44 = vmul.f32 %v12235_v1, %v19285_v3 }
 0x227   : > { %v10837_v60 = vpop.f32.mrf.mxu0  ;;  %10980 = vmatmul.mubr.msk.f32.gmra.mxu0 %vm1718_vm0, %v1451_v28 }
 0x228   : > { %11769 = vtanh.f32 %v3866_v8  ;;  %10982 = vmatprep.mubr.msk.f32.mxu0 %vm1718_vm0, %v1452_v21  ;;  %v3869_v61 = vadd.f32 %v10837_v60, %v12933_v27  ;;  %v1454_v8 = vmul.f32 %v12237_v36, %v19285_v3  ;;  %v1455_v60 = vmul.f32 %v12766_v13, %v19285_v3 }
 0x229   : > { %v13201_v24 = vpop.eup %11757  ;;  %11771 = vtanh.f32 %v3867_v41  ;;  %v2703_v17 = vpop.f32.mrf.mxu0 }
 0x22a   : > { %19286 = vst [vmem:[#allocation22_spill] sm:$0xff] %v13201_v24  ;;  %v13206_v48 = vpop.eup %11759  ;;  %v3868_v43 = vadd.f32 %v12933_v27, %v2703_v17  ;;  %11215 = vmatprep.mubr.msk.f32.mxu1 %vm1718_vm0, %v13201_v24 }
 0x22b   : > { %19287 = vst [vmem:[#allocation136_spill] sm:$0xff] %v13206_v48  ;;  %v10840_v28 = vpop.f32.mrf.mxu0  ;;  %10983 = vmatmul.mubr.msk.f32.gmra.mxu0 %vm1718_vm0, %v1453_v44  ;;  %11216 = vmatmul.mubr.msk.f32.gmra.mxu1 %vm1718_vm0, %v13206_v48  ;;  %v1456_v44 = vmul.f32 %v12253_v57, %v19285_v3 }
 0x22c   : > { %11773 = vtanh.f32 %v3868_v43  ;;  %10985 = vmatprep.mubr.msk.f32.mxu0 %vm1718_vm0, %v1454_v8  ;;  %v3871_v41 = vadd.f32 %v10840_v28, %v12933_v27 }
 0x22d   : > { %v13217_v1 = vpop.eup %11761  ;;  %11775 = vtanh.f32 %v3869_v61  ;;  %v2713_v21 = vpop.f32.mrf.mxu0 }
 0x22e   : > { %19288 = vst [vmem:[#allocation137_spill] sm:$0xff] %v13217_v1  ;;  %v13222_v17 = vpop.eup %11763  ;;  %v3870_v36 = vadd.f32 %v12933_v27, %v2713_v21  ;;  %11218 = vmatprep.mubr.msk.f32.mxu1 %vm1718_vm0, %v13217_v1  ;;  %v1457_v21 = vmul.f32 %v12776_v0, %v19285_v3 }
 0x22f   : > { %19289 = vst [vmem:[#allocation138_spill] sm:$0xff] %v13222_v17  ;;  %v10843_v43 = vpop.f32.mrf.mxu0  ;;  %10986 = vmatmul.mubr.msk.f32.gmra.mxu0 %vm1718_vm0, %v1455_v60  ;;  %11219 = vmatmul.mubr.msk.f32.gmra.mxu1 %vm1718_vm0, %v13222_v17  ;;  %v1458_v60 = vmul.f32 %v12282_v54, %v19285_v3 }
 0x230   : > { %11777 = vtanh.f32 %v3870_v36  ;;  %10988 = vmatprep.mubr.msk.f32.mxu0 %vm1718_vm0, %v1456_v44  ;;  %v3873_v8 = vadd.f32 %v10843_v43, %v12933_v27 }
 0x231   : > { %v13233_v61 = vpop.eup %11765  ;;  %11779 = vtanh.f32 %v3871_v41  ;;  %v2723_v28 = vpop.f32.mrf.mxu0 }
 0x232   : > { %19290 = vst [vmem:[#allocation139_spill] sm:$0xff] %v13233_v61  ;;  %v13238_v13 = vpop.eup %11767  ;;  %v3872_v57 = vadd.f32 %v12933_v27, %v2723_v28  ;;  %11221 = vmatprep.mubr.msk.f32.mxu1 %vm1718_vm0, %v13233_v61  ;;  %v1459_v28 = vmul.f32 %v12786_v9, %v19285_v3 }
 0x233   : > { %19291 = vst [vmem:[#allocation140_spill] sm:$0xff] %v13238_v13  ;;  %v10846_v36 = vpop.f32.mrf.mxu0  ;;  %10989 = vmatmul.mubr.msk.f32.gmra.mxu0 %vm1718_vm0, %v1457_v21  ;;  %11222 = vmatmul.mubr.msk.f32.gmra.mxu1 %vm1718_vm0, %v13238_v13  ;;  %v1460_v21 = vmul.f32 %v12293_v30, %v19285_v3 }
 0x234   : > { %11781 = vtanh.f32 %v3872_v57  ;;  %10991 = vmatprep.mubr.msk.f32.mxu0 %vm1718_vm0, %v1458_v60  ;;  %v3875_v44 = vadd.f32 %v10846_v36, %v12933_v27 }
 0x235   : > { %v13249_v41 = vpop.eup %11769  ;;  %11783 = vtanh.f32 %v3873_v8  ;;  %v2733_v43 = vpop.f32.mrf.mxu0 }
 0x236   : > { %19292 = vst [vmem:[#allocation141_spill] sm:$0xff] %v13249_v41  ;;  %v13254_v0 = vpop.eup %11771  ;;  %v3874_v54 = vadd.f32 %v12933_v27, %v2733_v43  ;;  %11224 = vmatprep.mubr.msk.f32.mxu1 %vm1718_vm0, %v13249_v41  ;;  %v1461_v43 = vmul.f32 %v12796_v55, %v19285_v3 }
 0x237   : > { %19293 = vst [vmem:[#allocation142_spill] sm:$0xff] %v13254_v0  ;;  %v10849_v57 = vpop.f32.mrf.mxu0  ;;  %10992 = vmatmul.mubr.msk.f32.gmra.mxu0 %vm1718_vm0, %v1459_v28  ;;  %11225 = vmatmul.mubr.msk.f32.gmra.mxu1 %vm1718_vm0, %v13254_v0  ;;  %v1462_v28 = vmul.f32 %v12318_v18, %v19285_v3 }
 0x238   : > { %11785 = vtanh.f32 %v3874_v54  ;;  %10994 = vmatprep.mubr.msk.f32.mxu0 %vm1718_vm0, %v1460_v21  ;;  %v3877_v60 = vadd.f32 %v10849_v57, %v12933_v27 }
 0x239   : > { %v13265_v8 = vpop.eup %11773  ;;  %11787 = vtanh.f32 %v3875_v44  ;;  %v2743_v36 = vpop.f32.mrf.mxu0 }
 0x23a   : > { %19294 = vst [vmem:[#allocation143_spill] sm:$0xff] %v13265_v8  ;;  %v13270_v9 = vpop.eup %11775  ;;  %v3876_v30 = vadd.f32 %v12933_v27, %v2743_v36  ;;  %11227 = vmatprep.mubr.msk.f32.mxu1 %vm1718_vm0, %v13265_v8  ;;  %v1463_v36 = vmul.f32 %v12806_v47, %v19285_v3 }
 0x23b   : > { %19295 = vst [vmem:[#allocation144_spill] sm:$0xff] %v13270_v9  ;;  %v10852_v54 = vpop.f32.mrf.mxu0  ;;  %10995 = vmatmul.mubr.msk.f32.gmra.mxu0 %vm1718_vm0, %v1461_v43  ;;  %11228 = vmatmul.mubr.msk.f32.gmra.mxu1 %vm1718_vm0, %v13270_v9  ;;  %v1464_v43 = vmul.f32 %v12331_v63, %v19285_v3 }
 0x23c   : > { %11789 = vtanh.f32 %v3876_v30  ;;  %10997 = vmatprep.mubr.msk.f32.mxu0 %vm1718_vm0, %v1462_v28  ;;  %v3879_v21 = vadd.f32 %v10852_v54, %v12933_v27 }
 0x23d   : > { %v13281_v44 = vpop.eup %11777  ;;  %11791 = vtanh.f32 %v3877_v60  ;;  %v2753_v57 = vpop.f32.mrf.mxu0 }
 0x23e   : > { %19296 = vst [vmem:[#allocation145_spill] sm:$0xff] %v13281_v44  ;;  %v13286_v55 = vpop.eup %11779  ;;  %v3878_v18 = vadd.f32 %v12933_v27, %v2753_v57  ;;  %11230 = vmatprep.mubr.msk.f32.mxu1 %vm1718_vm0, %v13281_v44  ;;  %v1465_v57 = vmul.f32 %v12816_v2, %v19285_v3 }
 0x23f   : > { %19297 = vst [vmem:[#allocation146_spill] sm:$0xff] %v13286_v55  ;;  %v10855_v30 = vpop.f32.mrf.mxu0  ;;  %10998 = vmatmul.mubr.msk.f32.gmra.mxu0 %vm1718_vm0, %v1463_v36  ;;  %11231 = vmatmul.mubr.msk.f32.gmra.mxu1 %vm1718_vm0, %v13286_v55  ;;  %v1466_v36 = vmul.f32 %v12350_v12, %v19285_v3 }
 0x240   : > { %11793 = vtanh.f32 %v3878_v18  ;;  %11000 = vmatprep.mubr.msk.f32.mxu0 %vm1718_vm0, %v1464_v43  ;;  %v3881_v28 = vadd.f32 %v10855_v30, %v12933_v27 }
 0x241   : > { %v13297_v60 = vpop.eup %11781  ;;  %11795 = vtanh.f32 %v3879_v21  ;;  %v2763_v54 = vpop.f32.mrf.mxu0 }
 0x242   : > { %19298 = vst [vmem:[#allocation147_spill] sm:$0xff] %v13297_v60  ;;  %v13302_v47 = vpop.eup %11783  ;;  %v3880_v63 = vadd.f32 %v12933_v27, %v2763_v54  ;;  %11233 = vmatprep.mubr.msk.f32.mxu1 %vm1718_vm0, %v13297_v60  ;;  %v1467_v54 = vmul.f32 %v12826_v26, %v19285_v3 }
 0x243   : > { %19299 = vst [vmem:[#allocation148_spill] sm:$0xff] %v13302_v47  ;;  %v10858_v18 = vpop.f32.mrf.mxu0  ;;  %11001 = vmatmul.mubr.msk.f32.gmra.mxu0 %vm1718_vm0, %v1465_v57  ;;  %11234 = vmatmul.mubr.msk.f32.gmra.mxu1 %vm1718_vm0, %v13302_v47  ;;  %v1468_v57 = vmul.f32 %v12364_v7, %v19285_v3 }
 0x244   : > { %11797 = vtanh.f32 %v3880_v63  ;;  %11003 = vmatprep.mubr.msk.f32.mxu0 %vm1718_vm0, %v1466_v36  ;;  %v3883_v43 = vadd.f32 %v10858_v18, %v12933_v27 }
 0x245   : > { %v13313_v21 = vpop.eup %11785  ;;  %11799 = vtanh.f32 %v3881_v28  ;;  %v2773_v30 = vpop.f32.mrf.mxu0 }
 0x246   : > { %19300 = vst [vmem:[#allocation149_spill] sm:$0xff] %v13313_v21  ;;  %v13318_v2 = vpop.eup %11787  ;;  %v3882_v12 = vadd.f32 %v12933_v27, %v2773_v30  ;;  %11236 = vmatprep.mubr.msk.f32.mxu1 %vm1718_vm0, %v13313_v21  ;;  %v1469_v30 = vmul.f32 %v12836_v53, %v19285_v3 }
 0x247   : > { %19301 = vst [vmem:[#allocation150_spill] sm:$0xff] %v13318_v2  ;;  %v10861_v63 = vpop.f32.mrf.mxu0  ;;  %11004 = vmatmul.mubr.msk.f32.gmra.mxu0 %vm1718_vm0, %v1467_v54  ;;  %11237 = vmatmul.mubr.msk.f32.gmra.mxu1 %vm1718_vm0, %v13318_v2  ;;  %v1470_v54 = vmul.f32 %v12386_v10, %v19285_v3 }
 0x248   : > { %11801 = vtanh.f32 %v3882_v12  ;;  %11006 = vmatprep.mubr.msk.f32.mxu0 %vm1718_vm0, %v1468_v57  ;;  %v3885_v36 = vadd.f32 %v10861_v63, %v12933_v27 }
 0x249   : > { %v13329_v28 = vpop.eup %11789  ;;  %11803 = vtanh.f32 %v3883_v43  ;;  %v2783_v18 = vpop.f32.mrf.mxu0 }
 0x24a   : > { %19302 = vst [vmem:[#allocation151_spill] sm:$0xff] %v13329_v28  ;;  %v13334_v26 = vpop.eup %11791  ;;  %v3884_v7 = vadd.f32 %v12933_v27, %v2783_v18  ;;  %11239 = vmatprep.mubr.msk.f32.mxu1 %vm1718_vm0, %v13329_v28  ;;  %v1471_v18 = vmul.f32 %v12846_v4, %v19285_v3 }
 0x24b   : > { %19303 = vst [vmem:[#allocation152_spill] sm:$0xff] %v13334_v26  ;;  %v10864_v12 = vpop.f32.mrf.mxu0  ;;  %11007 = vmatmul.mubr.msk.f32.gmra.mxu0 %vm1718_vm0, %v1469_v30  ;;  %11240 = vmatmul.mubr.msk.f32.gmra.mxu1 %vm1718_vm0, %v13334_v26  ;;  %v1472_v30 = vmul.f32 %v12399_v33, %v19285_v3 }
 0x24c   : > { %11805 = vtanh.f32 %v3884_v7  ;;  %11009 = vmatprep.mubr.msk.f32.mxu0 %vm1718_vm0, %v1470_v54  ;;  %v3887_v57 = vadd.f32 %v10864_v12, %v12933_v27 }
 0x24d   : > { %v13345_v43 = vpop.eup %11793  ;;  %11807 = vtanh.f32 %v3885_v36  ;;  %v2793_v63 = vpop.f32.mrf.mxu0 }
 0x24e   : > { %19304 = vst [vmem:[#allocation153_spill] sm:$0xff] %v13345_v43  ;;  %v13350_v53 = vpop.eup %11795  ;;  %v3886_v10 = vadd.f32 %v12933_v27, %v2793_v63  ;;  %11242 = vmatprep.mubr.msk.f32.mxu1 %vm1718_vm0, %v13345_v43  ;;  %v1473_v63 = vmul.f32 %v12856_v19, %v19285_v3 }
 0x24f   : > { %19305 = vst [vmem:[#allocation154_spill] sm:$0xff] %v13350_v53  ;;  %v10867_v7 = vpop.f32.mrf.mxu0  ;;  %11010 = vmatmul.mubr.msk.f32.gmra.mxu0 %vm1718_vm0, %v1471_v18  ;;  %11243 = vmatmul.mubr.msk.f32.gmra.mxu1 %vm1718_vm0, %v13350_v53  ;;  %v1474_v18 = vmul.f32 %v12420_v35, %v19285_v3 }
 0x250   : > { %11809 = vtanh.f32 %v3886_v10  ;;  %11012 = vmatprep.mubr.msk.f32.mxu0 %vm1718_vm0, %v1472_v30  ;;  %v3889_v54 = vadd.f32 %v10867_v7, %v12933_v27 }
 0x251   : > { %v13361_v36 = vpop.eup %11797  ;;  %11811 = vtanh.f32 %v3887_v57  ;;  %v2803_v12 = vpop.f32.mrf.mxu0 }
 0x252   : > { %19306 = vst [vmem:[#allocation155_spill] sm:$0xff] %v13361_v36  ;;  %v13366_v4 = vpop.eup %11799  ;;  %v3888_v33 = vadd.f32 %v12933_v27, %v2803_v12  ;;  %11245 = vmatprep.mubr.msk.f32.mxu1 %vm1718_vm0, %v13361_v36  ;;  %v1475_v12 = vmul.f32 %v12866_v31, %v19285_v3 }
 0x253   : > { %19307 = vst [vmem:[#allocation156_spill] sm:$0xff] %v13366_v4  ;;  %v10870_v10 = vpop.f32.mrf.mxu0  ;;  %11013 = vmatmul.mubr.msk.f32.gmra.mxu0 %vm1718_vm0, %v1473_v63  ;;  %11246 = vmatmul.mubr.msk.f32.gmra.mxu1 %vm1718_vm0, %v13366_v4  ;;  %v1476_v63 = vmul.f32 %v12437_v38, %v19285_v3 }
 0x254   : > { %11813 = vtanh.f32 %v3888_v33  ;;  %11015 = vmatprep.mubr.msk.f32.mxu0 %vm1718_vm0, %v1474_v18  ;;  %v3891_v30 = vadd.f32 %v10870_v10, %v12933_v27 }
 0x255   : > { %v13377_v57 = vpop.eup %11801  ;;  %11815 = vtanh.f32 %v3889_v54  ;;  %v2813_v7 = vpop.f32.mrf.mxu0 }
 0x256   : > { %19308 = vst [vmem:[#allocation157_spill] sm:$0xff] %v13377_v57  ;;  %v13382_v19 = vpop.eup %11803  ;;  %v3890_v35 = vadd.f32 %v12933_v27, %v2813_v7  ;;  %11248 = vmatprep.mubr.msk.f32.mxu1 %vm1718_vm0, %v13377_v57  ;;  %v1477_v7 = vmul.f32 %v12876_v15, %v19285_v3 }
 0x257   : > { %19309 = vst [vmem:[#allocation158_spill] sm:$0xff] %v13382_v19  ;;  %v10873_v33 = vpop.f32.mrf.mxu0  ;;  %11016 = vmatmul.mubr.msk.f32.gmra.mxu0 %vm1718_vm0, %v1475_v12  ;;  %11249 = vmatmul.mubr.msk.f32.gmra.mxu1 %vm1718_vm0, %v13382_v19  ;;  %v1478_v12 = vmul.f32 %v12460_v16, %v19285_v3 }
 0x258   : > { %11817 = vtanh.f32 %v3890_v35  ;;  %11018 = vmatprep.mubr.msk.f32.mxu0 %vm1718_vm0, %v1476_v63  ;;  %v3893_v18 = vadd.f32 %v10873_v33, %v12933_v27 }
 0x259   : > { %v13393_v54 = vpop.eup %11805  ;;  %11819 = vtanh.f32 %v3891_v30  ;;  %v2823_v10 = vpop.f32.mrf.mxu0 }
 0x25a   : > { %19310 = vst [vmem:[#allocation159_spill] sm:$0xff] %v13393_v54  ;;  %v13398_v31 = vpop.eup %11807  ;;  %v3892_v38 = vadd.f32 %v12933_v27, %v2823_v10  ;;  %11251 = vmatprep.mubr.msk.f32.mxu1 %vm1718_vm0, %v13393_v54  ;;  %v1479_v10 = vmul.f32 %v12886_v20, %v19285_v3 }
 0x25b   : > { %19311 = vst [vmem:[#allocation160_spill] sm:$0xff] %v13398_v31  ;;  %v10876_v35 = vpop.f32.mrf.mxu0  ;;  %11019 = vmatmul.mubr.msk.f32.gmra.mxu0 %vm1718_vm0, %v1477_v7  ;;  %11252 = vmatmul.mubr.msk.f32.gmra.mxu1 %vm1718_vm0, %v13398_v31  ;;  %v1480_v7 = vmul.f32 %v12471_v42, %v19285_v3  ;;  %v19339_v31 = vld [vmem:[#allocation104_spill] sm:$0xff] }
 0x25c   : > { %11821 = vtanh.f32 %v3892_v38  ;;  %11021 = vmatprep.mubr.msk.f32.mxu0 %vm1718_vm0, %v1478_v12  ;;  %v3895_v63 = vadd.f32 %v10876_v35, %v12933_v27 }
 0x25d   : > { %v13409_v30 = vpop.eup %11809  ;;  %11823 = vtanh.f32 %v3893_v18  ;;  %v2833_v33 = vpop.f32.mrf.mxu0 }
 0x25e   : > { %19312 = vst [vmem:[#allocation161_spill] sm:$0xff] %v13409_v30  ;;  %v13414_v15 = vpop.eup %11811  ;;  %v3894_v16 = vadd.f32 %v12933_v27, %v2833_v33  ;;  %11254 = vmatprep.mubr.msk.f32.mxu1 %vm1718_vm0, %v13409_v30  ;;  %v1481_v33 = vmul.f32 %v12896_v23, %v19285_v3 }
 0x25f   : > { %19313 = vst [vmem:[#allocation162_spill] sm:$0xff] %v13414_v15  ;;  %v10879_v38 = vpop.f32.mrf.mxu0  ;;  %11022 = vmatmul.mubr.msk.f32.gmra.mxu0 %vm1718_vm0, %v1479_v10  ;;  %11255 = vmatmul.mubr.msk.f32.gmra.mxu1 %vm1718_vm0, %v13414_v15  ;;  %v1482_v10 = vmul.f32 %v12488_v62, %v19285_v3 }
 0x260   : > { %11825 = vtanh.f32 %v3894_v16  ;;  %11024 = vmatprep.mubr.msk.f32.mxu0 %vm1718_vm0, %v1480_v7  ;;  %v3897_v12 = vadd.f32 %v10879_v38, %v12933_v27 }
 0x261   : > { %v13425_v18 = vpop.eup %11813  ;;  %11827 = vtanh.f32 %v3895_v63  ;;  %v2843_v35 = vpop.f32.mrf.mxu0 }
 0x262   : > { %19314 = vst [vmem:[#allocation163_spill] sm:$0xff] %v13425_v18  ;;  %v13430_v20 = vpop.eup %11815  ;;  %v3896_v42 = vadd.f32 %v12933_v27, %v2843_v35  ;;  %11257 = vmatprep.mubr.msk.f32.mxu1 %vm1718_vm0, %v13425_v18  ;;  %v19317_v35 = vld [vmem:[#allocation99_spill] sm:$0xff] }
 0x263   : > { %19315 = vst [vmem:[#allocation164_spill] sm:$0xff] %v13430_v20  ;;  %v10882_v16 = vpop.f32.mrf.mxu0  ;;  %11025 = vmatmul.mubr.msk.f32.gmra.mxu0 %vm1718_vm0, %v1481_v33  ;;  %11258 = vmatmul.mubr.msk.f32.gmra.mxu1 %vm1718_vm0, %v13430_v20  ;;  %v1483_v23 = vmul.f32 %v19317_v35, %v19285_v3  ;;  %v19319_v33 = vld [vmem:[#allocation56_spill] sm:$0xff] }
 0x264   : > { %11829 = vtanh.f32 %v3896_v42  ;;  %11027 = vmatprep.mubr.msk.f32.mxu0 %vm1718_vm0, %v1482_v10  ;;  %v3899_v7 = vadd.f32 %v10882_v16, %v12933_v27  ;;  %v1484_v42 = vmul.f32 %v19319_v33, %v19285_v3  ;;  %v19321_v35 = vld [vmem:[#allocation100_spill] sm:$0xff] }
 0x265   : > { %v13441_v63 = vpop.eup %11817  ;;  %11831 = vtanh.f32 %v3897_v12  ;;  %v2853_v38 = vpop.f32.mrf.mxu0 }
 0x266   : > { %19316 = vst [vmem:[#allocation165_spill] sm:$0xff] %v13441_v63  ;;  %v13446_v18 = vpop.eup %11819  ;;  %v3898_v62 = vadd.f32 %v12933_v27, %v2853_v38  ;;  %11260 = vmatprep.mubr.msk.f32.mxu1 %vm1718_vm0, %v13441_v63  ;;  %v1485_v63 = vmul.f32 %v19321_v35, %v19285_v3 }
 0x267   : > { %19318 = vst [vmem:[#allocation166_spill] sm:$0xff] %v13446_v18  ;;  %v10885_v10 = vpop.f32.mrf.mxu0  ;;  %11028 = vmatmul.mubr.msk.f32.gmra.mxu0 %vm1718_vm0, %v1483_v23  ;;  %11261 = vmatmul.mubr.msk.f32.gmra.mxu1 %vm1718_vm0, %v13446_v18  ;;  %v19323_v23 = vld [vmem:[#allocation4_spill] sm:$0xff]  ;;  %v19333_v18 = vld [vmem:[#allocation103_spill] sm:$0xff] }
 0x268   : > { %11833 = vtanh.f32 %v3898_v62  ;;  %11030 = vmatprep.mubr.msk.f32.mxu0 %vm1718_vm0, %v1484_v42  ;;  %v3901_v16 = vadd.f32 %v10885_v10, %v12933_v27  ;;  %v1486_v62 = vmul.f32 %v19323_v23, %v19285_v3 }
 0x269   : > { %v13457_v12 = vpop.eup %11821  ;;  %11835 = vtanh.f32 %v3899_v7  ;;  %v2863_v38 = vpop.f32.mrf.mxu0 }
 0x26a   : > { %19320 = vst [vmem:[#allocation56_spill] sm:$0xff] %v13457_v12  ;;  %v13462_v20 = vpop.eup %11823  ;;  %v3900_v33 = vadd.f32 %v12933_v27, %v2863_v38  ;;  %11263 = vmatprep.mubr.msk.f32.mxu1 %vm1718_vm0, %v13457_v12  ;;  %v19325_v27 = vld [vmem:[#allocation101_spill] sm:$0xff] }
 0x26b   : > { %19322 = vst [vmem:[#allocation167_spill] sm:$0xff] %v13462_v20  ;;  %v10888_v42 = vpop.f32.mrf.mxu0  ;;  %11031 = vmatmul.mubr.msk.f32.gmra.mxu0 %vm1718_vm0, %v1485_v63  ;;  %11264 = vmatmul.mubr.msk.f32.gmra.mxu1 %vm1718_vm0, %v13462_v20  ;;  %v1487_v38 = vmul.f32 %v19325_v27, %v19285_v3  ;;  %v19327_v63 = vld [vmem:[#allocation58_spill] sm:$0xff] }
 0x26c   : > { %11837 = vtanh.f32 %v3900_v33  ;;  %11033 = vmatprep.mubr.msk.f32.mxu0 %vm1718_vm0, %v1486_v62  ;;  %v1488_v23 = vmul.f32 %v19327_v63, %v19285_v3  ;;  %v19329_v62 = vld [vmem:[#allocation102_spill] sm:$0xff]  ;;  %v19331_v63 = vld [vmem:[#allocation9_spill] sm:$0xff] }
 0x26d   : > { %v13473_v7 = vpop.eup %11825  ;;  %11839 = vtanh.f32 %v3901_v16  ;;  %v2873_v10 = vpop.f32.mrf.mxu0  ;;  %v1489_v20 = vmul.f32 %v19329_v62, %v19285_v3 }
 0x26e   : > { %19324 = vst [vmem:[#allocation4_spill] sm:$0xff] %v13473_v7  ;;  %v13477_v12 = vpop.eup %11827  ;;  %11266 = vmatprep.mubr.msk.f32.mxu1 %vm1718_vm0, %v13473_v7  ;;  %v1490_v7 = vmul.f32 %v19331_v63, %v19285_v3 }
 0x26f   : > { %19326 = vst [vmem:[#allocation168_spill] sm:$0xff] %v13477_v12  ;;  %v10891_v35 = vpop.f32.mrf.mxu0  ;;  %11034 = vmatmul.mubr.msk.f32.gmra.mxu0 %vm1718_vm0, %v1487_v38  ;;  %11267 = vmatmul.mubr.msk.f32.gmra.mxu1 %vm1718_vm0, %v13477_v12 }
 0x270   : > { %11036 = vmatprep.mubr.msk.f32.mxu0 %vm1718_vm0, %v1488_v23  ;;  %v3966_v23 = vmul.f32 %v12989_v39, %v12989_v39 }
 0x271   : > { %v13487_v16 = vpop.eup %11829  ;;  %v2883_v33 = vpop.f32.mrf.mxu0 }
 0x272   : > { %19328 = vst [vmem:[#allocation58_spill] sm:$0xff] %v13487_v16  ;;  %v13491_v27 = vpop.eup %11831  ;;  %11269 = vmatprep.mubr.msk.f32.mxu1 %vm1718_vm0, %v13487_v16  ;;  %v1491_v16 = vmul.f32 %v19333_v18, %v19285_v3  ;;  %v19337_v18 = vld [vmem:[#allocation110_spill] sm:$0xff] }
 0x273   : > { %19330 = vst [vmem:[#allocation169_spill] sm:$0xff] %v13491_v27  ;;  %v10894_v38 = vpop.f32.mrf.mxu0  ;;  %11037 = vmatmul.mubr.msk.f32.gmra.mxu0 %vm1718_vm0, %v1489_v20  ;;  %11270 = vmatmul.mubr.msk.f32.gmra.mxu1 %vm1718_vm0, %v13491_v27  ;;  %v19335_v20 = vld [vmem:[#allocation11_spill] sm:$0xff]  ;;  %v3967_v27 = vmul.f32 %v12996_v56, %v12996_v56  ;;  %v3968_v30 = vmul.f32 %v19337_v18, %v19337_v18 }
 0x274   : > { %11039 = vmatprep.mubr.msk.f32.mxu0 %vm1718_vm0, %v1490_v7  ;;  %v1492_v63 = vmul.f32 %v19335_v20, %v19285_v3  ;;  %v13520_v7 = vsub.f32 1.0, %v3966_v23  ;;  %v1493_v56 = vmul.f32 %v19339_v31, %v19285_v3  ;;  %v19341_v23 = vld [vmem:[#allocation12_spill] sm:$0xff] }
 0x275   : > { %v13503_v12 = vpop.eup %11833  ;;  %v2893_v62 = vpop.f32.mrf.mxu0  ;;  %v13536_v19 = vsub.f32 1.0, %v3967_v27  ;;  %v13545_v31 = vsub.f32 1.0, %v3968_v30 }
 0x276   : > { %19332 = vst [vmem:[#allocation9_spill] sm:$0xff] %v13503_v12  ;;  %v13507_v15 = vpop.eup %11835  ;;  %11272 = vmatprep.mubr.msk.f32.mxu1 %vm1718_vm0, %v13503_v12  ;;  %19336 = vst [vmem:[#allocation11_spill] sm:$0xff] %v13520_v7 }
 0x277   : > { %19334 = vst [vmem:[#allocation170_spill] sm:$0xff] %v13507_v15  ;;  %v13515_v39 = vpop.f32.mrf.mxu0  ;;  %11040 = vmatmul.mubr.msk.f32.gmra.mxu0 %vm1718_vm0, %v1491_v16  ;;  %11273 = vmatmul.mubr.msk.f32.gmra.mxu1 %vm1718_vm0, %v13507_v15  ;;  %v4094_v16 = vmul.f32 %v13520_v7, %v2873_v10  ;;  %v1494_v15 = vmul.f32 %v19341_v23, %v19285_v3  ;;  %19342 = vst [vmem:[#allocation12_spill] sm:$0xff] %v13536_v19  ;;  %v19345_v7 = vld [vmem:[#allocation15_spill] sm:$0xff] }
 0x278   : > { %11042 = vmatprep.mubr.msk.f32.mxu0 %vm1718_vm0, %v1492_v63  ;;  %v3969_v63 = vmul.f32 %v13016_v34, %v13016_v34  ;;  %19343 = vst [vmem:[#allocation173_spill] sm:$0xff] %v13545_v31  ;;  %v3970_v10 = vmul.f32 %v13029_v14, %v13029_v14  ;;  %v4095_v27 = vmul.f32 %v10888_v42, %v13536_v19 }
 0x279   : > { %v13525_v12 = vpop.eup %11837  ;;  %v2903_v20 = vpop.f32.mrf.mxu0  ;;  %v3971_v14 = vmul.f32 %v13036_v22, %v13036_v22  ;;  %v3972_v42 = vmul.f32 %v13049_v32, %v13049_v32  ;;  %v3973_v32 = vmul.f32 %v13056_v6, %v13056_v6 }
 0x27a   : > { %19338 = vst [vmem:[#allocation171_spill] sm:$0xff] %v13525_v12  ;;  %v13529_v54 = vpop.eup %11839  ;;  %11275 = vmatprep.mubr.msk.f32.mxu1 %vm1718_vm0, %v13525_v12  ;;  %v19344_v12 = vld [vmem:[#allocation105_spill] sm:$0xff]  ;;  %v13557_v30 = vsub.f32 1.0, %v3969_v63 }
 0x27b   : > { %19340 = vst [vmem:[#allocation172_spill] sm:$0xff] %v13529_v54  ;;  %v13540_v18 = vpop.f32.mrf.mxu0  ;;  %11043 = vmatmul.mubr.msk.f32.gmra.mxu0 %vm1718_vm0, %v1493_v56  ;;  %11276 = vmatmul.mubr.msk.f32.gmra.mxu1 %vm1718_vm0, %v13529_v54  ;;  %v1495_v34 = vmul.f32 %v19344_v12, %v19285_v3  ;;  %v4096_v56 = vmul.f32 %v13545_v31, %v2883_v33 }
 0x27c   : > { %11045 = vmatprep.mubr.msk.f32.mxu0 %vm1718_vm0, %v1494_v15  ;;  %11278 = vmatprep.mubr.msk.f32.mxu1 %vm1718_vm0, %v4094_v16  ;;  %v1496_v54 = vmul.f32 %v19345_v7, %v19285_v3  ;;  %19346 = vst [vmem:[#allocation15_spill] sm:$0xff] %v13557_v30  ;;  %v13565_v15 = vsub.f32 1.0, %v3970_v10  ;;  %v4097_v33 = vmul.f32 %v10891_v35, %v13557_v30  ;;  %v19348_v16 = vld [vmem:[#allocation107_spill] sm:$0xff]  ;;  %v13577_v10 = vsub.f32 1.0, %v3971_v14 }
 0x27d   : > { %v2913_v23 = vpop.f32.mrf.mxu0  ;;  %v1497_v63 = vmul.f32 %v19348_v16, %v19285_v3  ;;  %v3974_v35 = vmul.f32 %v13069_v37, %v13069_v37  ;;  %v3975_v37 = vmul.f32 %v13076_v46, %v13076_v46 }
 0x27e   : > { %19347 = vst [vmem:[#allocation174_spill] sm:$0xff] %v13565_v15  ;;  %v4098_v12 = vmul.f32 %v13565_v15, %v2893_v62  ;;  %v4099_v14 = vmul.f32 %v10894_v38, %v13577_v10  ;;  %v3976_v38 = vmul.f32 %v13089_v50, %v13089_v50  ;;  %v3977_v50 = vmul.f32 %v13096_v40, %v13096_v40 }
 0x27f   : > { %v13561_v57 = vpop.f32.mrf.mxu0  ;;  %11046 = vmatmul.mubr.msk.f32.gmra.mxu0 %vm1718_vm0, %v1495_v34  ;;  %11279 = vmatmul.mubr.msk.f32.gmra.mxu1 %vm1718_vm0, %v4095_v27  ;;  %v19349_v34 = vld [vmem:[#allocation17_spill] sm:$0xff] }
 0x280   : > { %11048 = vmatprep.mubr.msk.f32.mxu0 %vm1718_vm0, %v1496_v54  ;;  %11281 = vmatprep.mubr.msk.f32.mxu1 %vm1718_vm0, %v4096_v56  ;;  %v1498_v27 = vmul.f32 %v19349_v34, %v19285_v3  ;;  %19350 = vst [vmem:[#allocation17_spill] sm:$0xff] %v13577_v10  ;;  %v13585_v54 = vsub.f32 1.0, %v3972_v42  ;;  %v19352_v56 = vld [vmem:[#allocation109_spill] sm:$0xff]  ;;  %v13597_v42 = vsub.f32 1.0, %v3973_v32  ;;  %v13639_v40 = vsub.f32 1.0, %v3977_v50 }
 0x281   : > { %v2923_v7 = vpop.f32.mrf.mxu0  ;;  %v1499_v34 = vmul.f32 %v19352_v56, %v19285_v3  ;;  %v13618_v56 = vsub.f32 1.0, %v3975_v37 }
 0x282   : > { %19351 = vst [vmem:[#allocation175_spill] sm:$0xff] %v13585_v54  ;;  %v4100_v16 = vmul.f32 %v13585_v54, %v2903_v20  ;;  %v4101_v32 = vmul.f32 %v13515_v39, %v13597_v42  ;;  %v13626_v39 = vsub.f32 1.0, %v3976_v38  ;;  %v4105_v50 = vmul.f32 %v13561_v57, %v13639_v40 }
 0x283   : > { %v13581_v31 = vpop.f32.mrf.mxu0  ;;  %11049 = vmatmul.mubr.msk.f32.gmra.mxu0 %vm1718_vm0, %v1497_v63  ;;  %11282 = vmatmul.mubr.msk.f32.gmra.mxu1 %vm1718_vm0, %v4097_v33  ;;  %v19353_v63 = vld [vmem:[#allocation19_spill] sm:$0xff]  ;;  %v4103_v37 = vmul.f32 %v13540_v18, %v13618_v56 }
 0x284   : > { %11051 = vmatprep.mubr.msk.f32.mxu0 %vm1718_vm0, %v1498_v27  ;;  %11284 = vmatprep.mubr.msk.f32.mxu1 %vm1718_vm0, %v4098_v12  ;;  %v1500_v33 = vmul.f32 %v19353_v63, %v19285_v3  ;;  %19354 = vst [vmem:[#allocation19_spill] sm:$0xff] %v13597_v42  ;;  %v13605_v12 = vsub.f32 1.0, %v3974_v35  ;;  %v19356_v27 = vld [vmem:[#allocation113_spill] sm:$0xff]  ;;  %19359 = vst [vmem:[#allocation177_spill] sm:$0xff] %v13626_v39 }
 0x285   : > { %v2933_v62 = vpop.f32.mrf.mxu0  ;;  %v1501_v63 = vmul.f32 %v19356_v27, %v19285_v3 }
 0x286   : > { %19355 = vst [vmem:[#allocation176_spill] sm:$0xff] %v13605_v12 }
 0x287   : > { %v13601_v6 = vpop.f32.mrf.mxu0  ;;  %11052 = vmatmul.mubr.msk.f32.gmra.mxu0 %vm1718_vm0, %v1499_v34  ;;  %11285 = vmatmul.mubr.msk.f32.gmra.mxu1 %vm1718_vm0, %v4099_v14  ;;  %v4102_v34 = vmul.f32 %v13605_v12, %v2913_v23  ;;  %v19357_v14 = vld [vmem:[#allocation20_spill] sm:$0xff] }
 0x288   : > { %11054 = vmatprep.mubr.msk.f32.mxu0 %vm1718_vm0, %v1500_v33  ;;  %11287 = vmatprep.mubr.msk.f32.mxu1 %vm1718_vm0, %v4100_v16  ;;  %v1502_v35 = vmul.f32 %v19357_v14, %v19285_v3  ;;  %19358 = vst [vmem:[#allocation20_spill] sm:$0xff] %v13618_v56  ;;  %v3978_v16 = vmul.f32 %v13109_v59, %v13109_v59  ;;  %v19360_v14 = vld [vmem:[#allocation115_spill] sm:$0xff] }
 0x289   : > { %v2943_v20 = vpop.f32.mrf.mxu0  ;;  %v1503_v27 = vmul.f32 %v19360_v14, %v19285_v3  ;;  %v3979_v59 = vmul.f32 %v13116_v51, %v13116_v51 }
 0x28a   : > { %v13647_v18 = vsub.f32 1.0, %v3978_v16 }
 0x28b   : > { %v13622_v33 = vpop.f32.mrf.mxu0  ;;  %11055 = vmatmul.mubr.msk.f32.gmra.mxu0 %vm1718_vm0, %v1501_v63  ;;  %11288 = vmatmul.mubr.msk.f32.gmra.mxu1 %vm1718_vm0, %v4101_v32  ;;  %v4104_v63 = vmul.f32 %v13626_v39, %v2923_v7  ;;  %v19361_v32 = vld [vmem:[#allocation67_spill] sm:$0xff]  ;;  %v13660_v51 = vsub.f32 1.0, %v3979_v59 }
 0x28c   : > { %11057 = vmatprep.mubr.msk.f32.mxu0 %vm1718_vm0, %v1502_v35  ;;  %11290 = vmatprep.mubr.msk.f32.mxu1 %vm1718_vm0, %v4102_v34  ;;  %v1504_v38 = vmul.f32 %v19361_v32, %v19285_v3  ;;  %19362 = vst [vmem:[#allocation67_spill] sm:$0xff] %v13639_v40  ;;  %19363 = vst [vmem:[#allocation178_spill] sm:$0xff] %v13647_v18  ;;  %v3980_v34 = vmul.f32 %v13129_v58, %v13129_v58  ;;  %v19364_v32 = vld [vmem:[#allocation117_spill] sm:$0xff] }
 0x28d   : > { %v2953_v23 = vpop.f32.mrf.mxu0  ;;  %v1505_v14 = vmul.f32 %v19364_v32, %v19285_v3  ;;  %v3981_v58 = vmul.f32 %v13136_v5, %v13136_v5  ;;  %v4107_v59 = vmul.f32 %v13581_v31, %v13660_v51 }
 0x28e   : > { %v13668_v57 = vsub.f32 1.0, %v3980_v34 }
 0x28f   : > { %v13643_v35 = vpop.f32.mrf.mxu0  ;;  %11058 = vmatmul.mubr.msk.f32.gmra.mxu0 %vm1718_vm0, %v1503_v27  ;;  %11291 = vmatmul.mubr.msk.f32.gmra.mxu1 %vm1718_vm0, %v4103_v37  ;;  %v4106_v27 = vmul.f32 %v13647_v18, %v2933_v62  ;;  %v19365_v37 = vld [vmem:[#allocation70_spill] sm:$0xff]  ;;  %v13681_v5 = vsub.f32 1.0, %v3981_v58 }
 0x290   : > { %11060 = vmatprep.mubr.msk.f32.mxu0 %vm1718_vm0, %v1504_v38  ;;  %11293 = vmatprep.mubr.msk.f32.mxu1 %vm1718_vm0, %v4104_v63  ;;  %v1506_v16 = vmul.f32 %v19365_v37, %v19285_v3  ;;  %19366 = vst [vmem:[#allocation70_spill] sm:$0xff] %v13660_v51  ;;  %19367 = vst [vmem:[#allocation179_spill] sm:$0xff] %v13668_v57  ;;  %v3982_v63 = vmul.f32 %v13149_v49, %v13149_v49  ;;  %v19368_v37 = vld [vmem:[#allocation120_spill] sm:$0xff] }
 0x291   : > { %v2963_v7 = vpop.f32.mrf.mxu0  ;;  %v1507_v32 = vmul.f32 %v19368_v37, %v19285_v3  ;;  %v3983_v49 = vmul.f32 %v13156_v29, %v13156_v29  ;;  %v4109_v58 = vmul.f32 %v13601_v6, %v13681_v5 }
 0x292   : > { %v13689_v31 = vsub.f32 1.0, %v3982_v63 }
 0x293   : > { %v13664_v38 = vpop.f32.mrf.mxu0  ;;  %11061 = vmatmul.mubr.msk.f32.gmra.mxu0 %vm1718_vm0, %v1505_v14  ;;  %11294 = vmatmul.mubr.msk.f32.gmra.mxu1 %vm1718_vm0, %v4105_v50  ;;  %v4108_v14 = vmul.f32 %v13668_v57, %v2943_v20  ;;  %v19369_v50 = vld [vmem:[#allocation74_spill] sm:$0xff]  ;;  %v13702_v29 = vsub.f32 1.0, %v3983_v49 }
 0x294   : > { %11063 = vmatprep.mubr.msk.f32.mxu0 %vm1718_vm0, %v1506_v16  ;;  %11296 = vmatprep.mubr.msk.f32.mxu1 %vm1718_vm0, %v4106_v27  ;;  %v1508_v34 = vmul.f32 %v19369_v50, %v19285_v3  ;;  %19370 = vst [vmem:[#allocation74_spill] sm:$0xff] %v13681_v5  ;;  %19371 = vst [vmem:[#allocation180_spill] sm:$0xff] %v13689_v31  ;;  %v3984_v27 = vmul.f32 %v13167_v45, %v13167_v45  ;;  %v19372_v50 = vld [vmem:[#allocation123_spill] sm:$0xff] }
 0x295   : > { %v2973_v62 = vpop.f32.mrf.mxu0  ;;  %v1509_v37 = vmul.f32 %v19372_v50, %v19285_v3  ;;  %v3985_v45 = vmul.f32 %v13174_v11, %v13174_v11  ;;  %v4111_v49 = vmul.f32 %v13622_v33, %v13702_v29 }
 0x296   : > { %v13710_v6 = vsub.f32 1.0, %v3984_v27 }
 0x297   : > { %v13685_v16 = vpop.f32.mrf.mxu0  ;;  %11064 = vmatmul.mubr.msk.f32.gmra.mxu0 %vm1718_vm0, %v1507_v32  ;;  %11297 = vmatmul.mubr.msk.f32.gmra.mxu1 %vm1718_vm0, %v4107_v59  ;;  %v4110_v32 = vmul.f32 %v13689_v31, %v2953_v23  ;;  %v19373_v59 = vld [vmem:[#allocation76_spill] sm:$0xff]  ;;  %v13723_v11 = vsub.f32 1.0, %v3985_v45 }
 0x298   : > { %11066 = vmatprep.mubr.msk.f32.mxu0 %vm1718_vm0, %v1508_v34  ;;  %11299 = vmatprep.mubr.msk.f32.mxu1 %vm1718_vm0, %v4108_v14  ;;  %v1510_v63 = vmul.f32 %v19373_v59, %v19285_v3  ;;  %19374 = vst [vmem:[#allocation76_spill] sm:$0xff] %v13702_v29  ;;  %19375 = vst [vmem:[#allocation181_spill] sm:$0xff] %v13710_v6  ;;  %v3986_v14 = vmul.f32 %v13185_v25, %v13185_v25  ;;  %v19376_v59 = vld [vmem:[#allocation125_spill] sm:$0xff] }
 0x299   : > { %v2983_v20 = vpop.f32.mrf.mxu0  ;;  %v1511_v50 = vmul.f32 %v19376_v59, %v19285_v3  ;;  %v3987_v25 = vmul.f32 %v13190_v52, %v13190_v52  ;;  %v4113_v45 = vmul.f32 %v13643_v35, %v13723_v11 }
 0x29a   : > { %v13731_v33 = vsub.f32 1.0, %v3986_v14 }
 0x29b   : > { %v13706_v34 = vpop.f32.mrf.mxu0  ;;  %11067 = vmatmul.mubr.msk.f32.gmra.mxu0 %vm1718_vm0, %v1509_v37  ;;  %11300 = vmatmul.mubr.msk.f32.gmra.mxu1 %vm1718_vm0, %v4109_v58  ;;  %v4112_v37 = vmul.f32 %v13710_v6, %v2963_v7  ;;  %v19377_v58 = vld [vmem:[#allocation79_spill] sm:$0xff]  ;;  %v13744_v6 = vsub.f32 1.0, %v3987_v25 }
 0x29c   : > { %11069 = vmatprep.mubr.msk.f32.mxu0 %vm1718_vm0, %v1510_v63  ;;  %11302 = vmatprep.mubr.msk.f32.mxu1 %vm1718_vm0, %v4110_v32  ;;  %v1512_v27 = vmul.f32 %v19377_v58, %v19285_v3  ;;  %19378 = vst [vmem:[#allocation79_spill] sm:$0xff] %v13723_v11  ;;  %19379 = vst [vmem:[#allocation182_spill] sm:$0xff] %v13731_v33  ;;  %v3988_v32 = vmul.f32 %v13201_v24, %v13201_v24  ;;  %v19380_v58 = vld [vmem:[#allocation129_spill] sm:$0xff] }
 0x29d   : > { %v2993_v23 = vpop.f32.mrf.mxu0  ;;  %v1513_v59 = vmul.f32 %v19380_v58, %v19285_v3  ;;  %v3989_v24 = vmul.f32 %v13206_v48, %v13206_v48  ;;  %v4115_v25 = vmul.f32 %v13664_v38, %v13744_v6  ;;  %v19388_v38 = vld [vmem:[#allocation24_spill] sm:$0xff] }
 0x29e   : > { %v13752_v35 = vsub.f32 1.0, %v3988_v32 }
 0x29f   : > { %v13727_v63 = vpop.f32.mrf.mxu0  ;;  %11070 = vmatmul.mubr.msk.f32.gmra.mxu0 %vm1718_vm0, %v1511_v50  ;;  %11303 = vmatmul.mubr.msk.f32.gmra.mxu1 %vm1718_vm0, %v4111_v49  ;;  %v4114_v50 = vmul.f32 %v13731_v33, %v2973_v62  ;;  %v19381_v49 = vld [vmem:[#allocation82_spill] sm:$0xff]  ;;  %v19385_v33 = vld [vmem:[#allocation23_spill] sm:$0xff]  ;;  %v13765_v48 = vsub.f32 1.0, %v3989_v24 }
 0x2a0   : > { %11072 = vmatprep.mubr.msk.f32.mxu0 %vm1718_vm0, %v1512_v27  ;;  %11305 = vmatprep.mubr.msk.f32.mxu1 %vm1718_vm0, %v4112_v37  ;;  %v1514_v14 = vmul.f32 %v19381_v49, %v19285_v3  ;;  %19382 = vst [vmem:[#allocation82_spill] sm:$0xff] %v13744_v6  ;;  %19383 = vst [vmem:[#allocation183_spill] sm:$0xff] %v13752_v35  ;;  %v3990_v37 = vmul.f32 %v13217_v1, %v13217_v1  ;;  %v19384_v49 = vld [vmem:[#allocation132_spill] sm:$0xff] }
 0x2a1   : > { %v3003_v7 = vpop.f32.mrf.mxu0  ;;  %v1515_v58 = vmul.f32 %v19384_v49, %v19285_v3  ;;  %19387 = vst [vmem:[#allocation23_spill] sm:$0xff] %v13765_v48  ;;  %v3991_v1 = vmul.f32 %v13222_v17, %v13222_v17  ;;  %v3992_v3 = vmul.f32 %v13233_v61, %v13233_v61  ;;  %v4117_v24 = vmul.f32 %v13685_v16, %v13765_v48  ;;  %v19391_v49 = vld [vmem:[#allocation85_spill] sm:$0xff] }
 0x2a2   : > { %v13774_v6 = vsub.f32 1.0, %v3990_v37  ;;  %v19392_v37 = vld [vmem:[#allocation28_spill] sm:$0xff]  ;;  %v19394_v16 = vld [vmem:[#allocation25_spill] sm:$0xff] }
 0x2a3   : > { %v13748_v27 = vpop.f32.mrf.mxu0  ;;  %11073 = vmatmul.mubr.msk.f32.gmra.mxu0 %vm1718_vm0, %v1513_v59  ;;  %11306 = vmatmul.mubr.msk.f32.gmra.mxu1 %vm1718_vm0, %v4113_v45  ;;  %v4116_v59 = vmul.f32 %v13752_v35, %v2983_v20  ;;  %v19386_v45 = vld [vmem:[#allocation3_spill] sm:$0xff]  ;;  %v13788_v17 = vsub.f32 1.0, %v3991_v1  ;;  %v13797_v61 = vsub.f32 1.0, %v3992_v3 }
 0x2a4   : > { %11075 = vmatprep.mubr.msk.f32.mxu0 %vm1718_vm0, %v1514_v14  ;;  %11308 = vmatprep.mubr.msk.f32.mxu1 %vm1718_vm0, %v4114_v50  ;;  %v1649_v32 = vmul.f32 %v19386_v45, %v19385_v33  ;;  %v1519_v50 = vmul.f32 -2.0, %v19388_v38  ;;  %19389 = vst [vmem:[#allocation3_spill] sm:$0xff] %v13774_v6  ;;  %v19390_v33 = vld [vmem:[#allocation27_spill] sm:$0xff]  ;;  %v4118_v38 = vmul.f32 %v13774_v6, %v2993_v23 }
 0x2a5   : > { %v3013_v62 = vpop.f32.mrf.mxu0  ;;  %v1651_v35 = vmul.f32 %v19386_v45, %v19392_v37  ;;  %19393 = vst [vmem:[#allocation24_spill] sm:$0xff] %v13788_v17  ;;  %19395 = vst [vmem:[#allocation27_spill] sm:$0xff] %v13797_v61  ;;  %v3994_v23 = vmul.f32 %v13249_v41, %v13249_v41  ;;  %v4119_v1 = vmul.f32 %v13706_v34, %v13788_v17  ;;  %v19399_v34 = vld [vmem:[#allocation26_spill] sm:$0xff] }
 0x2a7   : > { %v13769_v14 = vpop.f32.mrf.mxu0  ;;  %11076 = vmatmul.mubr.msk.f32.gmra.mxu0 %vm1718_vm0, %v1515_v58  ;;  %11309 = vmatmul.mubr.msk.f32.gmra.mxu1 %vm1718_vm0, %v4115_v25  ;;  %v1650_v58 = vmul.f32 %v19386_v45, %v19390_v33  ;;  %v1583_v25 = vmul.f32 %v1519_v50, %v19391_v49  ;;  %v1521_v33 = vmul.f32 -2.0, %v19394_v16  ;;  %v19397_v16 = vld [vmem:[#allocation31_spill] sm:$0xff] }
 0x2a8   : > { %11078 = vmatprep.mubr.msk.f32.mxu0 %vm1718_vm0, %v1649_v32  ;;  %11311 = vmatprep.mubr.msk.f32.mxu1 %vm1718_vm0, %v4116_v59  ;;  %v3993_v32 = vmul.f32 %v13238_v13, %v13238_v13  ;;  %v1653_v3 = vmul.f32 %v19386_v45, %v19397_v16  ;;  %v19492_v13 = vld [vmem:[#allocation167_spill] sm:$0xff] }
 0x2a9   : > { %v3023_v20 = vpop.f32.mrf.mxu0  ;;  %v1652_v50 = vmul.f32 %v19386_v45, %v1583_v25  ;;  %v1523_v25 = vmul.f32 -2.0, %v19399_v34  ;;  %v19402_v34 = vld [vmem:[#allocation32_spill] sm:$0xff]  ;;  %v4021_v17 = vmul.f32 %v19492_v13, %v19492_v13 }
 0x2aa   : > { %v13810_v6 = vsub.f32 1.0, %v3993_v32  ;;  %v19497_v13 = vld [vmem:[#allocation4_spill] sm:$0xff] }
 0x2ab   : > { %v13792_v59 = vpop.f32.mrf.mxu0  ;;  %11079 = vmatmul.mubr.msk.f32.gmra.mxu0 %vm1718_vm0, %v1650_v58  ;;  %11312 = vmatmul.mubr.msk.f32.gmra.mxu1 %vm1718_vm0, %v4117_v24  ;;  %v19396_v58 = vld [vmem:[#allocation86_spill] sm:$0xff]  ;;  %v4120_v24 = vmul.f32 %v13797_v61, %v3003_v7  ;;  %v3996_v7 = vmul.f32 %v13265_v8, %v13265_v8 }
 0x2ac   : > { %11081 = vmatprep.mubr.msk.f32.mxu0 %vm1718_vm0, %v1651_v35  ;;  %11314 = vmatprep.mubr.msk.f32.mxu1 %vm1718_vm0, %v4118_v38  ;;  %v1585_v37 = vmul.f32 %v1521_v33, %v19396_v58  ;;  %19398 = vst [vmem:[#allocation85_spill] sm:$0xff] %v13810_v6  ;;  %v3995_v35 = vmul.f32 %v13254_v0, %v13254_v0  ;;  %v13819_v38 = vsub.f32 1.0, %v3994_v23 }
 0x2ad   : > { %v3033_v49 = vpop.f32.mrf.mxu0  ;;  %v4121_v32 = vmul.f32 %v13727_v63, %v13810_v6  ;;  %v1655_v23 = vmul.f32 %v19386_v45, %v19402_v34  ;;  %v19404_v63 = vld [vmem:[#allocation29_spill] sm:$0xff] }
 0x2ae   : > { %19400 = vst [vmem:[#allocation28_spill] sm:$0xff] %v13819_v38  ;;  %v1654_v58 = vmul.f32 %v19386_v45, %v1585_v37  ;;  %v13832_v61 = vsub.f32 1.0, %v3995_v35  ;;  %v1525_v37 = vmul.f32 -2.0, %v19404_v63  ;;  %v19407_v63 = vld [vmem:[#allocation33_spill] sm:$0xff] }
 0x2af   : > { %v13814_v41 = vpop.f32.mrf.mxu0  ;;  %11082 = vmatmul.mubr.msk.f32.gmra.mxu0 %vm1718_vm0, %v1652_v50  ;;  %11315 = vmatmul.mubr.msk.f32.gmra.mxu1 %vm1718_vm0, %v4119_v1  ;;  %v19401_v50 = vld [vmem:[#allocation87_spill] sm:$0xff]  ;;  %v4122_v1 = vmul.f32 %v13819_v38, %v3013_v62  ;;  %v3998_v62 = vmul.f32 %v13281_v44, %v13281_v44 }
 0x2b0   : > { %11084 = vmatprep.mubr.msk.f32.mxu0 %vm1718_vm0, %v1653_v3  ;;  %11317 = vmatprep.mubr.msk.f32.mxu1 %vm1718_vm0, %v4120_v24  ;;  %v1587_v16 = vmul.f32 %v1523_v25, %v19401_v50  ;;  %19403 = vst [vmem:[#allocation25_spill] sm:$0xff] %v13832_v61  ;;  %v3997_v3 = vmul.f32 %v13270_v9, %v13270_v9  ;;  %v13841_v24 = vsub.f32 1.0, %v3996_v7 }
 0x2b1   : > { %v3043_v33 = vpop.f32.mrf.mxu0  ;;  %v4123_v35 = vmul.f32 %v13748_v27, %v13832_v61  ;;  %v1657_v7 = vmul.f32 %v19386_v45, %v19407_v63  ;;  %v19409_v27 = vld [vmem:[#allocation30_spill] sm:$0xff] }
 0x2b2   : > { %19405 = vst [vmem:[#allocation86_spill] sm:$0xff] %v13841_v24  ;;  %v1656_v50 = vmul.f32 %v19386_v45, %v1587_v16  ;;  %v13854_v38 = vsub.f32 1.0, %v3997_v3  ;;  %v1527_v16 = vmul.f32 -2.0, %v19409_v27  ;;  %v19484_v61 = vld [vmem:[#allocation6_spill] sm:$0xff] }
 0x2b3   : > { %v13836_v8 = vpop.f32.mrf.mxu0  ;;  %11085 = vmatmul.mubr.msk.f32.gmra.mxu0 %vm1718_vm0, %v1654_v58  ;;  %11318 = vmatmul.mubr.msk.f32.gmra.mxu1 %vm1718_vm0, %v4121_v32  ;;  %v19406_v58 = vld [vmem:[#allocation88_spill] sm:$0xff]  ;;  %v4124_v32 = vmul.f32 %v13841_v24, %v3023_v20  ;;  %v4000_v20 = vmul.f32 %v13297_v60, %v13297_v60  ;;  %v19413_v24 = vld [vmem:[#allocation35_spill] sm:$0xff]  ;;  %v1553_v0 = vmul.f32 -2.0, %v19484_v61 }
 0x2b4   : > { %11087 = vmatprep.mubr.msk.f32.mxu0 %vm1718_vm0, %v1655_v23  ;;  %11320 = vmatprep.mubr.msk.f32.mxu1 %vm1718_vm0, %v4122_v1  ;;  %v1589_v34 = vmul.f32 %v1525_v37, %v19406_v58  ;;  %19408 = vst [vmem:[#allocation31_spill] sm:$0xff] %v13854_v38  ;;  %v3999_v23 = vmul.f32 %v13286_v55, %v13286_v55  ;;  %v13863_v1 = vsub.f32 1.0, %v3998_v62  ;;  %v19411_v58 = vld [vmem:[#allocation89_spill] sm:$0xff]  ;;  %v19412_v62 = vld [vmem:[#allocation34_spill] sm:$0xff]  ;;  %v1529_v60 = vmul.f32 -2.0, %v19413_v24  ;;  %v19488_v61 = vld [vmem:[#allocation55_spill] sm:$0xff] }
 0x2b5   : > { %v3053_v25 = vpop.f32.mrf.mxu0  ;;  %v4125_v3 = vmul.f32 %v13769_v14, %v13854_v38  ;;  %v1659_v27 = vmul.f32 %v19386_v45, %v19412_v62  ;;  %v13887_v14 = vsub.f32 1.0, %v4000_v20  ;;  %v19480_v38 = vld [vmem:[#allocation166_spill] sm:$0xff] }
 0x2b6   : > { %19410 = vst [vmem:[#allocation26_spill] sm:$0xff] %v13863_v1  ;;  %v4126_v63 = vmul.f32 %v13863_v1, %v3033_v49  ;;  %v13879_v55 = vsub.f32 1.0, %v3999_v23  ;;  %v19416_v49 = vld [vmem:[#allocation90_spill] sm:$0xff]  ;;  %v4002_v23 = vmul.f32 %v13313_v21, %v13313_v21 }
 0x2b7   : > { %v13858_v44 = vpop.f32.mrf.mxu0  ;;  %11088 = vmatmul.mubr.msk.f32.gmra.mxu0 %vm1718_vm0, %v1656_v50  ;;  %11321 = vmatmul.mubr.msk.f32.gmra.mxu1 %vm1718_vm0, %v4123_v35  ;;  %v1658_v50 = vmul.f32 %v19386_v45, %v1589_v34  ;;  %v1591_v35 = vmul.f32 %v1527_v16, %v19411_v58  ;;  %19415 = vst [vmem:[#allocation32_spill] sm:$0xff] %v13887_v14  ;;  %v13899_v58 = vld [vmem:[#allocation2] ss:$0 sm:$0xff] }
 0x2b8   : > { %11090 = vmatprep.mubr.msk.f32.mxu0 %vm1718_vm0, %v1657_v7  ;;  %11323 = vmatprep.mubr.msk.f32.mxu1 %vm1718_vm0, %v4124_v32  ;;  %19414 = vst [vmem:[#allocation87_spill] sm:$0xff] %v13879_v55  ;;  %v4001_v32 = vmul.f32 %v13302_v47, %v13302_v47  ;;  %v1593_v34 = vmul.f32 %v1529_v60, %v19416_v49 }
 0x2b9   : > { %v13871_v37 = vpop.f32.mrf.mxu0  ;;  %v4127_v24 = vmul.f32 %v13792_v59, %v13879_v55  ;;  %v4128_v20 = vmul.f32 %v13887_v14, %v3043_v33  ;;  %v4003_v60 = vmul.f32 %v13318_v2, %v13318_v2  ;;  %v19422_v14 = vld [vmem:[#allocation91_spill] sm:$0xff]  ;;  %v19467_v55 = vld [vmem:[#allocation98_spill] sm:$0xff] }
 0x2ba   : > { %v1662_v33 = vmul.f32 %v19386_v45, %v1593_v34 }
 0x2bb   : > { %v13883_v7 = vpop.f32.mrf.mxu0  ;;  %11091 = vmatmul.mubr.msk.f32.gmra.mxu0 %vm1718_vm0, %v1658_v50  ;;  %11324 = vmatmul.mubr.msk.f32.gmra.mxu1 %vm1718_vm0, %v4125_v3  ;;  %v1660_v50 = vmul.f32 %v19386_v45, %v1591_v35  ;;  %v19417_v3 = vld [vmem:[#allocation36_spill] sm:$0xff]  ;;  %v19419_v35 = vld [vmem:[#allocation37_spill] sm:$0xff] }
 0x2bc   : > { %11093 = vmatprep.mubr.msk.f32.mxu0 %vm1718_vm0, %v1659_v27  ;;  %11326 = vmatprep.mubr.msk.f32.mxu1 %vm1718_vm0, %v4126_v63  ;;  %v1661_v62 = vmul.f32 %v19386_v45, %v19417_v3  ;;  %v13904_v63 = vsub.f32 1.0, %v4001_v32  ;;  %v1531_v49 = vmul.f32 -2.0, %v19419_v35  ;;  %v13921_v3 = vsub.f32 1.0, %v4002_v23 }
 0x2bd   : > { %v13896_v16 = vpop.f32.mrf.mxu0  ;;  %v13935_v23 = vsub.f32 1.0, %v4003_v60  ;;  %v19427_v60 = vld [vmem:[#allocation92_spill] sm:$0xff] }
 0x2be   : > { %19418 = vst [vmem:[#allocation29_spill] sm:$0xff] %v13904_v63  ;;  %v11184_v27 = vpop.f32.mrf.mxu1  ;;  %v4129_v32 = vmul.f32 %v13814_v41, %v13904_v63  ;;  %19421 = vst [vmem:[#allocation33_spill] sm:$0xff] %v13921_v3  ;;  %v4130_v63 = vmul.f32 %v13921_v3, %v3053_v25 }
 0x2bf   : > { %v13908_v59 = vpop.f32.mrf.mxu0  ;;  %11094 = vmatmul.mubr.msk.f32.gmra.mxu0 %vm1718_vm0, %v1660_v50  ;;  %11327 = vmatmul.mubr.msk.f32.gmra.mxu1 %vm1718_vm0, %v4127_v24  ;;  %v13914_v21 = vadd.f32 %v11184_v27, %v13899_v58  ;;  %v4004_v50 = vmul.f32 %v13329_v28, %v13329_v28  ;;  %v1595_v27 = vmul.f32 %v1531_v49, %v19422_v14 }
 0x2c0   : > { %11096 = vmatprep.mubr.msk.f32.mxu0 %vm1718_vm0, %v1661_v62  ;;  %11329 = vmatprep.mubr.msk.f32.mxu1 %vm1718_vm0, %v4128_v20  ;;  %v5445_v35 = vpop.f32.mrf.mxu1  ;;  %v19424_v20 = vld [vmem:[#allocation39_spill] sm:$0xff]  ;;  %v19425_v62 = vld [vmem:[#allocation38_spill] sm:$0xff]  ;;  %19426 = vst [vmem:[#allocation89_spill] sm:$0xff] %v13935_v23  ;;  %v4005_v28 = vmul.f32 %v13334_v26, %v13334_v26  ;;  %v4131_v25 = vmul.f32 %v13836_v8, %v13935_v23  ;;  %v19430_v8 = vld [vmem:[#allocation40_spill] sm:$0xff] }
 0x2c1   : > { %19420 = vst [vmem:[#allocation88_spill] sm:$0xff] %v13914_v21  ;;  %v13925_v24 = vpop.f32.mrf.mxu0  ;;  %v13929_v2 = vadd.f32 %v13899_v58, %v5445_v35  ;;  %7443 = vperm.xlu0 %11583, %v13914_v21   ;;  %v1663_v34 = vmul.f32 %v19386_v45, %v19424_v20  ;;  %v1533_v41 = vmul.f32 -2.0, %v19425_v62  ;;  %v13951_v20 = vsub.f32 1.0, %v4004_v50 }
 0x2c2   : > { %v11187_v14 = vpop.f32.mrf.mxu1  ;;  %v1664_v3 = vmul.f32 %v19386_v45, %v1595_v27  ;;  %v1665_v50 = vmul.f32 %v19386_v45, %v19430_v8 }
 0x2c3   : > { %19423 = vst [vmem:[#allocation30_spill] sm:$0xff] %v13929_v2  ;;  %v13940_v1 = vpop.f32.mrf.mxu0  ;;  %11097 = vmatmul.mubr.msk.f32.gmra.mxu0 %vm1718_vm0, %v1662_v33  ;;  %11330 = vmatmul.mubr.msk.f32.gmra.mxu1 %vm1718_vm0, %v4129_v32  ;;  %v7820_v49 = vmul.f32 %v13929_v2, %v13929_v2  ;;  %v1597_v35 = vmul.f32 %v1533_v41, %v19427_v60  ;;  %19428 = vst [vmem:[#allocation34_spill] sm:$0xff] %v13951_v20  ;;  %v13966_v60 = vsub.f32 1.0, %v4005_v28 }
 0x2c4   : > { %7438 = vperm.xlu1 %11584, %v13929_v2   ;;  %11099 = vmatprep.mubr.msk.f32.mxu0 %vm1718_vm0, %v1663_v34  ;;  %v4006_v33 = vmul.f32 %v13345_v43, %v13345_v43  ;;  %v5455_v62 = vpop.f32.mrf.mxu1  ;;  %v7821_v34 = vmul.f32 %v13914_v21, %v13914_v21  ;;  %v4007_v2 = vmul.f32 %v13350_v53, %v13350_v53 }
 0x2c5   : > { %11332 = vmatprep.mubr.msk.f32.mxu1 %vm1718_vm0, %v4130_v63  ;;  %v13956_v32 = vpop.f32.mrf.mxu0  ;;  %v13962_v41 = vadd.f32 %v13899_v58, %v5455_v62  ;;  %7886 = vperm.xlu0 %11583, %v7820_v49   ;;  %19431 = vst [vmem:[#allocation90_spill] sm:$0xff] %v13966_v60  ;;  %v4132_v63 = vmul.f32 %v13951_v20, %v13871_v37  ;;  %v19432_v49 = vld [vmem:[#allocation41_spill] sm:$0xff] }
 0x2c6   : > { %v13975_v27 = vpop.f32.mrf.mxu1  ;;  %v1535_v62 = vmul.f32 -2.0, %v19432_v49  ;;  %v1666_v37 = vmul.f32 %v19386_v45, %v1597_v35  ;;  %v4133_v8 = vmul.f32 %v13858_v44, %v13966_v60  ;;  %v13985_v21 = vsub.f32 1.0, %v4006_v33  ;;  %v19434_v20 = vld [vmem:[#allocation93_spill] sm:$0xff]  ;;  %v19436_v35 = vld [vmem:[#allocation43_spill] sm:$0xff]  ;;  %v19437_v44 = vld [vmem:[#allocation42_spill] sm:$0xff] }
 0x2c7   : > { %19429 = vst [vmem:[#allocation35_spill] sm:$0xff] %v13962_v41  ;;  %v13972_v43 = vpop.f32.mrf.mxu0  ;;  %11100 = vmatmul.mubr.msk.f32.gmra.mxu0 %vm1718_vm0, %v1664_v3  ;;  %11333 = vmatmul.mubr.msk.f32.gmra.mxu1 %vm1718_vm0, %v4131_v25  ;;  %v7822_v28 = vmul.f32 %v13962_v41, %v13962_v41  ;;  %v4008_v3 = vmul.f32 %v13361_v36, %v13361_v36  ;;  %v1537_v33 = vmul.f32 -2.0, %v19437_v44  ;;  %v13999_v60 = vsub.f32 1.0, %v4007_v2  ;;  %v19440_v2 = vld [vmem:[#allocation94_spill] sm:$0xff] }
 0x2c8   : > { %7891 = vperm.xlu1 %11584, %v7821_v34   ;;  %11102 = vmatprep.mubr.msk.f32.mxu0 %vm1718_vm0, %v1665_v50  ;;  %19433 = vst [vmem:[#allocation36_spill] sm:$0xff] %v13985_v21  ;;  %v5465_v49 = vpop.f32.mrf.mxu1  ;;  %v1599_v53 = vmul.f32 %v1535_v62, %v19434_v20  ;;  %v13994_v34 = vadd.f32 %v11187_v14, %v13899_v58 }
 0x2c9   : > { %11335 = vmatprep.mubr.msk.f32.mxu1 %vm1718_vm0, %v4132_v63  ;;  %v13990_v25 = vpop.f32.mrf.mxu0  ;;  %7896 = vperm.xlu0 %11583, %v7822_v28   ;;  %v1667_v50 = vmul.f32 %v19386_v45, %v19436_v35  ;;  %19438 = vst [vmem:[#allocation91_spill] sm:$0xff] %v13999_v60  ;;  %v4134_v36 = vmul.f32 %v13985_v21, %v13896_v16  ;;  %v14019_v28 = vsub.f32 1.0, %v4008_v3  ;;  %v19442_v35 = vld [vmem:[#allocation157_spill] sm:$0xff]  ;;  %v19445_v3 = vld [vmem:[#allocation158_spill] sm:$0xff] }
 0x2ca   : > { %19435 = vst [vmem:[#allocation37_spill] sm:$0xff] %v13994_v34  ;;  %v4009_v63 = vmul.f32 %v13366_v4, %v13366_v4  ;;  %v14008_v14 = vpop.f32.mrf.mxu1  ;;  %v14012_v20 = vadd.f32 %v13899_v58, %v5465_v49  ;;  %v1601_v16 = vmul.f32 %v1537_v33, %v19440_v2  ;;  %v4135_v62 = vmul.f32 %v13883_v7, %v13999_v60 }
 0x2cb   : > { %v14005_v26 = vpop.f32.mrf.mxu0  ;;  %11103 = vmatmul.mubr.msk.f32.gmra.mxu0 %vm1718_vm0, %v1666_v37  ;;  %11336 = vmatmul.mubr.msk.f32.gmra.mxu1 %vm1718_vm0, %v4133_v8  ;;  %19441 = vst [vmem:[#allocation38_spill] sm:$0xff] %v14019_v28  ;;  %v4010_v37 = vmul.f32 %v19442_v35, %v19442_v35  ;;  %v1668_v44 = vmul.f32 %v19386_v45, %v1599_v53  ;;  %v19446_v53 = vld [vmem:[#allocation45_spill] sm:$0xff] }
 0x2cc   : > { %19439 = vst [vmem:[#allocation39_spill] sm:$0xff] %v14012_v20  ;;  %7453 = vperm.xlu1 %11584, %v13994_v34   ;;  %11105 = vmatprep.mubr.msk.f32.mxu0 %vm1718_vm0, %v1667_v50  ;;  %v5475_v49 = vpop.f32.mrf.mxu1  ;;  %v19443_v50 = vld [vmem:[#allocation44_spill] sm:$0xff]  ;;  %v14030_v2 = vsub.f32 1.0, %v4009_v63  ;;  %v4136_v7 = vmul.f32 %v14019_v28, %v13925_v24  ;;  %v4011_v35 = vmul.f32 %v19445_v3, %v19445_v3  ;;  %v1539_v4 = vmul.f32 -2.0, %v19446_v53 }
 0x2cd   : > { %11338 = vmatprep.mubr.msk.f32.mxu1 %vm1718_vm0, %v4134_v36  ;;  %v14024_v8 = vpop.f32.mrf.mxu0  ;;  %7458 = vperm.xlu0 %11583, %v14012_v20   ;;  %v1669_v33 = vmul.f32 %v19386_v45, %v19443_v50  ;;  %v7824_v63 = vmul.f32 %v14012_v20, %v14012_v20  ;;  %v1670_v24 = vmul.f32 %v19386_v45, %v1601_v16  ;;  %v14050_v3 = vsub.f32 1.0, %v4010_v37  ;;  %v19449_v20 = vld [vmem:[#allocation95_spill] sm:$0xff] }
 0x2ce   : > { %19444 = vst [vmem:[#allocation92_spill] sm:$0xff] %v14030_v2  ;;  %v14039_v36 = vpop.f32.mrf.mxu1  ;;  %v4137_v50 = vmul.f32 %v13908_v59, %v14030_v2  ;;  %v1603_v60 = vmul.f32 %v1539_v4, %v19449_v20  ;;  %v19450_v16 = vld [vmem:[#allocation47_spill] sm:$0xff]  ;;  %v19451_v59 = vld [vmem:[#allocation46_spill] sm:$0xff]  ;;  %v14063_v2 = vsub.f32 1.0, %v4011_v35  ;;  %v14076_v20 = vadd.f32 %v13899_v58, %v5475_v49  ;;  %v19455_v35 = vld [vmem:[#allocation96_spill] sm:$0xff] }
 0x2cf   : > { %v14036_v21 = vpop.f32.mrf.mxu0  ;;  %11106 = vmatmul.mubr.msk.f32.gmra.mxu0 %vm1718_vm0, %v1668_v44  ;;  %11339 = vmatmul.mubr.msk.f32.gmra.mxu1 %vm1718_vm0, %v4135_v62  ;;  %19447 = vst [vmem:[#allocation40_spill] sm:$0xff] %v14050_v3  ;;  %v19448_v44 = vld [vmem:[#allocation159_spill] sm:$0xff]  ;;  %v1541_v37 = vmul.f32 -2.0, %v19451_v59  ;;  %v19457_v59 = vld [vmem:[#allocation161_spill] sm:$0xff] }
 0x2d0   : > { %7448 = vperm.xlu1 %11584, %v13962_v41   ;;  %11108 = vmatprep.mubr.msk.f32.mxu0 %vm1718_vm0, %v1669_v33  ;;  %v4012_v28 = vmul.f32 %v19448_v44, %v19448_v44  ;;  %v5485_v53 = vpop.f32.mrf.mxu1  ;;  %v7823_v33 = vmul.f32 %v13994_v34, %v13994_v34  ;;  %v1671_v41 = vmul.f32 %v19386_v45, %v19450_v16 }
 0x2d1   : > { %11341 = vmatprep.mubr.msk.f32.mxu1 %vm1718_vm0, %v4136_v7  ;;  %v14055_v62 = vpop.f32.mrf.mxu0  ;;  %7906 = vperm.xlu0 %11583, %v7824_v63   ;;  %19452 = vst [vmem:[#allocation41_spill] sm:$0xff] %v14063_v2  ;;  %v4138_v44 = vmul.f32 %v14050_v3, %v13956_v32  ;;  %v19453_v7 = vld [vmem:[#allocation160_spill] sm:$0xff]  ;;  %19454 = vst [vmem:[#allocation93_spill] sm:$0xff] %v14076_v20  ;;  %v1605_v63 = vmul.f32 %v1541_v37, %v19455_v35  ;;  %v19463_v3 = vld [vmem:[#allocation50_spill] sm:$0xff] }
 0x2d2   : > { %v4013_v23 = vmul.f32 %v19453_v7, %v19453_v7  ;;  %v14072_v4 = vpop.f32.mrf.mxu1  ;;  %v4139_v32 = vmul.f32 %v13940_v1, %v14063_v2  ;;  %v14082_v16 = vsub.f32 1.0, %v4012_v28  ;;  %v1672_v49 = vmul.f32 %v19386_v45, %v1603_v60  ;;  %v19459_v1 = vld [vmem:[#allocation49_spill] sm:$0xff]  ;;  %v19466_v2 = vld [vmem:[#allocation163_spill] sm:$0xff] }
 0x2d3   : > { %v14069_v47 = vpop.f32.mrf.mxu0  ;;  %11109 = vmatmul.mubr.msk.f32.gmra.mxu0 %vm1718_vm0, %v1670_v24  ;;  %11342 = vmatmul.mubr.msk.f32.gmra.mxu1 %vm1718_vm0, %v4137_v50  ;;  %v4014_v24 = vmul.f32 %v19457_v59, %v19457_v59  ;;  %v1673_v28 = vmul.f32 %v19386_v45, %v19459_v1  ;;  %v19462_v59 = vld [vmem:[#allocation162_spill] sm:$0xff]  ;;  %v1545_v1 = vmul.f32 -2.0, %v19463_v3 }
 0x2d4   : > { %7901 = vperm.xlu1 %11584, %v7823_v33   ;;  %11111 = vmatprep.mubr.msk.f32.mxu0 %vm1718_vm0, %v1671_v41  ;;  %19456 = vst [vmem:[#allocation43_spill] sm:$0xff] %v14082_v16  ;;  %v14089_v50 = vpop.f32.mrf.mxu1  ;;  %v14094_v41 = vadd.f32 %v13975_v27, %v13899_v58  ;;  %v19460_v33 = vld [vmem:[#allocation48_spill] sm:$0xff]  ;;  %v14100_v35 = vsub.f32 1.0, %v4013_v23  ;;  %v4015_v7 = vmul.f32 %v19462_v59, %v19462_v59 }
 0x2d5   : > { %11344 = vmatprep.mubr.msk.f32.mxu1 %vm1718_vm0, %v4138_v44  ;;  %v14087_v34 = vpop.f32.mrf.mxu0  ;;  %7468 = vperm.xlu0 %11583, %v14076_v20   ;;  %v1543_v37 = vmul.f32 -2.0, %v19460_v33  ;;  %v4140_v44 = vmul.f32 %v14082_v16, %v13990_v25  ;;  %v7826_v23 = vmul.f32 %v14076_v20, %v14076_v20  ;;  %v1674_v25 = vmul.f32 %v19386_v45, %v1605_v63  ;;  %v19464_v33 = vld [vmem:[#allocation97_spill] sm:$0xff] }
 0x2d6   : > { %19458 = vst [vmem:[#allocation42_spill] sm:$0xff] %v14094_v41  ;;  %19461 = vst [vmem:[#allocation94_spill] sm:$0xff] %v14100_v35  ;;  %v14109_v27 = vpop.f32.mrf.mxu1  ;;  %v14121_v16 = vsub.f32 1.0, %v4014_v24  ;;  %v7825_v63 = vmul.f32 %v14094_v41, %v14094_v41  ;;  %v14135_v24 = vsub.f32 1.0, %v4015_v7 }
 0x2d7   : > { %v14106_v60 = vpop.f32.mrf.mxu0  ;;  %11112 = vmatmul.mubr.msk.f32.gmra.mxu0 %vm1718_vm0, %v1672_v49  ;;  %11345 = vmatmul.mubr.msk.f32.gmra.mxu1 %vm1718_vm0, %v4139_v32  ;;  %v1607_v59 = vmul.f32 %v1543_v37, %v19464_v33  ;;  %v4141_v49 = vmul.f32 %v13972_v43, %v14100_v35  ;;  %v4016_v32 = vmul.f32 %v19466_v2, %v19466_v2  ;;  %v19468_v37 = vld [vmem:[#allocation51_spill] sm:$0xff]  ;;  %v19470_v2 = vld [vmem:[#allocation164_spill] sm:$0xff] }
 0x2d8   : > { %7463 = vperm.xlu1 %11584, %v14094_v41   ;;  %11114 = vmatprep.mubr.msk.f32.mxu0 %vm1718_vm0, %v1673_v28  ;;  %19465 = vst [vmem:[#allocation44_spill] sm:$0xff] %v14121_v16  ;;  %v14128_v20 = vpop.f32.mrf.mxu1  ;;  %v1609_v28 = vmul.f32 %v1545_v1, %v19467_v55  ;;  %v1675_v43 = vmul.f32 %v19386_v45, %v19468_v37  ;;  %19469 = vst [vmem:[#allocation45_spill] sm:$0xff] %v14135_v24 }
 0x2d9   : > { %11347 = vmatprep.mubr.msk.f32.mxu1 %vm1718_vm0, %v4140_v44  ;;  %v14126_v3 = vpop.f32.mrf.mxu0  ;;  %7916 = vperm.xlu0 %11583, %v7826_v23   ;;  %v4142_v33 = vmul.f32 %v14121_v16, %v14024_v8  ;;  %v4017_v44 = vmul.f32 %v19470_v2, %v19470_v2  ;;  %v14148_v1 = vadd.f32 %v13899_v58, %v5485_v53  ;;  %v19472_v8 = vld [vmem:[#allocation53_spill] sm:$0xff]  ;;  %v14155_v41 = vsub.f32 1.0, %v4016_v32 }
 0x2da   : > { %v14144_v55 = vpop.f32.mrf.mxu1  ;;  %v1676_v7 = vmul.f32 %v19386_v45, %v1607_v59  ;;  %v1547_v23 = vmul.f32 -2.0, %v19472_v8  ;;  %v4143_v37 = vmul.f32 %v14005_v26, %v14135_v24  ;;  %v14167_v59 = vadd.f32 %v14008_v14, %v13899_v58  ;;  %v19476_v26 = vld [vmem:[#allocation52_spill] sm:$0xff] }
 0x2db   : > { %v14141_v35 = vpop.f32.mrf.mxu0  ;;  %11115 = vmatmul.mubr.msk.f32.gmra.mxu0 %vm1718_vm0, %v1674_v25  ;;  %11348 = vmatmul.mubr.msk.f32.gmra.mxu1 %vm1718_vm0, %v4141_v49  ;;  %19471 = vst [vmem:[#allocation95_spill] sm:$0xff] %v14148_v1  ;;  %19473 = vst [vmem:[#allocation47_spill] sm:$0xff] %v14155_v41  ;;  %v19474_v25 = vld [vmem:[#allocation165_spill] sm:$0xff]  ;;  %v1677_v32 = vmul.f32 %v19386_v45, %v19476_v26  ;;  %v4144_v24 = vmul.f32 %v14155_v41, %v14055_v62  ;;  %v19481_v26 = vld [vmem:[#allocation99_spill] sm:$0xff] }
 0x2dc   : > { %7911 = vperm.xlu1 %11584, %v7825_v63   ;;  %11117 = vmatprep.mubr.msk.f32.mxu0 %vm1718_vm0, %v1675_v43  ;;  %v4018_v2 = vmul.f32 %v19474_v25, %v19474_v25  ;;  %v14162_v53 = vpop.f32.mrf.mxu1  ;;  %v1678_v63 = vmul.f32 %v19386_v45, %v1609_v28  ;;  %19475 = vst [vmem:[#allocation46_spill] sm:$0xff] %v14167_v59  ;;  %v19477_v43 = vld [vmem:[#allocation54_spill] sm:$0xff]  ;;  %v19478_v25 = vld [vmem:[#allocation5_spill] sm:$0xff]  ;;  %v19482_v62 = vld [vmem:[#allocation100_spill] sm:$0xff] }
 0x2dd   : > { %11350 = vmatprep.mubr.msk.f32.mxu1 %vm1718_vm0, %v4142_v33  ;;  %v14160_v49 = vpop.f32.mrf.mxu0  ;;  %7478 = vperm.xlu0 %11583, %v14148_v1   ;;  %v1549_v8 = vmul.f32 -2.0, %v19477_v43  ;;  %v1551_v16 = vmul.f32 -2.0, %v19478_v25  ;;  %v14174_v33 = vsub.f32 1.0, %v4017_v44  ;;  %v4019_v28 = vmul.f32 %v19480_v38, %v19480_v38  ;;  %v19483_v38 = vld [vmem:[#allocation101_spill] sm:$0xff] }
 0x2de   : > { %v14183_v14 = vpop.f32.mrf.mxu1  ;;  %v1611_v43 = vmul.f32 %v1547_v23, %v19481_v26  ;;  %v7828_v44 = vmul.f32 %v14148_v1, %v14148_v1  ;;  %v14196_v6 = vsub.f32 1.0, %v4018_v2  ;;  %v19489_v2 = vld [vmem:[#allocation102_spill] sm:$0xff] }
 0x2df   : > { %19479 = vst [vmem:[#allocation96_spill] sm:$0xff] %v14174_v33  ;;  %v14180_v9 = vpop.f32.mrf.mxu0  ;;  %11118 = vmatmul.mubr.msk.f32.gmra.mxu0 %vm1718_vm0, %v1676_v7  ;;  %11351 = vmatmul.mubr.msk.f32.gmra.mxu1 %vm1718_vm0, %v4143_v37  ;;  %v1613_v25 = vmul.f32 %v1549_v8, %v19482_v62  ;;  %v1615_v41 = vmul.f32 %v1551_v16, %v19483_v38  ;;  %v19486_v37 = vld [vmem:[#allocation56_spill] sm:$0xff] }
 0x2e0   : > { %7473 = vperm.xlu1 %11584, %v14167_v59   ;;  %11120 = vmatprep.mubr.msk.f32.mxu0 %vm1718_vm0, %v1677_v32  ;;  %v4145_v7 = vmul.f32 %v14036_v21, %v14174_v33  ;;  %19485 = vst [vmem:[#allocation49_spill] sm:$0xff] %v14196_v6  ;;  %v4020_v23 = vmul.f32 %v19486_v37, %v19486_v37  ;;  %v14203_v1 = vpop.f32.mrf.mxu1  ;;  %v19487_v32 = vld [vmem:[#allocation59_spill] sm:$0xff]  ;;  %v19490_v62 = vld [vmem:[#allocation60_spill] sm:$0xff]  ;;  %v14212_v37 = vsub.f32 1.0, %v4019_v28 }
 0x2e1   : > { %11353 = vmatprep.mubr.msk.f32.mxu1 %vm1718_vm0, %v4144_v24  ;;  %v14201_v26 = vpop.f32.mrf.mxu0  ;;  %v1555_v8 = vmul.f32 -2.0, %v19487_v32  ;;  %v7827_v38 = vmul.f32 %v14167_v59, %v14167_v59  ;;  %7926 = vperm.xlu0 %11583, %v7828_v44   ;;  %v1679_v21 = vmul.f32 %v19386_v45, %v19488_v61  ;;  %v1617_v16 = vmul.f32 %v1553_v0, %v19489_v2  ;;  %v19493_v61 = vld [vmem:[#allocation103_spill] sm:$0xff]  ;;  %v19495_v2 = vld [vmem:[#allocation104_spill] sm:$0xff] }
 0x2e2   : > { %v1557_v33 = vmul.f32 -2.0, %v19490_v62  ;;  %19491 = vst [vmem:[#allocation48_spill] sm:$0xff] %v14212_v37  ;;  %v4146_v24 = vmul.f32 %v14196_v6, %v14087_v34  ;;  %v14221_v44 = vpop.f32.mrf.mxu1  ;;  %v14227_v28 = vadd.f32 %v13899_v58, %v14089_v50  ;;  %v1680_v34 = vmul.f32 %v19386_v45, %v1611_v43 }
 0x2e3   : > { %v14218_v32 = vpop.f32.mrf.mxu0  ;;  %11121 = vmatmul.mubr.msk.f32.gmra.mxu0 %vm1718_vm0, %v1678_v63  ;;  %11354 = vmatmul.mubr.msk.f32.gmra.mxu1 %vm1718_vm0, %v4145_v7  ;;  %v1619_v0 = vmul.f32 %v1555_v8, %v19493_v61  ;;  %v4147_v63 = vmul.f32 %v14069_v47, %v14212_v37  ;;  %v14234_v59 = vsub.f32 1.0, %v4020_v23  ;;  %v4022_v7 = vmul.f32 %v19497_v13, %v19497_v13  ;;  %v19499_v47 = vld [vmem:[#allocation57_spill] sm:$0xff]  ;;  %v19509_v37 = vld [vmem:[#allocation8_spill] sm:$0xff] }
 0x2e4   : > { %19494 = vst [vmem:[#allocation50_spill] sm:$0xff] %v14227_v28  ;;  %7921 = vperm.xlu1 %11584, %v7827_v38   ;;  %11123 = vmatprep.mubr.msk.f32.mxu0 %vm1718_vm0, %v1679_v21  ;;  %v1621_v62 = vmul.f32 %v1557_v33, %v19495_v2  ;;  %v14241_v50 = vpop.f32.mrf.mxu1  ;;  %v1682_v38 = vmul.f32 %v19386_v45, %v1613_v25  ;;  %v19501_v25 = vld [vmem:[#allocation168_spill] sm:$0xff] }
 0x2e5   : > { %19496 = vst [vmem:[#allocation97_spill] sm:$0xff] %v14234_v59  ;;  %11356 = vmatprep.mubr.msk.f32.mxu1 %vm1718_vm0, %v4146_v24  ;;  %v14239_v8 = vpop.f32.mrf.mxu0  ;;  %v14246_v43 = vadd.f32 %v14039_v36, %v13899_v58  ;;  %7488 = vperm.xlu0 %11583, %v14227_v28   ;;  %v1681_v33 = vmul.f32 %v19386_v45, %v19499_v47  ;;  %v14255_v24 = vsub.f32 1.0, %v4021_v17 }
 0x2e6   : > { %v1684_v23 = vmul.f32 %v19386_v45, %v1615_v41  ;;  %v14253_v21 = vmul.f32 %v19386_v45, %v1617_v16  ;;  %v4148_v61 = vmul.f32 %v14234_v59, %v14126_v3  ;;  %v4023_v2 = vmul.f32 %v19501_v25, %v19501_v25  ;;  %v14264_v13 = vpop.f32.mrf.mxu1  ;;  %v19503_v3 = vld [vmem:[#allocation108_spill] sm:$0xff]  ;;  %v19506_v59 = vld [vmem:[#allocation58_spill] sm:$0xff] }
 0x2e7   : > { %19498 = vst [vmem:[#allocation98_spill] sm:$0xff] %v14246_v43  ;;  %19500 = vst [vmem:[#allocation51_spill] sm:$0xff] %v14255_v24  ;;  %v14261_v36 = vpop.f32.mrf.mxu0  ;;  %11124 = vmatmul.mubr.msk.f32.gmra.mxu0 %vm1718_vm0, %v1680_v34  ;;  %11357 = vmatmul.mubr.msk.f32.gmra.mxu1 %vm1718_vm0, %v4147_v63  ;;  %v14268_v41 = vmul.f32 %v19386_v45, %v1619_v0  ;;  %v7830_v17 = vmul.f32 %v14227_v28, %v14227_v28  ;;  %v4287_v16 = vmul.f32 2.0, %v19503_v3  ;;  %v19504_v34 = vld [vmem:[#allocation62_spill] sm:$0xff]  ;;  %v19507_v3 = vld [vmem:[#allocation7_spill] sm:$0xff] }
 0x2e8   : > { %19502 = vst [vmem:[#allocation53_spill] sm:$0xff] %v14264_v13  ;;  %7483 = vperm.xlu1 %11584, %v14246_v43   ;;  %11126 = vmatprep.mubr.msk.f32.mxu0 %vm1718_vm0, %v1681_v33  ;;  %v14276_v47 = vmul.f32 %v19386_v45, %v1621_v62  ;;  %v14279_v25 = vmul.f32 -2.0, %v19504_v34  ;;  %v4149_v63 = vmul.f32 %v14106_v60, %v14255_v24  ;;  %v14283_v0 = vsub.f32 1.0, %v4022_v7  ;;  %v14290_v33 = vpop.f32.mrf.mxu1  ;;  %v19508_v7 = vld [vmem:[#allocation106_spill] sm:$0xff]  ;;  %v19511_v13 = vld [vmem:[#allocation169_spill] sm:$0xff] }
 0x2e9   : > { %v4024_v28 = vmul.f32 %v19506_v59, %v19506_v59  ;;  %11359 = vmatprep.mubr.msk.f32.mxu1 %vm1718_vm0, %v4148_v61  ;;  %v14288_v6 = vpop.f32.mrf.mxu0  ;;  %v1683_v62 = vmul.f32 %v19386_v45, %v19507_v3  ;;  %v7829_v34 = vmul.f32 %v14246_v43, %v14246_v43  ;;  %7936 = vperm.xlu0 %11583, %v7830_v17   ;;  %v4286_v24 = vmul.f32 2.0, %v19508_v7 }
 0x2ea   : > { %19505 = vst [vmem:[#allocation52_spill] sm:$0xff] %v14283_v0  ;;  %v4351_v60 = vmul.f32 %v4287_v16, %v13536_v19  ;;  %v1685_v59 = vmul.f32 %v19386_v45, %v19509_v37  ;;  %v14300_v48 = vsub.f32 1.0, %v4023_v2  ;;  %v4150_v61 = vmul.f32 %v14283_v0, %v14160_v49  ;;  %v19513_v16 = vld [vmem:[#allocation10_spill] sm:$0xff]  ;;  %v19515_v2 = vld [vmem:[#allocation11_spill] sm:$0xff] }
 0x2eb   : > { %v4025_v52 = vmul.f32 %v19511_v13, %v19511_v13  ;;  %v14306_v3 = vpop.f32.mrf.mxu0  ;;  %11127 = vmatmul.mubr.msk.f32.gmra.mxu0 %vm1718_vm0, %v1682_v38  ;;  %v14309_v17 = vpop.f32.mrf.mxu1  ;;  %11360 = vmatmul.mubr.msk.f32.gmra.mxu1 %vm1718_vm0, %v4149_v63  ;;  %v1687_v7 = vmul.f32 %v19386_v45, %v19513_v16  ;;  %v14316_v37 = vadd.f32 %v13899_v58, %v14128_v20  ;;  %v19516_v13 = vld [vmem:[#allocation111_spill] sm:$0xff]  ;;  %v19518_v63 = vld [vmem:[#allocation9_spill] sm:$0xff] }
 0x2ec   : > { %19510 = vst [vmem:[#allocation54_spill] sm:$0xff] %v14300_v48  ;;  %19512 = vst [vmem:[#allocation5_spill] sm:$0xff] %v14309_v17  ;;  %v4415_v49 = vmul.f32 %v14306_v3, %v4351_v60  ;;  %7931 = vperm.xlu1 %11584, %v7829_v34   ;;  %v4350_v43 = vmul.f32 %v4286_v24, %v19515_v2  ;;  %v4289_v0 = vmul.f32 2.0, %v19516_v13  ;;  %v14323_v17 = vsub.f32 1.0, %v4024_v28  ;;  %v19519_v34 = vld [vmem:[#allocation110_spill] sm:$0xff] }
 0x2ed   : > { %19514 = vst [vmem:[#allocation99_spill] sm:$0xff] %v14316_v37  ;;  %v4151_v38 = vmul.f32 %v14141_v35, %v14300_v48  ;;  %v4026_v11 = vmul.f32 %v19518_v63, %v19518_v63  ;;  %11129 = vmatprep.mubr.msk.f32.mxu0 %vm1718_vm0, %v1683_v62  ;;  %11362 = vmatprep.mubr.msk.f32.mxu1 %vm1718_vm0, %v4150_v61  ;;  %v14329_v20 = vpop.f32.mrf.mxu0  ;;  %v14331_v60 = vpop.f32.mrf.mxu1  ;;  %v4288_v24 = vmul.f32 2.0, %v19519_v34  ;;  %v14344_v61 = vsub.f32 1.0, %v4025_v52  ;;  %v19523_v63 = vld [vmem:[#allocation170_spill] sm:$0xff] }
 0x2ee   : > { %19517 = vst [vmem:[#allocation100_spill] sm:$0xff] %v14323_v17  ;;  %v14336_v13 = vadd.f32 %v14072_v4, %v13899_v58  ;;  %v14339_v35 = vmul.f32 %v14306_v3, %v4415_v49  ;;  %v4414_v28 = vmul.f32 %v4350_v43, %v14329_v20  ;;  %7498 = vperm.xlu0 %11583, %v14316_v37   ;;  %v4291_v43 = vmul.f32 2.0, %v13036_v22 }
 0x2ef   : > { %v4353_v62 = vmul.f32 %v4289_v0, %v13557_v30  ;;  %19522 = vst [vmem:[#allocation59_spill] sm:$0xff] %v14344_v61  ;;  %v4152_v16 = vmul.f32 %v14323_v17, %v14201_v26  ;;  %v4027_v34 = vmul.f32 %v19523_v63, %v19523_v63  ;;  %v14350_v48 = vpop.f32.mrf.mxu0  ;;  %11130 = vmatmul.mubr.msk.f32.gmra.mxu0 %vm1718_vm0, %v1684_v23  ;;  %v14353_v4 = vpop.f32.mrf.mxu1  ;;  %v19524_v26 = vld [vmem:[#allocation173_spill] sm:$0xff]  ;;  %v14366_v17 = vsub.f32 1.0, %v4026_v11 }
 0x2f0   : > { %19520 = vst [vmem:[#allocation101_spill] sm:$0xff] %v14336_v13  ;;  %19521 = vst [vmem:[#allocation6_spill] sm:$0xff] %v14339_v35  ;;  %11363 = vmatmul.mubr.msk.f32.gmra.mxu1 %vm1718_vm0, %v4151_v38  ;;  %v7832_v52 = vmul.f32 %v14316_v37, %v14316_v37  ;;  %7493 = vperm.xlu1 %11584, %v14336_v13   ;;  %v4352_v49 = vmul.f32 %v4288_v24, %v19524_v26  ;;  %v19525_v35 = vld [vmem:[#allocation112_spill] sm:$0xff]  ;;  %v19526_v38 = vld [vmem:[#allocation171_spill] sm:$0xff] }
 0x2f1   : > { %v4417_v0 = vmul.f32 %v14350_v48, %v4353_v62  ;;  %11132 = vmatprep.mubr.msk.f32.mxu0 %vm1718_vm0, %v1685_v59  ;;  %v4290_v63 = vmul.f32 2.0, %v19525_v35  ;;  %v4153_v23 = vmul.f32 %v14180_v9, %v14344_v61  ;;  %v4028_v22 = vmul.f32 %v19526_v38, %v19526_v38  ;;  %11365 = vmatprep.mubr.msk.f32.mxu1 %vm1718_vm0, %v4152_v16  ;;  %v14371_v37 = vpop.f32.mrf.mxu0  ;;  %v14373_v62 = vpop.f32.mrf.mxu1  ;;  %v19529_v61 = vld [vmem:[#allocation172_spill] sm:$0xff] }
 0x2f2   : > { %v14376_v59 = vmul.f32 %v4414_v28, %v14329_v20  ;;  %v7831_v24 = vmul.f32 %v14336_v13, %v14336_v13  ;;  %v4416_v9 = vmul.f32 %v4352_v49, %v14371_v37  ;;  %7946 = vperm.xlu0 %11583, %v7832_v52   ;;  %v4355_v11 = vmul.f32 %v4291_v43, %v13577_v10  ;;  %v19530_v52 = vld [vmem:[#allocation61_spill] sm:$0xff]  ;;  %v19532_v13 = vld [vmem:[#allocation116_spill] sm:$0xff] }
 0x2f3   : > { %v14381_v35 = vmul.f32 %v14350_v48, %v4417_v0  ;;  %v14385_v38 = vsub.f32 1.0, %v4027_v34  ;;  %v4154_v16 = vmul.f32 %v14366_v17, %v14239_v8  ;;  %v4029_v28 = vmul.f32 %v19529_v61, %v19529_v61  ;;  %11133 = vmatmul.mubr.msk.f32.gmra.mxu0 %vm1718_vm0, %v14253_v21  ;;  %v14395_v0 = vpop.f32.mrf.mxu1  ;;  %v19534_v61 = vld [vmem:[#allocation114_spill] sm:$0xff] }
 0x2f4   : > { %19527 = vst [vmem:[#allocation55_spill] sm:$0xff] %v14376_v59  ;;  %v14391_v59 = vpop.f32.mrf.mxu0  ;;  %11366 = vmatmul.mubr.msk.f32.gmra.mxu1 %vm1718_vm0, %v4153_v23  ;;  %v1689_v43 = vmul.f32 %v19386_v45, %v19530_v52  ;;  %v14402_v34 = vadd.f32 %v13899_v58, %v14162_v53  ;;  %7941 = vperm.xlu1 %11584, %v7831_v24   ;;  %v4293_v21 = vmul.f32 2.0, %v19532_v13  ;;  %v14410_v23 = vsub.f32 1.0, %v4028_v22 }
 0x2f5   : > { %19528 = vst [vmem:[#allocation102_spill] sm:$0xff] %v14381_v35  ;;  %v4419_v8 = vmul.f32 %v14391_v59, %v4355_v11  ;;  %11135 = vmatprep.mubr.msk.f32.mxu0 %vm1718_vm0, %v1687_v7  ;;  %v4354_v49 = vmul.f32 %v4290_v63, %v13565_v15  ;;  %v4155_v35 = vmul.f32 %v14218_v32, %v14385_v38  ;;  %v14415_v53 = vpop.f32.mrf.mxu1  ;;  %v4292_v11 = vmul.f32 2.0, %v19534_v61 }
 0x2f6   : > { %19531 = vst [vmem:[#allocation60_spill] sm:$0xff] %v14402_v34  ;;  %19533 = vst [vmem:[#allocation103_spill] sm:$0xff] %v14410_v23  ;;  %11368 = vmatprep.mubr.msk.f32.mxu1 %vm1718_vm0, %v4154_v16  ;;  %v14413_v52 = vpop.f32.mrf.mxu0  ;;  %v14419_v24 = vmul.f32 %v4416_v9, %v14371_v37  ;;  %v14423_v7 = vadd.f32 %v14109_v27, %v13899_v58  ;;  %7508 = vperm.xlu0 %11583, %v14402_v34   ;;  %v14431_v22 = vsub.f32 1.0, %v4029_v28  ;;  %v19539_v16 = vld [vmem:[#allocation105_spill] sm:$0xff] }
 0x2f7   : > { %v14426_v63 = vmul.f32 %v14391_v59, %v4419_v8  ;;  %v4418_v32 = vmul.f32 %v4354_v49, %v14413_v52  ;;  %v4357_v13 = vmul.f32 %v4293_v21, %v13597_v42  ;;  %v4156_v61 = vmul.f32 %v14410_v23, %v14288_v6  ;;  %11136 = vmatmul.mubr.msk.f32.gmra.mxu0 %vm1718_vm0, %v14268_v41  ;;  %v14439_v27 = vpop.f32.mrf.mxu1  ;;  %v19540_v49 = vld [vmem:[#allocation14_spill] sm:$0xff] }
 0x2f8   : > { %19535 = vst [vmem:[#allocation104_spill] sm:$0xff] %v14419_v24  ;;  %19536 = vst [vmem:[#allocation57_spill] sm:$0xff] %v14423_v7  ;;  %v14435_v9 = vpop.f32.mrf.mxu0  ;;  %11369 = vmatmul.mubr.msk.f32.gmra.mxu1 %vm1718_vm0, %v4155_v35  ;;  %v1623_v8 = vmul.f32 %v14279_v25, %v19539_v16  ;;  %v7834_v28 = vmul.f32 %v14402_v34, %v14402_v34  ;;  %7503 = vperm.xlu1 %11584, %v14423_v7   ;;  %v4295_v41 = vmul.f32 2.0, %v13076_v46  ;;  %v19542_v34 = vld [vmem:[#allocation118_spill] sm:$0xff] }
 0x2f9   : > { %19537 = vst [vmem:[#allocation108_spill] sm:$0xff] %v14426_v63  ;;  %19538 = vst [vmem:[#allocation62_spill] sm:$0xff] %v14431_v22  ;;  %v1561_v63 = vmul.f32 -2.0, %v19540_v49  ;;  %v4421_v21 = vmul.f32 %v14435_v9, %v4357_v13  ;;  %11138 = vmatprep.mubr.msk.f32.mxu0 %vm1718_vm0, %v1689_v43  ;;  %v4356_v6 = vmul.f32 %v4292_v11, %v13585_v54  ;;  %11371 = vmatprep.mubr.msk.f32.mxu1 %vm1718_vm0, %v4156_v61  ;;  %v14457_v16 = vpop.f32.mrf.mxu1  ;;  %v19541_v49 = vld [vmem:[#allocation13_spill] sm:$0xff] }
 0x2fa   : > { %v4157_v35 = vmul.f32 %v14261_v36, %v14431_v22  ;;  %v14455_v25 = vpop.f32.mrf.mxu0  ;;  %v1691_v13 = vmul.f32 %v19386_v45, %v19541_v49  ;;  %v4294_v24 = vmul.f32 2.0, %v19542_v34  ;;  %v14463_v43 = vmul.f32 %v4418_v32, %v14413_v52  ;;  %7956 = vperm.xlu0 %11583, %v7834_v28  }
 0x2fb   : > { %v7833_v46 = vmul.f32 %v14423_v7, %v14423_v7  ;;  %v14468_v11 = vmul.f32 %v14435_v9, %v4421_v21  ;;  %v4420_v36 = vmul.f32 %v4356_v6, %v14455_v25  ;;  %v4359_v61 = vmul.f32 %v4295_v41, %v13618_v56  ;;  %11139 = vmatmul.mubr.msk.f32.gmra.mxu0 %vm1718_vm0, %v14276_v47  ;;  %v14478_v34 = vpop.f32.mrf.mxu1  ;;  %v19545_v21 = vld [vmem:[#allocation107_spill] sm:$0xff] }
 0x2fc   : > { %19543 = vst [vmem:[#allocation7_spill] sm:$0xff] %v14463_v43  ;;  %v4158_v23 = vmul.f32 %v19515_v2, %v14329_v20  ;;  %v14474_v49 = vpop.f32.mrf.mxu0  ;;  %11372 = vmatmul.mubr.msk.f32.gmra.mxu1 %vm1718_vm0, %v4157_v35  ;;  %v1692_v32 = vmul.f32 %v19386_v45, %v1623_v8  ;;  %v1625_v7 = vmul.f32 %v1561_v63, %v19545_v21  ;;  %v19546_v6 = vld [vmem:[#allocation63_spill] sm:$0xff] }
 0x2fd   : > { %19544 = vst [vmem:[#allocation106_spill] sm:$0xff] %v14468_v11  ;;  %v1563_v28 = vmul.f32 -2.0, %v19546_v6  ;;  %v14486_v41 = vadd.f32 %v13899_v58, %v14203_v1  ;;  %v4423_v20 = vmul.f32 %v14474_v49, %v4359_v61  ;;  %7951 = vperm.xlu1 %11584, %v7833_v46   ;;  %11141 = vmatprep.mubr.msk.f32.mxu0 %vm1718_vm0, %v1691_v13  ;;  %v19548_v11 = vld [vmem:[#allocation121_spill] sm:$0xff]  ;;  %v14497_v35 = vpop.f32.mrf.mxu1  ;;  %v19549_v1 = vld [vmem:[#allocation16_spill] sm:$0xff]  ;;  %v19550_v61 = vld [vmem:[#allocation119_spill] sm:$0xff] }
 0x2fe   : > { %v4358_v47 = vmul.f32 %v4294_v24, %v13605_v12  ;;  %v4297_v43 = vmul.f32 2.0, %v19548_v11  ;;  %v4159_v8 = vmul.f32 %v14306_v3, %v13536_v19  ;;  %11374 = vmatprep.mubr.msk.f32.mxu1 %vm1718_vm0, %v4158_v23  ;;  %v14495_v63 = vpop.f32.mrf.mxu0  ;;  %v1693_v21 = vmul.f32 %v19386_v45, %v19549_v1 }
 0x2ff   : > { %19547 = vst [vmem:[#allocation8_spill] sm:$0xff] %v14486_v41  ;;  %v4296_v46 = vmul.f32 2.0, %v19550_v61  ;;  %v14503_v13 = vmul.f32 %v4420_v36, %v14455_v25  ;;  %v14507_v24 = vadd.f32 %v14144_v55, %v13899_v58  ;;  %v14510_v3 = vmul.f32 %v14474_v49, %v4423_v20  ;;  %7518 = vperm.xlu0 %11583, %v14486_v41   ;;  %v14520_v36 = vpop.f32.mrf.mxu1  ;;  %v19554_v20 = vld [vmem:[#allocation109_spill] sm:$0xff] }
 0x300   : > { %v4422_v23 = vmul.f32 %v4358_v47, %v14495_v63  ;;  %v4361_v11 = vmul.f32 %v4297_v43, %v13639_v40  ;;  %v4160_v6 = vmul.f32 %v19524_v26, %v14371_v37  ;;  %v14517_v1 = vpop.f32.mrf.mxu0  ;;  %11142 = vmatmul.mubr.msk.f32.gmra.mxu0 %vm1718_vm0, %v1692_v32  ;;  %11375 = vmatmul.mubr.msk.f32.gmra.mxu1 %vm1718_vm0, %v4159_v8  ;;  %v19555_v47 = vld [vmem:[#allocation64_spill] sm:$0xff] }
 0x301   : > { %19551 = vst [vmem:[#allocation10_spill] sm:$0xff] %v14503_v13  ;;  %19552 = vst [vmem:[#allocation11_spill] sm:$0xff] %v14507_v24  ;;  %v1694_v55 = vmul.f32 %v19386_v45, %v1625_v7  ;;  %v1627_v61 = vmul.f32 %v1563_v28, %v19554_v20  ;;  %v7836_v43 = vmul.f32 %v14486_v41, %v14486_v41  ;;  %7513 = vperm.xlu1 %11584, %v14507_v24   ;;  %v19556_v32 = vld [vmem:[#allocation124_spill] sm:$0xff]  ;;  %v14538_v8 = vpop.f32.mrf.mxu1  ;;  %v19557_v20 = vld [vmem:[#allocation18_spill] sm:$0xff] }
 0x302   : > { %19553 = vst [vmem:[#allocation111_spill] sm:$0xff] %v14510_v3  ;;  %v1565_v3 = vmul.f32 -2.0, %v19555_v47  ;;  %v4425_v13 = vmul.f32 %v14517_v1, %v4361_v11  ;;  %11144 = vmatprep.mubr.msk.f32.mxu0 %vm1718_vm0, %v1693_v21  ;;  %v4360_v37 = vmul.f32 %v4296_v46, %v13626_v39  ;;  %v4299_v26 = vmul.f32 2.0, %v19556_v32  ;;  %11377 = vmatprep.mubr.msk.f32.mxu1 %vm1718_vm0, %v4160_v6  ;;  %v14536_v28 = vpop.f32.mrf.mxu0  ;;  %v19558_v47 = vld [vmem:[#allocation122_spill] sm:$0xff] }
 0x303   : > { %v4161_v7 = vmul.f32 %v14350_v48, %v13557_v30  ;;  %v1695_v11 = vmul.f32 %v19386_v45, %v19557_v20  ;;  %v4298_v41 = vmul.f32 2.0, %v19558_v47  ;;  %v14544_v21 = vmul.f32 %v4422_v23, %v14495_v63  ;;  %7966 = vperm.xlu0 %11583, %v7836_v43   ;;  %v14558_v23 = vpop.f32.mrf.mxu1  ;;  %v19564_v43 = vld [vmem:[#allocation127_spill] sm:$0xff] }
 0x304   : > { %v7835_v46 = vmul.f32 %v14507_v24, %v14507_v24  ;;  %v14549_v32 = vmul.f32 %v14517_v1, %v4425_v13  ;;  %v4424_v48 = vmul.f32 %v4360_v37, %v14536_v28  ;;  %v4363_v6 = vmul.f32 %v4299_v26, %v13660_v51  ;;  %v14555_v20 = vpop.f32.mrf.mxu0  ;;  %11145 = vmatmul.mubr.msk.f32.gmra.mxu0 %vm1718_vm0, %v1694_v55  ;;  %v19561_v13 = vld [vmem:[#allocation113_spill] sm:$0xff] }
 0x305   : > { %19559 = vst [vmem:[#allocation110_spill] sm:$0xff] %v14544_v21  ;;  %v4162_v30 = vmul.f32 %v13565_v15, %v14413_v52  ;;  %11378 = vmatmul.mubr.msk.f32.gmra.mxu1 %vm1718_vm0, %v4161_v7  ;;  %v1696_v47 = vmul.f32 %v19386_v45, %v1627_v61  ;;  %v1629_v24 = vmul.f32 %v1565_v3, %v19561_v13  ;;  %v4301_v21 = vmul.f32 2.0, %v19564_v43  ;;  %v14577_v7 = vpop.f32.mrf.mxu1 }
 0x306   : > { %19560 = vst [vmem:[#allocation112_spill] sm:$0xff] %v14549_v32  ;;  %v19562_v32 = vld [vmem:[#allocation21_spill] sm:$0xff]  ;;  %v14566_v26 = vadd.f32 %v13899_v58, %v14241_v50  ;;  %v4427_v52 = vmul.f32 %v14555_v20, %v4363_v6  ;;  %7961 = vperm.xlu1 %11584, %v7835_v46   ;;  %11147 = vmatprep.mubr.msk.f32.mxu0 %vm1718_vm0, %v1695_v11  ;;  %v14575_v3 = vpop.f32.mrf.mxu0  ;;  %v19566_v6 = vld [vmem:[#allocation126_spill] sm:$0xff] }
 0x307   : > { %v1567_v37 = vmul.f32 -2.0, %v19562_v32  ;;  %v4362_v55 = vmul.f32 %v4298_v41, %v13647_v18  ;;  %v4163_v61 = vmul.f32 %v14391_v59, %v13577_v10  ;;  %11380 = vmatprep.mubr.msk.f32.mxu1 %vm1718_vm0, %v4162_v30  ;;  %v19565_v50 = vld [vmem:[#allocation65_spill] sm:$0xff]  ;;  %v4300_v46 = vmul.f32 2.0, %v19566_v6 }
 0x308   : > { %19563 = vst [vmem:[#allocation61_spill] sm:$0xff] %v14566_v26  ;;  %v1697_v32 = vmul.f32 %v19386_v45, %v19565_v50  ;;  %v14583_v11 = vmul.f32 %v4424_v48, %v14536_v28  ;;  %v14587_v41 = vadd.f32 %v14183_v14, %v13899_v58  ;;  %v14590_v59 = vmul.f32 %v14555_v20, %v4427_v52  ;;  %v14597_v50 = vpop.f32.mrf.mxu0  ;;  %v14600_v48 = vpop.f32.mrf.mxu1  ;;  %v19570_v52 = vld [vmem:[#allocation115_spill] sm:$0xff] }
 0x309   : > { %v4426_v30 = vmul.f32 %v4362_v55, %v14575_v3  ;;  %7528 = vperm.xlu0 %11583, %v14566_v26   ;;  %v4365_v13 = vmul.f32 %v4301_v21, %v13681_v5  ;;  %v4164_v43 = vmul.f32 %v13585_v54, %v14455_v25  ;;  %11148 = vmatmul.mubr.msk.f32.gmra.mxu0 %vm1718_vm0, %v1696_v47  ;;  %v19571_v47 = vld [vmem:[#allocation130_spill] sm:$0xff] }
 0x30a   : > { %19567 = vst [vmem:[#allocation116_spill] sm:$0xff] %v14583_v11  ;;  %19568 = vst [vmem:[#allocation114_spill] sm:$0xff] %v14587_v41  ;;  %11381 = vmatmul.mubr.msk.f32.gmra.mxu1 %vm1718_vm0, %v4163_v61  ;;  %v1698_v14 = vmul.f32 %v19386_v45, %v1629_v24  ;;  %v1631_v6 = vmul.f32 %v1567_v37, %v19570_v52  ;;  %v7838_v55 = vmul.f32 %v14566_v26, %v14566_v26  ;;  %v14615_v24 = vpop.f32.mrf.mxu0  ;;  %v14617_v37 = vpop.f32.mrf.mxu1  ;;  %v19572_v52 = vld [vmem:[#allocation66_spill] sm:$0xff]  ;;  %v19573_v26 = vld [vmem:[#allocation128_spill] sm:$0xff] }
 0x30b   : > { %19569 = vst [vmem:[#allocation105_spill] sm:$0xff] %v14590_v59  ;;  %v4429_v21 = vmul.f32 %v14597_v50, %v4365_v13  ;;  %7523 = vperm.xlu1 %11584, %v14587_v41   ;;  %11150 = vmatprep.mubr.msk.f32.mxu0 %vm1718_vm0, %v1697_v32  ;;  %v4364_v25 = vmul.f32 %v4300_v46, %v13668_v57  ;;  %v4303_v59 = vmul.f32 2.0, %v19571_v47  ;;  %v4302_v11 = vmul.f32 2.0, %v19573_v26 }
 0x30c   : > { %v4165_v61 = vmul.f32 %v14435_v9, %v13597_v42  ;;  %11383 = vmatprep.mubr.msk.f32.mxu1 %vm1718_vm0, %v4164_v43  ;;  %v1699_v13 = vmul.f32 %v19386_v45, %v19572_v52  ;;  %v14623_v32 = vmul.f32 %v4426_v30, %v14575_v3  ;;  %v7837_v46 = vmul.f32 %v14587_v41, %v14587_v41  ;;  %v14634_v52 = vpop.f32.mrf.mxu0  ;;  %v14637_v26 = vpop.f32.mrf.mxu1 }
 0x30d   : > { %v14628_v47 = vmul.f32 %v14597_v50, %v4429_v21  ;;  %v4428_v9 = vmul.f32 %v4364_v25, %v14615_v24  ;;  %7976 = vperm.xlu0 %11583, %v7838_v55   ;;  %v4367_v43 = vmul.f32 %v4303_v59, %v13702_v29  ;;  %v4166_v42 = vmul.f32 %v13605_v12, %v14495_v63  ;;  %v19576_v21 = vld [vmem:[#allocation68_spill] sm:$0xff] }
 0x30e   : > { %19574 = vst [vmem:[#allocation14_spill] sm:$0xff] %v14623_v32  ;;  %11151 = vmatmul.mubr.msk.f32.gmra.mxu0 %vm1718_vm0, %v1698_v14  ;;  %11384 = vmatmul.mubr.msk.f32.gmra.mxu1 %vm1718_vm0, %v4165_v61  ;;  %v1700_v30 = vmul.f32 %v19386_v45, %v1631_v6  ;;  %v1569_v41 = vmul.f32 -2.0, %v19576_v21  ;;  %v14644_v55 = vadd.f32 %v13899_v58, %v14290_v33  ;;  %v19578_v14 = vld [vmem:[#allocation133_spill] sm:$0xff]  ;;  %v14653_v6 = vpop.f32.mrf.mxu0  ;;  %v14655_v21 = vpop.f32.mrf.mxu1  ;;  %v19579_v33 = vld [vmem:[#allocation131_spill] sm:$0xff] }
 0x30f   : > { %19575 = vst [vmem:[#allocation13_spill] sm:$0xff] %v14628_v47  ;;  %v4431_v59 = vmul.f32 %v14634_v52, %v4367_v43  ;;  %7971 = vperm.xlu1 %11584, %v7837_v46   ;;  %11153 = vmatprep.mubr.msk.f32.mxu0 %vm1718_vm0, %v1699_v13  ;;  %v4366_v63 = vmul.f32 %v4302_v11, %v13689_v31  ;;  %v4305_v25 = vmul.f32 2.0, %v19578_v14  ;;  %v4304_v47 = vmul.f32 2.0, %v19579_v33  ;;  %v19580_v32 = vld [vmem:[#allocation117_spill] sm:$0xff] }
 0x310   : > { %19577 = vst [vmem:[#allocation118_spill] sm:$0xff] %v14644_v55  ;;  %v4167_v61 = vmul.f32 %v14474_v49, %v13618_v56  ;;  %11386 = vmatprep.mubr.msk.f32.mxu1 %vm1718_vm0, %v4166_v42  ;;  %v1633_v43 = vmul.f32 %v1569_v41, %v19580_v32  ;;  %v14660_v46 = vmul.f32 %v4428_v9, %v14615_v24  ;;  %v19584_v49 = vld [vmem:[#allocation79_spill] sm:$0xff]  ;;  %v14674_v41 = vpop.f32.mrf.mxu0  ;;  %v14677_v32 = vpop.f32.mrf.mxu1 }
 0x311   : > { %v14664_v11 = vadd.f32 %v14221_v44, %v13899_v58  ;;  %v14667_v13 = vmul.f32 %v14634_v52, %v4431_v59  ;;  %v4430_v42 = vmul.f32 %v4366_v63, %v14653_v6  ;;  %7538 = vperm.xlu0 %11583, %v14644_v55   ;;  %v4369_v14 = vmul.f32 %v4305_v25, %v19584_v49  ;;  %v19585_v58 = vld [vmem:[#allocation69_spill] sm:$0xff]  ;;  %v19586_v9 = vld [vmem:[#allocation135_spill] sm:$0xff] }
 0x312   : > { %19581 = vst [vmem:[#allocation107_spill] sm:$0xff] %v14660_v46  ;;  %v4168_v33 = vmul.f32 %v13626_v39, %v14536_v28  ;;  %11154 = vmatmul.mubr.msk.f32.gmra.mxu0 %vm1718_vm0, %v1700_v30  ;;  %11387 = vmatmul.mubr.msk.f32.gmra.mxu1 %vm1718_vm0, %v4167_v61  ;;  %v1701_v44 = vmul.f32 %v19386_v45, %v19585_v58  ;;  %v4307_v59 = vmul.f32 2.0, %v19586_v9  ;;  %v19587_v63 = vld [vmem:[#allocation71_spill] sm:$0xff]  ;;  %v19589_v30 = vld [vmem:[#allocation181_spill] sm:$0xff]  ;;  %v14696_v58 = vpop.f32.mrf.mxu0  ;;  %v14698_v9 = vpop.f32.mrf.mxu1 }
 0x313   : > { %19582 = vst [vmem:[#allocation63_spill] sm:$0xff] %v14664_v11  ;;  %19583 = vst [vmem:[#allocation121_spill] sm:$0xff] %v14667_v13  ;;  %v1571_v13 = vmul.f32 -2.0, %v19587_v63  ;;  %v7840_v25 = vmul.f32 %v14644_v55, %v14644_v55  ;;  %v14687_v28 = vmul.f32 %v4430_v42, %v14653_v6  ;;  %v4433_v46 = vmul.f32 %v14674_v41, %v4369_v14  ;;  %v19590_v63 = vld [vmem:[#allocation134_spill] sm:$0xff]  ;;  %v19591_v14 = vld [vmem:[#allocation120_spill] sm:$0xff] }
 0x314   : > { %7533 = vperm.xlu1 %11584, %v14664_v11   ;;  %v4368_v39 = vmul.f32 %v4304_v47, %v19589_v30  ;;  %v4169_v61 = vmul.f32 %v14517_v1, %v13639_v40  ;;  %11156 = vmatprep.mubr.msk.f32.mxu0 %vm1718_vm0, %v1701_v44  ;;  %v1702_v42 = vmul.f32 %v19386_v45, %v1633_v43  ;;  %v4306_v55 = vmul.f32 2.0, %v19590_v63  ;;  %v14712_v12 = vpop.f32.mrf.mxu0  ;;  %v14715_v43 = vpop.f32.mrf.mxu1  ;;  %v19595_v63 = vld [vmem:[#allocation136_spill] sm:$0xff] }
 0x315   : > { %19588 = vst [vmem:[#allocation16_spill] sm:$0xff] %v14687_v28  ;;  %11389 = vmatprep.mubr.msk.f32.mxu1 %vm1718_vm0, %v4168_v33  ;;  %v1635_v28 = vmul.f32 %v1571_v13, %v19591_v14  ;;  %v7839_v47 = vmul.f32 %v14664_v11, %v14664_v11  ;;  %v14706_v56 = vmul.f32 %v14674_v41, %v4433_v46  ;;  %v19593_v33 = vld [vmem:[#allocation82_spill] sm:$0xff]  ;;  %v19594_v13 = vld [vmem:[#allocation72_spill] sm:$0xff]  ;;  %v4309_v14 = vmul.f32 2.0, %v19595_v63 }
 0x316   : > { %v4432_v1 = vmul.f32 %v4368_v39, %v14696_v58  ;;  %7986 = vperm.xlu0 %11583, %v7840_v25   ;;  %v4371_v44 = vmul.f32 %v4307_v59, %v19593_v33  ;;  %v4170_v40 = vmul.f32 %v13647_v18, %v14575_v3  ;;  %11157 = vmatmul.mubr.msk.f32.gmra.mxu0 %vm1718_vm0, %v1702_v42  ;;  %v19596_v39 = vld [vmem:[#allocation73_spill] sm:$0xff]  ;;  %v14722_v11 = vld [vmem:[#allocation2] ss:$0 sm:$0xff]  ;;  %v14737_v63 = vpop.f32.mrf.mxu0  ;;  %v19601_v18 = vld [vmem:[#allocation123_spill] sm:$0xff] }
 0x317   : > { %19592 = vst [vmem:[#allocation119_spill] sm:$0xff] %v14706_v56  ;;  %11390 = vmatmul.mubr.msk.f32.gmra.mxu1 %vm1718_vm0, %v4169_v61  ;;  %v1703_v46 = vmul.f32 %v19386_v45, %v19594_v13  ;;  %v1573_v25 = vmul.f32 -2.0, %v19596_v39  ;;  %v14726_v3 = vadd.f32 %v14722_v11, %v14331_v60  ;;  %v19599_v61 = vld [vmem:[#allocation182_spill] sm:$0xff]  ;;  %v4171_v13 = vmul.f32 %v14555_v20, %v13660_v51  ;;  %v14739_v39 = vpop.f32.mrf.mxu1 }
 0x318   : > { %v14729_v59 = vmul.f32 %v4432_v1, %v14696_v58  ;;  %v4435_v42 = vmul.f32 %v14712_v12, %v4371_v44  ;;  %7981 = vperm.xlu1 %11584, %v7839_v47   ;;  %v4370_v56 = vmul.f32 %v4306_v55, %v19599_v61  ;;  %11392 = vmatprep.mubr.msk.f32.mxu1 %vm1718_vm0, %v4170_v40  ;;  %v19600_v1 = vld [vmem:[#allocation22_spill] sm:$0xff]  ;;  %v19602_v47 = vld [vmem:[#allocation53_spill] sm:$0xff]  ;;  %v19605_v40 = vld [vmem:[#allocation23_spill] sm:$0xff]  ;;  %v14756_v54 = vpop.f32.mrf.mxu0 }
 0x319   : > { %19597 = vst [vmem:[#allocation109_spill] sm:$0xff] %v14726_v3  ;;  %11159 = vmatprep.mubr.msk.f32.mxu0 %vm1718_vm0, %v1703_v46  ;;  %v1704_v60 = vmul.f32 %v19386_v45, %v1635_v28  ;;  %v1637_v44 = vmul.f32 %v1573_v25, %v19601_v18  ;;  %v14746_v55 = vadd.f32 %v14722_v11, %v19602_v47  ;;  %v14759_v18 = vpop.f32.mrf.mxu1  ;;  %v19606_v25 = vld [vmem:[#allocation75_spill] sm:$0xff]  ;;  %v19608_v47 = vld [vmem:[#allocation77_spill] sm:$0xff] }
 0x31a   : > { %19598 = vst [vmem:[#allocation64_spill] sm:$0xff] %v14729_v59  ;;  %v4308_v59 = vmul.f32 2.0, %v19600_v1  ;;  %v14749_v20 = vmul.f32 %v14712_v12, %v4435_v42  ;;  %v4434_v46 = vmul.f32 %v4370_v56, %v14737_v63  ;;  %7548 = vperm.xlu0 %11583, %v14726_v3   ;;  %v4373_v51 = vmul.f32 %v4309_v14, %v19605_v40  ;;  %v19607_v1 = vld [vmem:[#allocation138_spill] sm:$0xff] }
 0x31b   : > { %19603 = vst [vmem:[#allocation124_spill] sm:$0xff] %v14746_v55  ;;  %v4172_v28 = vmul.f32 %v13668_v57, %v14615_v24  ;;  %11160 = vmatmul.mubr.msk.f32.gmra.mxu0 %vm1718_vm0, %v1704_v60  ;;  %11393 = vmatmul.mubr.msk.f32.gmra.mxu1 %vm1718_vm0, %v4171_v13  ;;  %v1705_v42 = vmul.f32 %v19386_v45, %v19606_v25  ;;  %v4311_v56 = vmul.f32 2.0, %v19607_v1  ;;  %v19610_v60 = vld [vmem:[#allocation183_spill] sm:$0xff]  ;;  %v14778_v25 = vpop.f32.mrf.mxu0  ;;  %v14780_v1 = vpop.f32.mrf.mxu1 }
 0x31c   : > { %19604 = vst [vmem:[#allocation18_spill] sm:$0xff] %v14749_v20  ;;  %v1575_v20 = vmul.f32 -2.0, %v19608_v47  ;;  %v7842_v14 = vmul.f32 %v14726_v3, %v14726_v3  ;;  %v14769_v24 = vmul.f32 %v4434_v46, %v14737_v63  ;;  %v4437_v57 = vmul.f32 %v14756_v54, %v4373_v51  ;;  %7543 = vperm.xlu1 %11584, %v14746_v55   ;;  %v19611_v47 = vld [vmem:[#allocation137_spill] sm:$0xff] }
 0x31d   : > { %v4372_v10 = vmul.f32 %v4308_v59, %v19610_v60  ;;  %v4173_v13 = vmul.f32 %v14597_v50, %v13681_v5  ;;  %11162 = vmatprep.mubr.msk.f32.mxu0 %vm1718_vm0, %v1705_v42  ;;  %11395 = vmatprep.mubr.msk.f32.mxu1 %vm1718_vm0, %v4172_v28  ;;  %v1706_v46 = vmul.f32 %v19386_v45, %v1637_v44  ;;  %v4310_v3 = vmul.f32 2.0, %v19611_v47  ;;  %v19612_v51 = vld [vmem:[#allocation125_spill] sm:$0xff]  ;;  %v19614_v28 = vld [vmem:[#allocation24_spill] sm:$0xff]  ;;  %v14794_v19 = vpop.f32.mrf.mxu0  ;;  %v14797_v44 = vpop.f32.mrf.mxu1 }
 0x31e   : > { %19609 = vst [vmem:[#allocation122_spill] sm:$0xff] %v14769_v24  ;;  %v1639_v24 = vmul.f32 %v1575_v20, %v19612_v51  ;;  %v7841_v59 = vmul.f32 %v14746_v55, %v14746_v55  ;;  %v14788_v15 = vmul.f32 %v14756_v54, %v4437_v57  ;;  %7996 = vperm.xlu0 %11583, %v7842_v14   ;;  %19615 = vst [vmem:[#allocation21_spill] sm:$0xff] %v14797_v44  ;;  %v19616_v20 = vld [vmem:[#allocation78_spill] sm:$0xff]  ;;  %v19617_v47 = vld [vmem:[#allocation140_spill] sm:$0xff] }
 0x31f   : > { %v4436_v50 = vmul.f32 %v4372_v10, %v14778_v25  ;;  %v4375_v42 = vmul.f32 %v4311_v56, %v19614_v28  ;;  %v4174_v5 = vmul.f32 %v13689_v31, %v14653_v6  ;;  %11163 = vmatmul.mubr.msk.f32.gmra.mxu0 %vm1718_vm0, %v1706_v46  ;;  %11396 = vmatmul.mubr.msk.f32.gmra.mxu1 %vm1718_vm0, %v4173_v13  ;;  %v4313_v51 = vmul.f32 2.0, %v19617_v47  ;;  %v19618_v10 = vld [vmem:[#allocation80_spill] sm:$0xff]  ;;  %v19621_v55 = vld [vmem:[#allocation3_spill] sm:$0xff]  ;;  %v14819_v47 = vpop.f32.mrf.mxu1 }
 0x320   : > { %19613 = vst [vmem:[#allocation113_spill] sm:$0xff] %v14788_v15  ;;  %v1707_v57 = vmul.f32 %v19386_v45, %v19616_v20  ;;  %v1577_v14 = vmul.f32 -2.0, %v19618_v10  ;;  %v14806_v56 = vadd.f32 %v14722_v11, %v14373_v62  ;;  %7991 = vperm.xlu1 %11584, %v7841_v59   ;;  %v4374_v15 = vmul.f32 %v4310_v3, %v19621_v55  ;;  %v14817_v20 = vpop.f32.mrf.mxu0  ;;  %v19624_v59 = vld [vmem:[#allocation5_spill] sm:$0xff] }
 0x321   : > { %v14809_v6 = vmul.f32 %v4436_v50, %v14778_v25  ;;  %v4439_v46 = vmul.f32 %v14794_v19, %v4375_v42  ;;  %v4175_v13 = vmul.f32 %v14634_v52, %v13702_v29  ;;  %11398 = vmatprep.mubr.msk.f32.mxu1 %vm1718_vm0, %v4174_v5  ;;  %v1708_v62 = vmul.f32 %v19386_v45, %v1639_v24  ;;  %v19622_v50 = vld [vmem:[#allocation139_spill] sm:$0xff]  ;;  %v19627_v5 = vld [vmem:[#allocation85_spill] sm:$0xff] }
 0x322   : > { %19619 = vst [vmem:[#allocation127_spill] sm:$0xff] %v14806_v56  ;;  %11165 = vmatprep.mubr.msk.f32.mxu0 %vm1718_vm0, %v1707_v57  ;;  %v4312_v10 = vmul.f32 2.0, %v19622_v50  ;;  %v14826_v3 = vadd.f32 %v14722_v11, %v19624_v59  ;;  %v4438_v57 = vmul.f32 %v4374_v15, %v14817_v20  ;;  %7558 = vperm.xlu0 %11583, %v14806_v56   ;;  %v14836_v31 = vpop.f32.mrf.mxu0  ;;  %v19630_v50 = vld [vmem:[#allocation142_spill] sm:$0xff]  ;;  %v19631_v59 = vld [vmem:[#allocation83_spill] sm:$0xff] }
 0x323   : > { %19620 = vst [vmem:[#allocation65_spill] sm:$0xff] %v14809_v6  ;;  %v19623_v6 = vld [vmem:[#allocation129_spill] sm:$0xff]  ;;  %v14829_v52 = vmul.f32 %v14794_v19, %v4439_v46  ;;  %v4377_v29 = vmul.f32 %v4313_v51, %v19627_v5  ;;  %v4176_v24 = vmul.f32 %v19589_v30, %v14696_v58  ;;  %11166 = vmatmul.mubr.msk.f32.gmra.mxu0 %vm1718_vm0, %v1708_v62  ;;  %v4315_v15 = vmul.f32 2.0, %v19630_v50  ;;  %v19633_v62 = vld [vmem:[#allocation27_spill] sm:$0xff] }
 0x324   : > { %v1641_v42 = vmul.f32 %v1577_v14, %v19623_v6  ;;  %19625 = vst [vmem:[#allocation126_spill] sm:$0xff] %v14826_v3  ;;  %v14839_v14 = vpop.f32.mrf.mxu1  ;;  %11399 = vmatmul.mubr.msk.f32.gmra.mxu1 %vm1718_vm0, %v4175_v13  ;;  %v19629_v6 = vld [vmem:[#allocation81_spill] sm:$0xff]  ;;  %v7844_v51 = vmul.f32 %v14806_v56, %v14806_v56  ;;  %v14849_v58 = vmul.f32 %v4438_v57, %v14817_v20 }
 0x325   : > { %19626 = vst [vmem:[#allocation115_spill] sm:$0xff] %v14829_v52  ;;  %19628 = vst [vmem:[#allocation130_spill] sm:$0xff] %v14839_v14  ;;  %v1709_v46 = vmul.f32 %v19386_v45, %v19629_v6  ;;  %v1579_v52 = vmul.f32 -2.0, %v19631_v59  ;;  %v4441_v30 = vmul.f32 %v14836_v31, %v4377_v29  ;;  %7553 = vperm.xlu1 %11584, %v14826_v3   ;;  %11401 = vmatprep.mubr.msk.f32.mxu1 %vm1718_vm0, %v4176_v24  ;;  %v14858_v6 = vpop.f32.mrf.mxu0  ;;  %v19635_v59 = vld [vmem:[#allocation141_spill] sm:$0xff]  ;;  %v19636_v29 = vld [vmem:[#allocation132_spill] sm:$0xff] }
 0x326   : > { %19632 = vst [vmem:[#allocation66_spill] sm:$0xff] %v14849_v58  ;;  %v4376_v14 = vmul.f32 %v4312_v10, %v19633_v62  ;;  %v4177_v13 = vmul.f32 %v14674_v41, %v19584_v49  ;;  %v14860_v50 = vpop.f32.mrf.mxu1  ;;  %v1710_v57 = vmul.f32 %v19386_v45, %v1641_v42  ;;  %v4314_v56 = vmul.f32 2.0, %v19635_v59  ;;  %8006 = vperm.xlu0 %11583, %v7844_v51   ;;  %v19638_v24 = vld [vmem:[#allocation25_spill] sm:$0xff]  ;;  %v19640_v59 = vld [vmem:[#allocation144_spill] sm:$0xff] }
 0x327   : > { %11168 = vmatprep.mubr.msk.f32.mxu0 %vm1718_vm0, %v1709_v46  ;;  %19634 = vst [vmem:[#allocation128_spill] sm:$0xff] %v14860_v50  ;;  %v1643_v58 = vmul.f32 %v1579_v52, %v19636_v29  ;;  %v7843_v10 = vmul.f32 %v14826_v3, %v14826_v3  ;;  %v14868_v44 = vmul.f32 %v14836_v31, %v4441_v30  ;;  %v14874_v50 = vpop.f32.mrf.mxu0  ;;  %v19639_v52 = vld [vmem:[#allocation84_spill] sm:$0xff]  ;;  %v4317_v29 = vmul.f32 2.0, %v19640_v59 }
 0x328   : > { %v4440_v41 = vmul.f32 %v4376_v14, %v14858_v6  ;;  %v4379_v46 = vmul.f32 %v4315_v15, %v19638_v24  ;;  %v4178_v49 = vmul.f32 %v19599_v61, %v14737_v63  ;;  %11169 = vmatmul.mubr.msk.f32.gmra.mxu0 %vm1718_vm0, %v1710_v57  ;;  %v14877_v42 = vpop.f32.mrf.mxu1  ;;  %11402 = vmatmul.mubr.msk.f32.gmra.mxu1 %vm1718_vm0, %v4177_v13  ;;  %v19643_v51 = vld [vmem:[#allocation28_spill] sm:$0xff] }
 0x329   : > { %19637 = vst [vmem:[#allocation68_spill] sm:$0xff] %v14868_v44  ;;  %v1711_v30 = vmul.f32 %v19386_v45, %v19639_v52  ;;  %v14885_v14 = vadd.f32 %v14722_v11, %v14415_v53  ;;  %8001 = vperm.xlu1 %11584, %v7843_v10   ;;  %v4378_v57 = vmul.f32 %v4314_v56, %v19643_v51  ;;  %v14896_v52 = vpop.f32.mrf.mxu0 }
 0x32a   : > { %v14888_v15 = vmul.f32 %v4440_v41, %v14858_v6  ;;  %v4443_v63 = vmul.f32 %v14874_v50, %v4379_v46  ;;  %v4179_v13 = vmul.f32 %v14712_v12, %v19593_v33  ;;  %11404 = vmatprep.mubr.msk.f32.mxu1 %vm1718_vm0, %v4178_v49  ;;  %v14898_v59 = vpop.f32.mrf.mxu1  ;;  %v1712_v53 = vmul.f32 %v19386_v45, %v1643_v58  ;;  %v19644_v41 = vld [vmem:[#allocation143_spill] sm:$0xff] }
 0x32b   : > { %19641 = vst [vmem:[#allocation133_spill] sm:$0xff] %v14885_v14  ;;  %11171 = vmatprep.mubr.msk.f32.mxu0 %vm1718_vm0, %v1711_v30  ;;  %v4316_v3 = vmul.f32 2.0, %v19644_v41  ;;  %v14904_v10 = vadd.f32 %v14722_v11, %v14353_v4  ;;  %v4442_v12 = vmul.f32 %v4378_v57, %v14896_v52  ;;  %7568 = vperm.xlu0 %11583, %v14885_v14   ;;  %v19647_v49 = vld [vmem:[#allocation31_spill] sm:$0xff]  ;;  %v14914_v44 = vpop.f32.mrf.mxu0  ;;  %v19648_v4 = vld [vmem:[#allocation146_spill] sm:$0xff] }
 0x32c   : > { %19642 = vst [vmem:[#allocation131_spill] sm:$0xff] %v14888_v15  ;;  %v14907_v56 = vmul.f32 %v14874_v50, %v4443_v63  ;;  %v4381_v46 = vmul.f32 %v4317_v29, %v19647_v49  ;;  %v4180_v30 = vmul.f32 %v19610_v60, %v14778_v25  ;;  %11172 = vmatmul.mubr.msk.f32.gmra.mxu0 %vm1718_vm0, %v1712_v53  ;;  %v14917_v45 = vpop.f32.mrf.mxu1  ;;  %v4319_v58 = vmul.f32 2.0, %v19648_v4  ;;  %v19650_v25 = vld [vmem:[#allocation86_spill] sm:$0xff] }
 0x32d   : > { %19645 = vst [vmem:[#allocation117_spill] sm:$0xff] %v14904_v10  ;;  %11405 = vmatmul.mubr.msk.f32.gmra.mxu1 %vm1718_vm0, %v4179_v13  ;;  %v7846_v63 = vmul.f32 %v14885_v14, %v14885_v14  ;;  %v14924_v57 = vmul.f32 %v4442_v12, %v14896_v52  ;;  %7563 = vperm.xlu1 %11584, %v14904_v10   ;;  %v14932_v13 = vpop.f32.mrf.mxu0 }
 0x32e   : > { %19646 = vst [vmem:[#allocation69_spill] sm:$0xff] %v14907_v56  ;;  %v4445_v29 = vmul.f32 %v14914_v44, %v4381_v46  ;;  %v4380_v41 = vmul.f32 %v4316_v3, %v19650_v25  ;;  %v4181_v53 = vmul.f32 %v14756_v54, %v19605_v40  ;;  %11407 = vmatprep.mubr.msk.f32.mxu1 %vm1718_vm0, %v4180_v30  ;;  %v14934_v4 = vpop.f32.mrf.mxu1  ;;  %v19651_v56 = vld [vmem:[#allocation145_spill] sm:$0xff]  ;;  %v19653_v3 = vld [vmem:[#allocation87_spill] sm:$0xff] }
 0x32f   : > { %19649 = vst [vmem:[#allocation135_spill] sm:$0xff] %v14924_v57  ;;  %v4318_v14 = vmul.f32 2.0, %v19651_v56  ;;  %v7845_v12 = vmul.f32 %v14904_v10, %v14904_v10  ;;  %8016 = vperm.xlu0 %11583, %v7846_v63   ;;  %v4383_v15 = vmul.f32 %v4319_v58, %v19653_v3  ;;  %v4182_v54 = vmul.f32 %v19621_v55, %v14817_v20  ;;  %v14946_v30 = vpop.f32.mrf.mxu0  ;;  %v19654_v56 = vld [vmem:[#allocation148_spill] sm:$0xff]  ;;  %v19657_v63 = vld [vmem:[#allocation26_spill] sm:$0xff]  ;;  %v19666_v55 = vld [vmem:[#allocation149_spill] sm:$0xff] }
 0x330   : > { %v14940_v46 = vmul.f32 %v14914_v44, %v4445_v29  ;;  %v4444_v57 = vmul.f32 %v4380_v41, %v14932_v13  ;;  %v14948_v40 = vpop.f32.mrf.mxu1  ;;  %v4321_v60 = vmul.f32 2.0, %v19654_v56  ;;  %v14954_v29 = vadd.f32 %v14722_v11, %v14457_v16 }
 0x331   : > { %11408 = vmatmul.mubr.msk.f32.gmra.mxu1 %vm1718_vm0, %v4181_v53  ;;  %v4447_v58 = vmul.f32 %v14946_v30, %v4383_v15  ;;  %8011 = vperm.xlu1 %11584, %v7845_v12   ;;  %v4382_v20 = vmul.f32 %v4318_v14, %v19657_v63  ;;  %v4183_v10 = vmul.f32 %v14794_v19, %v19614_v28  ;;  %v14964_v53 = vpop.f32.mrf.mxu0  ;;  %v19661_v19 = vld [vmem:[#allocation29_spill] sm:$0xff] }
 0x332   : > { %19652 = vst [vmem:[#allocation71_spill] sm:$0xff] %v14940_v46  ;;  %19655 = vst [vmem:[#allocation134_spill] sm:$0xff] %v14954_v29  ;;  %v14957_v41 = vmul.f32 %v4444_v57, %v14932_v13  ;;  %11410 = vmatprep.mubr.msk.f32.mxu1 %vm1718_vm0, %v4182_v54  ;;  %v14966_v56 = vpop.f32.mrf.mxu1  ;;  %v19658_v46 = vld [vmem:[#allocation147_spill] sm:$0xff]  ;;  %v14971_v57 = vadd.f32 %v14722_v11, %v14395_v0  ;;  %v4385_v12 = vmul.f32 %v4321_v60, %v19661_v19  ;;  %v19663_v0 = vld [vmem:[#allocation150_spill] sm:$0xff] }
 0x333   : > { %v4320_v16 = vmul.f32 2.0, %v19658_v46  ;;  %v14974_v15 = vmul.f32 %v14946_v30, %v4447_v58  ;;  %v4446_v14 = vmul.f32 %v4382_v20, %v14964_v53  ;;  %7578 = vperm.xlu0 %11583, %v14954_v29   ;;  %v4184_v54 = vmul.f32 %v19633_v62, %v14858_v6  ;;  %v19665_v60 = vld [vmem:[#allocation32_spill] sm:$0xff] }
 0x334   : > { %19656 = vst [vmem:[#allocation120_spill] sm:$0xff] %v14957_v41  ;;  %19659 = vst [vmem:[#allocation72_spill] sm:$0xff] %v14971_v57  ;;  %v14981_v41 = vpop.f32.mrf.mxu0  ;;  %v14983_v28 = vpop.f32.mrf.mxu1  ;;  %v4323_v46 = vmul.f32 2.0, %v19663_v0  ;;  %v7848_v58 = vmul.f32 %v14954_v29, %v14954_v29  ;;  %v4185_v62 = vmul.f32 %v14836_v31, %v19627_v5  ;;  %v4322_v29 = vmul.f32 2.0, %v19666_v55  ;;  %v19670_v55 = vld [vmem:[#allocation152_spill] sm:$0xff] }
 0x335   : > { %19660 = vst [vmem:[#allocation136_spill] sm:$0xff] %v14974_v15  ;;  %19662 = vst [vmem:[#allocation73_spill] sm:$0xff] %v14983_v28  ;;  %11411 = vmatmul.mubr.msk.f32.gmra.mxu1 %vm1718_vm0, %v4183_v10  ;;  %v14990_v20 = vmul.f32 %v4446_v14, %v14964_v53  ;;  %v4449_v15 = vmul.f32 %v14981_v41, %v4385_v12  ;;  %7573 = vperm.xlu1 %11584, %v14971_v57   ;;  %v4325_v33 = vmul.f32 2.0, %v19670_v55 }
 0x336   : > { %v4384_v6 = vmul.f32 %v4320_v16, %v19665_v60  ;;  %11413 = vmatprep.mubr.msk.f32.mxu1 %vm1718_vm0, %v4184_v54  ;;  %v14998_v10 = vpop.f32.mrf.mxu0  ;;  %v15000_v0 = vpop.f32.mrf.mxu1  ;;  %v7847_v14 = vmul.f32 %v14971_v57, %v14971_v57  ;;  %v19668_v16 = vld [vmem:[#allocation89_spill] sm:$0xff]  ;;  %v4186_v31 = vmul.f32 %v19643_v51, %v14896_v52  ;;  %v4187_v57 = vmul.f32 %v14874_v50, %v19638_v24  ;;  %v19677_v50 = vld [vmem:[#allocation90_spill] sm:$0xff] }
 0x337   : > { %19664 = vst [vmem:[#allocation182_spill] sm:$0xff] %v14990_v20  ;;  %v15006_v12 = vmul.f32 %v14981_v41, %v4449_v15  ;;  %8026 = vperm.xlu0 %11583, %v7848_v58   ;;  %v4387_v28 = vmul.f32 %v4323_v46, %v19668_v16  ;;  %v15020_v15 = vadd.f32 %v14722_v11, %v14497_v35  ;;  %v19673_v58 = vld [vmem:[#allocation33_spill] sm:$0xff] }
 0x338   : > { %v4448_v20 = vmul.f32 %v4384_v6, %v14998_v10  ;;  %v15012_v54 = vpop.f32.mrf.mxu0  ;;  %v15014_v5 = vpop.f32.mrf.mxu1  ;;  %v4386_v52 = vmul.f32 %v4322_v29, %v19673_v58 }
 0x339   : > { %19667 = vst [vmem:[#allocation22_spill] sm:$0xff] %v15006_v12  ;;  %19669 = vst [vmem:[#allocation123_spill] sm:$0xff] %v15014_v5  ;;  %11414 = vmatmul.mubr.msk.f32.gmra.mxu1 %vm1718_vm0, %v4185_v62  ;;  %v4451_v46 = vmul.f32 %v15012_v54, %v4387_v28  ;;  %8021 = vperm.xlu1 %11584, %v7847_v14   ;;  %v19674_v12 = vld [vmem:[#allocation151_spill] sm:$0xff]  ;;  %v4389_v14 = vmul.f32 %v4325_v33, %v19677_v50  ;;  %v19681_v33 = vld [vmem:[#allocation34_spill] sm:$0xff] }
 0x33a   : > { %19671 = vst [vmem:[#allocation53_spill] sm:$0xff] %v15020_v15  ;;  %v15023_v6 = vmul.f32 %v4448_v20, %v14998_v10  ;;  %11416 = vmatprep.mubr.msk.f32.mxu1 %vm1718_vm0, %v4186_v31  ;;  %v15030_v62 = vpop.f32.mrf.mxu0  ;;  %v15032_v55 = vpop.f32.mrf.mxu1  ;;  %v4324_v35 = vmul.f32 2.0, %v19674_v12  ;;  %v15037_v20 = vadd.f32 %v14722_v11, %v14439_v27  ;;  %v4188_v31 = vmul.f32 %v19650_v25, %v14932_v13  ;;  %v19679_v27 = vld [vmem:[#allocation154_spill] sm:$0xff] }
 0x33b   : > { %v15040_v28 = vmul.f32 %v15012_v54, %v4451_v46  ;;  %v4450_v29 = vmul.f32 %v4386_v52, %v15030_v62  ;;  %7588 = vperm.xlu0 %11583, %v15020_v15   ;;  %v4327_v12 = vmul.f32 2.0, %v19679_v27  ;;  %v7850_v46 = vmul.f32 %v15020_v15, %v15020_v15 }
 0x33c   : > { %19672 = vst [vmem:[#allocation75_spill] sm:$0xff] %v15023_v6  ;;  %19675 = vst [vmem:[#allocation138_spill] sm:$0xff] %v15037_v20  ;;  %v15047_v6 = vpop.f32.mrf.mxu0  ;;  %v15049_v24 = vpop.f32.mrf.mxu1  ;;  %v4388_v13 = vmul.f32 %v4324_v35, %v19681_v33  ;;  %v4189_v25 = vmul.f32 %v14914_v44, %v19647_v49  ;;  %v19684_v35 = vld [vmem:[#allocation91_spill] sm:$0xff]  ;;  %v4190_v44 = vmul.f32 %v19657_v63, %v14964_v53 }
 0x33d   : > { %19676 = vst [vmem:[#allocation77_spill] sm:$0xff] %v15040_v28  ;;  %19678 = vst [vmem:[#allocation137_spill] sm:$0xff] %v15049_v24  ;;  %11417 = vmatmul.mubr.msk.f32.gmra.mxu1 %vm1718_vm0, %v4187_v57  ;;  %v15056_v52 = vmul.f32 %v4450_v29, %v15030_v62  ;;  %v4453_v28 = vmul.f32 %v15047_v6, %v4389_v14  ;;  %7583 = vperm.xlu1 %11584, %v15037_v20   ;;  %v19682_v24 = vld [vmem:[#allocation153_spill] sm:$0xff] }
 0x33e   : > { %11419 = vmatprep.mubr.msk.f32.mxu1 %vm1718_vm0, %v4188_v31  ;;  %v15064_v57 = vpop.f32.mrf.mxu0  ;;  %v15066_v27 = vpop.f32.mrf.mxu1  ;;  %v4326_v15 = vmul.f32 2.0, %v19682_v24  ;;  %v7849_v29 = vmul.f32 %v15037_v20, %v15037_v20  ;;  %v4391_v51 = vmul.f32 %v4327_v12, %v19684_v35  ;;  %v19686_v24 = vld [vmem:[#allocation156_spill] sm:$0xff]  ;;  %v4191_v20 = vmul.f32 %v14946_v30, %v19653_v3 }
 0x33f   : > { %19680 = vst [vmem:[#allocation125_spill] sm:$0xff] %v15056_v52  ;;  %v15072_v14 = vmul.f32 %v15047_v6, %v4453_v28  ;;  %v4452_v52 = vmul.f32 %v4388_v13, %v15064_v57  ;;  %8036 = vperm.xlu0 %11583, %v7850_v46   ;;  %v4329_v5 = vmul.f32 2.0, %v19686_v24  ;;  %v15086_v28 = vadd.f32 %v14722_v11, %v14538_v8  ;;  %v19689_v46 = vld [vmem:[#allocation36_spill] sm:$0xff] }
 0x340   : > { %v15078_v31 = vpop.f32.mrf.mxu0  ;;  %v15080_v49 = vpop.f32.mrf.mxu1  ;;  %v4390_v53 = vmul.f32 %v4326_v15, %v19689_v46 }
 0x341   : > { %19683 = vst [vmem:[#allocation78_spill] sm:$0xff] %v15072_v14  ;;  %19685 = vst [vmem:[#allocation140_spill] sm:$0xff] %v15080_v49  ;;  %11420 = vmatmul.mubr.msk.f32.gmra.mxu1 %vm1718_vm0, %v4189_v25  ;;  %v15089_v13 = vmul.f32 %v4452_v52, %v15064_v57  ;;  %v4455_v12 = vmul.f32 %v15078_v31, %v4391_v51  ;;  %8031 = vperm.xlu1 %11584, %v7849_v29   ;;  %v19690_v14 = vld [vmem:[#allocation92_spill] sm:$0xff]  ;;  %v19691_v49 = vld [vmem:[#allocation155_spill] sm:$0xff]  ;;  %v15112_v29 = vpop.permute.xlu0 %7443 }
 0x342   : > { %19687 = vst [vmem:[#allocation80_spill] sm:$0xff] %v15086_v28  ;;  %11422 = vmatprep.mubr.msk.f32.mxu1 %vm1718_vm0, %v4190_v44  ;;  %v15096_v25 = vpop.f32.mrf.mxu0  ;;  %v15098_v24 = vpop.f32.mrf.mxu1  ;;  %v4393_v8 = vmul.f32 %v4329_v5, %v19690_v14  ;;  %v4328_v63 = vmul.f32 2.0, %v19691_v49  ;;  %v15104_v52 = vadd.f32 %v14722_v11, %v14478_v34  ;;  %v4192_v51 = vmul.f32 %v19665_v60, %v14998_v10  ;;  %v19696_v34 = vld [vmem:[#allocation38_spill] sm:$0xff]  ;;  %v19706_v60 = vld [vmem:[#allocation160_spill] sm:$0xff] }
 0x343   : > { %19688 = vst [vmem:[#allocation139_spill] sm:$0xff] %v15089_v13  ;;  %v15109_v15 = vmul.f32 %v15078_v31, %v4455_v12  ;;  %v4454_v30 = vmul.f32 %v4390_v53, %v15096_v25  ;;  %19694 = vst [vmem:[#allocation81_spill] sm:$0xff] %v15112_v29  ;;  %7598 = vperm.xlu0 %11583, %v15086_v28   ;;  %v15115_v44 = vpop.permute.xlu1 %7438  ;;  %v19697_v13 = vld [vmem:[#allocation158_spill] sm:$0xff]  ;;  %v7852_v10 = vmul.f32 %v15086_v28, %v15086_v28 }
 0x344   : > { %19692 = vst [vmem:[#allocation129_spill] sm:$0xff] %v15104_v52  ;;  %19695 = vst [vmem:[#allocation142_spill] sm:$0xff] %v15115_v44  ;;  %v15117_v5 = vpop.f32.mrf.mxu0  ;;  %v4392_v49 = vmul.f32 %v4328_v63, %v19696_v34  ;;  %v4331_v3 = vmul.f32 2.0, %v19697_v13  ;;  %v15128_v29 = vpop.f32.mrf.mxu1  ;;  %v19700_v13 = vld [vmem:[#allocation41_spill] sm:$0xff] }
 0x345   : > { %19693 = vst [vmem:[#allocation5_spill] sm:$0xff] %v15109_v15  ;;  %11423 = vmatmul.mubr.msk.f32.gmra.mxu1 %vm1718_vm0, %v4191_v20  ;;  %v15125_v12 = vmul.f32 %v4454_v30, %v15096_v25  ;;  %v4457_v53 = vmul.f32 %v15117_v5, %v4393_v8  ;;  %19699 = vst [vmem:[#allocation141_spill] sm:$0xff] %v15128_v29  ;;  %7593 = vperm.xlu1 %11584, %v15104_v52   ;;  %v19701_v15 = vld [vmem:[#allocation157_spill] sm:$0xff] }
 0x346   : > { %11425 = vmatprep.mubr.msk.f32.mxu1 %vm1718_vm0, %v4192_v51  ;;  %v4193_v20 = vmul.f32 %v14981_v41, %v19661_v19  ;;  %v15134_v63 = vpop.f32.mrf.mxu0  ;;  %v4395_v44 = vmul.f32 %v4331_v3, %v19700_v13  ;;  %v4330_v28 = vmul.f32 2.0, %v19701_v15  ;;  %v7851_v30 = vmul.f32 %v15104_v52, %v15104_v52  ;;  %v15146_v29 = vpop.f32.mrf.mxu1  ;;  %v19705_v15 = vld [vmem:[#allocation40_spill] sm:$0xff] }
 0x347   : > { %19698 = vst [vmem:[#allocation83_spill] sm:$0xff] %v15125_v12  ;;  %v4194_v8 = vmul.f32 %v19673_v58, %v15030_v62  ;;  %v15143_v12 = vmul.f32 %v15117_v5, %v4457_v53  ;;  %v4456_v51 = vmul.f32 %v4392_v49, %v15134_v63  ;;  %v15148_v41 = vpop.permute.xlu0 %7886  ;;  %8046 = vperm.xlu0 %11583, %v7852_v10   ;;  %v15150_v19 = vpop.permute.xlu1 %7891  ;;  %v4333_v62 = vmul.f32 2.0, %v19706_v60  ;;  %v19710_v60 = vld [vmem:[#allocation94_spill] sm:$0xff] }
 0x348   : > { %19703 = vst [vmem:[#allocation84_spill] sm:$0xff] %v15148_v41  ;;  %19704 = vst [vmem:[#allocation144_spill] sm:$0xff] %v15150_v19  ;;  %v15152_v3 = vpop.f32.mrf.mxu0  ;;  %v4394_v52 = vmul.f32 %v4330_v28, %v19705_v15  ;;  %v15159_v53 = vadd.f32 %v14722_v11, %v14577_v7  ;;  %v15165_v10 = vpop.f32.mrf.mxu1 }
 0x349   : > { %19702 = vst [vmem:[#allocation132_spill] sm:$0xff] %v15143_v12  ;;  %11426 = vmatmul.mubr.msk.f32.gmra.mxu1 %vm1718_vm0, %v4193_v20  ;;  %v15162_v49 = vmul.f32 %v4456_v51, %v15134_v63  ;;  %v4459_v41 = vmul.f32 %v15152_v3, %v4395_v44  ;;  %19709 = vst [vmem:[#allocation145_spill] sm:$0xff] %v15165_v10  ;;  %8041 = vperm.xlu1 %11584, %v7851_v30   ;;  %v19711_v12 = vld [vmem:[#allocation159_spill] sm:$0xff] }
 0x34a   : > { %19707 = vst [vmem:[#allocation143_spill] sm:$0xff] %v15159_v53  ;;  %11428 = vmatprep.mubr.msk.f32.mxu1 %vm1718_vm0, %v4194_v8  ;;  %v4195_v20 = vmul.f32 %v15012_v54, %v19668_v16  ;;  %v15170_v28 = vpop.f32.mrf.mxu0  ;;  %v4397_v19 = vmul.f32 %v4333_v62, %v19710_v60  ;;  %v4332_v7 = vmul.f32 2.0, %v19711_v12  ;;  %v15176_v51 = vadd.f32 %v14722_v11, %v14520_v36  ;;  %v19717_v36 = vld [vmem:[#allocation43_spill] sm:$0xff]  ;;  %v19727_v16 = vld [vmem:[#allocation164_spill] sm:$0xff] }
 0x34b   : > { %19708 = vst [vmem:[#allocation146_spill] sm:$0xff] %v15162_v49  ;;  %v4196_v44 = vmul.f32 %v19681_v33, %v15064_v57  ;;  %v15181_v30 = vmul.f32 %v15152_v3, %v4459_v41  ;;  %v4458_v8 = vmul.f32 %v4394_v52, %v15170_v28  ;;  %v15184_v49 = vpop.f32.mrf.mxu1  ;;  %v15186_v54 = vpop.permute.xlu0 %7896  ;;  %7608 = vperm.xlu0 %11583, %v15159_v53   ;;  %v19718_v57 = vld [vmem:[#allocation162_spill] sm:$0xff] }
 0x34c   : > { %19712 = vst [vmem:[#allocation148_spill] sm:$0xff] %v15176_v51  ;;  %19714 = vst [vmem:[#allocation150_spill] sm:$0xff] %v15184_v49  ;;  %v15189_v62 = vpop.permute.xlu1 %7453  ;;  %v15191_v12 = vpop.f32.mrf.mxu0  ;;  %v4396_v10 = vmul.f32 %v4332_v7, %v19717_v36  ;;  %v4335_v33 = vmul.f32 2.0, %v19718_v57  ;;  %v7854_v41 = vmul.f32 %v15159_v53, %v15159_v53  ;;  %v19721_v57 = vld [vmem:[#allocation45_spill] sm:$0xff] }
 0x34d   : > { %19713 = vst [vmem:[#allocation147_spill] sm:$0xff] %v15181_v30  ;;  %19715 = vst [vmem:[#allocation149_spill] sm:$0xff] %v15186_v54  ;;  %11429 = vmatmul.mubr.msk.f32.gmra.mxu1 %vm1718_vm0, %v4195_v20  ;;  %v15199_v52 = vmul.f32 %v4458_v8, %v15170_v28  ;;  %v4461_v54 = vmul.f32 %v15191_v12, %v4397_v19  ;;  %v15202_v30 = vpop.f32.mrf.mxu1  ;;  %7603 = vperm.xlu1 %11584, %v15176_v51   ;;  %v19722_v49 = vld [vmem:[#allocation161_spill] sm:$0xff] }
 0x34e   : > { %19716 = vst [vmem:[#allocation152_spill] sm:$0xff] %v15189_v62  ;;  %19720 = vst [vmem:[#allocation151_spill] sm:$0xff] %v15202_v30  ;;  %11431 = vmatprep.mubr.msk.f32.mxu1 %vm1718_vm0, %v4196_v44  ;;  %v4197_v20 = vmul.f32 %v15047_v6, %v19677_v50  ;;  %v15208_v7 = vpop.f32.mrf.mxu0  ;;  %v4399_v62 = vmul.f32 %v4335_v33, %v19721_v57  ;;  %v4334_v53 = vmul.f32 2.0, %v19722_v49  ;;  %v19726_v49 = vld [vmem:[#allocation44_spill] sm:$0xff] }
 0x34f   : > { %19719 = vst [vmem:[#allocation33_spill] sm:$0xff] %v15199_v52  ;;  %v7853_v8 = vmul.f32 %v15176_v51, %v15176_v51  ;;  %v4198_v19 = vmul.f32 %v19689_v46, %v15096_v25  ;;  %v15217_v52 = vmul.f32 %v15191_v12, %v4461_v54  ;;  %v4460_v44 = vmul.f32 %v4396_v10, %v15208_v7  ;;  %v15220_v30 = vpop.f32.mrf.mxu1  ;;  %v15222_v6 = vpop.permute.xlu0 %7458 }
 0x350   : > { %19724 = vst [vmem:[#allocation153_spill] sm:$0xff] %v15222_v6  ;;  %8056 = vperm.xlu0 %11583, %v7854_v41   ;;  %v15224_v50 = vpop.permute.xlu1 %7448  ;;  %v15226_v33 = vpop.f32.mrf.mxu0  ;;  %v4398_v51 = vmul.f32 %v4334_v53, %v19726_v49  ;;  %v4337_v25 = vmul.f32 2.0, %v19727_v16  ;;  %v15233_v54 = vadd.f32 %v14722_v11, %v14617_v37  ;;  %v19731_v16 = vld [vmem:[#allocation96_spill] sm:$0xff] }
 0x351   : > { %19723 = vst [vmem:[#allocation154_spill] sm:$0xff] %v15217_v52  ;;  %19725 = vst [vmem:[#allocation156_spill] sm:$0xff] %v15224_v50  ;;  %11432 = vmatmul.mubr.msk.f32.gmra.mxu1 %vm1718_vm0, %v4197_v20  ;;  %v15236_v10 = vmul.f32 %v4460_v44, %v15208_v7  ;;  %v4463_v6 = vmul.f32 %v15226_v33, %v4399_v62  ;;  %v15239_v41 = vpop.f32.mrf.mxu1  ;;  %8051 = vperm.xlu1 %11584, %v7853_v8   ;;  %v19732_v52 = vld [vmem:[#allocation163_spill] sm:$0xff] }
 0x352   : > { %19728 = vst [vmem:[#allocation36_spill] sm:$0xff] %v15233_v54  ;;  %19730 = vst [vmem:[#allocation158_spill] sm:$0xff] %v15239_v41  ;;  %11434 = vmatprep.mubr.msk.f32.mxu1 %vm1718_vm0, %v4198_v19  ;;  %v4199_v20 = vmul.f32 %v15078_v31, %v19684_v35  ;;  %v15244_v53 = vpop.f32.mrf.mxu0  ;;  %v4401_v50 = vmul.f32 %v4337_v25, %v19731_v16  ;;  %v4336_v37 = vmul.f32 2.0, %v19732_v52  ;;  %v19748_v35 = vld [vmem:[#allocation167_spill] sm:$0xff] }
 0x353   : > { %19729 = vst [vmem:[#allocation155_spill] sm:$0xff] %v15236_v10  ;;  %v15250_v44 = vadd.f32 %v14722_v11, %v14558_v23  ;;  %v4200_v62 = vmul.f32 %v19696_v34, %v15134_v63  ;;  %v15255_v8 = vmul.f32 %v15226_v33, %v4463_v6  ;;  %v4462_v19 = vmul.f32 %v4398_v51, %v15244_v53  ;;  %v15258_v10 = vpop.f32.mrf.mxu1  ;;  %v15260_v31 = vpop.permute.xlu0 %7906  ;;  %v19738_v23 = vld [vmem:[#allocation47_spill] sm:$0xff]  ;;  %v19739_v63 = vld [vmem:[#allocation166_spill] sm:$0xff] }
 0x354   : > { %19735 = vst [vmem:[#allocation160_spill] sm:$0xff] %v15258_v10  ;;  %19736 = vst [vmem:[#allocation159_spill] sm:$0xff] %v15260_v31  ;;  %7618 = vperm.xlu0 %11583, %v15233_v54   ;;  %v15263_v25 = vpop.permute.xlu1 %7901  ;;  %v15265_v52 = vpop.f32.mrf.mxu0  ;;  %v4400_v41 = vmul.f32 %v4336_v37, %v19738_v23  ;;  %v4339_v34 = vmul.f32 2.0, %v19739_v63  ;;  %v7856_v6 = vmul.f32 %v15233_v54, %v15233_v54  ;;  %v19742_v63 = vld [vmem:[#allocation48_spill] sm:$0xff]  ;;  %v19743_v10 = vld [vmem:[#allocation165_spill] sm:$0xff] }
 0x355   : > { %19733 = vst [vmem:[#allocation157_spill] sm:$0xff] %v15250_v44  ;;  %19734 = vst [vmem:[#allocation40_spill] sm:$0xff] %v15255_v8  ;;  %11435 = vmatmul.mubr.msk.f32.gmra.mxu1 %vm1718_vm0, %v4199_v20  ;;  %v15273_v51 = vmul.f32 %v4462_v19, %v15244_v53  ;;  %v4465_v31 = vmul.f32 %v15265_v52, %v4401_v50  ;;  %v15276_v8 = vpop.f32.mrf.mxu1  ;;  %7613 = vperm.xlu1 %11584, %v15250_v44   ;;  %v4338_v54 = vmul.f32 2.0, %v19743_v10  ;;  %v19747_v10 = vld [vmem:[#allocation49_spill] sm:$0xff] }
 0x356   : > { %19737 = vst [vmem:[#allocation162_spill] sm:$0xff] %v15263_v25  ;;  %19741 = vst [vmem:[#allocation161_spill] sm:$0xff] %v15276_v8  ;;  %11437 = vmatprep.mubr.msk.f32.mxu1 %vm1718_vm0, %v4200_v62  ;;  %v4201_v20 = vmul.f32 %v15117_v5, %v19690_v14  ;;  %v15282_v37 = vpop.f32.mrf.mxu0  ;;  %v4403_v25 = vmul.f32 %v4339_v34, %v19742_v63  ;;  %v7855_v19 = vmul.f32 %v15250_v44, %v15250_v44 }
 0x357   : > { %19740 = vst [vmem:[#allocation45_spill] sm:$0xff] %v15273_v51  ;;  %v4202_v50 = vmul.f32 %v19705_v15, %v15170_v28  ;;  %v15291_v51 = vmul.f32 %v15265_v52, %v4465_v31  ;;  %v4464_v62 = vmul.f32 %v4400_v41, %v15282_v37  ;;  %v15294_v8 = vpop.f32.mrf.mxu1  ;;  %v15296_v5 = vpop.permute.xlu0 %7468  ;;  %v4402_v44 = vmul.f32 %v4338_v54, %v19747_v10 }
 0x358   : > { %19745 = vst [vmem:[#allocation164_spill] sm:$0xff] %v15296_v5  ;;  %8066 = vperm.xlu0 %11583, %v7856_v6   ;;  %v15298_v14 = vpop.permute.xlu1 %7463  ;;  %v15300_v34 = vpop.f32.mrf.mxu0  ;;  %v4341_v28 = vmul.f32 2.0, %v19748_v35  ;;  %v15307_v31 = vadd.f32 %v14722_v11, %v14655_v21  ;;  %v19752_v35 = vld [vmem:[#allocation51_spill] sm:$0xff] }
 0x359   : > { %19744 = vst [vmem:[#allocation44_spill] sm:$0xff] %v15291_v51  ;;  %19746 = vst [vmem:[#allocation163_spill] sm:$0xff] %v15298_v14  ;;  %11438 = vmatmul.mubr.msk.f32.gmra.mxu1 %vm1718_vm0, %v4201_v20  ;;  %v15310_v41 = vmul.f32 %v4464_v62, %v15282_v37  ;;  %v4467_v5 = vmul.f32 %v15300_v34, %v4403_v25  ;;  %v15313_v6 = vpop.f32.mrf.mxu1  ;;  %8061 = vperm.xlu1 %11584, %v7855_v19   ;;  %v19753_v51 = vld [vmem:[#allocation56_spill] sm:$0xff] }
 0x35a   : > { %19749 = vst [vmem:[#allocation166_spill] sm:$0xff] %v15307_v31  ;;  %19751 = vst [vmem:[#allocation165_spill] sm:$0xff] %v15313_v6  ;;  %11440 = vmatprep.mubr.msk.f32.mxu1 %vm1718_vm0, %v4202_v50  ;;  %v4203_v20 = vmul.f32 %v15152_v3, %v19700_v13  ;;  %v15318_v54 = vpop.f32.mrf.mxu0  ;;  %v4405_v14 = vmul.f32 %v4341_v28, %v19752_v35  ;;  %v4340_v21 = vmul.f32 2.0, %v19753_v51  ;;  %v19769_v13 = vld [vmem:[#allocation169_spill] sm:$0xff] }
 0x35b   : > { %19750 = vst [vmem:[#allocation48_spill] sm:$0xff] %v15310_v41  ;;  %v15324_v62 = vadd.f32 %v14722_v11, %v14600_v48  ;;  %v4204_v25 = vmul.f32 %v19717_v36, %v15208_v7  ;;  %v15329_v19 = vmul.f32 %v15300_v34, %v4467_v5  ;;  %v4466_v50 = vmul.f32 %v4402_v44, %v15318_v54  ;;  %v15332_v41 = vpop.f32.mrf.mxu1  ;;  %v15334_v3 = vpop.permute.xlu0 %7916  ;;  %v19759_v48 = vld [vmem:[#allocation97_spill] sm:$0xff]  ;;  %v19760_v7 = vld [vmem:[#allocation168_spill] sm:$0xff] }
 0x35c   : > { %19756 = vst [vmem:[#allocation51_spill] sm:$0xff] %v15332_v41  ;;  %19757 = vst [vmem:[#allocation56_spill] sm:$0xff] %v15334_v3  ;;  %7628 = vperm.xlu0 %11583, %v15307_v31   ;;  %v15337_v28 = vpop.permute.xlu1 %7911  ;;  %v15339_v51 = vpop.f32.mrf.mxu0  ;;  %v4404_v6 = vmul.f32 %v4340_v21, %v19759_v48  ;;  %v4343_v36 = vmul.f32 2.0, %v19760_v7  ;;  %v7858_v5 = vmul.f32 %v15307_v31, %v15307_v31  ;;  %v19763_v7 = vld [vmem:[#allocation54_spill] sm:$0xff]  ;;  %v19764_v41 = vld [vmem:[#allocation4_spill] sm:$0xff] }
 0x35d   : > { %19754 = vst [vmem:[#allocation49_spill] sm:$0xff] %v15324_v62  ;;  %19755 = vst [vmem:[#allocation167_spill] sm:$0xff] %v15329_v19  ;;  %11441 = vmatmul.mubr.msk.f32.gmra.mxu1 %vm1718_vm0, %v4203_v20  ;;  %v15347_v44 = vmul.f32 %v4466_v50, %v15318_v54  ;;  %v4469_v3 = vmul.f32 %v15339_v51, %v4405_v14  ;;  %v15350_v19 = vpop.f32.mrf.mxu1  ;;  %7623 = vperm.xlu1 %11584, %v15324_v62   ;;  %v4342_v31 = vmul.f32 2.0, %v19764_v41  ;;  %v19768_v41 = vld [vmem:[#allocation52_spill] sm:$0xff] }
 0x35e   : > { %19758 = vst [vmem:[#allocation184_spill] sm:$0xff] %v15337_v28  ;;  %19762 = vst [vmem:[#allocation168_spill] sm:$0xff] %v15350_v19  ;;  %11443 = vmatprep.mubr.msk.f32.mxu1 %vm1718_vm0, %v4204_v25  ;;  %v4205_v20 = vmul.f32 %v15191_v12, %v19710_v60  ;;  %v15356_v21 = vpop.f32.mrf.mxu0  ;;  %v4407_v28 = vmul.f32 %v4343_v36, %v19763_v7  ;;  %v7857_v50 = vmul.f32 %v15324_v62, %v15324_v62 }
 0x35f   : > { %19761 = vst [vmem:[#allocation97_spill] sm:$0xff] %v15347_v44  ;;  %v4206_v14 = vmul.f32 %v19726_v49, %v15244_v53  ;;  %v15365_v44 = vmul.f32 %v15339_v51, %v4469_v3  ;;  %v4468_v25 = vmul.f32 %v4404_v6, %v15356_v21  ;;  %v15368_v19 = vpop.f32.mrf.mxu1  ;;  %v15370_v12 = vpop.permute.xlu0 %7478  ;;  %v4406_v62 = vmul.f32 %v4342_v31, %v19768_v41 }
 0x360   : > { %19766 = vst [vmem:[#allocation4_spill] sm:$0xff] %v15370_v12  ;;  %8076 = vperm.xlu0 %11583, %v7858_v5   ;;  %v15372_v60 = vpop.permute.xlu1 %7473  ;;  %v15374_v36 = vpop.f32.mrf.mxu0  ;;  %v4345_v53 = vmul.f32 2.0, %v19769_v13  ;;  %v15381_v3 = vadd.f32 %v14722_v11, %v14698_v9  ;;  %v19773_v13 = vld [vmem:[#allocation59_spill] sm:$0xff] }
 0x361   : > { %19765 = vst [vmem:[#allocation54_spill] sm:$0xff] %v15365_v44  ;;  %19767 = vst [vmem:[#allocation185_spill] sm:$0xff] %v15372_v60  ;;  %11444 = vmatmul.mubr.msk.f32.gmra.mxu1 %vm1718_vm0, %v4205_v20  ;;  %v15384_v6 = vmul.f32 %v4468_v25, %v15356_v21  ;;  %v4471_v12 = vmul.f32 %v15374_v36, %v4407_v28  ;;  %v15387_v5 = vpop.f32.mrf.mxu1  ;;  %8071 = vperm.xlu1 %11584, %v7857_v50   ;;  %v19774_v44 = vld [vmem:[#allocation58_spill] sm:$0xff] }
 0x362   : > { %19770 = vst [vmem:[#allocation52_spill] sm:$0xff] %v15381_v3  ;;  %19772 = vst [vmem:[#allocation186_spill] sm:$0xff] %v15387_v5  ;;  %11446 = vmatprep.mubr.msk.f32.mxu1 %vm1718_vm0, %v4206_v14  ;;  %v4207_v20 = vmul.f32 %v15226_v33, %v19721_v57  ;;  %v15392_v31 = vpop.f32.mrf.mxu0  ;;  %v4409_v60 = vmul.f32 %v4345_v53, %v19773_v13  ;;  %v4344_v9 = vmul.f32 2.0, %v19774_v44 }
 0x363   : > { %19771 = vst [vmem:[#allocation169_spill] sm:$0xff] %v15384_v6  ;;  %v15398_v25 = vadd.f32 %v14722_v11, %v14637_v26  ;;  %v4208_v28 = vmul.f32 %v19738_v23, %v15282_v37  ;;  %v15403_v50 = vmul.f32 %v15374_v36, %v4471_v12  ;;  %v4470_v14 = vmul.f32 %v4406_v62, %v15392_v31  ;;  %v15406_v6 = vpop.f32.mrf.mxu1  ;;  %v15408_v33 = vpop.permute.xlu0 %7926  ;;  %v19780_v26 = vld [vmem:[#allocation100_spill] sm:$0xff]  ;;  %v19781_v37 = vld [vmem:[#allocation170_spill] sm:$0xff] }
 0x364   : > { %19777 = vst [vmem:[#allocation187_spill] sm:$0xff] %v15406_v6  ;;  %19778 = vst [vmem:[#allocation188_spill] sm:$0xff] %v15408_v33  ;;  %7638 = vperm.xlu0 %11583, %v15381_v3   ;;  %v15411_v53 = vpop.permute.xlu1 %7921  ;;  %v15413_v44 = vpop.f32.mrf.mxu0  ;;  %v4408_v5 = vmul.f32 %v4344_v9, %v19780_v26  ;;  %v4347_v23 = vmul.f32 2.0, %v19781_v37  ;;  %v7860_v12 = vmul.f32 %v15381_v3, %v15381_v3 }
 0x365   : > { %19775 = vst [vmem:[#allocation59_spill] sm:$0xff] %v15398_v25  ;;  %19776 = vst [vmem:[#allocation58_spill] sm:$0xff] %v15403_v50  ;;  %11447 = vmatmul.mubr.msk.f32.gmra.mxu1 %vm1718_vm0, %v4207_v20  ;;  %v15421_v62 = vmul.f32 %v4470_v14, %v15392_v31  ;;  %v4473_v33 = vmul.f32 %v15413_v44, %v4409_v60  ;;  %v15424_v50 = vpop.f32.mrf.mxu1  ;;  %7633 = vperm.xlu1 %11584, %v15398_v25  }
 0x366   : > { %19779 = vst [vmem:[#allocation189_spill] sm:$0xff] %v15411_v53  ;;  %19783 = vst [vmem:[#allocation170_spill] sm:$0xff] %v15424_v50  ;;  %11449 = vmatprep.mubr.msk.f32.mxu1 %vm1718_vm0, %v4208_v28  ;;  %v4209_v20 = vmul.f32 %v15265_v52, %v19731_v16  ;;  %v3483_v9 = vpop.f32.mrf.mxu0  ;;  %v4411_v37 = vmul.f32 %v4347_v23, %v14385_v38  ;;  %v19784_v53 = vld [vmem:[#allocation9_spill] sm:$0xff]  ;;  %v7859_v14 = vmul.f32 %v15398_v25, %v15398_v25  ;;  %v19788_v25 = vld [vmem:[#allocation172_spill] sm:$0xff] }
 0x367   : > { %19782 = vst [vmem:[#allocation100_spill] sm:$0xff] %v15421_v62  ;;  %v4346_v6 = vmul.f32 2.0, %v19784_v53  ;;  %v4210_v60 = vmul.f32 %v19747_v10, %v15318_v54  ;;  %v15437_v3 = vmul.f32 %v15413_v44, %v4473_v33  ;;  %v4472_v62 = vmul.f32 %v4408_v5, %v3483_v9  ;;  %v15439_v50 = vpop.f32.mrf.mxu1  ;;  %v15441_v28 = vpop.permute.xlu0 %7488 }
 0x368   : > { %19786 = vst [vmem:[#allocation190_spill] sm:$0xff] %v15441_v28  ;;  %8086 = vperm.xlu0 %11583, %v7860_v12   ;;  %v15443_v52 = vpop.permute.xlu1 %7483  ;;  %v15445_v23 = vpop.f32.mrf.mxu0  ;;  %v4349_v16 = vmul.f32 2.0, %v19788_v25  ;;  %v15452_v54 = vadd.f32 %v14722_v11, %v14739_v39  ;;  %v4211_v12 = vmul.f32 %v15300_v34, %v19742_v63  ;;  %v19790_v25 = vld [vmem:[#allocation171_spill] sm:$0xff]  ;;  %v15466_v39 = vadd.f32 %v14722_v11, %v14677_v32 }
 0x369   : > { %19785 = vst [vmem:[#allocation9_spill] sm:$0xff] %v15437_v3  ;;  %19787 = vst [vmem:[#allocation191_spill] sm:$0xff] %v15443_v52  ;;  %11450 = vmatmul.mubr.msk.f32.gmra.mxu1 %vm1718_vm0, %v4209_v20  ;;  %v4410_v53 = vmul.f32 %v4346_v6, %v14366_v17  ;;  %v15454_v5 = vmul.f32 %v4472_v62, %v3483_v9  ;;  %v4475_v33 = vmul.f32 %v15445_v23, %v4411_v37  ;;  %v15457_v28 = vpop.f32.mrf.mxu1  ;;  %v19795_v32 = vld [vmem:[#allocation103_spill] sm:$0xff] }
 0x36a   : > { %19789 = vst [vmem:[#allocation172_spill] sm:$0xff] %v15452_v54  ;;  %8081 = vperm.xlu1 %11584, %v7859_v14   ;;  %11452 = vmatprep.mubr.msk.f32.mxu1 %vm1718_vm0, %v4210_v60  ;;  %v3493_v20 = vpop.f32.mrf.mxu0  ;;  %v4413_v6 = vmul.f32 %v4349_v16, %v14431_v22  ;;  %v4348_v52 = vmul.f32 2.0, %v19790_v25  ;;  %19791 = vst [vmem:[#allocation171_spill] sm:$0xff] %v15466_v39  ;;  %v4212_v62 = vmul.f32 %v19759_v48, %v15356_v21 }
 0x36b   : > { %v15471_v37 = vmul.f32 %v15445_v23, %v4475_v33  ;;  %v4474_v14 = vmul.f32 %v4410_v53, %v3493_v20  ;;  %v15473_v60 = vpop.f32.mrf.mxu1  ;;  %v15475_v3 = vpop.permute.xlu0 %7936  ;;  %v7862_v21 = vmul.f32 %v15452_v54, %v15452_v54 }
 0x36c   : > { %19793 = vst [vmem:[#allocation193_spill] sm:$0xff] %v15475_v3  ;;  %7648 = vperm.xlu0 %11583, %v15452_v54   ;;  %v15478_v16 = vpop.permute.xlu1 %7931  ;;  %v15480_v34 = vpop.f32.mrf.mxu0  ;;  %v4412_v25 = vmul.f32 %v4348_v52, %v19795_v32  ;;  %v4213_v3 = vmul.f32 %v15339_v51, %v19752_v35  ;;  %v7861_v52 = vmul.f32 %v15466_v39, %v15466_v39 }
 0x36d   : > { %19792 = vst [vmem:[#allocation192_spill] sm:$0xff] %v15471_v37  ;;  %19794 = vst [vmem:[#allocation194_spill] sm:$0xff] %v15478_v16  ;;  %11453 = vmatmul.mubr.msk.f32.gmra.mxu1 %vm1718_vm0, %v4211_v12  ;;  %v15486_v33 = vmul.f32 %v4474_v14, %v3493_v20  ;;  %v4477_v53 = vmul.f32 %v15480_v34, %v4413_v6  ;;  %v15489_v37 = vpop.f32.mrf.mxu1  ;;  %v4214_v12 = vmul.f32 %v19768_v41, %v15392_v31 }
 0x36e   : > { %19797 = vst [vmem:[#allocation195_spill] sm:$0xff] %v15489_v37  ;;  %7643 = vperm.xlu1 %11584, %v15466_v39   ;;  %11455 = vmatprep.mubr.msk.f32.mxu1 %vm1718_vm0, %v4212_v62  ;;  %v3503_v16 = vpop.f32.mrf.mxu0  ;;  %v15511_v51 = vadd.f32 %v14722_v11, %v14780_v1 }
 0x36f   : > { %19796 = vst [vmem:[#allocation103_spill] sm:$0xff] %v15486_v33  ;;  %v15500_v14 = vmul.f32 %v15480_v34, %v4477_v53  ;;  %v4476_v6 = vmul.f32 %v4412_v25, %v3503_v16  ;;  %v15502_v54 = vpop.f32.mrf.mxu1  ;;  %v15504_v33 = vpop.permute.xlu0 %7498  ;;  %v4215_v25 = vmul.f32 %v15374_v36, %v19763_v7  ;;  %v15522_v53 = vadd.f32 %v14722_v11, %v14715_v43 }
 0x370   : > { %19799 = vst [vmem:[#allocation197_spill] sm:$0xff] %v15504_v33  ;;  %8096 = vperm.xlu0 %11583, %v7862_v21   ;;  %v15506_v62 = vpop.permute.xlu1 %7493  ;;  %v11080_v37 = vpop.f32.mrf.mxu0  ;;  %19801 = vst [vmem:[#allocation199_spill] sm:$0xff] %v15511_v51  ;;  %v7864_v36 = vmul.f32 %v15511_v51, %v15511_v51  ;;  %v4217_v11 = vmul.f32 %v15413_v44, %v19773_v13 }
 0x371   : > { %19798 = vst [vmem:[#allocation196_spill] sm:$0xff] %v15500_v14  ;;  %19800 = vst [vmem:[#allocation198_spill] sm:$0xff] %v15506_v62  ;;  %11456 = vmatmul.mubr.msk.f32.gmra.mxu1 %vm1718_vm0, %v4213_v3  ;;  %v15513_v39 = vmul.f32 %v4476_v6, %v3503_v16  ;;  %v15515_v31 = vpop.f32.mrf.mxu1  ;;  %v4216_v3 = vmul.f32 %v19780_v26, %v3483_v9  ;;  %v7863_v9 = vmul.f32 %v15522_v53, %v15522_v53 }
 0x372   : > { %19803 = vst [vmem:[#allocation201_spill] sm:$0xff] %v15515_v31  ;;  %8091 = vperm.xlu1 %11584, %v7861_v52   ;;  %11458 = vmatprep.mubr.msk.f32.mxu1 %vm1718_vm0, %v4214_v12  ;;  %v3513_v21 = vpop.f32.mrf.mxu0  ;;  %19804 = vst [vmem:[#allocation202_spill] sm:$0xff] %v15522_v53 }
 0x373   : > { %19802 = vst [vmem:[#allocation200_spill] sm:$0xff] %v15513_v39  ;;  %v15525_v33 = vpop.f32.mrf.mxu1  ;;  %v15527_v1 = vpop.permute.xlu0 %7946 }
 0x374   : > { %19805 = vst [vmem:[#allocation203_spill] sm:$0xff] %v15527_v1  ;;  %7658 = vperm.xlu0 %11583, %v15511_v51   ;;  %v15530_v6 = vpop.permute.xlu1 %7941  ;;  %v11083_v52 = vpop.f32.mrf.mxu0  ;;  %v4218_v1 = vmul.f32 %v14366_v17, %v3493_v20  ;;  %v4219_v20 = vmul.f32 %v15445_v23, %v14385_v38 }
 0x375   : > { %19806 = vst [vmem:[#allocation204_spill] sm:$0xff] %v15530_v6  ;;  %11459 = vmatmul.mubr.msk.f32.gmra.mxu1 %vm1718_vm0, %v4215_v25  ;;  %v15535_v12 = vpop.f32.mrf.mxu1 }
 0x376   : > { %19807 = vst [vmem:[#allocation205_spill] sm:$0xff] %v15535_v12  ;;  %7653 = vperm.xlu1 %11584, %v15522_v53   ;;  %11461 = vmatprep.mubr.msk.f32.mxu1 %vm1718_vm0, %v4216_v3  ;;  %v3523_v43 = vpop.f32.mrf.mxu0  ;;  %v15551_v3 = vld [vmem:[#allocation2] ss:$0 sm:$0xff]  ;;  %v19819_v12 = vld [vmem:[#allocation173_spill] sm:$0xff] }
 0x377   : > { %v15544_v6 = vpop.f32.mrf.mxu1  ;;  %v15546_v25 = vpop.permute.xlu0 %7508  ;;  %v15555_v44 = vadd.f32 %v15551_v3, %v14819_v47  ;;  %v15564_v53 = vadd.f32 %v15551_v3, %v14759_v18  ;;  %v4224_v39 = vmul.f32 %v19819_v12, %v3523_v43  ;;  %v19827_v43 = vld [vmem:[#allocation15_spill] sm:$0xff] }
 0x378   : > { %19808 = vst [vmem:[#allocation206_spill] sm:$0xff] %v15546_v25  ;;  %8106 = vperm.xlu0 %11583, %v7864_v36   ;;  %v15548_v51 = vpop.permute.xlu1 %7503  ;;  %v11086_v62 = vpop.f32.mrf.mxu0  ;;  %v4222_v25 = vmul.f32 %v19515_v2, %v3513_v21  ;;  %v4221_v2 = vmul.f32 %v15480_v34, %v14431_v22  ;;  %v19823_v34 = vld [vmem:[#allocation128_spill] sm:$0xff] }
 0x379   : > { %19809 = vst [vmem:[#allocation207_spill] sm:$0xff] %v15548_v51  ;;  %11462 = vmatmul.mubr.msk.f32.gmra.mxu1 %vm1718_vm0, %v4217_v11  ;;  %19810 = vst [vmem:[#allocation208_spill] sm:$0xff] %v15555_v44  ;;  %v15557_v14 = vpop.f32.mrf.mxu1  ;;  %v4220_v11 = vmul.f32 %v19795_v32, %v3503_v16  ;;  %v7866_v23 = vmul.f32 %v15555_v44, %v15555_v44  ;;  %v19817_v16 = vld [vmem:[#allocation12_spill] sm:$0xff] }
 0x37a   : > { %19811 = vst [vmem:[#allocation209_spill] sm:$0xff] %v15557_v14  ;;  %8101 = vperm.xlu1 %11584, %v7863_v9   ;;  %11464 = vmatprep.mubr.msk.f32.mxu1 %vm1718_vm0, %v4218_v1  ;;  %v3533_v36 = vpop.f32.mrf.mxu0  ;;  %19812 = vst [vmem:[#allocation210_spill] sm:$0xff] %v15564_v53  ;;  %v4223_v21 = vmul.f32 %v11080_v37, %v19817_v16  ;;  %v19818_v14 = vld [vmem:[#allocation55_spill] sm:$0xff]  ;;  %v15598_v37 = vadd.f32 %v15551_v3, %v19823_v34 }
 0x37b   : > { %v15568_v51 = vpop.f32.mrf.mxu1  ;;  %v15570_v47 = vpop.permute.xlu0 %7956 }
 0x37c   : > { %19813 = vst [vmem:[#allocation211_spill] sm:$0xff] %v15568_v51  ;;  %19814 = vst [vmem:[#allocation212_spill] sm:$0xff] %v15570_v47  ;;  %7668 = vperm.xlu0 %11583, %v15555_v44   ;;  %v15573_v9 = vpop.permute.xlu1 %7951  ;;  %v11089_v1 = vpop.f32.mrf.mxu0 }
 0x37d   : > { %19815 = vst [vmem:[#allocation213_spill] sm:$0xff] %v15573_v9  ;;  %11465 = vmatmul.mubr.msk.f32.gmra.mxu1 %vm1718_vm0, %v4219_v20  ;;  %v15578_v18 = vpop.f32.mrf.mxu1  ;;  %v7865_v9 = vmul.f32 %v15564_v53, %v15564_v53  ;;  %v4542_v20 = vsub.f32 %v4222_v25, %v19818_v14  ;;  %19824 = vst [vmem:[#allocation128_spill] sm:$0xff] %v15598_v37  ;;  %v19826_v14 = vld [vmem:[#allocation6_spill] sm:$0xff]  ;;  %v4225_v25 = vmul.f32 %v11083_v52, %v19827_v43 }
 0x37e   : > { %19816 = vst [vmem:[#allocation214_spill] sm:$0xff] %v15578_v18  ;;  %7663 = vperm.xlu1 %11584, %v15564_v53   ;;  %11467 = vmatprep.mubr.msk.f32.mxu1 %vm1718_vm0, %v4220_v11  ;;  %v3543_v47 = vpop.f32.mrf.mxu0  ;;  %v4543_v12 = vsub.f32 %v4223_v21, %v19826_v14  ;;  %v7868_v52 = vmul.f32 %v15598_v37, %v15598_v37 }
 0x37f   : > { %v15589_v44 = vpop.f32.mrf.mxu1  ;;  %v15591_v18 = vpop.permute.xlu0 %7518 }
 0x380   : > { %19820 = vst [vmem:[#allocation12_spill] sm:$0xff] %v15589_v44  ;;  %19821 = vst [vmem:[#allocation55_spill] sm:$0xff] %v15591_v18  ;;  %8116 = vperm.xlu0 %11583, %v7866_v23   ;;  %v15593_v31 = vpop.permute.xlu1 %7513  ;;  %v11092_v11 = vpop.f32.mrf.mxu0  ;;  %v19828_v23 = vld [vmem:[#allocation21_spill] sm:$0xff]  ;;  %v19831_v44 = vld [vmem:[#allocation174_spill] sm:$0xff] }
 0x381   : > { %19822 = vst [vmem:[#allocation173_spill] sm:$0xff] %v15593_v31  ;;  %11468 = vmatmul.mubr.msk.f32.gmra.mxu1 %vm1718_vm0, %v4221_v2  ;;  %v15600_v16 = vpop.f32.mrf.mxu1  ;;  %v15607_v18 = vadd.f32 %v15551_v3, %v19828_v23  ;;  %v19830_v31 = vld [vmem:[#allocation104_spill] sm:$0xff]  ;;  %v4226_v22 = vmul.f32 %v19831_v44, %v3533_v36  ;;  %v19836_v44 = vld [vmem:[#allocation17_spill] sm:$0xff]  ;;  %v19837_v23 = vld [vmem:[#allocation7_spill] sm:$0xff] }
 0x382   : > { %19825 = vst [vmem:[#allocation215_spill] sm:$0xff] %v15600_v16  ;;  %8111 = vperm.xlu1 %11584, %v7865_v9   ;;  %11470 = vmatprep.mubr.msk.f32.mxu1 %vm1718_vm0, %v4542_v20  ;;  %v3553_v53 = vpop.f32.mrf.mxu0  ;;  %v4544_v2 = vsub.f32 %v4224_v39, %v19830_v31  ;;  %v19835_v39 = vld [vmem:[#allocation102_spill] sm:$0xff]  ;;  %v4227_v36 = vmul.f32 %v11086_v62, %v19836_v44 }
 0x383   : > { %19829 = vst [vmem:[#allocation6_spill] sm:$0xff] %v15607_v18  ;;  %v15611_v34 = vpop.f32.mrf.mxu1  ;;  %v15613_v51 = vpop.permute.xlu0 %7966  ;;  %v4545_v31 = vsub.f32 %v4225_v25, %v19835_v39  ;;  %v7867_v43 = vmul.f32 %v15607_v18, %v15607_v18  ;;  %v15640_v62 = vadd.f32 %v15551_v3, %v14898_v59  ;;  %v19845_v39 = vld [vmem:[#allocation19_spill] sm:$0xff] }
 0x384   : > { %19832 = vst [vmem:[#allocation15_spill] sm:$0xff] %v15613_v51  ;;  %7678 = vperm.xlu0 %11583, %v15598_v37   ;;  %v15616_v9 = vpop.permute.xlu1 %7961  ;;  %v11095_v21 = vpop.f32.mrf.mxu0  ;;  %v4546_v51 = vsub.f32 %v4226_v22, %v19837_v23  ;;  %v19844_v22 = vld [vmem:[#allocation108_spill] sm:$0xff]  ;;  %v4229_v44 = vmul.f32 %v11089_v1, %v19845_v39 }
 0x385   : > { %19833 = vst [vmem:[#allocation21_spill] sm:$0xff] %v15616_v9  ;;  %11471 = vmatmul.mubr.msk.f32.gmra.mxu1 %vm1718_vm0, %v4543_v12  ;;  %v15621_v20 = vpop.f32.mrf.mxu1  ;;  %v19838_v12 = vld [vmem:[#allocation175_spill] sm:$0xff]  ;;  %19842 = vst [vmem:[#allocation7_spill] sm:$0xff] %v15640_v62  ;;  %v7870_v1 = vmul.f32 %v15640_v62, %v15640_v62 }
 0x386   : > { %19834 = vst [vmem:[#allocation104_spill] sm:$0xff] %v15621_v20  ;;  %7673 = vperm.xlu1 %11584, %v15607_v18   ;;  %11473 = vmatprep.mubr.msk.f32.mxu1 %vm1718_vm0, %v4544_v2  ;;  %v3563_v14 = vpop.f32.mrf.mxu0  ;;  %v4228_v9 = vmul.f32 %v19838_v12, %v3543_v47  ;;  %v4547_v47 = vsub.f32 %v4227_v36, %v19844_v22  ;;  %v19848_v18 = vld [vmem:[#allocation10_spill] sm:$0xff] }
 0x387   : > { %v15631_v16 = vpop.f32.mrf.mxu1  ;;  %v15633_v37 = vpop.permute.xlu0 %7528 }
 0x388   : > { %19839 = vst [vmem:[#allocation174_spill] sm:$0xff] %v15631_v16  ;;  %19840 = vst [vmem:[#allocation102_spill] sm:$0xff] %v15633_v37  ;;  %8126 = vperm.xlu0 %11583, %v7868_v52   ;;  %v15635_v20 = vpop.permute.xlu1 %7523  ;;  %v11098_v2 = vpop.f32.mrf.mxu0  ;;  %v19846_v52 = vld [vmem:[#allocation130_spill] sm:$0xff]  ;;  %v19849_v37 = vld [vmem:[#allocation176_spill] sm:$0xff] }
 0x389   : > { %19841 = vst [vmem:[#allocation17_spill] sm:$0xff] %v15635_v20  ;;  %11474 = vmatmul.mubr.msk.f32.gmra.mxu1 %vm1718_vm0, %v4545_v31  ;;  %v15642_v25 = vpop.f32.mrf.mxu1  ;;  %v15649_v12 = vadd.f32 %v15551_v3, %v19846_v52  ;;  %v4548_v31 = vsub.f32 %v4228_v9, %v19848_v18  ;;  %v4230_v20 = vmul.f32 %v19849_v37, %v3553_v53  ;;  %v19853_v53 = vld [vmem:[#allocation106_spill] sm:$0xff]  ;;  %v19854_v37 = vld [vmem:[#allocation20_spill] sm:$0xff] }
 0x38a   : > { %19843 = vst [vmem:[#allocation175_spill] sm:$0xff] %v15642_v25  ;;  %8121 = vperm.xlu1 %11584, %v7867_v43   ;;  %11476 = vmatprep.mubr.msk.f32.mxu1 %vm1718_vm0, %v4546_v51  ;;  %v3573_v23 = vpop.f32.mrf.mxu0  ;;  %v4549_v18 = vsub.f32 %v4229_v44, %v19853_v53  ;;  %v4231_v9 = vmul.f32 %v11092_v11, %v19854_v37  ;;  %v19855_v52 = vld [vmem:[#allocation110_spill] sm:$0xff]  ;;  %v19862_v53 = vld [vmem:[#allocation67_spill] sm:$0xff] }
 0x38b   : > { %19847 = vst [vmem:[#allocation108_spill] sm:$0xff] %v15649_v12  ;;  %v15653_v59 = vpop.f32.mrf.mxu1  ;;  %v15655_v16 = vpop.permute.xlu0 %7976  ;;  %v7869_v39 = vmul.f32 %v15649_v12, %v15649_v12  ;;  %v15682_v11 = vadd.f32 %v15551_v3, %v14934_v4  ;;  %v4233_v37 = vmul.f32 %v11095_v21, %v19862_v53 }
 0x38c   : > { %19850 = vst [vmem:[#allocation19_spill] sm:$0xff] %v15655_v16  ;;  %7688 = vperm.xlu0 %11583, %v15640_v62   ;;  %v15658_v51 = vpop.permute.xlu1 %7971  ;;  %v11101_v36 = vpop.f32.mrf.mxu0  ;;  %v4550_v16 = vsub.f32 %v4230_v20, %v19855_v52  ;;  %v19861_v20 = vld [vmem:[#allocation111_spill] sm:$0xff] }
 0x38d   : > { %19851 = vst [vmem:[#allocation130_spill] sm:$0xff] %v15658_v51  ;;  %11477 = vmatmul.mubr.msk.f32.gmra.mxu1 %vm1718_vm0, %v4547_v47  ;;  %v15663_v43 = vpop.f32.mrf.mxu1  ;;  %v19856_v47 = vld [vmem:[#allocation177_spill] sm:$0xff]  ;;  %19859 = vst [vmem:[#allocation20_spill] sm:$0xff] %v15682_v11  ;;  %v7872_v21 = vmul.f32 %v15682_v11, %v15682_v11 }
 0x38e   : > { %19852 = vst [vmem:[#allocation10_spill] sm:$0xff] %v15663_v43  ;;  %7683 = vperm.xlu1 %11584, %v15649_v12   ;;  %11479 = vmatprep.mubr.msk.f32.mxu1 %vm1718_vm0, %v4548_v31  ;;  %v3583_v22 = vpop.f32.mrf.mxu0  ;;  %v4232_v51 = vmul.f32 %v19856_v47, %v3563_v14  ;;  %v4551_v14 = vsub.f32 %v4231_v9, %v19861_v20  ;;  %v19864_v47 = vld [vmem:[#allocation116_spill] sm:$0xff]  ;;  %v19865_v12 = vld [vmem:[#allocation178_spill] sm:$0xff] }
 0x38f   : > { %v15673_v25 = vpop.f32.mrf.mxu1  ;;  %v15675_v62 = vpop.permute.xlu0 %7538 }
 0x390   : > { %19857 = vst [vmem:[#allocation176_spill] sm:$0xff] %v15675_v62  ;;  %8136 = vperm.xlu0 %11583, %v7870_v1   ;;  %v15677_v43 = vpop.permute.xlu1 %7533  ;;  %v11104_v31 = vpop.f32.mrf.mxu0  ;;  %v15691_v1 = vadd.f32 %v15551_v3, %v14877_v42  ;;  %v4234_v62 = vmul.f32 %v19865_v12, %v3573_v23  ;;  %v19869_v23 = vld [vmem:[#allocation112_spill] sm:$0xff] }
 0x391   : > { %19858 = vst [vmem:[#allocation106_spill] sm:$0xff] %v15677_v43  ;;  %11480 = vmatmul.mubr.msk.f32.gmra.mxu1 %vm1718_vm0, %v4549_v18  ;;  %v15684_v44 = vpop.f32.mrf.mxu1  ;;  %v4552_v18 = vsub.f32 %v4232_v51, %v19864_v47  ;;  %v4553_v12 = vsub.f32 %v4233_v37, %v19869_v23  ;;  %v19870_v51 = vld [vmem:[#allocation70_spill] sm:$0xff] }
 0x392   : > { %19860 = vst [vmem:[#allocation110_spill] sm:$0xff] %v15684_v44  ;;  %8131 = vperm.xlu1 %11584, %v7869_v39   ;;  %11482 = vmatprep.mubr.msk.f32.mxu1 %vm1718_vm0, %v4550_v16  ;;  %v3593_v52 = vpop.f32.mrf.mxu0  ;;  %19863 = vst [vmem:[#allocation177_spill] sm:$0xff] %v15691_v1  ;;  %v4235_v39 = vmul.f32 %v11098_v2, %v19870_v51  ;;  %v7871_v53 = vmul.f32 %v15691_v1, %v15691_v1  ;;  %v19871_v47 = vld [vmem:[#allocation14_spill] sm:$0xff] }
 0x393   : > { %v15695_v4 = vpop.f32.mrf.mxu1  ;;  %v15697_v43 = vpop.permute.xlu0 %7986  ;;  %v15724_v2 = vadd.f32 %v15551_v3, %v14966_v56  ;;  %v19878_v23 = vld [vmem:[#allocation74_spill] sm:$0xff] }
 0x394   : > { %19866 = vst [vmem:[#allocation111_spill] sm:$0xff] %v15697_v43  ;;  %7698 = vperm.xlu0 %11583, %v15682_v11   ;;  %v15700_v16 = vpop.permute.xlu1 %7981  ;;  %v11107_v9 = vpop.f32.mrf.mxu0  ;;  %v4554_v43 = vsub.f32 %v4234_v62, %v19871_v47  ;;  %v19877_v62 = vld [vmem:[#allocation105_spill] sm:$0xff]  ;;  %v4237_v51 = vmul.f32 %v11101_v36, %v19878_v23 }
 0x395   : > { %19867 = vst [vmem:[#allocation67_spill] sm:$0xff] %v15700_v16  ;;  %11483 = vmatmul.mubr.msk.f32.gmra.mxu1 %vm1718_vm0, %v4551_v14  ;;  %v15705_v42 = vpop.f32.mrf.mxu1  ;;  %v19872_v14 = vld [vmem:[#allocation179_spill] sm:$0xff]  ;;  %19875 = vst [vmem:[#allocation70_spill] sm:$0xff] %v15724_v2  ;;  %v7874_v36 = vmul.f32 %v15724_v2, %v15724_v2 }
 0x396   : > { %19868 = vst [vmem:[#allocation116_spill] sm:$0xff] %v15705_v42  ;;  %7693 = vperm.xlu1 %11584, %v15691_v1   ;;  %11485 = vmatprep.mubr.msk.f32.mxu1 %vm1718_vm0, %v4552_v18  ;;  %v3603_v20 = vpop.f32.mrf.mxu0  ;;  %v4236_v16 = vmul.f32 %v19872_v14, %v3583_v22  ;;  %v4555_v22 = vsub.f32 %v4235_v39, %v19877_v62  ;;  %v19880_v14 = vld [vmem:[#allocation107_spill] sm:$0xff]  ;;  %v19881_v1 = vld [vmem:[#allocation180_spill] sm:$0xff] }
 0x397   : > { %v15715_v44 = vpop.f32.mrf.mxu1  ;;  %v15717_v11 = vpop.permute.xlu0 %7548 }
 0x398   : > { %19873 = vst [vmem:[#allocation178_spill] sm:$0xff] %v15717_v11  ;;  %8146 = vperm.xlu0 %11583, %v7872_v21   ;;  %v15719_v42 = vpop.permute.xlu1 %7543  ;;  %v11110_v18 = vpop.f32.mrf.mxu0  ;;  %v15733_v21 = vadd.f32 %v15551_v3, %v14917_v45  ;;  %v4238_v11 = vmul.f32 %v19881_v1, %v3593_v52  ;;  %v19885_v52 = vld [vmem:[#allocation13_spill] sm:$0xff] }
 0x399   : > { %19874 = vst [vmem:[#allocation112_spill] sm:$0xff] %v15719_v42  ;;  %11486 = vmatmul.mubr.msk.f32.gmra.mxu1 %vm1718_vm0, %v4553_v12  ;;  %v15726_v37 = vpop.f32.mrf.mxu1  ;;  %v4556_v12 = vsub.f32 %v4236_v16, %v19880_v14  ;;  %v4557_v1 = vsub.f32 %v4237_v51, %v19885_v52  ;;  %v19886_v16 = vld [vmem:[#allocation76_spill] sm:$0xff]  ;;  %v19894_v52 = vld [vmem:[#allocation79_spill] sm:$0xff] }
 0x39a   : > { %19876 = vst [vmem:[#allocation14_spill] sm:$0xff] %v15726_v37  ;;  %8141 = vperm.xlu1 %11584, %v7871_v53   ;;  %11488 = vmatprep.mubr.msk.f32.mxu1 %vm1718_vm0, %v4554_v43  ;;  %v3613_v47 = vpop.f32.mrf.mxu0  ;;  %19879 = vst [vmem:[#allocation179_spill] sm:$0xff] %v15733_v21  ;;  %v4239_v53 = vmul.f32 %v11104_v31, %v19886_v16  ;;  %v7873_v23 = vmul.f32 %v15733_v21, %v15733_v21  ;;  %v19887_v14 = vld [vmem:[#allocation16_spill] sm:$0xff] }
 0x39b   : > { %v15737_v56 = vpop.f32.mrf.mxu1  ;;  %v15739_v42 = vpop.permute.xlu0 %7996  ;;  %v15766_v31 = vadd.f32 %v15551_v3, %v15000_v0  ;;  %v4241_v16 = vmul.f32 %v11107_v9, %v19894_v52 }
 0x39c   : > { %19882 = vst [vmem:[#allocation105_spill] sm:$0xff] %v15739_v42  ;;  %7708 = vperm.xlu0 %11583, %v15724_v2   ;;  %v15742_v43 = vpop.permute.xlu1 %7991  ;;  %v11113_v39 = vpop.f32.mrf.mxu0  ;;  %v4558_v42 = vsub.f32 %v4238_v11, %v19887_v14  ;;  %v19893_v11 = vld [vmem:[#allocation121_spill] sm:$0xff] }
 0x39d   : > { %19883 = vst [vmem:[#allocation74_spill] sm:$0xff] %v15742_v43  ;;  %11489 = vmatmul.mubr.msk.f32.gmra.mxu1 %vm1718_vm0, %v4555_v22  ;;  %v15747_v45 = vpop.f32.mrf.mxu1  ;;  %v19888_v22 = vld [vmem:[#allocation181_spill] sm:$0xff]  ;;  %19891 = vst [vmem:[#allocation76_spill] sm:$0xff] %v15766_v31  ;;  %v7876_v9 = vmul.f32 %v15766_v31, %v15766_v31 }
 0x39e   : > { %19884 = vst [vmem:[#allocation107_spill] sm:$0xff] %v15747_v45  ;;  %7703 = vperm.xlu1 %11584, %v15733_v21   ;;  %11491 = vmatprep.mubr.msk.f32.mxu1 %vm1718_vm0, %v4556_v12  ;;  %v3623_v62 = vpop.f32.mrf.mxu0  ;;  %v4240_v43 = vmul.f32 %v19888_v22, %v3603_v20  ;;  %v4559_v20 = vsub.f32 %v4239_v53, %v19893_v11  ;;  %v19896_v22 = vld [vmem:[#allocation64_spill] sm:$0xff] }
 0x39f   : > { %v15757_v37 = vpop.f32.mrf.mxu1  ;;  %v15759_v2 = vpop.permute.xlu0 %7558  ;;  %v4242_v21 = vmul.f32 %v19599_v61, %v3613_v47  ;;  %v19900_v61 = vld [vmem:[#allocation119_spill] sm:$0xff] }
 0x3a0   : > { %19889 = vst [vmem:[#allocation180_spill] sm:$0xff] %v15759_v2  ;;  %8156 = vperm.xlu0 %11583, %v7874_v36   ;;  %v15761_v45 = vpop.permute.xlu1 %7553  ;;  %v11116_v12 = vpop.f32.mrf.mxu0  ;;  %v15775_v36 = vadd.f32 %v15551_v3, %v14948_v40  ;;  %v4561_v47 = vsub.f32 %v4241_v16, %v19900_v61  ;;  %v19909_v61 = vld [vmem:[#allocation23_spill] sm:$0xff] }
 0x3a1   : > { %19890 = vst [vmem:[#allocation13_spill] sm:$0xff] %v15761_v45  ;;  %11492 = vmatmul.mubr.msk.f32.gmra.mxu1 %vm1718_vm0, %v4557_v1  ;;  %v15768_v51 = vpop.f32.mrf.mxu1  ;;  %v4560_v1 = vsub.f32 %v4240_v43, %v19896_v22  ;;  %v19901_v43 = vld [vmem:[#allocation82_spill] sm:$0xff] }
 0x3a2   : > { %19892 = vst [vmem:[#allocation16_spill] sm:$0xff] %v15768_v51  ;;  %8151 = vperm.xlu1 %11584, %v7873_v23   ;;  %11494 = vmatprep.mubr.msk.f32.mxu1 %vm1718_vm0, %v4558_v42  ;;  %v3633_v14 = vpop.f32.mrf.mxu0  ;;  %19895 = vst [vmem:[#allocation181_spill] sm:$0xff] %v15775_v36  ;;  %v4243_v23 = vmul.f32 %v11110_v18, %v19901_v43  ;;  %v7875_v52 = vmul.f32 %v15775_v36, %v15775_v36  ;;  %v19902_v22 = vld [vmem:[#allocation122_spill] sm:$0xff] }
 0x3a3   : > { %v15779_v0 = vpop.f32.mrf.mxu1  ;;  %v15781_v2 = vpop.permute.xlu0 %8006  ;;  %v15808_v18 = vadd.f32 %v15551_v3, %v15032_v55  ;;  %v4245_v43 = vmul.f32 %v11113_v39, %v19909_v61 }
 0x3a4   : > { %19897 = vst [vmem:[#allocation121_spill] sm:$0xff] %v15781_v2  ;;  %7718 = vperm.xlu0 %11583, %v15766_v31   ;;  %v15784_v42 = vpop.permute.xlu1 %8001  ;;  %v11119_v53 = vpop.f32.mrf.mxu0  ;;  %v4562_v2 = vsub.f32 %v4242_v21, %v19902_v22  ;;  %v19908_v21 = vld [vmem:[#allocation18_spill] sm:$0xff] }
 0x3a5   : > { %19898 = vst [vmem:[#allocation79_spill] sm:$0xff] %v15784_v42  ;;  %11495 = vmatmul.mubr.msk.f32.gmra.mxu1 %vm1718_vm0, %v4559_v20  ;;  %v15789_v40 = vpop.f32.mrf.mxu1  ;;  %v19903_v20 = vld [vmem:[#allocation183_spill] sm:$0xff]  ;;  %19906 = vst [vmem:[#allocation122_spill] sm:$0xff] %v15808_v18  ;;  %v7878_v39 = vmul.f32 %v15808_v18, %v15808_v18 }
 0x3a6   : > { %19899 = vst [vmem:[#allocation64_spill] sm:$0xff] %v15789_v40  ;;  %7713 = vperm.xlu1 %11584, %v15775_v36   ;;  %11497 = vmatprep.mubr.msk.f32.mxu1 %vm1718_vm0, %v4560_v1  ;;  %v3643_v11 = vpop.f32.mrf.mxu0  ;;  %v4244_v42 = vmul.f32 %v19903_v20, %v3623_v62  ;;  %v4563_v62 = vsub.f32 %v4243_v23, %v19908_v21  ;;  %v19912_v36 = vld [vmem:[#allocation65_spill] sm:$0xff] }
 0x3a7   : > { %v15799_v45 = vpop.f32.mrf.mxu1  ;;  %v15801_v31 = vpop.permute.xlu0 %7568 }
 0x3a8   : > { %19904 = vst [vmem:[#allocation119_spill] sm:$0xff] %v15801_v31  ;;  %8166 = vperm.xlu0 %11583, %v7876_v9   ;;  %v15803_v40 = vpop.permute.xlu1 %7563  ;;  %v11122_v1 = vpop.f32.mrf.mxu0  ;;  %v19910_v9 = vld [vmem:[#allocation73_spill] sm:$0xff]  ;;  %v19913_v31 = vld [vmem:[#allocation3_spill] sm:$0xff] }
 0x3a9   : > { %19905 = vst [vmem:[#allocation82_spill] sm:$0xff] %v15803_v40  ;;  %11498 = vmatmul.mubr.msk.f32.gmra.mxu1 %vm1718_vm0, %v4561_v47  ;;  %v15810_v16 = vpop.f32.mrf.mxu1  ;;  %v15817_v20 = vadd.f32 %v15551_v3, %v19910_v9  ;;  %v4564_v47 = vsub.f32 %v4244_v42, %v19912_v36  ;;  %v4246_v40 = vmul.f32 %v19913_v31, %v3633_v14  ;;  %v19917_v31 = vld [vmem:[#allocation113_spill] sm:$0xff]  ;;  %v19918_v36 = vld [vmem:[#allocation24_spill] sm:$0xff]  ;;  %v19919_v9 = vld [vmem:[#allocation66_spill] sm:$0xff] }
 0x3aa   : > { %19907 = vst [vmem:[#allocation183_spill] sm:$0xff] %v15810_v16  ;;  %8161 = vperm.xlu1 %11584, %v7875_v52   ;;  %11500 = vmatprep.mubr.msk.f32.mxu1 %vm1718_vm0, %v4562_v2  ;;  %v3653_v22 = vpop.f32.mrf.mxu0  ;;  %v4565_v14 = vsub.f32 %v4245_v43, %v19917_v31  ;;  %v4247_v42 = vmul.f32 %v11116_v12, %v19918_v36  ;;  %v19927_v31 = vld [vmem:[#allocation85_spill] sm:$0xff] }
 0x3ab   : > { %19911 = vst [vmem:[#allocation18_spill] sm:$0xff] %v15817_v20  ;;  %v15821_v55 = vpop.f32.mrf.mxu1  ;;  %v15823_v51 = vpop.permute.xlu0 %8016  ;;  %v7877_v61 = vmul.f32 %v15817_v20, %v15817_v20  ;;  %v15850_v12 = vadd.f32 %v15551_v3, %v15066_v27  ;;  %v4249_v36 = vmul.f32 %v11119_v53, %v19927_v31 }
 0x3ac   : > { %19914 = vst [vmem:[#allocation23_spill] sm:$0xff] %v15823_v51  ;;  %7728 = vperm.xlu0 %11583, %v15808_v18   ;;  %v15826_v2 = vpop.permute.xlu1 %8011  ;;  %v11125_v23 = vpop.f32.mrf.mxu0  ;;  %v4566_v51 = vsub.f32 %v4246_v40, %v19919_v9  ;;  %v19926_v40 = vld [vmem:[#allocation115_spill] sm:$0xff] }
 0x3ad   : > { %19915 = vst [vmem:[#allocation73_spill] sm:$0xff] %v15826_v2  ;;  %11501 = vmatmul.mubr.msk.f32.gmra.mxu1 %vm1718_vm0, %v4563_v62  ;;  %v15831_v52 = vpop.f32.mrf.mxu1  ;;  %v19920_v62 = vld [vmem:[#allocation27_spill] sm:$0xff]  ;;  %19924 = vst [vmem:[#allocation66_spill] sm:$0xff] %v15850_v12  ;;  %v7880_v53 = vmul.f32 %v15850_v12, %v15850_v12 }
 0x3ae   : > { %19916 = vst [vmem:[#allocation65_spill] sm:$0xff] %v15831_v52  ;;  %7723 = vperm.xlu1 %11584, %v15817_v20   ;;  %11503 = vmatprep.mubr.msk.f32.mxu1 %vm1718_vm0, %v4564_v47  ;;  %v3663_v21 = vpop.f32.mrf.mxu0  ;;  %v4248_v2 = vmul.f32 %v19920_v62, %v3643_v11  ;;  %v4567_v11 = vsub.f32 %v4247_v42, %v19926_v40  ;;  %v19930_v20 = vld [vmem:[#allocation131_spill] sm:$0xff] }
 0x3af   : > { %v15841_v16 = vpop.f32.mrf.mxu1  ;;  %v15843_v18 = vpop.permute.xlu0 %7578 }
 0x3b0   : > { %19921 = vst [vmem:[#allocation3_spill] sm:$0xff] %v15841_v16  ;;  %19922 = vst [vmem:[#allocation113_spill] sm:$0xff] %v15843_v18  ;;  %8176 = vperm.xlu0 %11583, %v7878_v39   ;;  %v15845_v52 = vpop.permute.xlu1 %7573  ;;  %v11128_v47 = vpop.f32.mrf.mxu0  ;;  %v19928_v39 = vld [vmem:[#allocation123_spill] sm:$0xff]  ;;  %v19931_v18 = vld [vmem:[#allocation28_spill] sm:$0xff] }
 0x3b1   : > { %19923 = vst [vmem:[#allocation24_spill] sm:$0xff] %v15845_v52  ;;  %11504 = vmatmul.mubr.msk.f32.gmra.mxu1 %vm1718_vm0, %v4565_v14  ;;  %v15852_v43 = vpop.f32.mrf.mxu1  ;;  %v15859_v62 = vadd.f32 %v15551_v3, %v19928_v39  ;;  %v4568_v14 = vsub.f32 %v4248_v2, %v19930_v20  ;;  %v4250_v52 = vmul.f32 %v19931_v18, %v3653_v22  ;;  %v19935_v18 = vld [vmem:[#allocation68_spill] sm:$0xff]  ;;  %v19936_v20 = vld [vmem:[#allocation25_spill] sm:$0xff]  ;;  %v19937_v39 = vld [vmem:[#allocation135_spill] sm:$0xff] }
 0x3b2   : > { %19925 = vst [vmem:[#allocation27_spill] sm:$0xff] %v15852_v43  ;;  %8171 = vperm.xlu1 %11584, %v7877_v61   ;;  %11506 = vmatprep.mubr.msk.f32.mxu1 %vm1718_vm0, %v4566_v51  ;;  %v3673_v9 = vpop.f32.mrf.mxu0  ;;  %v4569_v22 = vsub.f32 %v4249_v36, %v19935_v18  ;;  %v4251_v2 = vmul.f32 %v11122_v1, %v19936_v20  ;;  %v19945_v18 = vld [vmem:[#allocation31_spill] sm:$0xff] }
 0x3b3   : > { %19929 = vst [vmem:[#allocation115_spill] sm:$0xff] %v15859_v62  ;;  %v15863_v27 = vpop.f32.mrf.mxu1  ;;  %v15865_v16 = vpop.permute.xlu0 %8026  ;;  %v7879_v31 = vmul.f32 %v15859_v62, %v15859_v62  ;;  %v15892_v1 = vadd.f32 %v15551_v3, %v15098_v24  ;;  %v4253_v20 = vmul.f32 %v11125_v23, %v19945_v18 }
 0x3b4   : > { %19932 = vst [vmem:[#allocation85_spill] sm:$0xff] %v15865_v16  ;;  %7738 = vperm.xlu0 %11583, %v15850_v12   ;;  %v15868_v51 = vpop.permute.xlu1 %8021  ;;  %v11131_v42 = vpop.f32.mrf.mxu0  ;;  %v4570_v16 = vsub.f32 %v4250_v52, %v19937_v39  ;;  %v19944_v52 = vld [vmem:[#allocation69_spill] sm:$0xff] }
 0x3b5   : > { %19933 = vst [vmem:[#allocation123_spill] sm:$0xff] %v15868_v51  ;;  %11507 = vmatmul.mubr.msk.f32.gmra.mxu1 %vm1718_vm0, %v4567_v11  ;;  %v15873_v61 = vpop.f32.mrf.mxu1  ;;  %v19938_v11 = vld [vmem:[#allocation86_spill] sm:$0xff]  ;;  %19942 = vst [vmem:[#allocation135_spill] sm:$0xff] %v15892_v1  ;;  %v7882_v23 = vmul.f32 %v15892_v1, %v15892_v1 }
 0x3b6   : > { %19934 = vst [vmem:[#allocation131_spill] sm:$0xff] %v15873_v61  ;;  %7733 = vperm.xlu1 %11584, %v15859_v62   ;;  %11509 = vmatprep.mubr.msk.f32.mxu1 %vm1718_vm0, %v4568_v14  ;;  %v3683_v40 = vpop.f32.mrf.mxu0  ;;  %v4252_v51 = vmul.f32 %v19938_v11, %v3663_v21  ;;  %v4571_v21 = vsub.f32 %v4251_v2, %v19944_v52  ;;  %v19948_v62 = vld [vmem:[#allocation120_spill] sm:$0xff] }
 0x3b7   : > { %v15883_v43 = vpop.f32.mrf.mxu1  ;;  %v15885_v12 = vpop.permute.xlu0 %7588 }
 0x3b8   : > { %19939 = vst [vmem:[#allocation28_spill] sm:$0xff] %v15883_v43  ;;  %19940 = vst [vmem:[#allocation68_spill] sm:$0xff] %v15885_v12  ;;  %8186 = vperm.xlu0 %11583, %v7880_v53   ;;  %v15887_v61 = vpop.permute.xlu1 %7583  ;;  %v11134_v14 = vpop.f32.mrf.mxu0  ;;  %v19946_v53 = vld [vmem:[#allocation137_spill] sm:$0xff]  ;;  %v19949_v12 = vld [vmem:[#allocation26_spill] sm:$0xff] }
 0x3b9   : > { %19941 = vst [vmem:[#allocation25_spill] sm:$0xff] %v15887_v61  ;;  %11510 = vmatmul.mubr.msk.f32.gmra.mxu1 %vm1718_vm0, %v4569_v22  ;;  %v15894_v36 = vpop.f32.mrf.mxu1  ;;  %v15901_v11 = vadd.f32 %v15551_v3, %v19946_v53  ;;  %v4572_v22 = vsub.f32 %v4252_v51, %v19948_v62  ;;  %v4254_v61 = vmul.f32 %v19949_v12, %v3673_v9  ;;  %v19953_v12 = vld [vmem:[#allocation71_spill] sm:$0xff]  ;;  %v19955_v53 = vld [vmem:[#allocation182_spill] sm:$0xff] }
 0x3ba   : > { %19943 = vst [vmem:[#allocation86_spill] sm:$0xff] %v15894_v36  ;;  %8181 = vperm.xlu1 %11584, %v7879_v31   ;;  %11512 = vmatprep.mubr.msk.f32.mxu1 %vm1718_vm0, %v4570_v16  ;;  %v3693_v39 = vpop.f32.mrf.mxu0  ;;  %v4573_v9 = vsub.f32 %v4253_v20, %v19953_v12  ;;  %v19954_v62 = vld [vmem:[#allocation87_spill] sm:$0xff] }
 0x3bb   : > { %19947 = vst [vmem:[#allocation69_spill] sm:$0xff] %v15901_v11  ;;  %v15905_v24 = vpop.f32.mrf.mxu1  ;;  %v15907_v43 = vpop.permute.xlu0 %8036  ;;  %v4255_v51 = vmul.f32 %v11128_v47, %v19954_v62  ;;  %v7881_v18 = vmul.f32 %v15901_v11, %v15901_v11  ;;  %v19959_v47 = vld [vmem:[#allocation136_spill] sm:$0xff] }
 0x3bc   : > { %19950 = vst [vmem:[#allocation31_spill] sm:$0xff] %v15907_v43  ;;  %7748 = vperm.xlu0 %11583, %v15892_v1   ;;  %v15910_v16 = vpop.permute.xlu1 %8031  ;;  %v11137_v2 = vpop.f32.mrf.mxu0  ;;  %v4574_v43 = vsub.f32 %v4254_v61, %v19955_v53  ;;  %v19960_v61 = vld [vmem:[#allocation29_spill] sm:$0xff]  ;;  %v19961_v53 = vld [vmem:[#allocation140_spill] sm:$0xff] }
 0x3bd   : > { %19951 = vst [vmem:[#allocation137_spill] sm:$0xff] %v15910_v16  ;;  %11513 = vmatmul.mubr.msk.f32.gmra.mxu1 %vm1718_vm0, %v4571_v21  ;;  %v15915_v31 = vpop.f32.mrf.mxu1  ;;  %v19956_v21 = vld [vmem:[#allocation32_spill] sm:$0xff]  ;;  %v4575_v12 = vsub.f32 %v4255_v51, %v19959_v47  ;;  %v4257_v62 = vmul.f32 %v11131_v42, %v19960_v61 }
 0x3be   : > { %19952 = vst [vmem:[#allocation120_spill] sm:$0xff] %v15915_v31  ;;  %7743 = vperm.xlu1 %11584, %v15901_v11   ;;  %11515 = vmatprep.mubr.msk.f32.mxu1 %vm1718_vm0, %v4572_v22  ;;  %v3703_v52 = vpop.f32.mrf.mxu0  ;;  %v4256_v16 = vmul.f32 %v19956_v21, %v3683_v40  ;;  %v15939_v21 = vadd.f32 %v15551_v3, %v19961_v53  ;;  %v19969_v53 = vld [vmem:[#allocation34_spill] sm:$0xff] }
 0x3bf   : > { %v15925_v36 = vpop.f32.mrf.mxu1  ;;  %v15927_v1 = vpop.permute.xlu0 %7598 }
 0x3c0   : > { %19957 = vst [vmem:[#allocation26_spill] sm:$0xff] %v15927_v1  ;;  %8196 = vperm.xlu0 %11583, %v7882_v23   ;;  %v15929_v31 = vpop.permute.xlu1 %7593  ;;  %v11140_v22 = vpop.f32.mrf.mxu0  ;;  %19962 = vst [vmem:[#allocation87_spill] sm:$0xff] %v15939_v21  ;;  %v19963_v23 = vld [vmem:[#allocation75_spill] sm:$0xff]  ;;  %v4258_v1 = vmul.f32 %v19673_v58, %v3693_v39  ;;  %v19966_v58 = vld [vmem:[#allocation22_spill] sm:$0xff]  ;;  %v7883_v47 = vmul.f32 %v15939_v21, %v15939_v21 }
 0x3c1   : > { %19958 = vst [vmem:[#allocation71_spill] sm:$0xff] %v15929_v31  ;;  %11516 = vmatmul.mubr.msk.f32.gmra.mxu1 %vm1718_vm0, %v4573_v9  ;;  %v15932_v20 = vpop.f32.mrf.mxu1  ;;  %v4576_v11 = vsub.f32 %v4256_v16, %v19963_v23  ;;  %v4577_v3 = vsub.f32 %v4257_v62, %v19966_v58  ;;  %v19967_v39 = vld [vmem:[#allocation89_spill] sm:$0xff]  ;;  %v4260_v23 = vmul.f32 %v19969_v53, %v3703_v52  ;;  %v19975_v52 = vld [vmem:[#allocation90_spill] sm:$0xff]  ;;  %v19976_v53 = vld [vmem:[#allocation139_spill] sm:$0xff] }
 0x3c2   : > { %8191 = vperm.xlu1 %11584, %v7881_v18   ;;  %11518 = vmatprep.mubr.msk.f32.mxu1 %vm1718_vm0, %v4574_v43  ;;  %v3713_v40 = vpop.f32.mrf.mxu0  ;;  %v4259_v16 = vmul.f32 %v11134_v14, %v19967_v39  ;;  %v4261_v39 = vmul.f32 %v11137_v2, %v19975_v52  ;;  %v19980_v2 = vld [vmem:[#allocation141_spill] sm:$0xff]  ;;  %v19983_v52 = vld [vmem:[#allocation83_spill] sm:$0xff] }
 0x3c3   : > { %v15943_v31 = vpop.f32.mrf.mxu1  ;;  %v15945_v9 = vpop.permute.xlu0 %8046 }
 0x3c4   : > { %19964 = vst [vmem:[#allocation182_spill] sm:$0xff] %v15945_v9  ;;  %8332 = vrot.lane.b32.xlu0 %v15146_v29, %s11854_s12  ;;  %v15949_v43 = vpop.permute.xlu1 %8041  ;;  %v11143_v42 = vpop.f32.mrf.mxu0  ;;  %v19968_v29 = vld [vmem:[#allocation125_spill] sm:$0xff] }
 0x3c5   : > { %19965 = vst [vmem:[#allocation32_spill] sm:$0xff] %v15949_v43  ;;  %11519 = vmatmul.mubr.msk.f32.gmra.mxu1 %vm1718_vm0, %v4575_v12  ;;  %v15952_v51 = vpop.f32.mrf.mxu1  ;;  %v4578_v61 = vsub.f32 %v4258_v1, %v19968_v29  ;;  %v19972_v43 = vld [vmem:[#allocation150_spill] sm:$0xff]  ;;  %v19974_v1 = vld [vmem:[#allocation77_spill] sm:$0xff] }
 0x3c6   : > { %7753 = vperm.xlu1 %11584, %v15939_v21   ;;  %11521 = vmatprep.mubr.msk.f32.mxu1 %vm1718_vm0, %v4576_v11  ;;  %v3723_v18 = vpop.f32.mrf.mxu0  ;;  %v4579_v58 = vsub.f32 %v4259_v16, %v19974_v1  ;;  %v4580_v21 = vsub.f32 %v4260_v23, %v19976_v53 }
 0x3c7   : > { %v15962_v9 = vpop.f32.mrf.mxu1  ;;  %v15964_v12 = vpop.permute.xlu0 %7608 }
 0x3c8   : > { %19970 = vst [vmem:[#allocation136_spill] sm:$0xff] %v15962_v9  ;;  %19971 = vst [vmem:[#allocation29_spill] sm:$0xff] %v15964_v12  ;;  %8336 = vrot.lane.b32.xlu0 %v19972_v43, %s11854_s12  ;;  %v15968_v11 = vpop.permute.xlu1 %7603  ;;  %v11146_v62 = vpop.f32.mrf.mxu0  ;;  %v4262_v12 = vmul.f32 %v19689_v46, %v3713_v40  ;;  %v19981_v46 = vld [vmem:[#allocation78_spill] sm:$0xff] }
 0x3c9   : > { %19973 = vst [vmem:[#allocation140_spill] sm:$0xff] %v15968_v11  ;;  %11522 = vmatmul.mubr.msk.f32.gmra.mxu1 %vm1718_vm0, %v4577_v3  ;;  %v15971_v14 = vpop.f32.mrf.mxu1  ;;  %v4581_v40 = vsub.f32 %v4261_v39, %v19981_v46  ;;  %v19991_v39 = vld [vmem:[#allocation92_spill] sm:$0xff] }
 0x3ca   : > { %8201 = vperm.xlu1 %11584, %v7883_v47   ;;  %11524 = vmatprep.mubr.msk.f32.mxu1 %vm1718_vm0, %v4578_v61  ;;  %v3733_v29 = vpop.f32.mrf.mxu0  ;;  %v19982_v61 = vld [vmem:[#allocation91_spill] sm:$0xff]  ;;  %v4582_v53 = vsub.f32 %v4262_v12, %v19983_v52  ;;  %v4265_v46 = vmul.f32 %v11143_v42, %v19991_v39  ;;  %v19992_v52 = vld [vmem:[#allocation146_spill] sm:$0xff]  ;;  %v19999_v39 = vld [vmem:[#allocation33_spill] sm:$0xff] }
 0x3cb   : > { %v15978_v43 = vpop.f32.mrf.mxu1  ;;  %v15980_v11 = vpop.permute.xlu0 %8056  ;;  %v4263_v23 = vmul.f32 %v11140_v22, %v19982_v61  ;;  %v19989_v22 = vld [vmem:[#allocation145_spill] sm:$0xff]  ;;  %v19996_v42 = vld [vmem:[#allocation151_spill] sm:$0xff] }
 0x3cc   : > { %19977 = vst [vmem:[#allocation75_spill] sm:$0xff] %v15978_v43  ;;  %19978 = vst [vmem:[#allocation22_spill] sm:$0xff] %v15980_v11  ;;  %8340 = vrot.lane.b32.xlu0 %v15220_v30, %s11854_s12  ;;  %v15984_v3 = vpop.permute.xlu1 %8051  ;;  %v11149_v47 = vpop.f32.mrf.mxu0  ;;  %v19984_v30 = vld [vmem:[#allocation38_spill] sm:$0xff] }
 0x3cd   : > { %19979 = vst [vmem:[#allocation89_spill] sm:$0xff] %v15984_v3  ;;  %11525 = vmatmul.mubr.msk.f32.gmra.mxu1 %vm1718_vm0, %v4579_v58  ;;  %v15987_v16 = vpop.f32.mrf.mxu1  ;;  %v4264_v11 = vmul.f32 %v19984_v30, %v3723_v18  ;;  %v19987_v58 = vld [vmem:[#allocation160_spill] sm:$0xff]  ;;  %v19990_v18 = vld [vmem:[#allocation5_spill] sm:$0xff] }
 0x3ce   : > { %8334 = vrot.lane.b32.xlu1 %v19980_v2, %s11854_s12  ;;  %11527 = vmatprep.mubr.msk.f32.mxu1 %vm1718_vm0, %v4580_v21  ;;  %v3743_v1 = vpop.f32.mrf.mxu0  ;;  %v4583_v12 = vsub.f32 %v4263_v23, %v19990_v18 }
 0x3cf   : > { %v15996_v3 = vpop.f32.mrf.mxu1  ;;  %v15998_v43 = vpop.permute.xlu0 %7618  ;;  %v4584_v30 = vsub.f32 %v4264_v11, %v19992_v52 }
 0x3d0   : > { %19985 = vst [vmem:[#allocation125_spill] sm:$0xff] %v15996_v3  ;;  %19986 = vst [vmem:[#allocation34_spill] sm:$0xff] %v15998_v43  ;;  %8344 = vrot.lane.b32.xlu0 %v19987_v58, %s11854_s12  ;;  %v16002_v9 = vpop.permute.xlu1 %7613  ;;  %v11152_v2 = vpop.f32.mrf.mxu0  ;;  %v4266_v58 = vmul.f32 %v19705_v15, %v3733_v29  ;;  %v19997_v15 = vld [vmem:[#allocation132_spill] sm:$0xff]  ;;  %v19998_v29 = vld [vmem:[#allocation41_spill] sm:$0xff] }
 0x3d1   : > { %19988 = vst [vmem:[#allocation150_spill] sm:$0xff] %v16002_v9  ;;  %11528 = vmatmul.mubr.msk.f32.gmra.mxu1 %vm1718_vm0, %v4581_v40  ;;  %v16005_v21 = vpop.f32.mrf.mxu1  ;;  %v4585_v11 = vsub.f32 %v4265_v46, %v19997_v15 }
 0x3d2   : > { %8338 = vrot.lane.b32.xlu1 %v19989_v22, %s11854_s12  ;;  %11530 = vmatprep.mubr.msk.f32.mxu1 %vm1718_vm0, %v4582_v53  ;;  %v3753_v61 = vpop.f32.mrf.mxu0  ;;  %v4267_v53 = vmul.f32 %v11146_v62, %v19998_v29  ;;  %v4586_v52 = vsub.f32 %v4266_v58, %v19999_v39  ;;  %v20004_v62 = vld [vmem:[#allocation158_spill] sm:$0xff]  ;;  %v20007_v39 = vld [vmem:[#allocation155_spill] sm:$0xff] }
 0x3d3   : > { %v16014_v43 = vpop.f32.mrf.mxu1  ;;  %v16016_v9 = vpop.permute.xlu0 %8066  ;;  %v20006_v58 = vld [vmem:[#allocation94_spill] sm:$0xff] }
 0x3d4   : > { %19993 = vst [vmem:[#allocation77_spill] sm:$0xff] %v16014_v43  ;;  %19994 = vst [vmem:[#allocation90_spill] sm:$0xff] %v16016_v9  ;;  %8348 = vrot.lane.b32.xlu0 %v15294_v8, %s11854_s12  ;;  %v16020_v40 = vpop.permute.xlu1 %8061  ;;  %v11155_v22 = vpop.f32.mrf.mxu0  ;;  %v20000_v8 = vld [vmem:[#allocation43_spill] sm:$0xff]  ;;  %v4269_v15 = vmul.f32 %v11149_v47, %v20006_v58  ;;  %v20011_v47 = vld [vmem:[#allocation161_spill] sm:$0xff] }
 0x3d5   : > { %19995 = vst [vmem:[#allocation139_spill] sm:$0xff] %v16020_v40  ;;  %11531 = vmatmul.mubr.msk.f32.gmra.mxu1 %vm1718_vm0, %v4583_v12  ;;  %v16023_v23 = vpop.f32.mrf.mxu1  ;;  %v4268_v9 = vmul.f32 %v20000_v8, %v3743_v1  ;;  %v20002_v12 = vld [vmem:[#allocation51_spill] sm:$0xff] }
 0x3d6   : > { %8342 = vrot.lane.b32.xlu1 %v19996_v42, %s11854_s12  ;;  %11533 = vmatprep.mubr.msk.f32.mxu1 %vm1718_vm0, %v4584_v30  ;;  %v3763_v18 = vpop.f32.mrf.mxu0  ;;  %v20005_v1 = vld [vmem:[#allocation147_spill] sm:$0xff] }
 0x3d7   : > { %v16032_v40 = vpop.f32.mrf.mxu1  ;;  %v16034_v43 = vpop.permute.xlu0 %7628  ;;  %v4587_v30 = vsub.f32 %v4267_v53, %v20005_v1  ;;  %v4588_v8 = vsub.f32 %v4268_v9, %v20007_v39  ;;  %v20013_v1 = vld [vmem:[#allocation45_spill] sm:$0xff] }
 0x3d8   : > { %20001 = vst [vmem:[#allocation141_spill] sm:$0xff] %v16034_v43  ;;  %8352 = vrot.lane.b32.xlu0 %v20002_v12, %s11854_s12  ;;  %v16038_v3 = vpop.permute.xlu1 %7623  ;;  %v11158_v42 = vpop.f32.mrf.mxu0  ;;  %v4270_v12 = vmul.f32 %v19726_v49, %v3753_v61  ;;  %v20012_v49 = vld [vmem:[#allocation154_spill] sm:$0xff]  ;;  %v4271_v61 = vmul.f32 %v11152_v2, %v19721_v57  ;;  %v20018_v57 = vld [vmem:[#allocation165_spill] sm:$0xff]  ;;  %v20019_v2 = vld [vmem:[#allocation40_spill] sm:$0xff] }
 0x3d9   : > { %20003 = vst [vmem:[#allocation78_spill] sm:$0xff] %v16038_v3  ;;  %11534 = vmatmul.mubr.msk.f32.gmra.mxu1 %vm1718_vm0, %v4585_v11  ;;  %v16041_v46 = vpop.f32.mrf.mxu1  ;;  %v4589_v9 = vsub.f32 %v4269_v15, %v20012_v49 }
 0x3da   : > { %8346 = vrot.lane.b32.xlu1 %v20004_v62, %s11854_s12  ;;  %11536 = vmatprep.mubr.msk.f32.mxu1 %vm1718_vm0, %v4586_v52  ;;  %v3773_v29 = vpop.f32.mrf.mxu0  ;;  %v4590_v58 = vsub.f32 %v4270_v12, %v20013_v1  ;;  %v20021_v1 = vld [vmem:[#allocation48_spill] sm:$0xff] }
 0x3db   : > { %v16050_v43 = vpop.f32.mrf.mxu1  ;;  %v16052_v3 = vpop.permute.xlu0 %8076 }
 0x3dc   : > { %20008 = vst [vmem:[#allocation91_spill] sm:$0xff] %v16050_v43  ;;  %20009 = vst [vmem:[#allocation83_spill] sm:$0xff] %v16052_v3  ;;  %8356 = vrot.lane.b32.xlu0 %v15368_v19, %s11854_s12  ;;  %v16056_v11 = vpop.permute.xlu1 %8071  ;;  %v11161_v62 = vpop.f32.mrf.mxu0  ;;  %v20014_v19 = vld [vmem:[#allocation47_spill] sm:$0xff] }
 0x3dd   : > { %20010 = vst [vmem:[#allocation38_spill] sm:$0xff] %v16056_v11  ;;  %11537 = vmatmul.mubr.msk.f32.gmra.mxu1 %vm1718_vm0, %v4587_v30  ;;  %v16059_v53 = vpop.f32.mrf.mxu1  ;;  %v4272_v39 = vmul.f32 %v20014_v19, %v3763_v18  ;;  %v20016_v30 = vld [vmem:[#allocation187_spill] sm:$0xff]  ;;  %v4591_v18 = vsub.f32 %v4271_v61, %v20019_v2  ;;  %v20026_v2 = vld [vmem:[#allocation97_spill] sm:$0xff] }
 0x3de   : > { %8350 = vrot.lane.b32.xlu1 %v20011_v47, %s11854_s12  ;;  %11539 = vmatprep.mubr.msk.f32.mxu1 %vm1718_vm0, %v4588_v8  ;;  %v3783_v52 = vpop.f32.mrf.mxu0  ;;  %v20020_v8 = vld [vmem:[#allocation96_spill] sm:$0xff] }
 0x3df   : > { %v16068_v3 = vpop.f32.mrf.mxu1  ;;  %v16070_v11 = vpop.permute.xlu0 %7638  ;;  %v4273_v12 = vmul.f32 %v11155_v22, %v20020_v8  ;;  %v4592_v19 = vsub.f32 %v4272_v39, %v20021_v1  ;;  %v20024_v22 = vld [vmem:[#allocation168_spill] sm:$0xff] }
 0x3e0   : > { %20015 = vst [vmem:[#allocation160_spill] sm:$0xff] %v16070_v11  ;;  %8360 = vrot.lane.b32.xlu0 %v20016_v30, %s11854_s12  ;;  %v16074_v43 = vpop.permute.xlu1 %7633  ;;  %v11164_v47 = vpop.f32.mrf.mxu0  ;;  %v4274_v30 = vmul.f32 %v19747_v10, %v3773_v29  ;;  %v20025_v10 = vld [vmem:[#allocation44_spill] sm:$0xff] }
 0x3e1   : > { %20017 = vst [vmem:[#allocation145_spill] sm:$0xff] %v16074_v43  ;;  %11540 = vmatmul.mubr.msk.f32.gmra.mxu1 %vm1718_vm0, %v4589_v9  ;;  %v16077_v15 = vpop.f32.mrf.mxu1  ;;  %v4593_v29 = vsub.f32 %v4273_v12, %v20025_v10 }
 0x3e2   : > { %8354 = vrot.lane.b32.xlu1 %v20018_v57, %s11854_s12  ;;  %11542 = vmatprep.mubr.msk.f32.mxu1 %vm1718_vm0, %v4590_v58  ;;  %v3793_v49 = vpop.f32.mrf.mxu0  ;;  %v4275_v58 = vmul.f32 %v11158_v42, %v19742_v63  ;;  %v4594_v8 = vsub.f32 %v4274_v30, %v20026_v2  ;;  %v20029_v63 = vld [vmem:[#allocation186_spill] sm:$0xff] }
 0x3e3   : > { %v16086_v11 = vpop.f32.mrf.mxu1  ;;  %v16088_v43 = vpop.permute.xlu0 %8086 }
 0x3e4   : > { %20022 = vst [vmem:[#allocation5_spill] sm:$0xff] %v16088_v43  ;;  %8364 = vrot.lane.b32.xlu0 %v15439_v50, %s11854_s12  ;;  %v11167_v57 = vpop.f32.mrf.mxu0  ;;  %v4276_v50 = vmul.f32 %v19759_v48, %v3783_v52  ;;  %v20030_v48 = vld [vmem:[#allocation167_spill] sm:$0xff]  ;;  %v4277_v52 = vmul.f32 %v11161_v62, %v19752_v35  ;;  %v20034_v35 = vld [vmem:[#allocation170_spill] sm:$0xff] }
 0x3e5   : > { %v16092_v9 = vpop.permute.xlu1 %8081  ;;  %11543 = vmatmul.mubr.msk.f32.gmra.mxu1 %vm1718_vm0, %v4591_v18  ;;  %v16095_v61 = vpop.f32.mrf.mxu1  ;;  %v4595_v42 = vsub.f32 %v4275_v58, %v20030_v48  ;;  %v20036_v58 = vld [vmem:[#allocation100_spill] sm:$0xff] }
 0x3e6   : > { %20023 = vst [vmem:[#allocation92_spill] sm:$0xff] %v16092_v9  ;;  %8358 = vrot.lane.b32.xlu1 %v20024_v22, %s11854_s12  ;;  %11545 = vmatprep.mubr.msk.f32.mxu1 %vm1718_vm0, %v4592_v19  ;;  %v3803_v39 = vpop.f32.mrf.mxu0  ;;  %v20031_v19 = vld [vmem:[#allocation169_spill] sm:$0xff] }
 0x3e7   : > { %v16104_v1 = vpop.f32.mrf.mxu1  ;;  %v16106_v43 = vpop.permute.xlu0 %7648  ;;  %v4596_v30 = vsub.f32 %v4276_v50, %v20031_v19 }
 0x3e8   : > { %20027 = vst [vmem:[#allocation146_spill] sm:$0xff] %v16106_v43  ;;  %8368 = vrot.lane.b32.xlu0 %v15473_v60, %s11854_s12  ;;  %v11170_v22 = vpop.f32.mrf.mxu0  ;;  %v4278_v60 = vmul.f32 %v19768_v41, %v3793_v49  ;;  %v20035_v41 = vld [vmem:[#allocation54_spill] sm:$0xff]  ;;  %v4279_v49 = vmul.f32 %v11164_v47, %v19763_v7  ;;  %v4281_v47 = vmul.f32 %v11167_v57, %v19773_v13  ;;  %v20042_v13 = vld [vmem:[#allocation195_spill] sm:$0xff] }
 0x3e9   : > { %v16110_v18 = vpop.permute.xlu1 %7643  ;;  %11546 = vmatmul.mubr.msk.f32.gmra.mxu1 %vm1718_vm0, %v4593_v29  ;;  %v16113_v12 = vpop.f32.mrf.mxu1  ;;  %v4597_v62 = vsub.f32 %v4277_v52, %v20035_v41  ;;  %v20039_v7 = vld [vmem:[#allocation58_spill] sm:$0xff]  ;;  %v4283_v57 = vmul.f32 %v11170_v22, %v14385_v38  ;;  %v20049_v38 = vld [vmem:[#allocation192_spill] sm:$0xff] }
 0x3ea   : > { %20028 = vst [vmem:[#allocation151_spill] sm:$0xff] %v16110_v18  ;;  %8362 = vrot.lane.b32.xlu1 %v20029_v63, %s11854_s12  ;;  %11548 = vmatprep.mubr.msk.f32.mxu1 %vm1718_vm0, %v4594_v8  ;;  %v3813_v29 = vpop.f32.mrf.mxu0  ;;  %v4598_v50 = vsub.f32 %v4278_v60, %v20036_v58  ;;  %v20050_v22 = vld [vmem:[#allocation62_spill] sm:$0xff] }
 0x3eb   : > { %v16122_v10 = vpop.f32.mrf.mxu1  ;;  %v16124_v2 = vpop.permute.xlu0 %8096 }
 0x3ec   : > { %20032 = vst [vmem:[#allocation132_spill] sm:$0xff] %v16124_v2  ;;  %8372 = vrot.lane.b32.xlu0 %v15502_v54, %s11854_s12  ;;  %v4280_v54 = vmul.f32 %v19780_v26, %v3803_v39  ;;  %v4599_v26 = vsub.f32 %v4279_v49, %v20039_v7 }
 0x3ed   : > { %v16128_v9 = vpop.permute.xlu1 %8091  ;;  %11549 = vmatmul.mubr.msk.f32.gmra.mxu1 %vm1718_vm0, %v4595_v42  ;;  %v16131_v8 = vpop.f32.mrf.mxu1 }
 0x3ee   : > { %20033 = vst [vmem:[#allocation41_spill] sm:$0xff] %v16128_v9  ;;  %8366 = vrot.lane.b32.xlu1 %v20034_v35, %s11854_s12  ;;  %11551 = vmatprep.mubr.msk.f32.mxu1 %vm1718_vm0, %v4596_v30  ;;  %v11173_v42 = vpop.f32.mrf.mxu0  ;;  %v4600_v39 = vsub.f32 %v4280_v54, %v15454_v5 }
 0x3ef   : > { %v16140_v63 = vpop.f32.mrf.mxu1  ;;  %v16142_v48 = vpop.permute.xlu0 %7658 }
 0x3f0   : > { %20037 = vst [vmem:[#allocation33_spill] sm:$0xff] %v16142_v48  ;;  %8376 = vrot.lane.b32.xlu0 %v15525_v33, %s11854_s12  ;;  %v4282_v33 = vmul.f32 %v14366_v17, %v3813_v29  ;;  %v3823_v35 = vpop.f32.mrf.mxu0  ;;  %v20043_v17 = vld [vmem:[#allocation9_spill] sm:$0xff]  ;;  %v20044_v29 = vld [vmem:[#allocation103_spill] sm:$0xff] }
 0x3f1   : > { %v16146_v19 = vpop.permute.xlu1 %7653  ;;  %11552 = vmatmul.mubr.msk.f32.gmra.mxu1 %vm1718_vm0, %v4597_v62  ;;  %v16149_v30 = vpop.f32.mrf.mxu1  ;;  %v4601_v5 = vsub.f32 %v4281_v47, %v20043_v17  ;;  %v4285_v47 = vmul.f32 %v11173_v42, %v20050_v22  ;;  %v20053_v17 = vld [vmem:[#allocation12_spill] sm:$0xff] }
 0x3f2   : > { %20038 = vst [vmem:[#allocation43_spill] sm:$0xff] %v16146_v19  ;;  %8370 = vrot.lane.b32.xlu1 %v15457_v28, %s11854_s12  ;;  %11554 = vmatprep.mubr.msk.f32.mxu1 %vm1718_vm0, %v4598_v50  ;;  %v4602_v62 = vsub.f32 %v4282_v33, %v20044_v29  ;;  %v20046_v50 = vld [vmem:[#allocation211_spill] sm:$0xff]  ;;  %v20056_v42 = vld [vmem:[#allocation196_spill] sm:$0xff] }
 0x3f3   : > { %v16158_v52 = vpop.f32.mrf.mxu1  ;;  %v16160_v60 = vpop.permute.xlu0 %8106 }
 0x3f4   : > { %20040 = vst [vmem:[#allocation51_spill] sm:$0xff] %v16160_v60  ;;  %8380 = vrot.lane.b32.xlu0 %v15544_v6, %s11854_s12  ;;  %v4284_v6 = vmul.f32 %v19795_v32, %v3823_v35  ;;  %v4603_v32 = vsub.f32 %v4283_v57, %v20049_v38  ;;  %v4605_v57 = vsub.f32 %v4285_v47, %v20056_v42  ;;  %v20061_v47 = vld [vmem:[#allocation174_spill] sm:$0xff] }
 0x3f5   : > { %v16164_v41 = vpop.permute.xlu1 %8101  ;;  %11555 = vmatmul.mubr.msk.f32.gmra.mxu1 %vm1718_vm0, %v4599_v26  ;;  %v16167_v28 = vpop.f32.mrf.mxu1  ;;  %v20048_v26 = vld [vmem:[#allocation201_spill] sm:$0xff] }
 0x3f6   : > { %20041 = vst [vmem:[#allocation158_spill] sm:$0xff] %v16164_v41  ;;  %8374 = vrot.lane.b32.xlu1 %v20042_v13, %s11854_s12  ;;  %11557 = vmatprep.mubr.msk.f32.mxu1 %vm1718_vm0, %v4600_v39  ;;  %v20051_v39 = vld [vmem:[#allocation200_spill] sm:$0xff] }
 0x3f7   : > { %v16176_v49 = vpop.f32.mrf.mxu1  ;;  %v16178_v58 = vpop.permute.xlu0 %7668  ;;  %v4604_v33 = vsub.f32 %v4284_v6, %v20051_v39 }
 0x3f8   : > { %20045 = vst [vmem:[#allocation147_spill] sm:$0xff] %v16178_v58  ;;  %8384 = vrot.lane.b32.xlu0 %v20046_v50, %s11854_s12 }
 0x3f9   : > { %v16182_v54 = vpop.permute.xlu1 %7663  ;;  %11558 = vmatmul.mubr.msk.f32.gmra.mxu1 %vm1718_vm0, %v4601_v5  ;;  %v16185_v7 = vpop.f32.mrf.mxu1 }
 0x3fa   : > { %20047 = vst [vmem:[#allocation94_spill] sm:$0xff] %v16182_v54  ;;  %8378 = vrot.lane.b32.xlu1 %v20048_v26, %s11854_s12  ;;  %11560 = vmatprep.mubr.msk.f32.mxu1 %vm1718_vm0, %v4602_v62  ;;  %v20055_v62 = vld [vmem:[#allocation205_spill] sm:$0xff] }
 0x3fb   : > { %v16193_v35 = vpop.f32.mrf.mxu1  ;;  %v16195_v13 = vpop.permute.xlu0 %8116 }
 0x3fc   : > { %20052 = vst [vmem:[#allocation155_spill] sm:$0xff] %v16195_v13  ;;  %8388 = vrot.lane.b32.xlu0 %v20053_v17, %s11854_s12 }
 0x3fd   : > { %v16199_v5 = vpop.permute.xlu1 %8111  ;;  %11561 = vmatmul.mubr.msk.f32.gmra.mxu1 %vm1718_vm0, %v4603_v32  ;;  %v16202_v29 = vpop.f32.mrf.mxu1  ;;  %v20059_v32 = vld [vmem:[#allocation209_spill] sm:$0xff] }
 0x3fe   : > { %20054 = vst [vmem:[#allocation161_spill] sm:$0xff] %v16199_v5  ;;  %8382 = vrot.lane.b32.xlu1 %v20055_v62, %s11854_s12  ;;  %11563 = vmatprep.mubr.msk.f32.mxu1 %vm1718_vm0, %v4604_v33 }
 0x3ff   : > { %v16208_v6 = vpop.f32.mrf.mxu1  ;;  %v16210_v50 = vpop.permute.xlu0 %7678 }
 0x400   : > { %20057 = vst [vmem:[#allocation154_spill] sm:$0xff] %v16210_v50  ;;  %8392 = vrot.lane.b32.xlu0 %v15611_v34, %s11854_s12  ;;  %v20063_v34 = vld [vmem:[#allocation214_spill] sm:$0xff] }
 0x401   : > { %v16214_v26 = vpop.permute.xlu1 %7673  ;;  %11564 = vmatmul.mubr.msk.f32.gmra.mxu1 %vm1718_vm0, %v4605_v57  ;;  %v16217_v38 = vpop.f32.mrf.mxu1 }
 0x402   : > { %20058 = vst [vmem:[#allocation45_spill] sm:$0xff] %v16214_v26  ;;  %8386 = vrot.lane.b32.xlu1 %v20059_v32, %s11854_s12 }
 0x403   : > { %v16221_v22 = vpop.f32.mrf.mxu1  ;;  %v16223_v39 = vpop.permute.xlu0 %8126 }
 0x404   : > { %20060 = vst [vmem:[#allocation47_spill] sm:$0xff] %v16223_v39  ;;  %8396 = vrot.lane.b32.xlu0 %v20061_v47, %s11854_s12  ;;  %v20066_v47 = vld [vmem:[#allocation215_spill] sm:$0xff] }
 0x405   : > { %v16227_v33 = vpop.permute.xlu1 %8121  ;;  %v16229_v17 = vpop.f32.mrf.mxu1 }
 0x406   : > { %20062 = vst [vmem:[#allocation187_spill] sm:$0xff] %v16227_v33  ;;  %8390 = vrot.lane.b32.xlu1 %v20063_v34, %s11854_s12 }
 0x407   : > { %v16233_v62 = vpop.f32.mrf.mxu1  ;;  %v16235_v42 = vpop.permute.xlu0 %7688 }
 0x408   : > { %20064 = vst [vmem:[#allocation165_spill] sm:$0xff] %v16235_v42  ;;  %8400 = vrot.lane.b32.xlu0 %v15653_v59, %s11854_s12  ;;  %v20069_v59 = vld [vmem:[#allocation104_spill] sm:$0xff] }
 0x409   : > { %v16239_v57 = vpop.permute.xlu1 %7683  ;;  %v16241_v32 = vpop.f32.mrf.mxu1 }
 0x40a   : > { %20065 = vst [vmem:[#allocation40_spill] sm:$0xff] %v16239_v57  ;;  %8394 = vrot.lane.b32.xlu1 %v20066_v47, %s11854_s12 }
 0x40b   : > { %v16245_v39 = vpop.f32.mrf.mxu1  ;;  %v16247_v13 = vpop.permute.xlu0 %8136 }
 0x40c   : > { %20067 = vst [vmem:[#allocation96_spill] sm:$0xff] %v16247_v13  ;;  %8404 = vrot.lane.b32.xlu0 %v15673_v25, %s11854_s12  ;;  %v20072_v25 = vld [vmem:[#allocation175_spill] sm:$0xff] }
 0x40d   : > { %v16251_v34 = vpop.permute.xlu1 %8131  ;;  %v16253_v60 = vpop.f32.mrf.mxu1 }
 0x40e   : > { %20068 = vst [vmem:[#allocation48_spill] sm:$0xff] %v16251_v34  ;;  %8398 = vrot.lane.b32.xlu1 %v20069_v59, %s11854_s12 }
 0x40f   : > { %v16257_v33 = vpop.f32.mrf.mxu1  ;;  %v16259_v2 = vpop.permute.xlu0 %7698 }
 0x410   : > { %20070 = vst [vmem:[#allocation168_spill] sm:$0xff] %v16259_v2  ;;  %8408 = vrot.lane.b32.xlu0 %v15695_v4, %s11854_s12  ;;  %v20075_v4 = vld [vmem:[#allocation10_spill] sm:$0xff] }
 0x411   : > { %v16263_v47 = vpop.permute.xlu1 %7693  ;;  %v16265_v13 = vpop.f32.mrf.mxu1 }
 0x412   : > { %20071 = vst [vmem:[#allocation44_spill] sm:$0xff] %v16263_v47  ;;  %8402 = vrot.lane.b32.xlu1 %v20072_v25, %s11854_s12 }
 0x413   : > { %v16269_v34 = vpop.f32.mrf.mxu1  ;;  %v16271_v5 = vpop.permute.xlu0 %8146 }
 0x414   : > { %20073 = vst [vmem:[#allocation97_spill] sm:$0xff] %v16271_v5  ;;  %8412 = vrot.lane.b32.xlu0 %v15715_v44, %s11854_s12  ;;  %v20078_v44 = vld [vmem:[#allocation110_spill] sm:$0xff] }
 0x415   : > { %v16275_v59 = vpop.permute.xlu1 %8141  ;;  %v16277_v41 = vpop.f32.mrf.mxu1 }
 0x416   : > { %20074 = vst [vmem:[#allocation186_spill] sm:$0xff] %v16275_v59  ;;  %8406 = vrot.lane.b32.xlu1 %v20075_v4, %s11854_s12 }
 0x417   : > { %v16281_v9 = vpop.f32.mrf.mxu1  ;;  %v16283_v2 = vpop.permute.xlu0 %7708 }
 0x418   : > { %20076 = vst [vmem:[#allocation167_spill] sm:$0xff] %v16283_v2  ;;  %8416 = vrot.lane.b32.xlu0 %v15737_v56, %s11854_s12  ;;  %v20081_v56 = vld [vmem:[#allocation116_spill] sm:$0xff] }
 0x419   : > { %v16287_v25 = vpop.permute.xlu1 %7703  ;;  %v16289_v5 = vpop.f32.mrf.mxu1 }
 0x41a   : > { %20077 = vst [vmem:[#allocation169_spill] sm:$0xff] %v16287_v25  ;;  %8410 = vrot.lane.b32.xlu1 %v20078_v44, %s11854_s12 }
 0x41b   : > { %v16293_v59 = vpop.f32.mrf.mxu1  ;;  %v16295_v42 = vpop.permute.xlu0 %8156 }
 0x41c   : > { %20079 = vst [vmem:[#allocation170_spill] sm:$0xff] %v16295_v42  ;;  %8420 = vrot.lane.b32.xlu0 %v15757_v37, %s11854_s12  ;;  %v20084_v37 = vld [vmem:[#allocation14_spill] sm:$0xff] }
 0x41d   : > { %v16299_v4 = vpop.permute.xlu1 %8151  ;;  %v16301_v2 = vpop.f32.mrf.mxu1 }
 0x41e   : > { %20080 = vst [vmem:[#allocation54_spill] sm:$0xff] %v16299_v4  ;;  %8414 = vrot.lane.b32.xlu1 %v20081_v56, %s11854_s12 }
 0x41f   : > { %v16305_v25 = vpop.f32.mrf.mxu1  ;;  %v16307_v47 = vpop.permute.xlu0 %7718 }
 0x420   : > { %20082 = vst [vmem:[#allocation100_spill] sm:$0xff] %v16307_v47  ;;  %8424 = vrot.lane.b32.xlu0 %v15779_v0, %s11854_s12  ;;  %v20087_v0 = vld [vmem:[#allocation107_spill] sm:$0xff] }
 0x421   : > { %v16311_v44 = vpop.permute.xlu1 %7713  ;;  %v16313_v42 = vpop.f32.mrf.mxu1 }
 0x422   : > { %20083 = vst [vmem:[#allocation58_spill] sm:$0xff] %v16311_v44  ;;  %8418 = vrot.lane.b32.xlu1 %v20084_v37, %s11854_s12 }
 0x423   : > { %v16317_v4 = vpop.f32.mrf.mxu1  ;;  %v16319_v50 = vpop.permute.xlu0 %8166 }
 0x424   : > { %20085 = vst [vmem:[#allocation195_spill] sm:$0xff] %v16319_v50  ;;  %8428 = vrot.lane.b32.xlu0 %v15799_v45, %s11854_s12  ;;  %v20090_v45 = vld [vmem:[#allocation16_spill] sm:$0xff] }
 0x425   : > { %v16323_v56 = vpop.permute.xlu1 %8161  ;;  %v16325_v47 = vpop.f32.mrf.mxu1 }
 0x426   : > { %20086 = vst [vmem:[#allocation9_spill] sm:$0xff] %v16323_v56  ;;  %8422 = vrot.lane.b32.xlu1 %v20087_v0, %s11854_s12  ;;  %v20092_v0 = vld [vmem:[#allocation3_spill] sm:$0xff] }
 0x427   : > { %v16329_v44 = vpop.f32.mrf.mxu1  ;;  %v16331_v57 = vpop.permute.xlu0 %7728 }
 0x428   : > { %20088 = vst [vmem:[#allocation103_spill] sm:$0xff] %v16331_v57  ;;  %8432 = vrot.lane.b32.xlu0 %v15821_v55, %s11854_s12  ;;  %v20094_v55 = vld [vmem:[#allocation64_spill] sm:$0xff] }
 0x429   : > { %v16335_v37 = vpop.permute.xlu1 %7723  ;;  %v16337_v50 = vpop.f32.mrf.mxu1 }
 0x42a   : > { %20089 = vst [vmem:[#allocation211_spill] sm:$0xff] %v16335_v37  ;;  %8426 = vrot.lane.b32.xlu1 %v20090_v45, %s11854_s12 }
 0x42b   : > { %v16341_v56 = vpop.f32.mrf.mxu1  ;;  %v16343_v58 = vpop.permute.xlu0 %8176 }
 0x42c   : > { %20091 = vst [vmem:[#allocation201_spill] sm:$0xff] %v16343_v58  ;;  %8436 = vrot.lane.b32.xlu0 %v20092_v0, %s11854_s12  ;;  %v20097_v0 = vld [vmem:[#allocation183_spill] sm:$0xff] }
 0x42d   : > { %v16347_v26 = vpop.permute.xlu1 %8171  ;;  %v16349_v57 = vpop.f32.mrf.mxu1 }
 0x42e   : > { %20093 = vst [vmem:[#allocation192_spill] sm:$0xff] %v16347_v26  ;;  %8430 = vrot.lane.b32.xlu1 %v20094_v55, %s11854_s12  ;;  %v20099_v55 = vld [vmem:[#allocation28_spill] sm:$0xff] }
 0x42f   : > { %v16353_v37 = vpop.f32.mrf.mxu1  ;;  %v16355_v48 = vpop.permute.xlu0 %7738 }
 0x430   : > { %20095 = vst [vmem:[#allocation62_spill] sm:$0xff] %v16355_v48  ;;  %8440 = vrot.lane.b32.xlu0 %v15863_v27, %s11854_s12  ;;  %v20101_v27 = vld [vmem:[#allocation65_spill] sm:$0xff] }
 0x431   : > { %v16359_v45 = vpop.permute.xlu1 %7733  ;;  %v16361_v58 = vpop.f32.mrf.mxu1 }
 0x432   : > { %20096 = vst [vmem:[#allocation200_spill] sm:$0xff] %v16359_v45  ;;  %8434 = vrot.lane.b32.xlu1 %v20097_v0, %s11854_s12 }
 0x433   : > { %v16365_v26 = vpop.f32.mrf.mxu1  ;;  %v16367_v54 = vpop.permute.xlu0 %8186 }
 0x434   : > { %20098 = vst [vmem:[#allocation12_spill] sm:$0xff] %v16367_v54  ;;  %8444 = vrot.lane.b32.xlu0 %v20099_v55, %s11854_s12  ;;  %v20104_v55 = vld [vmem:[#allocation27_spill] sm:$0xff] }
 0x435   : > { %v16371_v43 = vpop.permute.xlu1 %8181  ;;  %v16373_v48 = vpop.f32.mrf.mxu1 }
 0x436   : > { %20100 = vst [vmem:[#allocation205_spill] sm:$0xff] %v16371_v43  ;;  %8438 = vrot.lane.b32.xlu1 %v20101_v27, %s11854_s12 }
 0x437   : > { %v16377_v45 = vpop.f32.mrf.mxu1  ;;  %v16379_v19 = vpop.permute.xlu0 %7748 }
 0x438   : > { %20102 = vst [vmem:[#allocation196_spill] sm:$0xff] %v16379_v19  ;;  %8448 = vrot.lane.b32.xlu0 %v15905_v24, %s11854_s12  ;;  %v20108_v19 = vld [vmem:[#allocation131_spill] sm:$0xff] }
 0x439   : > { %v16383_v0 = vpop.permute.xlu1 %7743  ;;  %v16385_v54 = vpop.f32.mrf.mxu1 }
 0x43a   : > { %20103 = vst [vmem:[#allocation209_spill] sm:$0xff] %v16383_v0  ;;  %8442 = vrot.lane.b32.xlu1 %v20104_v55, %s11854_s12 }
 0x43b   : > { %v16389_v43 = vpop.f32.mrf.mxu1  ;;  %v16391_v18 = vpop.permute.xlu0 %8196 }
 0x43c   : > { %20105 = vst [vmem:[#allocation174_spill] sm:$0xff] %v16389_v43  ;;  %20106 = vst [vmem:[#allocation214_spill] sm:$0xff] %v16391_v18  ;;  %8452 = vrot.lane.b32.xlu0 %v15925_v36, %s11854_s12  ;;  %v20111_v43 = vld [vmem:[#allocation86_spill] sm:$0xff] }
 0x43d   : > { %v16395_v27 = vpop.permute.xlu1 %8191  ;;  %v16399_v24 = vpop.f32.mrf.mxu1 }
 0x43e   : > { %20107 = vst [vmem:[#allocation215_spill] sm:$0xff] %v16395_v27  ;;  %8446 = vrot.lane.b32.xlu1 %v20108_v19, %s11854_s12  ;;  %v20114_v27 = vld [vmem:[#allocation120_spill] sm:$0xff] }
 0x43f   : > { %v16401_v0 = vpop.permute.xlu0 %8332  ;;  %v16409_v18 = vpop.f32.mrf.mxu1 }
 0x440   : > { %20109 = vst [vmem:[#allocation104_spill] sm:$0xff] %v16401_v0  ;;  %8456 = vrot.lane.b32.xlu0 %v15943_v31, %s11854_s12 }
 0x441   : > { %v16405_v55 = vpop.permute.xlu1 %7753  ;;  %v16419_v0 = vpop.f32.mrf.mxu1 }
 0x442   : > { %20110 = vst [vmem:[#allocation175_spill] sm:$0xff] %v16405_v55  ;;  %8450 = vrot.lane.b32.xlu1 %v20111_v43, %s11854_s12 }
 0x443   : > { %v16411_v36 = vpop.permute.xlu0 %8336  ;;  %v16429_v55 = vpop.f32.mrf.mxu1 }
 0x444   : > { %20112 = vst [vmem:[#allocation10_spill] sm:$0xff] %v16411_v36  ;;  %6860 = vrot.lane.b32.xlu0 %v15952_v51, %s11854_s12  ;;  %v20121_v36 = vld [vmem:[#allocation75_spill] sm:$0xff] }
 0x445   : > { %v16415_v19 = vpop.permute.xlu1 %8201 }
 0x446   : > { %20113 = vst [vmem:[#allocation110_spill] sm:$0xff] %v16415_v19  ;;  %8454 = vrot.lane.b32.xlu1 %v20114_v27, %s11854_s12  ;;  %v20118_v19 = vld [vmem:[#allocation136_spill] sm:$0xff] }
 0x447   : > { %v16421_v31 = vpop.permute.xlu0 %8340 }
 0x448   : > { %20115 = vst [vmem:[#allocation116_spill] sm:$0xff] %v16421_v31  ;;  %6864 = vrot.lane.b32.xlu0 %v15971_v14, %s11854_s12  ;;  %v16439_v31 = vpop.f32.mrf.mxu1 }
 0x449   : > { %v16425_v43 = vpop.permute.xlu1 %8334 }
 0x44a   : > { %8458 = vrot.lane.b32.xlu1 %v15932_v20, %s11854_s12 }
 0x44b   : > { %v16431_v51 = vpop.permute.xlu0 %8344 }
 0x44c   : > { %20116 = vst [vmem:[#allocation14_spill] sm:$0xff] %v16431_v51  ;;  %6868 = vrot.lane.b32.xlu0 %v15987_v16, %s11854_s12  ;;  %v16449_v51 = vpop.f32.mrf.mxu1 }
 0x44d   : > { %v16435_v27 = vpop.permute.xlu1 %8338 }
 0x44e   : > { %20117 = vst [vmem:[#allocation107_spill] sm:$0xff] %v16435_v27  ;;  %6858 = vrot.lane.b32.xlu1 %v20118_v19, %s11854_s12  ;;  %v20123_v27 = vld [vmem:[#allocation125_spill] sm:$0xff] }
 0x44f   : > { %v16441_v14 = vpop.permute.xlu0 %8348 }
 0x450   : > { %20119 = vst [vmem:[#allocation16_spill] sm:$0xff] %v16441_v14  ;;  %6872 = vrot.lane.b32.xlu0 %v16005_v21, %s11854_s12  ;;  %v16459_v14 = vpop.f32.mrf.mxu1 }
 0x451   : > { %v16445_v20 = vpop.permute.xlu1 %8342 }
 0x452   : > { %20120 = vst [vmem:[#allocation3_spill] sm:$0xff] %v16445_v20  ;;  %6862 = vrot.lane.b32.xlu1 %v20121_v36, %s11854_s12  ;;  %v20126_v20 = vld [vmem:[#allocation77_spill] sm:$0xff] }
 0x453   : > { %v16451_v16 = vpop.permute.xlu0 %8352 }
 0x454   : > { %20122 = vst [vmem:[#allocation64_spill] sm:$0xff] %v16451_v16  ;;  %6876 = vrot.lane.b32.xlu0 %v16023_v23, %s11854_s12  ;;  %v16469_v16 = vpop.f32.mrf.mxu1 }
 0x455   : > { %v16455_v19 = vpop.permute.xlu1 %8346 }
 0x456   : > { %6866 = vrot.lane.b32.xlu1 %v20123_v27, %s11854_s12 }
 0x457   : > { %v16461_v21 = vpop.permute.xlu0 %8356 }
 0x458   : > { %20124 = vst [vmem:[#allocation183_spill] sm:$0xff] %v16461_v21  ;;  %6880 = vrot.lane.b32.xlu0 %v16041_v46, %s11854_s12  ;;  %v16479_v21 = vpop.f32.mrf.mxu1 }
 0x459   : > { %v16465_v36 = vpop.permute.xlu1 %8350 }
 0x45a   : > { %20125 = vst [vmem:[#allocation28_spill] sm:$0xff] %v16465_v36  ;;  %6870 = vrot.lane.b32.xlu1 %v20126_v20, %s11854_s12  ;;  %v20131_v36 = vld [vmem:[#allocation91_spill] sm:$0xff] }
 0x45b   : > { %v16471_v23 = vpop.permute.xlu0 %8360 }
 0x45c   : > { %20127 = vst [vmem:[#allocation65_spill] sm:$0xff] %v16471_v23  ;;  %6884 = vrot.lane.b32.xlu0 %v16059_v53, %s11854_s12  ;;  %v16489_v23 = vpop.f32.mrf.mxu1 }
 0x45d   : > { %v16475_v27 = vpop.permute.xlu1 %8354 }
 0x45e   : > { %20128 = vst [vmem:[#allocation27_spill] sm:$0xff] %v16475_v27  ;;  %6874 = vrot.lane.b32.xlu1 %v16032_v40, %s11854_s12 }
 0x45f   : > { %v16481_v46 = vpop.permute.xlu0 %8364 }
 0x460   : > { %20129 = vst [vmem:[#allocation131_spill] sm:$0xff] %v16481_v46  ;;  %6888 = vrot.lane.b32.xlu0 %v16077_v15, %s11854_s12  ;;  %v16499_v46 = vpop.f32.mrf.mxu1 }
 0x461   : > { %v16485_v20 = vpop.permute.xlu1 %8358 }
 0x462   : > { %20130 = vst [vmem:[#allocation86_spill] sm:$0xff] %v16485_v20  ;;  %6878 = vrot.lane.b32.xlu1 %v20131_v36, %s11854_s12 }
 0x463   : > { %v16491_v53 = vpop.permute.xlu0 %8368 }
 0x464   : > { %20132 = vst [vmem:[#allocation120_spill] sm:$0xff] %v16491_v53  ;;  %6892 = vrot.lane.b32.xlu0 %v16095_v61, %s11854_s12  ;;  %v16509_v53 = vpop.f32.mrf.mxu1 }
 0x465   : > { %v16495_v40 = vpop.permute.xlu1 %8362 }
 0x466   : > { %20133 = vst [vmem:[#allocation136_spill] sm:$0xff] %v16495_v40  ;;  %6882 = vrot.lane.b32.xlu1 %v16068_v3, %s11854_s12 }
 0x467   : > { %v16501_v15 = vpop.permute.xlu0 %8372 }
 0x468   : > { %20134 = vst [vmem:[#allocation75_spill] sm:$0xff] %v16501_v15  ;;  %6896 = vrot.lane.b32.xlu0 %v16113_v12, %s11854_s12  ;;  %v16519_v15 = vpop.f32.mrf.mxu1 }
 0x469   : > { %v16505_v36 = vpop.permute.xlu1 %8366 }
 0x46a   : > { %20135 = vst [vmem:[#allocation125_spill] sm:$0xff] %v16505_v36  ;;  %6886 = vrot.lane.b32.xlu1 %v16086_v11, %s11854_s12  ;;  %v20179_v36 = vld [vmem:[#allocation174_spill] sm:$0xff] }
 0x46b   : > { %v16511_v61 = vpop.permute.xlu0 %8376 }
 0x46c   : > { %20136 = vst [vmem:[#allocation77_spill] sm:$0xff] %v16511_v61  ;;  %6900 = vrot.lane.b32.xlu0 %v16131_v8, %s11854_s12  ;;  %v16529_v61 = vpop.f32.mrf.mxu1 }
 0x46d   : > { %v16515_v3 = vpop.permute.xlu1 %8370 }
 0x46e   : > { %20137 = vst [vmem:[#allocation91_spill] sm:$0xff] %v16515_v3  ;;  %6890 = vrot.lane.b32.xlu1 %v16104_v1, %s11854_s12 }
 0x46f   : > { %v16521_v12 = vpop.permute.xlu0 %8380 }
 0x470   : > { %20138 = vst [vmem:[#allocation216_spill] sm:$0xff] %v16521_v12  ;;  %6904 = vrot.lane.b32.xlu0 %v16149_v30, %s11854_s12  ;;  %v16539_v12 = vpop.f32.mrf.mxu1 }
 0x471   : > { %v16525_v11 = vpop.permute.xlu1 %8374 }
 0x472   : > { %20139 = vst [vmem:[#allocation217_spill] sm:$0xff] %v16525_v11  ;;  %6894 = vrot.lane.b32.xlu1 %v16122_v10, %s11854_s12 }
 0x473   : > { %v16531_v8 = vpop.permute.xlu0 %8384 }
 0x474   : > { %20140 = vst [vmem:[#allocation218_spill] sm:$0xff] %v16531_v8  ;;  %6908 = vrot.lane.b32.xlu0 %v16167_v28, %s11854_s12  ;;  %v16549_v8 = vpop.f32.mrf.mxu1 }
 0x475   : > { %v16535_v1 = vpop.permute.xlu1 %8378 }
 0x476   : > { %20141 = vst [vmem:[#allocation219_spill] sm:$0xff] %v16535_v1  ;;  %6898 = vrot.lane.b32.xlu1 %v16140_v63, %s11854_s12 }
 0x477   : > { %v16541_v30 = vpop.permute.xlu0 %8388 }
 0x478   : > { %20142 = vst [vmem:[#allocation220_spill] sm:$0xff] %v16541_v30  ;;  %6912 = vrot.lane.b32.xlu0 %v16185_v7, %s11854_s12  ;;  %v16559_v30 = vpop.f32.mrf.mxu1 }
 0x479   : > { %v16545_v10 = vpop.permute.xlu1 %8382 }
 0x47a   : > { %20143 = vst [vmem:[#allocation221_spill] sm:$0xff] %v16545_v10  ;;  %6902 = vrot.lane.b32.xlu1 %v16158_v52, %s11854_s12 }
 0x47b   : > { %v16551_v28 = vpop.permute.xlu0 %8392 }
 0x47c   : > { %20144 = vst [vmem:[#allocation222_spill] sm:$0xff] %v16551_v28  ;;  %6916 = vrot.lane.b32.xlu0 %v16202_v29, %s11854_s12  ;;  %v16569_v28 = vpop.f32.mrf.mxu1 }
 0x47d   : > { %v16555_v63 = vpop.permute.xlu1 %8386 }
 0x47e   : > { %20145 = vst [vmem:[#allocation223_spill] sm:$0xff] %v16555_v63  ;;  %6906 = vrot.lane.b32.xlu1 %v16176_v49, %s11854_s12 }
 0x47f   : > { %v16561_v7 = vpop.permute.xlu0 %8396 }
 0x480   : > { %20146 = vst [vmem:[#allocation224_spill] sm:$0xff] %v16561_v7  ;;  %6920 = vrot.lane.b32.xlu0 %v16217_v38, %s11854_s12  ;;  %v16579_v7 = vpop.f32.mrf.mxu1 }
 0x481   : > { %v16565_v52 = vpop.permute.xlu1 %8390 }
 0x482   : > { %20147 = vst [vmem:[#allocation225_spill] sm:$0xff] %v16565_v52  ;;  %6910 = vrot.lane.b32.xlu1 %v16193_v35, %s11854_s12 }
 0x483   : > { %v16571_v29 = vpop.permute.xlu0 %8400 }
 0x484   : > { %20148 = vst [vmem:[#allocation226_spill] sm:$0xff] %v16571_v29  ;;  %6924 = vrot.lane.b32.xlu0 %v16229_v17, %s11854_s12  ;;  %v16589_v29 = vpop.f32.mrf.mxu1 }
 0x485   : > { %v16575_v49 = vpop.permute.xlu1 %8394 }
 0x486   : > { %20149 = vst [vmem:[#allocation227_spill] sm:$0xff] %v16575_v49  ;;  %6914 = vrot.lane.b32.xlu1 %v16208_v6, %s11854_s12 }
 0x487   : > { %v16581_v38 = vpop.permute.xlu0 %8404 }
 0x488   : > { %20150 = vst [vmem:[#allocation228_spill] sm:$0xff] %v16581_v38  ;;  %6928 = vrot.lane.b32.xlu0 %v16241_v32, %s11854_s12  ;;  %v16599_v38 = vpop.f32.mrf.mxu1 }
 0x489   : > { %v16585_v35 = vpop.permute.xlu1 %8398 }
 0x48a   : > { %20151 = vst [vmem:[#allocation229_spill] sm:$0xff] %v16585_v35  ;;  %6918 = vrot.lane.b32.xlu1 %v16221_v22, %s11854_s12 }
 0x48b   : > { %v16591_v17 = vpop.permute.xlu0 %8408 }
 0x48c   : > { %20152 = vst [vmem:[#allocation230_spill] sm:$0xff] %v16591_v17  ;;  %6932 = vrot.lane.b32.xlu0 %v16253_v60, %s11854_s12  ;;  %v16609_v17 = vpop.f32.mrf.mxu1 }
 0x48d   : > { %v16595_v6 = vpop.permute.xlu1 %8402 }
 0x48e   : > { %20153 = vst [vmem:[#allocation231_spill] sm:$0xff] %v16595_v6  ;;  %6922 = vrot.lane.b32.xlu1 %v16233_v62, %s11854_s12  ;;  %v16619_v6 = vpop.f32.mrf.mxu1 }
 0x48f   : > { %v16601_v32 = vpop.permute.xlu0 %8412 }
 0x490   : > { %20154 = vst [vmem:[#allocation232_spill] sm:$0xff] %v16601_v32  ;;  %6936 = vrot.lane.b32.xlu0 %v16265_v13, %s11854_s12 }
 0x491   : > { %v16605_v22 = vpop.permute.xlu1 %8406 }
 0x492   : > { %20155 = vst [vmem:[#allocation233_spill] sm:$0xff] %v16605_v22  ;;  %6926 = vrot.lane.b32.xlu1 %v16245_v39, %s11854_s12  ;;  %v16629_v22 = vpop.f32.mrf.mxu1 }
 0x493   : > { %v16611_v60 = vpop.permute.xlu0 %8416 }
 0x494   : > { %20156 = vst [vmem:[#allocation234_spill] sm:$0xff] %v16611_v60  ;;  %6940 = vrot.lane.b32.xlu0 %v16277_v41, %s11854_s12 }
 0x495   : > { %v16615_v62 = vpop.permute.xlu1 %8410 }
 0x496   : > { %20157 = vst [vmem:[#allocation235_spill] sm:$0xff] %v16615_v62  ;;  %6930 = vrot.lane.b32.xlu1 %v16257_v33, %s11854_s12  ;;  %v16639_v62 = vpop.f32.mrf.mxu1 }
 0x497   : > { %v16621_v13 = vpop.permute.xlu0 %8420 }
 0x498   : > { %20158 = vst [vmem:[#allocation236_spill] sm:$0xff] %v16621_v13  ;;  %6944 = vrot.lane.b32.xlu0 %v16289_v5, %s11854_s12  ;;  %v16649_v35 = vpop.f32.mrf.mxu1 }
 0x499   : > { %v16625_v39 = vpop.permute.xlu1 %8414 }
 0x49a   : > { %20159 = vst [vmem:[#allocation237_spill] sm:$0xff] %v16625_v39  ;;  %6934 = vrot.lane.b32.xlu1 %v16269_v34, %s11854_s12  ;;  %v16659_v49 = vpop.f32.mrf.mxu1 }
 0x49b   : > { %v16631_v41 = vpop.permute.xlu0 %8424 }
 0x49c   : > { %20160 = vst [vmem:[#allocation238_spill] sm:$0xff] %v16631_v41  ;;  %6948 = vrot.lane.b32.xlu0 %v16301_v2, %s11854_s12  ;;  %v16669_v52 = vpop.f32.mrf.mxu1 }
 0x49d   : > { %v16635_v33 = vpop.permute.xlu1 %8418 }
 0x49e   : > { %20161 = vst [vmem:[#allocation239_spill] sm:$0xff] %v16635_v33  ;;  %6938 = vrot.lane.b32.xlu1 %v16281_v9, %s11854_s12  ;;  %v16679_v63 = vpop.f32.mrf.mxu1 }
 0x49f   : > { %v16641_v5 = vpop.permute.xlu0 %8428 }
 0x4a0   : > { %20162 = vst [vmem:[#allocation240_spill] sm:$0xff] %v16641_v5  ;;  %6952 = vrot.lane.b32.xlu0 %v16313_v42, %s11854_s12  ;;  %v16689_v10 = vpop.f32.mrf.mxu1 }
 0x4a1   : > { %v16645_v34 = vpop.permute.xlu1 %8422 }
 0x4a2   : > { %20163 = vst [vmem:[#allocation241_spill] sm:$0xff] %v16645_v34  ;;  %6942 = vrot.lane.b32.xlu1 %v16293_v59, %s11854_s12  ;;  %v16699_v1 = vpop.f32.mrf.mxu1 }
 0x4a3   : > { %v16651_v2 = vpop.permute.xlu0 %8432 }
 0x4a4   : > { %20164 = vst [vmem:[#allocation242_spill] sm:$0xff] %v16651_v2  ;;  %6956 = vrot.lane.b32.xlu0 %v16325_v47, %s11854_s12  ;;  %v16709_v11 = vpop.f32.mrf.mxu1 }
 0x4a5   : > { %v16655_v9 = vpop.permute.xlu1 %8426 }
 0x4a6   : > { %20165 = vst [vmem:[#allocation243_spill] sm:$0xff] %v16655_v9  ;;  %6946 = vrot.lane.b32.xlu1 %v16305_v25, %s11854_s12  ;;  %v16719_v3 = vpop.f32.mrf.mxu1 }
 0x4a7   : > { %v16661_v42 = vpop.permute.xlu0 %8436 }
 0x4a8   : > { %20166 = vst [vmem:[#allocation244_spill] sm:$0xff] %v16661_v42  ;;  %6960 = vrot.lane.b32.xlu0 %v16337_v50, %s11854_s12 }
 0x4a9   : > { %v16665_v59 = vpop.permute.xlu1 %8430 }
 0x4aa   : > { %20167 = vst [vmem:[#allocation245_spill] sm:$0xff] %v16665_v59  ;;  %6950 = vrot.lane.b32.xlu1 %v16317_v4, %s11854_s12 }
 0x4ab   : > { %v16671_v47 = vpop.permute.xlu0 %8440 }
 0x4ac   : > { %20168 = vst [vmem:[#allocation246_spill] sm:$0xff] %v16671_v47  ;;  %6964 = vrot.lane.b32.xlu0 %v16349_v57, %s11854_s12 }
 0x4ad   : > { %v16675_v25 = vpop.permute.xlu1 %8434 }
 0x4ae   : > { %20169 = vst [vmem:[#allocation247_spill] sm:$0xff] %v16675_v25  ;;  %6954 = vrot.lane.b32.xlu1 %v16329_v44, %s11854_s12 }
 0x4af   : > { %v16681_v50 = vpop.permute.xlu0 %8444 }
 0x4b0   : > { %20170 = vst [vmem:[#allocation248_spill] sm:$0xff] %v16681_v50  ;;  %6968 = vrot.lane.b32.xlu0 %v16361_v58, %s11854_s12 }
 0x4b1   : > { %v16685_v4 = vpop.permute.xlu1 %8438 }
 0x4b2   : > { %20171 = vst [vmem:[#allocation249_spill] sm:$0xff] %v16685_v4  ;;  %6958 = vrot.lane.b32.xlu1 %v16341_v56, %s11854_s12 }
 0x4b3   : > { %v16691_v57 = vpop.permute.xlu0 %8448 }
 0x4b4   : > { %20172 = vst [vmem:[#allocation250_spill] sm:$0xff] %v16691_v57  ;;  %6972 = vrot.lane.b32.xlu0 %v16373_v48, %s11854_s12 }
 0x4b5   : > { %v16695_v44 = vpop.permute.xlu1 %8442 }
 0x4b6   : > { %20173 = vst [vmem:[#allocation251_spill] sm:$0xff] %v16695_v44  ;;  %6962 = vrot.lane.b32.xlu1 %v16353_v37, %s11854_s12 }
 0x4b7   : > { %v16701_v58 = vpop.permute.xlu0 %8452 }
 0x4b8   : > { %20174 = vst [vmem:[#allocation252_spill] sm:$0xff] %v16701_v58  ;;  %6976 = vrot.lane.b32.xlu0 %v16385_v54, %s11854_s12 }
 0x4b9   : > { %v16705_v56 = vpop.permute.xlu1 %8446 }
 0x4ba   : > { %20175 = vst [vmem:[#allocation253_spill] sm:$0xff] %v16705_v56  ;;  %6966 = vrot.lane.b32.xlu1 %v16365_v26, %s11854_s12 }
 0x4bb   : > { %v16711_v48 = vpop.permute.xlu0 %8456 }
 0x4bc   : > { %20176 = vst [vmem:[#allocation254_spill] sm:$0xff] %v16711_v48  ;;  %6980 = vrot.lane.b32.xlu0 %v16399_v24, %s11854_s12  ;;  %v16729_v48 = vpop.f32.mrf.mxu1 }
 0x4bd   : > { %v16715_v37 = vpop.permute.xlu1 %8450 }
 0x4be   : > { %20177 = vst [vmem:[#allocation255_spill] sm:$0xff] %v16715_v37  ;;  %6970 = vrot.lane.b32.xlu1 %v16377_v45, %s11854_s12  ;;  %v16739_v58 = vpop.f32.mrf.mxu1 }
 0x4bf   : > { %v16721_v54 = vpop.permute.xlu0 %6860 }
 0x4c0   : > { %6984 = vrot.lane.b32.xlu0 %v16419_v0, %s11854_s12 }
 0x4c1   : > { %v16725_v26 = vpop.permute.xlu1 %8454 }
 0x4c2   : > { %20178 = vst [vmem:[#allocation256_spill] sm:$0xff] %v16725_v26  ;;  %6974 = vrot.lane.b32.xlu1 %v20179_v36, %s11854_s12  ;;  %v16749_v26 = vpop.f32.mrf.mxu1 }
 0x4c3   : > { %v16731_v24 = vpop.permute.xlu0 %6864 }
 0x4c4   : > { %7116 = vrot.lane.b32.xlu0 %v16439_v31, %s11855_s13 }
 0x4c5   : > { %v16735_v45 = vpop.permute.xlu1 %8458 }
 0x4c6   : > { %20180 = vst [vmem:[#allocation174_spill] sm:$0xff] %v16735_v45  ;;  %6978 = vrot.lane.b32.xlu1 %v16409_v18, %s11854_s12  ;;  %v16759_v45 = vpop.f32.mrf.mxu1 }
 0x4c7   : > { %v16741_v0 = vpop.permute.xlu0 %6868 }
 0x4c8   : > { %7120 = vrot.lane.b32.xlu0 %v16459_v14, %s11855_s13  ;;  %v16769_v37 = vpop.f32.mrf.mxu1 }
 0x4c9   : > { %v16745_v36 = vpop.permute.xlu1 %6858 }
 0x4ca   : > { %6982 = vrot.lane.b32.xlu1 %v16429_v55, %s11854_s12  ;;  %v11523_v57 = vpop.f32.mrf.mxu1 }
 0x4cb   : > { %v16751_v31 = vpop.permute.xlu0 %6872 }
 0x4cc   : > { %7124 = vrot.lane.b32.xlu0 %v16479_v21, %s11855_s13 }
 0x4cd   : > { %v16755_v18 = vpop.permute.xlu1 %6862 }
 0x4ce   : > { %7114 = vrot.lane.b32.xlu1 %v16449_v51, %s11855_s13 }
 0x4cf   : > { %v16761_v14 = vpop.permute.xlu0 %6876 }
 0x4d0   : > { %7128 = vrot.lane.b32.xlu0 %v16499_v46, %s11855_s13 }
 0x4d1   : > { %v16765_v55 = vpop.permute.xlu1 %6866 }
 0x4d2   : > { %7118 = vrot.lane.b32.xlu1 %v16469_v16, %s11855_s13  ;;  %v16787_v16 = vpop.f32.mrf.mxu1 }
 0x4d3   : > { %v16771_v21 = vpop.permute.xlu0 %6880 }
 0x4d4   : > { %7132 = vrot.lane.b32.xlu0 %v16519_v15, %s11855_s13 }
 0x4d5   : > { %v16775_v51 = vpop.permute.xlu1 %6870 }
 0x4d6   : > { %7122 = vrot.lane.b32.xlu1 %v16489_v23, %s11855_s13  ;;  %v11526_v23 = vpop.f32.mrf.mxu1 }
 0x4d7   : > { %v16779_v56 = vpop.permute.xlu0 %6884 }
 0x4d8   : > { %7136 = vrot.lane.b32.xlu0 %v16539_v12, %s11855_s13 }
 0x4d9   : > { %v16783_v46 = vpop.permute.xlu1 %6874 }
 0x4da   : > { %7126 = vrot.lane.b32.xlu1 %v16509_v53, %s11855_s13  ;;  %v16805_v53 = vpop.f32.mrf.mxu1 }
 0x4db   : > { %v16789_v50 = vpop.permute.xlu0 %6888 }
 0x4dc   : > { %7140 = vrot.lane.b32.xlu0 %v16559_v30, %s11855_s13 }
 0x4dd   : > { %v16793_v15 = vpop.permute.xlu1 %6878 }
 0x4de   : > { %7130 = vrot.lane.b32.xlu1 %v16529_v61, %s11855_s13  ;;  %v11529_v61 = vpop.f32.mrf.mxu1 }
 0x4df   : > { %v16797_v44 = vpop.permute.xlu0 %6892 }
 0x4e0   : > { %7144 = vrot.lane.b32.xlu0 %v16579_v7, %s11855_s13 }
 0x4e1   : > { %v16801_v12 = vpop.permute.xlu1 %6882 }
 0x4e2   : > { %7134 = vrot.lane.b32.xlu1 %v16549_v8, %s11855_s13  ;;  %v6595_v8 = vpop.f32.mrf.mxu1 }
 0x4e3   : > { %v16807_v47 = vpop.permute.xlu0 %6896 }
 0x4e4   : > { %7148 = vrot.lane.b32.xlu0 %v16599_v38, %s11855_s13 }
 0x4e5   : > { %v16811_v30 = vpop.permute.xlu1 %6886 }
 0x4e6   : > { %7138 = vrot.lane.b32.xlu1 %v16569_v28, %s11855_s13  ;;  %v11532_v28 = vpop.f32.mrf.mxu1 }
 0x4e7   : > { %v16815_v4 = vpop.permute.xlu0 %6900 }
 0x4e8   : > { %7152 = vrot.lane.b32.xlu0 %v16619_v6, %s11855_s13 }
 0x4e9   : > { %v16819_v7 = vpop.permute.xlu1 %6890 }
 0x4ea   : > { %7142 = vrot.lane.b32.xlu1 %v16589_v29, %s11855_s13  ;;  %v6605_v29 = vpop.f32.mrf.mxu1 }
 0x4eb   : > { %v16823_v42 = vpop.permute.xlu0 %6904 }
 0x4ec   : > { %7156 = vrot.lane.b32.xlu0 %v16639_v62, %s11855_s13 }
 0x4ed   : > { %v16827_v38 = vpop.permute.xlu1 %6894 }
 0x4ee   : > { %7146 = vrot.lane.b32.xlu1 %v16609_v17, %s11855_s13  ;;  %v11535_v17 = vpop.f32.mrf.mxu1 }
 0x4ef   : > { %v16831_v25 = vpop.permute.xlu0 %6908 }
 0x4f0   : > { %7160 = vrot.lane.b32.xlu0 %v16659_v49, %s11855_s13 }
 0x4f1   : > { %v16835_v6 = vpop.permute.xlu1 %6898 }
 0x4f2   : > { %7150 = vrot.lane.b32.xlu1 %v16629_v22, %s11855_s13  ;;  %v6615_v22 = vpop.f32.mrf.mxu1 }
 0x4f3   : > { %v16839_v2 = vpop.permute.xlu0 %6912 }
 0x4f4   : > { %7164 = vrot.lane.b32.xlu0 %v16679_v63, %s11855_s13 }
 0x4f5   : > { %v16843_v62 = vpop.permute.xlu1 %6902 }
 0x4f6   : > { %7154 = vrot.lane.b32.xlu1 %v16649_v35, %s11855_s13  ;;  %v11538_v35 = vpop.f32.mrf.mxu1 }
 0x4f7   : > { %v16847_v59 = vpop.permute.xlu0 %6916 }
 0x4f8   : > { %7168 = vrot.lane.b32.xlu0 %v16699_v1, %s11855_s13 }
 0x4f9   : > { %v16851_v49 = vpop.permute.xlu1 %6906 }
 0x4fa   : > { %7158 = vrot.lane.b32.xlu1 %v16669_v52, %s11855_s13  ;;  %v6625_v52 = vpop.f32.mrf.mxu1 }
 0x4fb   : > { %v16855_v5 = vpop.permute.xlu0 %6920 }
 0x4fc   : > { %7172 = vrot.lane.b32.xlu0 %v16719_v3, %s11855_s13 }
 0x4fd   : > { %v16859_v63 = vpop.permute.xlu1 %6910 }
 0x4fe   : > { %7162 = vrot.lane.b32.xlu1 %v16689_v10, %s11855_s13  ;;  %v11541_v10 = vpop.f32.mrf.mxu1 }
 0x4ff   : > { %v16863_v9 = vpop.permute.xlu0 %6924 }
 0x500   : > { %7176 = vrot.lane.b32.xlu0 %v16739_v58, %s11855_s13 }
 0x501   : > { %v16867_v1 = vpop.permute.xlu1 %6914 }
 0x502   : > { %7166 = vrot.lane.b32.xlu1 %v16709_v11, %s11855_s13  ;;  %v6635_v11 = vpop.f32.mrf.mxu1 }
 0x503   : > { %v16871_v41 = vpop.permute.xlu0 %6928 }
 0x504   : > { %7180 = vrot.lane.b32.xlu0 %v16759_v45, %s11855_s13 }
 0x505   : > { %v16875_v3 = vpop.permute.xlu1 %6918 }
 0x506   : > { %7170 = vrot.lane.b32.xlu1 %v16729_v48, %s11855_s13  ;;  %v11544_v48 = vpop.f32.mrf.mxu1 }
 0x507   : > { %v16879_v34 = vpop.permute.xlu0 %6932 }
 0x508   : > { %7184 = vrot.lane.b32.xlu0 %v11523_v57, %s11855_s13 }
 0x509   : > { %v16882_v58 = vpop.permute.xlu1 %6922 }
 0x50a   : > { %7174 = vrot.lane.b32.xlu1 %v16749_v26, %s11855_s13  ;;  %v6645_v26 = vpop.f32.mrf.mxu1 }
 0x50b   : > { %v16886_v13 = vpop.permute.xlu0 %6936 }
 0x50c   : > { %20181 = vst [vmem:[#allocation257_spill] sm:$0xff] %v16886_v13  ;;  %7188 = vrot.lane.b32.xlu0 %v11526_v23, %s11855_s13 }
 0x50d   : > { %v16889_v45 = vpop.permute.xlu1 %6926 }
 0x50e   : > { %7178 = vrot.lane.b32.xlu1 %v16769_v37, %s11855_s13  ;;  %v11547_v37 = vpop.f32.mrf.mxu1 }
 0x50f   : > { %v16893_v33 = vpop.permute.xlu0 %6940 }
 0x510   : > { %20182 = vst [vmem:[#allocation258_spill] sm:$0xff] %v16893_v33  ;;  %7192 = vrot.lane.b32.xlu0 %v11529_v61, %s11855_s13 }
 0x511   : > { %v16896_v57 = vpop.permute.xlu1 %6930 }
 0x512   : > { %20183 = vst [vmem:[#allocation259_spill] sm:$0xff] %v16896_v57  ;;  %7182 = vrot.lane.b32.xlu1 %v16787_v16, %s11855_s13  ;;  %v6655_v16 = vpop.f32.mrf.mxu1 }
 0x513   : > { %v16900_v60 = vpop.permute.xlu0 %6944 }
 0x514   : > { %20184 = vst [vmem:[#allocation260_spill] sm:$0xff] %v16900_v60  ;;  %7196 = vrot.lane.b32.xlu0 %v11532_v28, %s11855_s13  ;;  %v11550_v40 = vpop.f32.mrf.mxu1 }
 0x515   : > { %v16903_v23 = vpop.permute.xlu1 %6934 }
 0x516   : > { %20185 = vst [vmem:[#allocation261_spill] sm:$0xff] %v16903_v23  ;;  %7186 = vrot.lane.b32.xlu1 %v16805_v53, %s11855_s13 }
 0x517   : > { %v16907_v39 = vpop.permute.xlu0 %6948 }
 0x518   : > { %20186 = vst [vmem:[#allocation262_spill] sm:$0xff] %v16907_v39  ;;  %7200 = vrot.lane.b32.xlu0 %v11535_v17, %s11855_s13  ;;  %v6665_v17 = vpop.f32.mrf.mxu1 }
 0x519   : > { %v16910_v61 = vpop.permute.xlu1 %6938 }
 0x51a   : > { %20187 = vst [vmem:[#allocation263_spill] sm:$0xff] %v16910_v61  ;;  %7190 = vrot.lane.b32.xlu1 %v6595_v8, %s11855_s13 }
 0x51b   : > { %v16913_v32 = vpop.permute.xlu0 %6952 }
 0x51c   : > { %20188 = vst [vmem:[#allocation264_spill] sm:$0xff] %v16913_v32  ;;  %7204 = vrot.lane.b32.xlu0 %v11538_v35, %s11855_s13  ;;  %v11553_v35 = vpop.f32.mrf.mxu1 }
 0x51d   : > { %v16916_v28 = vpop.permute.xlu1 %6942 }
 0x51e   : > { %20189 = vst [vmem:[#allocation265_spill] sm:$0xff] %v16916_v28  ;;  %7194 = vrot.lane.b32.xlu1 %v6605_v29, %s11855_s13 }
 0x51f   : > { %v16919_v53 = vpop.permute.xlu0 %6956 }
 0x520   : > { %20190 = vst [vmem:[#allocation266_spill] sm:$0xff] %v16919_v53  ;;  %7208 = vrot.lane.b32.xlu0 %v11541_v10, %s11855_s13  ;;  %v6675_v10 = vpop.f32.mrf.mxu1 }
 0x521   : > { %v16922_v39 = vpop.permute.xlu1 %6946 }
 0x522   : > { %20191 = vst [vmem:[#allocation267_spill] sm:$0xff] %v16922_v39  ;;  %7198 = vrot.lane.b32.xlu1 %v6615_v22, %s11855_s13 }
 0x523   : > { %v16925_v8 = vpop.permute.xlu0 %6960 }
 0x524   : > { %20192 = vst [vmem:[#allocation268_spill] sm:$0xff] %v16925_v8  ;;  %7212 = vrot.lane.b32.xlu0 %v11544_v48, %s11855_s13  ;;  %v11556_v48 = vpop.f32.mrf.mxu1 }
 0x525   : > { %v16928_v32 = vpop.permute.xlu1 %6950 }
 0x526   : > { %20193 = vst [vmem:[#allocation269_spill] sm:$0xff] %v16928_v32  ;;  %7202 = vrot.lane.b32.xlu1 %v6625_v52, %s11855_s13 }
 0x527   : > { %v16931_v29 = vpop.permute.xlu0 %6964 }
 0x528   : > { %20194 = vst [vmem:[#allocation270_spill] sm:$0xff] %v16931_v29  ;;  %7216 = vrot.lane.b32.xlu0 %v11547_v37, %s11855_s13  ;;  %v6685_v37 = vpop.f32.mrf.mxu1 }
 0x529   : > { %v16934_v53 = vpop.permute.xlu1 %6954 }
 0x52a   : > { %20195 = vst [vmem:[#allocation271_spill] sm:$0xff] %v16934_v53  ;;  %7206 = vrot.lane.b32.xlu1 %v6635_v11, %s11855_s13 }
 0x52b   : > { %v16937_v22 = vpop.permute.xlu0 %6968 }
 0x52c   : > { %20196 = vst [vmem:[#allocation272_spill] sm:$0xff] %v16937_v22  ;;  %7220 = vrot.lane.b32.xlu0 %v11550_v40, %s11855_s13  ;;  %v11559_v40 = vpop.f32.mrf.mxu1 }
 0x52d   : > { %v16940_v8 = vpop.permute.xlu1 %6958 }
 0x52e   : > { %20197 = vst [vmem:[#allocation273_spill] sm:$0xff] %v16940_v8  ;;  %7210 = vrot.lane.b32.xlu1 %v6645_v26, %s11855_s13 }
 0x52f   : > { %v16943_v52 = vpop.permute.xlu0 %6972 }
 0x530   : > { %20198 = vst [vmem:[#allocation274_spill] sm:$0xff] %v16943_v52  ;;  %7224 = vrot.lane.b32.xlu0 %v11553_v35, %s11855_s13 }
 0x531   : > { %v16946_v29 = vpop.permute.xlu1 %6962 }
 0x532   : > { %20199 = vst [vmem:[#allocation275_spill] sm:$0xff] %v16946_v29  ;;  %7214 = vrot.lane.b32.xlu1 %v6655_v16, %s11855_s13 }
 0x533   : > { %v16949_v11 = vpop.permute.xlu0 %6976 }
 0x534   : > { %20200 = vst [vmem:[#allocation276_spill] sm:$0xff] %v16949_v11  ;;  %7228 = vrot.lane.b32.xlu0 %v11556_v48, %s11855_s13 }
 0x535   : > { %v16952_v22 = vpop.permute.xlu1 %6966 }
 0x536   : > { %20201 = vst [vmem:[#allocation277_spill] sm:$0xff] %v16952_v22  ;;  %7218 = vrot.lane.b32.xlu1 %v6665_v17, %s11855_s13  ;;  %v7308_v17 = vsel %vm7306_vm2, 1.0, %v16721_v54  ;;  %v7307_v22 = vsel %vm7306_vm2, 1.0, %v16745_v36  ;;  %v7310_v36 = vsel %vm7306_vm2, 1.0, %v16731_v24  ;;  %v20212_v24 = vld [vmem:[#allocation152_spill] sm:$0xff] }
 0x537   : > { %v16955_v26 = vpop.permute.xlu0 %6980 }
 0x538   : > { %20202 = vst [vmem:[#allocation278_spill] sm:$0xff] %v16955_v26  ;;  %7232 = vrot.lane.b32.xlu0 %v11559_v40, %s11855_s13 }
 0x539   : > { %v16958_v52 = vpop.permute.xlu1 %6970 }
 0x53a   : > { %20203 = vst [vmem:[#allocation279_spill] sm:$0xff] %v16958_v52  ;;  %7222 = vrot.lane.b32.xlu1 %v6675_v10, %s11855_s13  ;;  %v6695_v10 = vpop.f32.mrf.mxu1 }
 0x53b   : > { %v16961_v35 = vpop.permute.xlu0 %6984 }
 0x53c   : > { %20204 = vst [vmem:[#allocation280_spill] sm:$0xff] %v16961_v35  ;;  %v20208_v35 = vld [vmem:[#allocation81_spill] sm:$0xff]  ;;  %v11562_v8 = vpop.f32.mrf.mxu1 }
 0x53d   : > { %v16963_v16 = vpop.permute.xlu1 %6974 }
 0x53e   : > { %20205 = vst [vmem:[#allocation281_spill] sm:$0xff] %v16963_v16  ;;  %7226 = vrot.lane.b32.xlu1 %v6685_v37, %s11855_s13 }
 0x53f   : > { %v7117_v48 = vpop.permute.xlu0 %7116 }
 0x540   : > { %v7373_v26 = vsel %vm7371_vm1, %v7308_v17, %v7117_v48  ;;  %v20209_v17 = vld [vmem:[#allocation144_spill] sm:$0xff] }
 0x541   : > { %v16969_v11 = vpop.permute.xlu1 %6978  ;;  %v7757_v37 = vmul.f32 %v20208_v35, %v7373_v26  ;;  %v8205_v48 = vmul.f32 %v20209_v17, %v7373_v26  ;;  %v6705_v17 = vpop.f32.mrf.mxu1 }
 0x542   : > { %20206 = vst [vmem:[#allocation282_spill] sm:$0xff] %v16969_v11  ;;  %8590 = vrot.lane.b32.xlu1 %v7373_v26, %s11855_s13 }
 0x543   : > { %v7121_v40 = vpop.permute.xlu0 %7120 }
 0x545   : > { %v16972_v52 = vpop.permute.xlu1 %6982 }
 0x546   : > { %20207 = vst [vmem:[#allocation283_spill] sm:$0xff] %v16972_v52  ;;  %7230 = vrot.lane.b32.xlu1 %v6695_v10, %s11855_s13  ;;  %v20210_v10 = vld [vmem:[#allocation142_spill] sm:$0xff] }
 0x547   : > { %v7125_v16 = vpop.permute.xlu0 %7124 }
 0x549   : > { %v7115_v54 = vpop.permute.xlu1 %7114 }
 0x54a   : > { %v7372_v29 = vsel %vm7371_vm1, %v7307_v22, %v7115_v54  ;;  %8846 = vrot.lane.b32.xlu1 %v7757_v37, %s11856_s14  ;;  %v7375_v22 = vsel %vm7371_vm1, %v7310_v36, %v7121_v40  ;;  %v7309_v36 = vsel %vm7306_vm2, 1.0, %v16755_v18  ;;  %v7312_v18 = vsel %vm7306_vm2, 1.0, %v16741_v0  ;;  %v20216_v0 = vld [vmem:[#allocation163_spill] sm:$0xff] }
 0x54b   : > { %8588 = vrot.lane.b32.xlu0 %v7372_v29, %s11855_s13  ;;  %v7129_v11 = vpop.permute.xlu0 %7128  ;;  %v7756_v37 = vmul.f32 %v20210_v10, %v7372_v29  ;;  %v7759_v32 = vmul.f32 %v20212_v24, %v7375_v22  ;;  %v11565_v24 = vpop.f32.mrf.mxu1 }
 0x54d   : > { %v7119_v52 = vpop.permute.xlu1 %7118 }
 0x54e   : > { %9102 = vrot.lane.b32.xlu1 %v8205_v48, %s11857_s15  ;;  %v20211_v48 = vld [vmem:[#allocation84_spill] sm:$0xff] }
 0x54f   : > { %7236 = vrot.lane.b32.xlu0 %v11562_v8, %s11855_s13  ;;  %v16986_v35 = vpop.permute.xlu0 %7132  ;;  %v8204_v53 = vmul.f32 %v20211_v48, %v7372_v29  ;;  %v20213_v29 = vld [vmem:[#allocation162_spill] sm:$0xff] }
 0x550   : > { %v8207_v48 = vmul.f32 %v20213_v29, %v7375_v22  ;;  %v6715_v29 = vpop.f32.mrf.mxu1 }
 0x551   : > { %v7123_v54 = vpop.permute.xlu1 %7122 }
 0x552   : > { %8594 = vrot.lane.b32.xlu1 %v7375_v22, %s11855_s13 }
 0x553   : > { %8844 = vrot.lane.b32.xlu0 %v7756_v37, %s11856_s14  ;;  %v16992_v26 = vpop.permute.xlu0 %7136  ;;  %v7374_v37 = vsel %vm7371_vm1, %v7309_v36, %v7119_v52  ;;  %v20214_v52 = vld [vmem:[#allocation156_spill] sm:$0xff] }
 0x554   : > { %v7758_v36 = vmul.f32 %v20214_v52, %v7374_v37  ;;  %v7311_v52 = vsel %vm7306_vm2, 1.0, %v16765_v55  ;;  %v7314_v55 = vsel %vm7306_vm2, 1.0, %v16751_v31 }
 0x555   : > { %v7127_v8 = vpop.permute.xlu1 %7126 }
 0x556   : > { %7234 = vrot.lane.b32.xlu1 %v6705_v17, %s11855_s13 }
 0x557   : > { %9100 = vrot.lane.b32.xlu0 %v8204_v53, %s11857_s15  ;;  %v16998_v40 = vpop.permute.xlu0 %7140 }
 0x559   : > { %v17002_v10 = vpop.permute.xlu1 %7130 }
 0x55a   : > { %8850 = vrot.lane.b32.xlu1 %v7759_v32, %s11856_s14  ;;  %v7377_v32 = vsel %vm7371_vm1, %v7312_v18, %v7125_v16 }
 0x55b   : > { %8592 = vrot.lane.b32.xlu0 %v7374_v37, %s11855_s13  ;;  %v17008_v17 = vpop.permute.xlu0 %7144  ;;  %v7761_v16 = vmul.f32 %v20216_v0, %v7377_v32 }
 0x55d   : > { %v17010_v53 = vpop.permute.xlu1 %7134 }
 0x55e   : > { %9106 = vrot.lane.b32.xlu1 %v8207_v48, %s11857_s15  ;;  %v20215_v48 = vld [vmem:[#allocation149_spill] sm:$0xff] }
 0x55f   : > { %7240 = vrot.lane.b32.xlu0 %v11565_v24, %s11855_s13  ;;  %v17016_v39 = vpop.permute.xlu0 %7148  ;;  %v8206_v24 = vmul.f32 %v20215_v48, %v7374_v37  ;;  %v20217_v37 = vld [vmem:[#allocation184_spill] sm:$0xff] }
 0x560   : > { %v8209_v48 = vmul.f32 %v20217_v37, %v7377_v32  ;;  %v20220_v37 = vld [vmem:[#allocation185_spill] sm:$0xff] }
 0x561   : > { %v17020_v28 = vpop.permute.xlu1 %7138 }
 0x562   : > { %8598 = vrot.lane.b32.xlu1 %v7377_v32, %s11855_s13 }
 0x563   : > { %8848 = vrot.lane.b32.xlu0 %v7758_v36, %s11856_s14  ;;  %v17024_v22 = vpop.permute.xlu0 %7152  ;;  %v7376_v36 = vsel %vm7371_vm1, %v7311_v52, %v7123_v54  ;;  %v20219_v52 = vld [vmem:[#allocation159_spill] sm:$0xff] }
 0x564   : > { %v8208_v33 = vmul.f32 %v20219_v52, %v7376_v36 }
 0x565   : > { %v17027_v20 = vpop.permute.xlu1 %7142 }
 0x566   : > { %7238 = vrot.lane.b32.xlu1 %v6715_v29, %s11855_s13 }
 0x567   : > { %9104 = vrot.lane.b32.xlu0 %v8206_v24, %s11857_s15  ;;  %v17032_v18 = vpop.permute.xlu0 %7156  ;;  %v20218_v24 = vld [vmem:[#allocation153_spill] sm:$0xff] }
 0x568   : > { %v7760_v61 = vmul.f32 %v20218_v24, %v7376_v36 }
 0x569   : > { %v17036_v60 = vpop.permute.xlu1 %7146 }
 0x56a   : > { %8854 = vrot.lane.b32.xlu1 %v7761_v16, %s11856_s14  ;;  %v7379_v16 = vsel %vm7371_vm1, %v7314_v55, %v7129_v11  ;;  %v20221_v11 = vld [vmem:[#allocation189_spill] sm:$0xff] }
 0x56b   : > { %8596 = vrot.lane.b32.xlu0 %v7376_v36, %s11855_s13  ;;  %v17042_v29 = vpop.permute.xlu0 %7160  ;;  %v7763_v24 = vmul.f32 %v20220_v37, %v7379_v16  ;;  %v8211_v36 = vmul.f32 %v20221_v11, %v7379_v16 }
 0x56d   : > { %v17045_v0 = vpop.permute.xlu1 %7150 }
 0x56e   : > { %9110 = vrot.lane.b32.xlu1 %v8209_v48, %s11857_s15 }
 0x56f   : > { %8852 = vrot.lane.b32.xlu0 %v7760_v61, %s11856_s14  ;;  %v17051_v54 = vpop.permute.xlu0 %7164  ;;  %v7313_v61 = vsel %vm7306_vm2, 1.0, %v16775_v51  ;;  %v7316_v51 = vsel %vm7306_vm2, 1.0, %v16761_v14  ;;  %v7315_v14 = vsel %vm7306_vm2, 1.0, %v16783_v46  ;;  %v7318_v46 = vsel %vm7306_vm2, 1.0, %v16771_v21 }
 0x570   : > { %v7378_v27 = vsel %vm7371_vm1, %v7313_v61, %v7127_v8  ;;  %v20223_v61 = vld [vmem:[#allocation56_spill] sm:$0xff]  ;;  %v7317_v21 = vsel %vm7306_vm2, 1.0, %v16793_v15  ;;  %v7320_v15 = vsel %vm7306_vm2, 1.0, %v16779_v56  ;;  %v7319_v56 = vsel %vm7306_vm2, 1.0, %v16801_v12 }
 0x571   : > { %v17055_v32 = vpop.permute.xlu1 %7154  ;;  %v7322_v12 = vsel %vm7306_vm2, 1.0, %v16789_v50  ;;  %v7321_v50 = vsel %vm7306_vm2, 1.0, %v16811_v30  ;;  %v7324_v30 = vsel %vm7306_vm2, 1.0, %v16797_v44  ;;  %v7323_v44 = vsel %vm7306_vm2, 1.0, %v16819_v7  ;;  %v20249_v7 = vld [vmem:[#allocation55_spill] sm:$0xff] }
 0x572   : > { %8602 = vrot.lane.b32.xlu1 %v7379_v16, %s11855_s13  ;;  %v8210_v16 = vmul.f32 %v20223_v61, %v7378_v27 }
 0x573   : > { %9108 = vrot.lane.b32.xlu0 %v8208_v33, %s11857_s15  ;;  %v17060_v48 = vpop.permute.xlu0 %7168  ;;  %v20222_v33 = vld [vmem:[#allocation164_spill] sm:$0xff] }
 0x574   : > { %v7762_v52 = vmul.f32 %v20222_v33, %v7378_v27  ;;  %v20224_v33 = vld [vmem:[#allocation191_spill] sm:$0xff] }
 0x575   : > { %v17064_v31 = vpop.permute.xlu1 %7158 }
 0x576   : > { %8858 = vrot.lane.b32.xlu1 %v7763_v24, %s11856_s14  ;;  %v7381_v24 = vsel %vm7371_vm1, %v7316_v51, %v16986_v35  ;;  %v7380_v35 = vsel %vm7371_vm1, %v7315_v14, %v17002_v10  ;;  %v20228_v14 = vld [vmem:[#allocation188_spill] sm:$0xff] }
 0x577   : > { %8600 = vrot.lane.b32.xlu0 %v7378_v27, %s11855_s13  ;;  %v17070_v55 = vpop.permute.xlu0 %7172  ;;  %v20225_v27 = vld [vmem:[#allocation194_spill] sm:$0xff] }
 0x578   : > { %v8213_v51 = vmul.f32 %v20225_v27, %v7381_v24 }
 0x579   : > { %v17073_v37 = vpop.permute.xlu1 %7162 }
 0x57a   : > { %9114 = vrot.lane.b32.xlu1 %v8211_v36, %s11857_s15  ;;  %v7765_v36 = vmul.f32 %v20224_v33, %v7381_v24 }
 0x57b   : > { %8856 = vrot.lane.b32.xlu0 %v7762_v52, %s11856_s14  ;;  %v17079_v8 = vpop.permute.xlu0 %7176 }
 0x57d   : > { %v17084_v11 = vpop.permute.xlu1 %7166 }
 0x57e   : > { %8606 = vrot.lane.b32.xlu1 %v7381_v24, %s11855_s13  ;;  %v8212_v24 = vmul.f32 %v20228_v14, %v7380_v35 }
 0x57f   : > { %9112 = vrot.lane.b32.xlu0 %v8210_v16, %s11857_s15  ;;  %v17089_v23 = vpop.permute.xlu0 %7180  ;;  %v20226_v16 = vld [vmem:[#allocation4_spill] sm:$0xff] }
 0x580   : > { %v7764_v33 = vmul.f32 %v20226_v16, %v7380_v35  ;;  %v20229_v16 = vld [vmem:[#allocation198_spill] sm:$0xff] }
 0x581   : > { %v17093_v52 = vpop.permute.xlu1 %7170 }
 0x582   : > { %8862 = vrot.lane.b32.xlu1 %v7765_v36, %s11856_s14  ;;  %v7383_v36 = vsel %vm7371_vm1, %v7318_v46, %v16992_v26  ;;  %v7382_v26 = vsel %vm7371_vm1, %v7317_v21, %v17010_v53  ;;  %v20234_v21 = vld [vmem:[#allocation193_spill] sm:$0xff] }
 0x583   : > { %8604 = vrot.lane.b32.xlu0 %v7380_v35, %s11855_s13  ;;  %v17100_v61 = vpop.permute.xlu0 %7184  ;;  %v20230_v35 = vld [vmem:[#allocation204_spill] sm:$0xff] }
 0x584   : > { %v8215_v46 = vmul.f32 %v20230_v35, %v7383_v36 }
 0x585   : > { %v17103_v13 = vpop.permute.xlu1 %7174 }
 0x586   : > { %9118 = vrot.lane.b32.xlu1 %v8213_v51, %s11857_s15  ;;  %v7767_v51 = vmul.f32 %v20229_v16, %v7383_v36 }
 0x587   : > { %8860 = vrot.lane.b32.xlu0 %v7764_v33, %s11856_s14  ;;  %v17109_v10 = vpop.permute.xlu0 %7188 }
 0x588   : > { %20227 = vst [vmem:[#allocation81_spill] sm:$0xff] %v17109_v10 }
 0x589   : > { %v17114_v27 = vpop.permute.xlu1 %7178 }
 0x58a   : > { %8610 = vrot.lane.b32.xlu1 %v7383_v36, %s11855_s13  ;;  %v8214_v36 = vmul.f32 %v20234_v21, %v7382_v26 }
 0x58b   : > { %9116 = vrot.lane.b32.xlu0 %v8212_v24, %s11857_s15  ;;  %v17119_v57 = vpop.permute.xlu0 %7192  ;;  %v20232_v24 = vld [vmem:[#allocation190_spill] sm:$0xff] }
 0x58c   : > { %v7766_v16 = vmul.f32 %v20232_v24, %v7382_v26  ;;  %v20235_v24 = vld [vmem:[#allocation207_spill] sm:$0xff] }
 0x58d   : > { %v17123_v33 = vpop.permute.xlu1 %7182 }
 0x58e   : > { %8866 = vrot.lane.b32.xlu1 %v7767_v51, %s11856_s14  ;;  %v7385_v51 = vsel %vm7371_vm1, %v7320_v15, %v16998_v40  ;;  %v7384_v40 = vsel %vm7371_vm1, %v7319_v56, %v17020_v28  ;;  %v20240_v56 = vld [vmem:[#allocation203_spill] sm:$0xff] }
 0x58f   : > { %8608 = vrot.lane.b32.xlu0 %v7382_v26, %s11855_s13  ;;  %v17130_v14 = vpop.permute.xlu0 %7196  ;;  %v20236_v26 = vld [vmem:[#allocation213_spill] sm:$0xff] }
 0x590   : > { %20231 = vst [vmem:[#allocation144_spill] sm:$0xff] %v17130_v14  ;;  %v8217_v15 = vmul.f32 %v20236_v26, %v7385_v51 }
 0x591   : > { %v17133_v10 = vpop.permute.xlu1 %7186 }
 0x592   : > { %9122 = vrot.lane.b32.xlu1 %v8215_v46, %s11857_s15  ;;  %v7769_v46 = vmul.f32 %v20235_v24, %v7385_v51 }
 0x593   : > { %8864 = vrot.lane.b32.xlu0 %v7766_v16, %s11856_s14  ;;  %v17139_v53 = vpop.permute.xlu0 %7200 }
 0x594   : > { %20233 = vst [vmem:[#allocation142_spill] sm:$0xff] %v17139_v53 }
 0x595   : > { %v17144_v35 = vpop.permute.xlu1 %7190 }
 0x596   : > { %8614 = vrot.lane.b32.xlu1 %v7385_v51, %s11855_s13  ;;  %v8216_v51 = vmul.f32 %v20240_v56, %v7384_v40 }
 0x597   : > { %9120 = vrot.lane.b32.xlu0 %v8214_v36, %s11857_s15  ;;  %v17149_v14 = vpop.permute.xlu0 %7204  ;;  %v20238_v36 = vld [vmem:[#allocation197_spill] sm:$0xff] }
 0x598   : > { %v7768_v24 = vmul.f32 %v20238_v36, %v7384_v40  ;;  %v20241_v36 = vld [vmem:[#allocation173_spill] sm:$0xff] }
 0x599   : > { %v17153_v16 = vpop.permute.xlu1 %7194 }
 0x59a   : > { %8870 = vrot.lane.b32.xlu1 %v7769_v46, %s11856_s14  ;;  %v7387_v46 = vsel %vm7371_vm1, %v7322_v12, %v17008_v17  ;;  %v7386_v17 = vsel %vm7371_vm1, %v7321_v50, %v17027_v20  ;;  %v17201_v20 = vsel %vm7371_vm1, %v7324_v30, %v17016_v39  ;;  %v17219_v39 = vsel %vm7371_vm1, %v7323_v44, %v17036_v60  ;;  %v20250_v60 = vld [vmem:[#allocation106_spill] sm:$0xff] }
 0x59b   : > { %8612 = vrot.lane.b32.xlu0 %v7384_v40, %s11855_s13  ;;  %v17160_v21 = vpop.permute.xlu0 %7208  ;;  %v20242_v40 = vld [vmem:[#allocation21_spill] sm:$0xff]  ;;  %20244 = vst [vmem:[#allocation162_spill] sm:$0xff] %v17201_v20  ;;  %20247 = vst [vmem:[#allocation156_spill] sm:$0xff] %v17219_v39  ;;  %v7326_v30 = vsel %vm7306_vm2, 1.0, %v16807_v47  ;;  %v7325_v47 = vsel %vm7306_vm2, 1.0, %v16827_v38  ;;  %v20253_v38 = vld [vmem:[#allocation102_spill] sm:$0xff] }
 0x59c   : > { %20237 = vst [vmem:[#allocation84_spill] sm:$0xff] %v17160_v21  ;;  %v8219_v12 = vmul.f32 %v20242_v40, %v7387_v46 }
 0x59d   : > { %v17163_v53 = vpop.permute.xlu1 %7198 }
 0x59e   : > { %9126 = vrot.lane.b32.xlu1 %v8217_v15, %s11857_s15  ;;  %v7771_v15 = vmul.f32 %v20241_v36, %v7387_v46 }
 0x59f   : > { %8868 = vrot.lane.b32.xlu0 %v7768_v24, %s11856_s14  ;;  %v17169_v28 = vpop.permute.xlu0 %7212 }
 0x5a0   : > { %20239 = vst [vmem:[#allocation152_spill] sm:$0xff] %v17169_v28 }
 0x5a1   : > { %v17174_v26 = vpop.permute.xlu1 %7202 }
 0x5a2   : > { %8618 = vrot.lane.b32.xlu1 %v7387_v46, %s11855_s13 }
 0x5a3   : > { %9124 = vrot.lane.b32.xlu0 %v8216_v51, %s11857_s15  ;;  %v17179_v21 = vpop.permute.xlu0 %7216  ;;  %v20243_v51 = vld [vmem:[#allocation206_spill] sm:$0xff] }
 0x5a4   : > { %v7770_v36 = vmul.f32 %v20243_v51, %v7386_v17 }
 0x5a5   : > { %v17183_v24 = vpop.permute.xlu1 %7206 }
 0x5a6   : > { %8874 = vrot.lane.b32.xlu1 %v7771_v15, %s11856_s14  ;;  %v20245_v15 = vld [vmem:[#allocation212_spill] sm:$0xff] }
 0x5a7   : > { %8616 = vrot.lane.b32.xlu0 %v7386_v17, %s11855_s13  ;;  %v17190_v56 = vpop.permute.xlu0 %7220  ;;  %v8218_v50 = vmul.f32 %v20245_v15, %v7386_v17  ;;  %v17230_v15 = vsel %vm7371_vm1, %v7326_v30, %v17024_v22  ;;  %v17249_v30 = vsel %vm7371_vm1, %v7325_v47, %v17045_v0  ;;  %v20254_v0 = vld [vmem:[#allocation112_spill] sm:$0xff] }
 0x5a8   : > { %20248 = vst [vmem:[#allocation149_spill] sm:$0xff] %v17230_v15  ;;  %20251 = vst [vmem:[#allocation163_spill] sm:$0xff] %v17249_v30 }
 0x5a9   : > { %v17193_v28 = vpop.permute.xlu1 %7210 }
 0x5aa   : > { %9130 = vrot.lane.b32.xlu1 %v8219_v12, %s11857_s15  ;;  %v20246_v12 = vld [vmem:[#allocation17_spill] sm:$0xff] }
 0x5ab   : > { %8872 = vrot.lane.b32.xlu0 %v7770_v36, %s11856_s14  ;;  %v17204_v46 = vpop.permute.xlu0 %7224  ;;  %v7773_v51 = vmul.f32 %v20246_v12, %v17201_v20 }
 0x5ad   : > { %v17206_v40 = vpop.permute.xlu1 %7214 }
 0x5ae   : > { %8622 = vrot.lane.b32.xlu1 %v17201_v20, %s11855_s13 }
 0x5af   : > { %9128 = vrot.lane.b32.xlu0 %v8218_v50, %s11857_s15  ;;  %v17222_v17 = vpop.permute.xlu0 %7228  ;;  %v7772_v50 = vmul.f32 %v20249_v7, %v17219_v39  ;;  %v7328_v7 = vsel %vm7306_vm2, 1.0, %v16815_v4  ;;  %v7327_v4 = vsel %vm7306_vm2, 1.0, %v16835_v6  ;;  %v20257_v6 = vld [vmem:[#allocation176_spill] sm:$0xff] }
 0x5b1   : > { %v17215_v36 = vpop.permute.xlu1 %7218 }
 0x5b2   : > { %8878 = vrot.lane.b32.xlu1 %v7773_v51, %s11856_s14  ;;  %v7775_v51 = vmul.f32 %v20250_v60, %v17230_v15  ;;  %v7774_v60 = vmul.f32 %v20253_v38, %v17249_v30  ;;  %v7330_v38 = vsel %vm7306_vm2, 1.0, %v16823_v42  ;;  %v20260_v42 = vld [vmem:[#allocation88_spill] sm:$0xff] }
 0x5b3   : > { %8620 = vrot.lane.b32.xlu0 %v17219_v39, %s11855_s13  ;;  %v17243_v44 = vpop.permute.xlu0 %7232  ;;  %v9293_v20 = vsel %vm7306_vm2, %v20260_v42, %v16425_v43 }
 0x5b5   : > { %v17234_v12 = vpop.permute.xlu1 %7222 }
 0x5b6   : > { %8626 = vrot.lane.b32.xlu1 %v17230_v15, %s11855_s13 }
 0x5b7   : > { %8876 = vrot.lane.b32.xlu0 %v7772_v50, %s11856_s14  ;;  %v17258_v50 = vsel %vm7371_vm1, %v7328_v7, %v17032_v18  ;;  %v17275_v7 = vsel %vm7371_vm1, %v7327_v4, %v17055_v32  ;;  %v20258_v32 = vld [vmem:[#allocation104_spill] sm:$0xff] }
 0x5b8   : > { %20252 = vst [vmem:[#allocation184_spill] sm:$0xff] %v17258_v50  ;;  %20256 = vst [vmem:[#allocation159_spill] sm:$0xff] %v17275_v7 }
 0x5b9   : > { %v17245_v22 = vpop.permute.xlu1 %7226 }
 0x5ba   : > { %8882 = vrot.lane.b32.xlu1 %v7775_v51, %s11856_s14  ;;  %v7777_v51 = vmul.f32 %v20254_v0, %v17258_v50  ;;  %v7776_v0 = vmul.f32 %v20257_v6, %v17275_v7 }
 0x5bb   : > { %8624 = vrot.lane.b32.xlu0 %v17249_v30, %s11855_s13 }
 0x5bd   : > { %v8591_v39 = vpop.permute.xlu1 %8590  ;;  %v8589_v15 = vpop.permute.xlu0 %8588 }
 0x5be   : > { %8630 = vrot.lane.b32.xlu1 %v17258_v50, %s11855_s13  ;;  %v9357_v6 = vsel %vm7371_vm1, %v9293_v20, %v8591_v39 }
 0x5bf   : > { %8880 = vrot.lane.b32.xlu0 %v7774_v60, %s11856_s14  ;;  %v17284_v60 = vsel %vm7371_vm1, %v7330_v38, %v17042_v29  ;;  %v20261_v29 = vld [vmem:[#allocation13_spill] sm:$0xff] }
 0x5c0   : > { %v7779_v38 = vmul.f32 %v20261_v29, %v17284_v60 }
 0x5c1   : > { %v17269_v47 = vpop.permute.xlu1 %7230  ;;  %v17271_v18 = vpop.permute.xlu0 %7236 }
 0x5c2   : > { %20255 = vst [vmem:[#allocation153_spill] sm:$0xff] %v17271_v18  ;;  %8886 = vrot.lane.b32.xlu1 %v7777_v51, %s11856_s14  ;;  %v20259_v51 = vld [vmem:[#allocation30_spill] sm:$0xff]  ;;  %v7329_v18 = vsel %vm7306_vm2, 1.0, %v16843_v62 }
 0x5c3   : > { %8628 = vrot.lane.b32.xlu0 %v17275_v7, %s11855_s13  ;;  %v9292_v4 = vsel %vm7306_vm2, %v20259_v51, %v20258_v32  ;;  %v17314_v39 = vsel %vm7371_vm1, %v7329_v18, %v17064_v31  ;;  %v20262_v18 = vld [vmem:[#allocation178_spill] sm:$0xff] }
 0x5c4   : > { %v9356_v7 = vsel %vm7371_vm1, %v9292_v4, %v8589_v15 }
 0x5c5   : > { %v8847_v30 = vpop.permute.xlu1 %8846  ;;  %v8845_v50 = vpop.permute.xlu0 %8844 }
 0x5c6   : > { %8634 = vrot.lane.b32.xlu1 %v17284_v60, %s11855_s13  ;;  %v9422_v32 = vsel %vm9420_vm3, %v9357_v6, %v8847_v30  ;;  %v9421_v51 = vsel %vm9420_vm3, %v9356_v7, %v8845_v50  ;;  %v7332_v7 = vsel %vm7306_vm2, 1.0, %v16831_v25  ;;  %v20263_v25 = vld [vmem:[#allocation82_spill] sm:$0xff] }
 0x5c7   : > { %8884 = vrot.lane.b32.xlu0 %v7776_v0, %s11856_s14  ;;  %v17331_v31 = vsel %vm7371_vm1, %v7332_v7, %v17051_v54  ;;  %v7778_v0 = vmul.f32 %v20262_v18, %v17314_v39  ;;  %v20267_v7 = vld [vmem:[#allocation107_spill] sm:$0xff]  ;;  %v20268_v18 = vld [vmem:[#allocation37_spill] sm:$0xff] }
 0x5c8   : > { %v7781_v29 = vmul.f32 %v20263_v25, %v17331_v31 }
 0x5c9   : > { %v9103_v43 = vpop.permute.xlu1 %9102  ;;  %v9101_v20 = vpop.permute.xlu0 %9100 }
 0x5ca   : > { %v9487_v62 = vsel %vm9485_vm4, %v9422_v32, %v9103_v43  ;;  %v9486_v15 = vsel %vm9485_vm4, %v9421_v51, %v9101_v20  ;;  %8890 = vrot.lane.b32.xlu1 %v7779_v38, %s11856_s14  ;;  %v7331_v38 = vsel %vm7306_vm2, 1.0, %v16851_v49  ;;  %v7334_v51 = vsel %vm7306_vm2, 1.0, %v16839_v2  ;;  %v20264_v49 = vld [vmem:[#allocation180_spill] sm:$0xff] }
 0x5cb   : > { %v9552_v30 = vsel %vm9550_vm5, %v9487_v62, 0.0  ;;  %v9551_v50 = vsel %vm9550_vm5, %v9486_v15, 0.0  ;;  %8632 = vrot.lane.b32.xlu0 %v17314_v39, %s11855_s13  ;;  %v17348_v32 = vsel %vm7371_vm1, %v7331_v38, %v17073_v37  ;;  %v17357_v43 = vsel %vm7371_vm1, %v7334_v51, %v17060_v48  ;;  %v20265_v37 = vld [vmem:[#allocation10_spill] sm:$0xff]  ;;  %v20269_v48 = vld [vmem:[#allocation24_spill] sm:$0xff] }
 0x5cc   : > { %9617 = vst.msk [vmem:[%s17310_s18 + $0x8] sm:$0xff] %vm9615_vm6, %v9552_v30  ;;  %9616 = vst.msk [vmem:[%s17310_s18] sm:$0xff] %vm9615_vm6, %v9551_v50  ;;  %v7780_v20 = vmul.f32 %v20264_v49, %v17348_v32  ;;  %v20266_v30 = vld [vmem:[#allocation35_spill] sm:$0xff]  ;;  %v9295_v2 = vsel %vm7306_vm2, %v20268_v18, %v20267_v7  ;;  %v7333_v38 = vsel %vm7306_vm2, 1.0, %v16859_v63 }
 0x5cd   : > { %v8595_v4 = vpop.permute.xlu1 %8594  ;;  %v8593_v42 = vpop.permute.xlu0 %8592  ;;  %v9294_v50 = vsel %vm7306_vm2, %v20266_v30, %v20265_v37 }
 0x5ce   : > { %8638 = vrot.lane.b32.xlu1 %v17331_v31, %s11855_s13  ;;  %v9359_v25 = vsel %vm7371_vm1, %v9295_v2, %v8595_v4 }
 0x5cf   : > { %8888 = vrot.lane.b32.xlu0 %v7778_v0, %s11856_s14  ;;  %v7783_v0 = vmul.f32 %v20269_v48, %v17357_v43 }
 0x5d1   : > { %v17342_v6 = vpop.permute.xlu1 %7234  ;;  %v17344_v54 = vpop.permute.xlu0 %7240 }
 0x5d2   : > { %8894 = vrot.lane.b32.xlu1 %v7781_v29, %s11856_s14  ;;  %v9358_v29 = vsel %vm7371_vm1, %v9294_v50, %v8593_v42 }
 0x5d3   : > { %8636 = vrot.lane.b32.xlu0 %v17348_v32, %s11855_s13 }
 0x5d5   : > { %v8851_v62 = vpop.permute.xlu1 %8850  ;;  %v8849_v15 = vpop.permute.xlu0 %8848 }
 0x5d6   : > { %8642 = vrot.lane.b32.xlu1 %v17357_v43, %s11855_s13  ;;  %v9424_v51 = vsel %vm9420_vm3, %v9359_v25, %v8851_v62  ;;  %v9423_v49 = vsel %vm9420_vm3, %v9358_v29, %v8849_v15  ;;  %v7336_v62 = vsel %vm7306_vm2, 1.0, %v16847_v59  ;;  %v20270_v15 = vld [vmem:[#allocation119_spill] sm:$0xff]  ;;  %v20271_v59 = vld [vmem:[#allocation25_spill] sm:$0xff] }
 0x5d7   : > { %8892 = vrot.lane.b32.xlu0 %v7780_v20, %s11856_s14  ;;  %v17380_v20 = vsel %vm7371_vm1, %v7333_v38, %v17084_v11  ;;  %v17397_v11 = vsel %vm7371_vm1, %v7336_v62, %v17070_v55  ;;  %v20272_v38 = vld [vmem:[#allocation116_spill] sm:$0xff] }
 0x5d8   : > { %v7782_v50 = vmul.f32 %v20270_v15, %v17380_v20  ;;  %v7785_v48 = vmul.f32 %v20271_v59, %v17397_v11  ;;  %v20275_v15 = vld [vmem:[#allocation3_spill] sm:$0xff] }
 0x5d9   : > { %v9107_v37 = vpop.permute.xlu1 %9106  ;;  %v9105_v30 = vpop.permute.xlu0 %9104 }
 0x5da   : > { %v9489_v7 = vsel %vm9485_vm4, %v9424_v51, %v9107_v37  ;;  %v9488_v4 = vsel %vm9485_vm4, %v9423_v49, %v9105_v30  ;;  %8898 = vrot.lane.b32.xlu1 %v7783_v0, %s11856_s14  ;;  %v7335_v0 = vsel %vm7306_vm2, 1.0, %v16867_v1  ;;  %v20273_v51 = vld [vmem:[#allocation39_spill] sm:$0xff]  ;;  %v7338_v1 = vsel %vm7306_vm2, 1.0, %v16855_v5  ;;  %v20276_v5 = vld [vmem:[#allocation42_spill] sm:$0xff] }
 0x5db   : > { %v9554_v42 = vsel %vm9550_vm5, %v9489_v7, 0.0  ;;  %v9553_v63 = vsel %vm9550_vm5, %v9488_v4, 0.0  ;;  %8640 = vrot.lane.b32.xlu0 %v17380_v20, %s11855_s13  ;;  %v17412_v29 = vsel %vm7371_vm1, %v7335_v0, %v17093_v52  ;;  %v9296_v49 = vsel %vm7306_vm2, %v20273_v51, %v20272_v38  ;;  %v20274_v52 = vld [vmem:[#allocation113_spill] sm:$0xff] }
 0x5dc   : > { %9619 = vst.msk [vmem:[%s17310_s18 + $0x18] sm:$0xff] %vm9615_vm6, %v9554_v42  ;;  %9618 = vst.msk [vmem:[%s17310_s18 + $0x10] sm:$0xff] %vm9615_vm6, %v9553_v63  ;;  %v17425_v30 = vsel %vm7371_vm1, %v7338_v1, %v17079_v8  ;;  %v7784_v7 = vmul.f32 %v20274_v52, %v17412_v29  ;;  %v7337_v0 = vsel %vm7306_vm2, 1.0, %v16875_v3  ;;  %v7340_v3 = vsel %vm7306_vm2, 1.0, %v16863_v9  ;;  %v20281_v9 = vld [vmem:[#allocation140_spill] sm:$0xff] }
 0x5dd   : > { %v8599_v18 = vpop.permute.xlu1 %8598  ;;  %v8597_v2 = vpop.permute.xlu0 %8596 }
 0x5de   : > { %8646 = vrot.lane.b32.xlu1 %v17397_v11, %s11855_s13  ;;  %v9360_v37 = vsel %vm7371_vm1, %v9296_v49, %v8597_v2  ;;  %v20277_v2 = vld [vmem:[#allocation71_spill] sm:$0xff]  ;;  %v17448_v49 = vsel %vm7371_vm1, %v7337_v0, %v17103_v13  ;;  %v20278_v13 = vld [vmem:[#allocation68_spill] sm:$0xff]  ;;  %v20282_v0 = vld [vmem:[#allocation46_spill] sm:$0xff] }
 0x5df   : > { %8896 = vrot.lane.b32.xlu0 %v7782_v50, %s11856_s14  ;;  %v9297_v50 = vsel %vm7306_vm2, %v20276_v5, %v20275_v15  ;;  %v7787_v59 = vmul.f32 %v20277_v2, %v17425_v30  ;;  %v7786_v52 = vmul.f32 %v20278_v13, %v17448_v49  ;;  %v7339_v5 = vsel %vm7306_vm2, 1.0, %v16882_v58 }
 0x5e0   : > { %v7342_v58 = vsel %vm7306_vm2, 1.0, %v16871_v41 }
 0x5e1   : > { %v17408_v25 = vpop.permute.xlu1 %7238  ;;  %v8853_v55 = vpop.permute.xlu0 %8852 }
 0x5e2   : > { %8902 = vrot.lane.b32.xlu1 %v7785_v48, %s11856_s14  ;;  %v9425_v4 = vsel %vm9420_vm3, %v9360_v37, %v8853_v55  ;;  %v9361_v48 = vsel %vm7371_vm1, %v9297_v50, %v8599_v18  ;;  %v17461_v18 = vsel %vm7371_vm1, %v7340_v3, %v17089_v23 }
 0x5e3   : > { %8644 = vrot.lane.b32.xlu0 %v17412_v29, %s11855_s13  ;;  %v7789_v15 = vmul.f32 %v20281_v9, %v17461_v18  ;;  %v20285_v9 = vld [vmem:[#allocation16_spill] sm:$0xff] }
 0x5e5   : > { %v8855_v42 = vpop.permute.xlu1 %8854  ;;  %v9109_v63 = vpop.permute.xlu0 %9108 }
 0x5e6   : > { %v9490_v62 = vsel %vm9485_vm4, %v9425_v4, %v9109_v63  ;;  %8650 = vrot.lane.b32.xlu1 %v17425_v30, %s11855_s13  ;;  %v9426_v55 = vsel %vm9420_vm3, %v9361_v48, %v8855_v42  ;;  %v20279_v42 = vld [vmem:[#allocation14_spill] sm:$0xff]  ;;  %v20280_v63 = vld [vmem:[#allocation93_spill] sm:$0xff] }
 0x5e7   : > { %v9555_v8 = vsel %vm9550_vm5, %v9490_v62, 0.0  ;;  %8900 = vrot.lane.b32.xlu0 %v7784_v7, %s11856_s14  ;;  %v9298_v62 = vsel %vm7306_vm2, %v20280_v63, %v20279_v42 }
 0x5e8   : > { %9620 = vst.msk [vmem:[%s17310_s18 + $0x20] sm:$0xff] %vm9615_vm6, %v9555_v8 }
 0x5e9   : > { %v9111_v38 = vpop.permute.xlu1 %9110  ;;  %v8601_v51 = vpop.permute.xlu0 %8600 }
 0x5ea   : > { %v9491_v1 = vsel %vm9485_vm4, %v9426_v55, %v9111_v38  ;;  %8906 = vrot.lane.b32.xlu1 %v7787_v59, %s11856_s14  ;;  %v9362_v23 = vsel %vm7371_vm1, %v9298_v62, %v8601_v51  ;;  %v17479_v59 = vsel %vm7371_vm1, %v7339_v5, %v17114_v27  ;;  %v9299_v55 = vsel %vm7306_vm2, %v20282_v0, %v16455_v19 }
 0x5eb   : > { %v9556_v37 = vsel %vm9550_vm5, %v9491_v1, 0.0  ;;  %8648 = vrot.lane.b32.xlu0 %v17448_v49, %s11855_s13  ;;  %v17496_v51 = vsel %vm7371_vm1, %v7342_v58, %v17100_v61  ;;  %v20283_v1 = vld [vmem:[#allocation26_spill] sm:$0xff]  ;;  %v7344_v5 = vsel %vm7306_vm2, 1.0, %v16879_v34  ;;  %v20289_v58 = vld [vmem:[#allocation28_spill] sm:$0xff] }
 0x5ec   : > { %9621 = vst.msk [vmem:[%s17310_s18 + $0x28] sm:$0xff] %vm9615_vm6, %v9556_v37  ;;  %v7788_v19 = vmul.f32 %v20283_v1, %v17479_v59  ;;  %v20290_v34 = vld [vmem:[#allocation98_spill] sm:$0xff] }
 0x5ed   : > { %v8603_v7 = vpop.permute.xlu1 %8602  ;;  %v8857_v4 = vpop.permute.xlu0 %8856 }
 0x5ee   : > { %8654 = vrot.lane.b32.xlu1 %v17461_v18, %s11855_s13  ;;  %v9427_v50 = vsel %vm9420_vm3, %v9362_v23, %v8857_v4  ;;  %v9363_v27 = vsel %vm7371_vm1, %v9299_v55, %v8603_v7  ;;  %v20284_v7 = vld [vmem:[#allocation150_spill] sm:$0xff]  ;;  %v7341_v4 = vsel %vm7306_vm2, 1.0, %v16889_v45 }
 0x5ef   : > { %8904 = vrot.lane.b32.xlu0 %v7786_v52, %s11856_s14  ;;  %v7791_v61 = vmul.f32 %v20284_v7, %v17496_v51  ;;  %v17514_v62 = vsel %vm7371_vm1, %v7341_v4, %v17123_v33  ;;  %v20288_v33 = vld [vmem:[#allocation29_spill] sm:$0xff] }
 0x5f1   : > { %v8859_v8 = vpop.permute.xlu1 %8858  ;;  %v9113_v2 = vpop.permute.xlu0 %9112 }
 0x5f2   : > { %v9492_v48 = vsel %vm9485_vm4, %v9427_v50, %v9113_v2  ;;  %8910 = vrot.lane.b32.xlu1 %v7789_v15, %s11856_s14  ;;  %v9428_v37 = vsel %vm9420_vm3, %v9363_v27, %v8859_v8  ;;  %v20286_v15 = vld [vmem:[#allocation95_spill] sm:$0xff]  ;;  %v20287_v50 = vld [vmem:[#allocation81_spill] sm:$0xff]  ;;  %v7790_v2 = vmul.f32 %v20288_v33, %v17514_v62  ;;  %v9301_v27 = vsel %vm7306_vm2, %v20290_v34, %v20289_v58  ;;  %v20295_v33 = vld [vmem:[#allocation64_spill] sm:$0xff] }
 0x5f3   : > { %v9557_v38 = vsel %vm9550_vm5, %v9492_v48, 0.0  ;;  %8652 = vrot.lane.b32.xlu0 %v17479_v59, %s11855_s13  ;;  %v9300_v23 = vsel %vm7306_vm2, %v20286_v15, %v20285_v9  ;;  %v17527_v8 = vsel %vm7371_vm1, %v7344_v5, %v20287_v50 }
 0x5f4   : > { %9622 = vst.msk [vmem:[%s17310_s18 + $0x30] sm:$0xff] %vm9615_vm6, %v9557_v38 }
 0x5f5   : > { %v9115_v3 = vpop.permute.xlu1 %9114  ;;  %v8605_v13 = vpop.permute.xlu0 %8604 }
 0x5f6   : > { %v9493_v52 = vsel %vm9485_vm4, %v9428_v37, %v9115_v3  ;;  %8658 = vrot.lane.b32.xlu1 %v17496_v51, %s11855_s13  ;;  %v9364_v45 = vsel %vm7371_vm1, %v9300_v23, %v8605_v13  ;;  %v20292_v13 = vld [vmem:[#allocation259_spill] sm:$0xff] }
 0x5f7   : > { %v9558_v41 = vsel %vm9550_vm5, %v9493_v52, 0.0  ;;  %8908 = vrot.lane.b32.xlu0 %v7788_v19, %s11856_s14  ;;  %v20291_v19 = vld [vmem:[#allocation78_spill] sm:$0xff]  ;;  %v7343_v52 = vsel %vm7306_vm2, 1.0, %v20292_v13  ;;  %v20300_v13 = vld [vmem:[#allocation101_spill] sm:$0xff] }
 0x5f8   : > { %9623 = vst.msk [vmem:[%s17310_s18 + $0x38] sm:$0xff] %vm9615_vm6, %v9558_v41  ;;  %v7793_v37 = vmul.f32 %v20291_v19, %v17527_v8  ;;  %v17550_v4 = vsel %vm7371_vm1, %v7343_v52, %v17133_v10  ;;  %v20294_v10 = vld [vmem:[#allocation34_spill] sm:$0xff] }
 0x5f9   : > { %v8607_v42 = vpop.permute.xlu1 %8606  ;;  %v8861_v63 = vpop.permute.xlu0 %8860  ;;  %v7792_v5 = vmul.f32 %v20294_v10, %v17550_v4 }
 0x5fa   : > { %8914 = vrot.lane.b32.xlu1 %v7791_v61, %s11856_s14  ;;  %v9429_v48 = vsel %vm9420_vm3, %v9364_v45, %v8861_v63  ;;  %v9365_v3 = vsel %vm7371_vm1, %v9301_v27, %v8607_v42  ;;  %v20293_v42 = vld [vmem:[#allocation257_spill] sm:$0xff] }
 0x5fb   : > { %8656 = vrot.lane.b32.xlu0 %v17514_v62, %s11855_s13  ;;  %v7346_v15 = vsel %vm7306_vm2, 1.0, %v20293_v42  ;;  %v20303_v42 = vld [vmem:[#allocation141_spill] sm:$0xff] }
 0x5fc   : > { %v17563_v23 = vsel %vm7371_vm1, %v7346_v15, %v17119_v57 }
 0x5fd   : > { %v8863_v0 = vpop.permute.xlu1 %8862  ;;  %v9117_v55 = vpop.permute.xlu0 %9116 }
 0x5fe   : > { %v9494_v38 = vsel %vm9485_vm4, %v9429_v48, %v9117_v55  ;;  %8662 = vrot.lane.b32.xlu1 %v17527_v8, %s11855_s13  ;;  %v9430_v41 = vsel %vm9420_vm3, %v9365_v3, %v8863_v0  ;;  %v20297_v0 = vld [vmem:[#allocation145_spill] sm:$0xff]  ;;  %v20299_v3 = vld [vmem:[#allocation27_spill] sm:$0xff] }
 0x5ff   : > { %v9559_v1 = vsel %vm9550_vm5, %v9494_v38, 0.0  ;;  %8912 = vrot.lane.b32.xlu0 %v7790_v2, %s11856_s14  ;;  %v20296_v2 = vld [vmem:[#allocation50_spill] sm:$0xff]  ;;  %v7795_v55 = vmul.f32 %v20297_v0, %v17563_v23  ;;  %v20298_v38 = vld [vmem:[#allocation261_spill] sm:$0xff]  ;;  %v9303_v52 = vsel %vm7306_vm2, %v20300_v13, %v20299_v3  ;;  %v20305_v0 = vld [vmem:[#allocation263_spill] sm:$0xff] }
 0x600   : > { %9624 = vst.msk [vmem:[%s17310_s18 + $0x40] sm:$0xff] %vm9615_vm6, %v9559_v1  ;;  %v9302_v48 = vsel %vm7306_vm2, %v20296_v2, %v20295_v33  ;;  %v7345_v58 = vsel %vm7306_vm2, 1.0, %v20298_v38  ;;  %v20304_v2 = vld [vmem:[#allocation151_spill] sm:$0xff] }
 0x601   : > { %v9119_v7 = vpop.permute.xlu1 %9118  ;;  %v8609_v61 = vpop.permute.xlu0 %8608  ;;  %v17581_v19 = vsel %vm7371_vm1, %v7345_v58, %v17144_v35 }
 0x602   : > { %v9495_v63 = vsel %vm9485_vm4, %v9430_v41, %v9119_v7  ;;  %8918 = vrot.lane.b32.xlu1 %v7793_v37, %s11856_s14  ;;  %v9366_v57 = vsel %vm7371_vm1, %v9302_v48, %v8609_v61  ;;  %v20301_v7 = vld [vmem:[#allocation258_spill] sm:$0xff]  ;;  %v7794_v15 = vmul.f32 %v20303_v42, %v17581_v19 }
 0x603   : > { %v9560_v9 = vsel %vm9550_vm5, %v9495_v63, 0.0  ;;  %8660 = vrot.lane.b32.xlu0 %v17550_v4, %s11855_s13  ;;  %v7348_v61 = vsel %vm7306_vm2, 1.0, %v20301_v7  ;;  %v20302_v63 = vld [vmem:[#allocation144_spill] sm:$0xff] }
 0x604   : > { %9625 = vst.msk [vmem:[%s17310_s18 + $0x48] sm:$0xff] %vm9615_vm6, %v9560_v9  ;;  %v17598_v9 = vsel %vm7371_vm1, %v7348_v61, %v20302_v63 }
 0x605   : > { %v8611_v45 = vpop.permute.xlu1 %8610  ;;  %v8865_v50 = vpop.permute.xlu0 %8864  ;;  %v7797_v48 = vmul.f32 %v20304_v2, %v17598_v9 }
 0x606   : > { %8666 = vrot.lane.b32.xlu1 %v17563_v23, %s11855_s13  ;;  %v9431_v34 = vsel %vm9420_vm3, %v9366_v57, %v8865_v50  ;;  %v9367_v35 = vsel %vm7371_vm1, %v9303_v52, %v8611_v45  ;;  %v20309_v52 = vld [vmem:[#allocation142_spill] sm:$0xff] }
 0x607   : > { %8916 = vrot.lane.b32.xlu0 %v7792_v5, %s11856_s14 }
 0x609   : > { %v8867_v27 = vpop.permute.xlu1 %8866  ;;  %v9121_v1 = vpop.permute.xlu0 %9120 }
 0x60a   : > { %v9496_v37 = vsel %vm9485_vm4, %v9431_v34, %v9121_v1  ;;  %8922 = vrot.lane.b32.xlu1 %v7795_v55, %s11856_s14  ;;  %v9432_v10 = vsel %vm9420_vm3, %v9367_v35, %v8867_v27  ;;  %v7347_v55 = vsel %vm7306_vm2, 1.0, %v20305_v0  ;;  %v20306_v34 = vld [vmem:[#allocation183_spill] sm:$0xff] }
 0x60b   : > { %v9561_v41 = vsel %vm9550_vm5, %v9496_v37, 0.0  ;;  %8664 = vrot.lane.b32.xlu0 %v17581_v19, %s11855_s13  ;;  %v17616_v58 = vsel %vm7371_vm1, %v7347_v55, %v17153_v16  ;;  %v20307_v27 = vld [vmem:[#allocation99_spill] sm:$0xff]  ;;  %v20308_v37 = vld [vmem:[#allocation260_spill] sm:$0xff] }
 0x60c   : > { %9626 = vst.msk [vmem:[%s17310_s18 + $0x50] sm:$0xff] %vm9615_vm6, %v9561_v41  ;;  %v9304_v1 = vsel %vm7306_vm2, %v20307_v27, %v20306_v34  ;;  %v7350_v3 = vsel %vm7306_vm2, 1.0, %v20308_v37  ;;  %v20310_v16 = vld [vmem:[#allocation160_spill] sm:$0xff] }
 0x60d   : > { %v9123_v5 = vpop.permute.xlu1 %9122  ;;  %v8613_v50 = vpop.permute.xlu0 %8612  ;;  %v17629_v41 = vsel %vm7371_vm1, %v7350_v3, %v20309_v52  ;;  %v7796_v7 = vmul.f32 %v20310_v16, %v17616_v58 }
 0x60e   : > { %v9497_v33 = vsel %vm9485_vm4, %v9432_v10, %v9123_v5  ;;  %8670 = vrot.lane.b32.xlu1 %v17598_v9, %s11855_s13  ;;  %v9368_v13 = vsel %vm7371_vm1, %v9304_v1, %v8613_v50  ;;  %v20312_v10 = vld [vmem:[#allocation57_spill] sm:$0xff] }
 0x60f   : > { %v9562_v45 = vsel %vm9550_vm5, %v9497_v33, 0.0  ;;  %8920 = vrot.lane.b32.xlu0 %v7794_v15, %s11856_s14  ;;  %v20311_v15 = vld [vmem:[#allocation86_spill] sm:$0xff]  ;;  %v20313_v33 = vld [vmem:[#allocation43_spill] sm:$0xff] }
 0x610   : > { %9627 = vst.msk [vmem:[%s17310_s18 + $0x58] sm:$0xff] %vm9615_vm6, %v9562_v45  ;;  %v9305_v5 = vsel %vm7306_vm2, %v20312_v10, %v20311_v15  ;;  %v7799_v45 = vmul.f32 %v20313_v33, %v17629_v41  ;;  %v20320_v10 = vld [vmem:[#allocation267_spill] sm:$0xff] }
 0x611   : > { %v8615_v57 = vpop.permute.xlu1 %8614  ;;  %v8869_v38 = vpop.permute.xlu0 %8868 }
 0x612   : > { %8926 = vrot.lane.b32.xlu1 %v7797_v48, %s11856_s14  ;;  %v9433_v61 = vsel %vm9420_vm3, %v9368_v13, %v8869_v38  ;;  %v9369_v2 = vsel %vm7371_vm1, %v9305_v5, %v8615_v57  ;;  %v20314_v48 = vld [vmem:[#allocation265_spill] sm:$0xff]  ;;  %v20315_v57 = vld [vmem:[#allocation262_spill] sm:$0xff]  ;;  %v7351_v5 = vsel %vm7306_vm2, 1.0, %v20320_v10 }
 0x613   : > { %8668 = vrot.lane.b32.xlu0 %v17616_v58, %s11855_s13  ;;  %v7349_v0 = vsel %vm7306_vm2, 1.0, %v20314_v48  ;;  %v7352_v3 = vsel %vm7306_vm2, 1.0, %v20315_v57  ;;  %v20324_v57 = vld [vmem:[#allocation84_spill] sm:$0xff] }
 0x614   : > { %v17652_v27 = vsel %vm7371_vm1, %v7349_v0, %v17163_v53  ;;  %v17665_v13 = vsel %vm7371_vm1, %v7352_v3, %v17149_v14  ;;  %v20316_v53 = vld [vmem:[#allocation146_spill] sm:$0xff]  ;;  %v20321_v0 = vld [vmem:[#allocation136_spill] sm:$0xff] }
 0x615   : > { %v8871_v35 = vpop.permute.xlu1 %8870  ;;  %v9125_v63 = vpop.permute.xlu0 %9124  ;;  %v7798_v52 = vmul.f32 %v20316_v53, %v17652_v27  ;;  %v20325_v53 = vld [vmem:[#allocation33_spill] sm:$0xff] }
 0x616   : > { %v9498_v42 = vsel %vm9485_vm4, %v9433_v61, %v9125_v63  ;;  %8674 = vrot.lane.b32.xlu1 %v17629_v41, %s11855_s13  ;;  %v9434_v55 = vsel %vm9420_vm3, %v9369_v2, %v8871_v35  ;;  %v20317_v61 = vld [vmem:[#allocation65_spill] sm:$0xff]  ;;  %v20318_v35 = vld [vmem:[#allocation60_spill] sm:$0xff]  ;;  %v17683_v2 = vsel %vm7371_vm1, %v7351_v5, %v17174_v26 }
 0x617   : > { %v9563_v50 = vsel %vm9550_vm5, %v9498_v42, 0.0  ;;  %8924 = vrot.lane.b32.xlu0 %v7796_v7, %s11856_s14  ;;  %v9306_v63 = vsel %vm7306_vm2, %v20318_v35, %v20317_v61  ;;  %v20319_v42 = vld [vmem:[#allocation94_spill] sm:$0xff] }
 0x618   : > { %9628 = vst.msk [vmem:[%s17310_s18 + $0x60] sm:$0xff] %vm9615_vm6, %v9563_v50  ;;  %v7801_v15 = vmul.f32 %v20319_v42, %v17665_v13  ;;  %v20326_v42 = vld [vmem:[#allocation45_spill] sm:$0xff] }
 0x619   : > { %v9127_v38 = vpop.permute.xlu1 %9126  ;;  %v8617_v34 = vpop.permute.xlu0 %8616 }
 0x61a   : > { %v9499_v1 = vsel %vm9485_vm4, %v9434_v55, %v9127_v38  ;;  %8930 = vrot.lane.b32.xlu1 %v7799_v45, %s11856_s14  ;;  %v9370_v14 = vsel %vm7371_vm1, %v9306_v63, %v8617_v34  ;;  %v20322_v55 = vld [vmem:[#allocation11_spill] sm:$0xff] }
 0x61b   : > { %v9564_v37 = vsel %vm9550_vm5, %v9499_v1, 0.0  ;;  %8672 = vrot.lane.b32.xlu0 %v17652_v27, %s11855_s13  ;;  %v9307_v38 = vsel %vm7306_vm2, %v20322_v55, %v20321_v0  ;;  %v20323_v1 = vld [vmem:[#allocation264_spill] sm:$0xff] }
 0x61c   : > { %9629 = vst.msk [vmem:[%s17310_s18 + $0x68] sm:$0xff] %vm9615_vm6, %v9564_v37  ;;  %v7354_v37 = vsel %vm7306_vm2, 1.0, %v20323_v1  ;;  %v20329_v0 = vld [vmem:[#allocation152_spill] sm:$0xff] }
 0x61d   : > { %v8619_v16 = vpop.permute.xlu1 %8618  ;;  %v8873_v7 = vpop.permute.xlu0 %8872  ;;  %v17700_v3 = vsel %vm7371_vm1, %v7354_v37, %v20324_v57  ;;  %v20332_v57 = vld [vmem:[#allocation271_spill] sm:$0xff] }
 0x61e   : > { %8678 = vrot.lane.b32.xlu1 %v17665_v13, %s11855_s13  ;;  %v9435_v50 = vsel %vm9420_vm3, %v9370_v14, %v8873_v7  ;;  %v9371_v26 = vsel %vm7371_vm1, %v9307_v38, %v8619_v16  ;;  %v20327_v14 = vld [vmem:[#allocation269_spill] sm:$0xff]  ;;  %v20330_v38 = vld [vmem:[#allocation147_spill] sm:$0xff] }
 0x61f   : > { %8928 = vrot.lane.b32.xlu0 %v7798_v52, %s11856_s14  ;;  %v7800_v52 = vmul.f32 %v20325_v53, %v17683_v2  ;;  %v7353_v10 = vsel %vm7306_vm2, 1.0, %v20327_v14  ;;  %v7355_v53 = vsel %vm7306_vm2, 1.0, %v20332_v57 }
 0x621   : > { %v8875_v33 = vpop.permute.xlu1 %8874  ;;  %v9129_v45 = vpop.permute.xlu0 %9128 }
 0x622   : > { %v9500_v48 = vsel %vm9485_vm4, %v9435_v50, %v9129_v45  ;;  %8934 = vrot.lane.b32.xlu1 %v7801_v15, %s11856_s14  ;;  %v9436_v7 = vsel %vm9420_vm3, %v9371_v26, %v8875_v33  ;;  %v7803_v15 = vmul.f32 %v20326_v42, %v17700_v3  ;;  %v17724_v33 = vsel %vm7371_vm1, %v7353_v10, %v17183_v24  ;;  %v20328_v45 = vld [vmem:[#allocation266_spill] sm:$0xff]  ;;  %v20331_v24 = vld [vmem:[#allocation40_spill] sm:$0xff] }
 0x623   : > { %v9565_v34 = vsel %vm9550_vm5, %v9500_v48, 0.0  ;;  %8676 = vrot.lane.b32.xlu0 %v17683_v2, %s11855_s13  ;;  %v7356_v48 = vsel %vm7306_vm2, 1.0, %v20328_v45 }
 0x624   : > { %9630 = vst.msk [vmem:[%s17310_s18 + $0x70] sm:$0xff] %vm9615_vm6, %v9565_v34  ;;  %v17733_v55 = vsel %vm7371_vm1, %v7356_v48, %v20329_v0  ;;  %v7802_v34 = vmul.f32 %v20330_v38, %v17724_v33  ;;  %v20338_v0 = vld [vmem:[#allocation273_spill] sm:$0xff] }
 0x625   : > { %v9131_v61 = vpop.permute.xlu1 %9130  ;;  %v17705_v35 = vpop.permute.xlu0 %8620  ;;  %v7805_v26 = vmul.f32 %v20331_v24, %v17733_v55  ;;  %v7357_v38 = vsel %vm7306_vm2, 1.0, %v20338_v0 }
 0x626   : > { %v9501_v63 = vsel %vm9485_vm4, %v9436_v7, %v9131_v61  ;;  %8682 = vrot.lane.b32.xlu1 %v17700_v3, %s11855_s13  ;;  %v17754_v61 = vsel %vm7371_vm1, %v7355_v53, %v17193_v28  ;;  %v20337_v28 = vld [vmem:[#allocation44_spill] sm:$0xff]  ;;  %v17784_v24 = vsel %vm7371_vm1, %v7357_v38, %v17206_v40  ;;  %v20345_v40 = vld [vmem:[#allocation169_spill] sm:$0xff] }
 0x627   : > { %v9566_v16 = vsel %vm9550_vm5, %v9501_v63, 0.0  ;;  %8932 = vrot.lane.b32.xlu0 %v7800_v52, %s11856_s14  ;;  %v20333_v63 = vld [vmem:[#allocation268_spill] sm:$0xff] }
 0x628   : > { %9631 = vst.msk [vmem:[%s17310_s18 + $0x78] sm:$0xff] %vm9615_vm6, %v9566_v16  ;;  %v7358_v16 = vsel %vm7306_vm2, 1.0, %v20333_v63  ;;  %v20342_v63 = vld [vmem:[#allocation165_spill] sm:$0xff] }
 0x629   : > { %v17718_v5 = vpop.permute.xlu1 %8622  ;;  %v17720_v50 = vpop.permute.xlu0 %8876  ;;  %v17763_v42 = vsel %vm7371_vm1, %v7358_v16, %v17179_v21  ;;  %v7806_v16 = vmul.f32 %v20342_v63, %v17784_v24 }
 0x62a   : > { %8938 = vrot.lane.b32.xlu1 %v7803_v15, %s11856_s14  ;;  %v20334_v15 = vld [vmem:[#allocation154_spill] sm:$0xff]  ;;  %v7807_v48 = vmul.f32 %v20337_v28, %v17763_v42 }
 0x62b   : > { %8680 = vrot.lane.b32.xlu0 %v17724_v33, %s11855_s13  ;;  %v7804_v14 = vmul.f32 %v20334_v15, %v17754_v61 }
 0x62d   : > { %v17737_v1 = vpop.permute.xlu1 %8878  ;;  %v17739_v37 = vpop.permute.xlu0 %8624 }
 0x62e   : > { %8686 = vrot.lane.b32.xlu1 %v17733_v55, %s11855_s13 }
 0x62f   : > { %8936 = vrot.lane.b32.xlu0 %v7802_v34, %s11856_s14 }
 0x631   : > { %v17748_v52 = vpop.permute.xlu1 %8626  ;;  %v17750_v7 = vpop.permute.xlu0 %8880 }
 0x632   : > { %8942 = vrot.lane.b32.xlu1 %v7805_v26, %s11856_s14  ;;  %v20341_v26 = vld [vmem:[#allocation270_spill] sm:$0xff] }
 0x633   : > { %8684 = vrot.lane.b32.xlu0 %v17754_v61, %s11855_s13  ;;  %v7360_v57 = vsel %vm7306_vm2, 1.0, %v20341_v26 }
 0x634   : > { %v17793_v53 = vsel %vm7371_vm1, %v7360_v57, %v17190_v56  ;;  %v20349_v57 = vld [vmem:[#allocation272_spill] sm:$0xff] }
 0x635   : > { %v17767_v10 = vpop.permute.xlu1 %8882  ;;  %v17769_v45 = vpop.permute.xlu0 %8628  ;;  %v7809_v28 = vmul.f32 %v20345_v40, %v17793_v53  ;;  %v7362_v63 = vsel %vm7306_vm2, 1.0, %v20349_v57  ;;  %v20350_v40 = vld [vmem:[#allocation168_spill] sm:$0xff] }
 0x636   : > { %20335 = vst [vmem:[#allocation185_spill] sm:$0xff] %v17767_v10  ;;  %20336 = vst [vmem:[#allocation189_spill] sm:$0xff] %v17769_v45  ;;  %8690 = vrot.lane.b32.xlu1 %v17763_v42, %s11855_s13 }
 0x637   : > { %8940 = vrot.lane.b32.xlu0 %v7804_v14, %s11856_s14 }
 0x639   : > { %v17778_v21 = vpop.permute.xlu1 %8630  ;;  %v17780_v34 = vpop.permute.xlu0 %8884 }
 0x63a   : > { %20339 = vst [vmem:[#allocation164_spill] sm:$0xff] %v17778_v21  ;;  %20340 = vst [vmem:[#allocation56_spill] sm:$0xff] %v17780_v34  ;;  %8946 = vrot.lane.b32.xlu1 %v7807_v48, %s11856_s14  ;;  %v20346_v48 = vld [vmem:[#allocation275_spill] sm:$0xff] }
 0x63b   : > { %8688 = vrot.lane.b32.xlu0 %v17784_v24, %s11855_s13  ;;  %v7359_v0 = vsel %vm7306_vm2, 1.0, %v20346_v48  ;;  %v20398_v21 = vld [vmem:[#allocation15_spill] sm:$0xff] }
 0x63c   : > { %v17814_v26 = vsel %vm7371_vm1, %v7359_v0, %v17215_v36  ;;  %v20353_v36 = vld [vmem:[#allocation58_spill] sm:$0xff]  ;;  %v20354_v0 = vld [vmem:[#allocation277_spill] sm:$0xff] }
 0x63d   : > { %v17797_v15 = vpop.permute.xlu1 %8886  ;;  %v17799_v14 = vpop.permute.xlu0 %8632  ;;  %v7808_v48 = vmul.f32 %v20350_v40, %v17814_v26  ;;  %v7361_v57 = vsel %vm7306_vm2, 1.0, %v20354_v0  ;;  %v20358_v0 = vld [vmem:[#allocation167_spill] sm:$0xff] }
 0x63e   : > { %20343 = vst [vmem:[#allocation191_spill] sm:$0xff] %v17797_v15  ;;  %20344 = vst [vmem:[#allocation194_spill] sm:$0xff] %v17799_v14  ;;  %8694 = vrot.lane.b32.xlu1 %v17793_v53, %s11855_s13  ;;  %v17844_v40 = vsel %vm7371_vm1, %v7361_v57, %v17234_v12  ;;  %v20361_v12 = vld [vmem:[#allocation211_spill] sm:$0xff] }
 0x63f   : > { %8944 = vrot.lane.b32.xlu0 %v7806_v16, %s11856_s14  ;;  %v17823_v16 = vsel %vm7371_vm1, %v7362_v63, %v17204_v46  ;;  %v20362_v57 = vld [vmem:[#allocation279_spill] sm:$0xff] }
 0x641   : > { %v17808_v56 = vpop.permute.xlu1 %8634  ;;  %v17810_v38 = vpop.permute.xlu0 %8888 }
 0x642   : > { %20347 = vst [vmem:[#allocation4_spill] sm:$0xff] %v17808_v56  ;;  %20348 = vst [vmem:[#allocation188_spill] sm:$0xff] %v17810_v38  ;;  %8950 = vrot.lane.b32.xlu1 %v7809_v28, %s11856_s14  ;;  %v7811_v28 = vmul.f32 %v20353_v36, %v17823_v16 }
 0x643   : > { %8692 = vrot.lane.b32.xlu0 %v17814_v26, %s11855_s13 }
 0x645   : > { %v17827_v56 = vpop.permute.xlu1 %8890  ;;  %v17829_v38 = vpop.permute.xlu0 %8636 }
 0x646   : > { %20351 = vst [vmem:[#allocation198_spill] sm:$0xff] %v17827_v56  ;;  %20352 = vst [vmem:[#allocation204_spill] sm:$0xff] %v17829_v38  ;;  %8698 = vrot.lane.b32.xlu1 %v17823_v16, %s11855_s13 }
 0x647   : > { %8948 = vrot.lane.b32.xlu0 %v7808_v48, %s11856_s14  ;;  %v20357_v48 = vld [vmem:[#allocation274_spill] sm:$0xff] }
 0x648   : > { %v7364_v56 = vsel %vm7306_vm2, 1.0, %v20357_v48  ;;  %v7363_v48 = vsel %vm7306_vm2, 1.0, %v20362_v57  ;;  %v20366_v57 = vld [vmem:[#allocation100_spill] sm:$0xff] }
 0x649   : > { %v17838_v46 = vpop.permute.xlu1 %8638  ;;  %v17840_v63 = vpop.permute.xlu0 %8892  ;;  %v17853_v36 = vsel %vm7371_vm1, %v7364_v56, %v17222_v17 }
 0x64a   : > { %20355 = vst [vmem:[#allocation190_spill] sm:$0xff] %v17838_v46  ;;  %20356 = vst [vmem:[#allocation193_spill] sm:$0xff] %v17840_v63  ;;  %8954 = vrot.lane.b32.xlu1 %v7811_v28, %s11856_s14  ;;  %v7810_v46 = vmul.f32 %v20358_v0, %v17844_v40  ;;  %v7813_v28 = vmul.f32 %v20361_v12, %v17853_v36  ;;  %v17874_v0 = vsel %vm7371_vm1, %v7363_v48, %v17245_v22  ;;  %v20369_v22 = vld [vmem:[#allocation200_spill] sm:$0xff]  ;;  %v20370_v48 = vld [vmem:[#allocation281_spill] sm:$0xff] }
 0x64b   : > { %8696 = vrot.lane.b32.xlu0 %v17844_v40, %s11855_s13 }
 0x64d   : > { %v17857_v63 = vpop.permute.xlu1 %8894  ;;  %v17859_v38 = vpop.permute.xlu0 %8640 }
 0x64e   : > { %20359 = vst [vmem:[#allocation207_spill] sm:$0xff] %v17857_v63  ;;  %20360 = vst [vmem:[#allocation213_spill] sm:$0xff] %v17859_v38  ;;  %8702 = vrot.lane.b32.xlu1 %v17853_v36, %s11855_s13 }
 0x64f   : > { %8952 = vrot.lane.b32.xlu0 %v7810_v46, %s11856_s14  ;;  %v20365_v46 = vld [vmem:[#allocation276_spill] sm:$0xff] }
 0x650   : > { %v7366_v63 = vsel %vm7306_vm2, 1.0, %v20365_v46  ;;  %v7365_v46 = vsel %vm7306_vm2, 1.0, %v20370_v48  ;;  %v20375_v48 = vld [vmem:[#allocation153_spill] sm:$0xff] }
 0x651   : > { %v17868_v17 = vpop.permute.xlu1 %8642  ;;  %v17870_v56 = vpop.permute.xlu0 %8896  ;;  %v17883_v12 = vsel %vm7371_vm1, %v7366_v63, %v17243_v44 }
 0x652   : > { %20363 = vst [vmem:[#allocation197_spill] sm:$0xff] %v17868_v17  ;;  %20364 = vst [vmem:[#allocation203_spill] sm:$0xff] %v17870_v56  ;;  %8958 = vrot.lane.b32.xlu1 %v7813_v28, %s11856_s14  ;;  %v7812_v17 = vmul.f32 %v20366_v57, %v17874_v0  ;;  %v7815_v28 = vmul.f32 %v20369_v22, %v17883_v12  ;;  %v17904_v57 = vsel %vm7371_vm1, %v7365_v46, %v17269_v47  ;;  %v20374_v22 = vld [vmem:[#allocation103_spill] sm:$0xff]  ;;  %v20378_v47 = vld [vmem:[#allocation209_spill] sm:$0xff] }
 0x653   : > { %8700 = vrot.lane.b32.xlu0 %v17874_v0, %s11855_s13  ;;  %v20379_v46 = vld [vmem:[#allocation282_spill] sm:$0xff] }
 0x655   : > { %v17887_v56 = vpop.permute.xlu1 %8898  ;;  %v17889_v38 = vpop.permute.xlu0 %8644 }
 0x656   : > { %20367 = vst [vmem:[#allocation173_spill] sm:$0xff] %v17887_v56  ;;  %20368 = vst [vmem:[#allocation21_spill] sm:$0xff] %v17889_v38  ;;  %8706 = vrot.lane.b32.xlu1 %v17883_v12, %s11855_s13  ;;  %v7814_v38 = vmul.f32 %v20374_v22, %v17904_v57 }
 0x657   : > { %8956 = vrot.lane.b32.xlu0 %v7812_v17, %s11856_s14  ;;  %v20373_v17 = vld [vmem:[#allocation278_spill] sm:$0xff] }
 0x658   : > { %v7368_v56 = vsel %vm7306_vm2, 1.0, %v20373_v17  ;;  %v7367_v17 = vsel %vm7306_vm2, 1.0, %v20379_v46 }
 0x659   : > { %v17898_v44 = vpop.permute.xlu1 %8646  ;;  %v17900_v63 = vpop.permute.xlu0 %8900 }
 0x65a   : > { %20371 = vst [vmem:[#allocation206_spill] sm:$0xff] %v17898_v44  ;;  %20372 = vst [vmem:[#allocation212_spill] sm:$0xff] %v17900_v63  ;;  %8962 = vrot.lane.b32.xlu1 %v7815_v28, %s11856_s14  ;;  %v17915_v44 = vsel %vm7371_vm1, %v7368_v56, %v20375_v48  ;;  %v17934_v56 = vsel %vm7371_vm1, %v7367_v17, %v17342_v6  ;;  %v20386_v6 = vld [vmem:[#allocation175_spill] sm:$0xff] }
 0x65b   : > { %8704 = vrot.lane.b32.xlu0 %v17904_v57, %s11855_s13  ;;  %v7817_v28 = vmul.f32 %v20378_v47, %v17915_v44  ;;  %v20383_v47 = vld [vmem:[#allocation62_spill] sm:$0xff]  ;;  %v20387_v17 = vld [vmem:[#allocation283_spill] sm:$0xff] }
 0x65d   : > { %v17917_v63 = vpop.permute.xlu1 %8902  ;;  %v17919_v15 = vpop.permute.xlu0 %8648 }
 0x65e   : > { %20376 = vst [vmem:[#allocation17_spill] sm:$0xff] %v17917_v63  ;;  %20377 = vst [vmem:[#allocation55_spill] sm:$0xff] %v17919_v15  ;;  %8710 = vrot.lane.b32.xlu1 %v17915_v44, %s11855_s13  ;;  %v7816_v63 = vmul.f32 %v20383_v47, %v17934_v56 }
 0x65f   : > { %8960 = vrot.lane.b32.xlu0 %v7814_v38, %s11856_s14  ;;  %v20382_v38 = vld [vmem:[#allocation280_spill] sm:$0xff] }
 0x660   : > { %v7370_v48 = vsel %vm7306_vm2, 1.0, %v20382_v38  ;;  %v7369_v38 = vsel %vm7306_vm2, 1.0, %v20387_v17 }
 0x661   : > { %v17928_v22 = vpop.permute.xlu1 %8650  ;;  %v17930_v14 = vpop.permute.xlu0 %8904  ;;  %v17945_v46 = vsel %vm7371_vm1, %v7370_v48, %v17344_v54  ;;  %v17964_v54 = vsel %vm7371_vm1, %v7369_v38, %v17408_v25  ;;  %v20391_v48 = vld [vmem:[#allocation130_spill] sm:$0xff]  ;;  %v20395_v25 = vld [vmem:[#allocation149_spill] sm:$0xff]  ;;  %v20396_v38 = vld [vmem:[#allocation67_spill] sm:$0xff] }
 0x662   : > { %20380 = vst [vmem:[#allocation106_spill] sm:$0xff] %v17928_v22  ;;  %20381 = vst [vmem:[#allocation102_spill] sm:$0xff] %v17930_v14  ;;  %8966 = vrot.lane.b32.xlu1 %v7817_v28, %s11856_s14  ;;  %v7819_v28 = vmul.f32 %v20386_v6, %v17945_v46  ;;  %v20392_v6 = vld [vmem:[#allocation196_spill] sm:$0xff] }
 0x663   : > { %8708 = vrot.lane.b32.xlu0 %v17934_v56, %s11855_s13 }
 0x665   : > { %v17947_v22 = vpop.permute.xlu1 %8906  ;;  %v17949_v14 = vpop.permute.xlu0 %8652 }
 0x666   : > { %20384 = vst [vmem:[#allocation112_spill] sm:$0xff] %v17947_v22  ;;  %20385 = vst [vmem:[#allocation176_spill] sm:$0xff] %v17949_v14  ;;  %8714 = vrot.lane.b32.xlu1 %v17945_v46, %s11855_s13  ;;  %v7818_v14 = vmul.f32 %v20392_v6, %v17964_v54  ;;  %v20401_v6 = vld [vmem:[#allocation74_spill] sm:$0xff] }
 0x667   : > { %8964 = vrot.lane.b32.xlu0 %v7816_v63, %s11856_s14  ;;  %v20390_v63 = vld [vmem:[#allocation162_spill] sm:$0xff] }
 0x668   : > { %v8221_v22 = vmul.f32 %v20391_v48, %v20390_v63  ;;  %v20400_v48 = vld [vmem:[#allocation184_spill] sm:$0xff] }
 0x669   : > { %v17958_v47 = vpop.permute.xlu1 %8654  ;;  %v17960_v15 = vpop.permute.xlu0 %8908 }
 0x66a   : > { %20388 = vst [vmem:[#allocation104_spill] sm:$0xff] %v17958_v47  ;;  %20389 = vst [vmem:[#allocation30_spill] sm:$0xff] %v17960_v15  ;;  %8970 = vrot.lane.b32.xlu1 %v7819_v28, %s11856_s14  ;;  %v8223_v28 = vmul.f32 %v20396_v38, %v20395_v25  ;;  %v20397_v15 = vld [vmem:[#allocation156_spill] sm:$0xff]  ;;  %v20405_v38 = vld [vmem:[#allocation159_spill] sm:$0xff] }
 0x66b   : > { %8712 = vrot.lane.b32.xlu0 %v17964_v54, %s11855_s13  ;;  %v8220_v34 = vmul.f32 %v20398_v21, %v20397_v15  ;;  %v20404_v21 = vld [vmem:[#allocation79_spill] sm:$0xff] }
 0x66c   : > { %v8227_v15 = vmul.f32 %v20404_v21, %v17284_v60  ;;  %v20409_v21 = vld [vmem:[#allocation123_spill] sm:$0xff] }
 0x66d   : > { %v17973_v17 = vpop.permute.xlu1 %8910  ;;  %v17975_v47 = vpop.permute.xlu0 %8656 }
 0x66e   : > { %20393 = vst [vmem:[#allocation88_spill] sm:$0xff] %v17973_v17  ;;  %20394 = vst [vmem:[#allocation13_spill] sm:$0xff] %v17975_v47  ;;  %9134 = vrot.lane.b32.xlu1 %v8221_v22, %s11857_s15  ;;  %v8225_v17 = vmul.f32 %v20401_v6, %v20400_v48  ;;  %v20402_v22 = vld [vmem:[#allocation163_spill] sm:$0xff] }
 0x66f   : > { %8968 = vrot.lane.b32.xlu0 %v7818_v14, %s11856_s14  ;;  %v20403_v47 = vld [vmem:[#allocation19_spill] sm:$0xff] }
 0x670   : > { %v8222_v14 = vmul.f32 %v20403_v47, %v20402_v22  ;;  %v20407_v47 = vld [vmem:[#allocation73_spill] sm:$0xff] }
 0x671   : > { %v17983_v10 = vpop.permute.xlu1 %8658  ;;  %v17985_v63 = vpop.permute.xlu0 %8912  ;;  %v8229_v6 = vmul.f32 %v20407_v47, %v17331_v31 }
 0x672   : > { %20399 = vst [vmem:[#allocation178_spill] sm:$0xff] %v17983_v10  ;;  %9138 = vrot.lane.b32.xlu1 %v8223_v28, %s11857_s15  ;;  %v20406_v28 = vld [vmem:[#allocation111_spill] sm:$0xff] }
 0x673   : > { %9132 = vrot.lane.b32.xlu0 %v8220_v34, %s11857_s15  ;;  %v8224_v34 = vmul.f32 %v20406_v28, %v20405_v38  ;;  %v8231_v38 = vmul.f32 %v20409_v21, %v17357_v43  ;;  %v20416_v21 = vld [vmem:[#allocation52_spill] sm:$0xff] }
 0x675   : > { %v17993_v45 = vpop.permute.xlu1 %8914  ;;  %v17995_v25 = vpop.permute.xlu0 %8660 }
 0x676   : > { %9142 = vrot.lane.b32.xlu1 %v8225_v17, %s11857_s15  ;;  %v20408_v17 = vld [vmem:[#allocation105_spill] sm:$0xff] }
 0x677   : > { %9136 = vrot.lane.b32.xlu0 %v8222_v14, %s11857_s15  ;;  %v8226_v22 = vmul.f32 %v20408_v17, %v17314_v39  ;;  %v20412_v39 = vld [vmem:[#allocation137_spill] sm:$0xff] }
 0x678   : > { %v8233_v47 = vmul.f32 %v20412_v39, %v17397_v11 }
 0x679   : > { %v18003_v10 = vpop.permute.xlu1 %8662  ;;  %v18005_v48 = vpop.permute.xlu0 %8916 }
 0x67a   : > { %9146 = vrot.lane.b32.xlu1 %v8227_v15, %s11857_s15  ;;  %v20410_v15 = vld [vmem:[#allocation121_spill] sm:$0xff] }
 0x67b   : > { %9140 = vrot.lane.b32.xlu0 %v8224_v34, %s11857_s15  ;;  %v8228_v28 = vmul.f32 %v20410_v15, %v17348_v32  ;;  %v20415_v32 = vld [vmem:[#allocation232_spill] sm:$0xff] }
 0x67c   : > { %v9332_v15 = vsel %vm7306_vm2, %v20416_v21, %v20415_v32 }
 0x67d   : > { %v18013_v14 = vpop.permute.xlu1 %8918  ;;  %v18015_v60 = vpop.permute.xlu0 %8664 }
 0x67e   : > { %9150 = vrot.lane.b32.xlu1 %v8229_v6, %s11857_s15  ;;  %v20413_v6 = vld [vmem:[#allocation23_spill] sm:$0xff] }
 0x67f   : > { %9144 = vrot.lane.b32.xlu0 %v8226_v22, %s11857_s15  ;;  %v8230_v17 = vmul.f32 %v20413_v6, %v17380_v20 }
 0x681   : > { %v18023_v34 = vpop.permute.xlu1 %8666  ;;  %v18025_v31 = vpop.permute.xlu0 %8920 }
 0x682   : > { %20411 = vst [vmem:[#allocation82_spill] sm:$0xff] %v18023_v34  ;;  %9154 = vrot.lane.b32.xlu1 %v8231_v38, %s11857_s15  ;;  %v20417_v38 = vld [vmem:[#allocation32_spill] sm:$0xff]  ;;  %v20418_v34 = vld [vmem:[#allocation85_spill] sm:$0xff] }
 0x683   : > { %9148 = vrot.lane.b32.xlu0 %v8228_v28, %s11857_s15  ;;  %v8235_v28 = vmul.f32 %v20417_v38, %v17425_v30  ;;  %v8232_v11 = vmul.f32 %v20418_v34, %v17412_v29  ;;  %v20421_v30 = vld [vmem:[#allocation89_spill] sm:$0xff]  ;;  %v20422_v29 = vld [vmem:[#allocation31_spill] sm:$0xff] }
 0x684   : > { %v8237_v21 = vmul.f32 %v20421_v30, %v17461_v18  ;;  %v8234_v34 = vmul.f32 %v20422_v29, %v17448_v49  ;;  %v20425_v18 = vld [vmem:[#allocation139_spill] sm:$0xff]  ;;  %v20426_v49 = vld [vmem:[#allocation182_spill] sm:$0xff] }
 0x685   : > { %v18033_v22 = vpop.permute.xlu1 %8922  ;;  %v8669_v43 = vpop.permute.xlu0 %8668 }
 0x686   : > { %20414 = vst [vmem:[#allocation180_spill] sm:$0xff] %v18033_v22  ;;  %9158 = vrot.lane.b32.xlu1 %v8233_v47, %s11857_s15  ;;  %v9396_v39 = vsel %vm7371_vm1, %v9332_v15, %v8669_v43  ;;  %v20419_v47 = vld [vmem:[#allocation237_spill] sm:$0xff] }
 0x687   : > { %9152 = vrot.lane.b32.xlu0 %v8230_v17, %s11857_s15  ;;  %v20420_v17 = vld [vmem:[#allocation171_spill] sm:$0xff] }
 0x688   : > { %v9333_v32 = vsel %vm7306_vm2, %v20420_v17, %v20419_v47  ;;  %v8239_v47 = vmul.f32 %v20425_v18, %v17496_v51  ;;  %v8236_v17 = vmul.f32 %v20426_v49, %v17479_v59  ;;  %v20429_v51 = vld [vmem:[#allocation38_spill] sm:$0xff]  ;;  %v20432_v49 = vld [vmem:[#allocation199_spill] sm:$0xff] }
 0x689   : > { %v8671_v20 = vpop.permute.xlu1 %8670  ;;  %v8925_v6 = vpop.permute.xlu0 %8924  ;;  %v20430_v59 = vld [vmem:[#allocation22_spill] sm:$0xff] }
 0x68a   : > { %v18046_v22 = vsel %vm9420_vm3, %v9396_v39, %v8925_v6  ;;  %9162 = vrot.lane.b32.xlu1 %v8235_v28, %s11857_s15  ;;  %v9397_v43 = vsel %vm7371_vm1, %v9333_v32, %v8671_v20  ;;  %v20423_v28 = vld [vmem:[#allocation234_spill] sm:$0xff] }
 0x68b   : > { %9156 = vrot.lane.b32.xlu0 %v8232_v11, %s11857_s15  ;;  %v20424_v11 = vld [vmem:[#allocation172_spill] sm:$0xff] }
 0x68c   : > { %v9334_v6 = vsel %vm7306_vm2, %v20424_v11, %v20423_v28  ;;  %v8238_v28 = vmul.f32 %v20430_v59, %v17514_v62  ;;  %v20434_v62 = vld [vmem:[#allocation90_spill] sm:$0xff] }
 0x68d   : > { %v8927_v15 = vpop.permute.xlu1 %8926  ;;  %v8673_v38 = vpop.permute.xlu0 %8672 }
 0x68e   : > { %v18059_v39 = vsel %vm9420_vm3, %v9397_v43, %v8927_v15  ;;  %9166 = vrot.lane.b32.xlu1 %v8237_v21, %s11857_s15  ;;  %v9398_v20 = vsel %vm7371_vm1, %v9334_v6, %v8673_v38  ;;  %v20427_v21 = vld [vmem:[#allocation239_spill] sm:$0xff]  ;;  %v8241_v15 = vmul.f32 %v20429_v51, %v17527_v8  ;;  %v20433_v8 = vld [vmem:[#allocation92_spill] sm:$0xff]  ;;  %v20435_v51 = vld [vmem:[#allocation241_spill] sm:$0xff] }
 0x68f   : > { %9160 = vrot.lane.b32.xlu0 %v8234_v34, %s11857_s15  ;;  %v20428_v34 = vld [vmem:[#allocation202_spill] sm:$0xff] }
 0x690   : > { %v9335_v43 = vsel %vm7306_vm2, %v20428_v34, %v20427_v21 }
 0x691   : > { %v8675_v32 = vpop.permute.xlu1 %8674  ;;  %v8929_v30 = vpop.permute.xlu0 %8928 }
 0x692   : > { %v18072_v29 = vsel %vm9420_vm3, %v9398_v20, %v8929_v30  ;;  %9170 = vrot.lane.b32.xlu1 %v8239_v47, %s11857_s15  ;;  %v9399_v38 = vsel %vm7371_vm1, %v9335_v43, %v8675_v32  ;;  %v20431_v47 = vld [vmem:[#allocation236_spill] sm:$0xff]  ;;  %v8243_v20 = vmul.f32 %v20433_v8, %v17563_v23  ;;  %v8240_v30 = vmul.f32 %v20434_v62, %v17550_v4  ;;  %v20437_v23 = vld [vmem:[#allocation41_spill] sm:$0xff]  ;;  %v20438_v4 = vld [vmem:[#allocation83_spill] sm:$0xff] }
 0x693   : > { %9164 = vrot.lane.b32.xlu0 %v8236_v17, %s11857_s15  ;;  %v9336_v17 = vsel %vm7306_vm2, %v20432_v49, %v20431_v47  ;;  %v20440_v8 = vld [vmem:[#allocation208_spill] sm:$0xff] }
 0x695   : > { %v8931_v11 = vpop.permute.xlu1 %8930  ;;  %v8677_v6 = vpop.permute.xlu0 %8676 }
 0x696   : > { %v18085_v18 = vsel %vm9420_vm3, %v9399_v38, %v8931_v11  ;;  %9174 = vrot.lane.b32.xlu1 %v8241_v15, %s11857_s15  ;;  %v9400_v32 = vsel %vm7371_vm1, %v9336_v17, %v8677_v6  ;;  %v20436_v15 = vld [vmem:[#allocation210_spill] sm:$0xff]  ;;  %v8242_v38 = vmul.f32 %v20438_v4, %v17581_v19  ;;  %v20442_v19 = vld [vmem:[#allocation5_spill] sm:$0xff] }
 0x697   : > { %9168 = vrot.lane.b32.xlu0 %v8238_v28, %s11857_s15  ;;  %v9337_v59 = vsel %vm7306_vm2, %v20436_v15, %v20435_v51  ;;  %v8245_v28 = vmul.f32 %v20437_v23, %v17598_v9  ;;  %v20439_v17 = vld [vmem:[#allocation238_spill] sm:$0xff]  ;;  %v20443_v15 = vld [vmem:[#allocation243_spill] sm:$0xff] }
 0x698   : > { %v20441_v9 = vld [vmem:[#allocation158_spill] sm:$0xff] }
 0x699   : > { %v8679_v21 = vpop.permute.xlu1 %8678  ;;  %v8933_v34 = vpop.permute.xlu0 %8932  ;;  %v8247_v62 = vmul.f32 %v20441_v9, %v17629_v41  ;;  %v20445_v41 = vld [vmem:[#allocation161_spill] sm:$0xff] }
 0x69a   : > { %v18098_v43 = vsel %vm9420_vm3, %v9400_v32, %v8933_v34  ;;  %9178 = vrot.lane.b32.xlu1 %v8243_v20, %s11857_s15  ;;  %v9401_v11 = vsel %vm7371_vm1, %v9337_v59, %v8679_v21  ;;  %v9338_v20 = vsel %vm7306_vm2, %v20440_v8, %v20439_v17  ;;  %v20444_v59 = vld [vmem:[#allocation6_spill] sm:$0xff]  ;;  %v20447_v17 = vld [vmem:[#allocation240_spill] sm:$0xff] }
 0x69b   : > { %9172 = vrot.lane.b32.xlu0 %v8240_v30, %s11857_s15  ;;  %v8244_v30 = vmul.f32 %v20442_v19, %v17616_v58  ;;  %v9339_v23 = vsel %vm7306_vm2, %v20444_v59, %v20443_v15  ;;  %v20446_v58 = vld [vmem:[#allocation132_spill] sm:$0xff] }
 0x69c   : > { %v8246_v4 = vmul.f32 %v20446_v58, %v17652_v27  ;;  %v20448_v8 = vld [vmem:[#allocation128_spill] sm:$0xff]  ;;  %v20450_v27 = vld [vmem:[#allocation51_spill] sm:$0xff] }
 0x69d   : > { %v8935_v6 = vpop.permute.xlu1 %8934  ;;  %v8681_v47 = vpop.permute.xlu0 %8680  ;;  %v20452_v15 = vld [vmem:[#allocation108_spill] sm:$0xff] }
 0x69e   : > { %v18111_v49 = vsel %vm9420_vm3, %v9401_v11, %v8935_v6  ;;  %9182 = vrot.lane.b32.xlu1 %v8245_v28, %s11857_s15  ;;  %v9402_v32 = vsel %vm7371_vm1, %v9338_v20, %v8681_v47  ;;  %v8249_v28 = vmul.f32 %v20445_v41, %v17665_v13  ;;  %v9340_v20 = vsel %vm7306_vm2, %v20448_v8, %v20447_v17  ;;  %v20449_v13 = vld [vmem:[#allocation187_spill] sm:$0xff] }
 0x69f   : > { %9176 = vrot.lane.b32.xlu0 %v8242_v38, %s11857_s15  ;;  %v8251_v9 = vmul.f32 %v20449_v13, %v17700_v3  ;;  %v20453_v3 = vld [vmem:[#allocation48_spill] sm:$0xff] }
 0x6a1   : > { %v8683_v21 = vpop.permute.xlu1 %8682  ;;  %v8937_v34 = vpop.permute.xlu0 %8936 }
 0x6a2   : > { %v18124_v51 = vsel %vm9420_vm3, %v9402_v32, %v8937_v34  ;;  %9186 = vrot.lane.b32.xlu1 %v8247_v62, %s11857_s15  ;;  %v9403_v38 = vsel %vm7371_vm1, %v9339_v23, %v8683_v21  ;;  %v8248_v62 = vmul.f32 %v20450_v27, %v17683_v2  ;;  %v20451_v34 = vld [vmem:[#allocation245_spill] sm:$0xff]  ;;  %v8253_v23 = vmul.f32 %v20453_v3, %v17733_v55  ;;  %v20454_v2 = vld [vmem:[#allocation155_spill] sm:$0xff]  ;;  %v20457_v55 = vld [vmem:[#allocation186_spill] sm:$0xff] }
 0x6a3   : > { %9180 = vrot.lane.b32.xlu0 %v8244_v30, %s11857_s15  ;;  %v9341_v59 = vsel %vm7306_vm2, %v20452_v15, %v20451_v34  ;;  %v8250_v41 = vmul.f32 %v20454_v2, %v17724_v33  ;;  %v8255_v8 = vmul.f32 %v20457_v55, %v17763_v42  ;;  %v20458_v33 = vld [vmem:[#allocation47_spill] sm:$0xff]  ;;  %v20461_v42 = vld [vmem:[#allocation54_spill] sm:$0xff] }
 0x6a4   : > { %v8257_v34 = vmul.f32 %v20461_v42, %v17793_v53  ;;  %v20465_v53 = vld [vmem:[#allocation9_spill] sm:$0xff] }
 0x6a5   : > { %v8939_v11 = vpop.permute.xlu1 %8938  ;;  %v8685_v6 = vpop.permute.xlu0 %8684 }
 0x6a6   : > { %v18137_v47 = vsel %vm9420_vm3, %v9403_v38, %v8939_v11  ;;  %9190 = vrot.lane.b32.xlu1 %v8249_v28, %s11857_s15  ;;  %v9404_v19 = vsel %vm7371_vm1, %v9340_v20, %v8685_v6  ;;  %v20455_v11 = vld [vmem:[#allocation242_spill] sm:$0xff]  ;;  %v20456_v6 = vld [vmem:[#allocation7_spill] sm:$0xff]  ;;  %v8252_v20 = vmul.f32 %v20458_v33, %v17754_v61  ;;  %v20462_v61 = vld [vmem:[#allocation96_spill] sm:$0xff] }
 0x6a7   : > { %9184 = vrot.lane.b32.xlu0 %v8246_v4, %s11857_s15  ;;  %v9342_v17 = vsel %vm7306_vm2, %v20456_v6, %v20455_v11  ;;  %v8254_v15 = vmul.f32 %v20462_v61, %v17784_v24  ;;  %v20466_v24 = vld [vmem:[#allocation97_spill] sm:$0xff]  ;;  %v20472_v61 = vld [vmem:[#allocation70_spill] sm:$0xff] }
 0x6a8   : > { %v8256_v11 = vmul.f32 %v20466_v24, %v17814_v26  ;;  %v20467_v33 = vld [vmem:[#allocation249_spill] sm:$0xff]  ;;  %v20470_v26 = vld [vmem:[#allocation170_spill] sm:$0xff] }
 0x6a9   : > { %v8687_v30 = vpop.permute.xlu1 %8686  ;;  %v8941_v32 = vpop.permute.xlu0 %8940 }
 0x6aa   : > { %v18150_v21 = vsel %vm9420_vm3, %v9404_v19, %v8941_v32  ;;  %9194 = vrot.lane.b32.xlu1 %v8251_v9, %s11857_s15  ;;  %v9405_v28 = vsel %vm7371_vm1, %v9341_v59, %v8687_v30  ;;  %v20459_v19 = vld [vmem:[#allocation247_spill] sm:$0xff]  ;;  %v20460_v30 = vld [vmem:[#allocation177_spill] sm:$0xff] }
 0x6ab   : > { %9188 = vrot.lane.b32.xlu0 %v8248_v62, %s11857_s15  ;;  %v9343_v32 = vsel %vm7306_vm2, %v20460_v30, %v20459_v19 }
 0x6ad   : > { %v8943_v58 = vpop.permute.xlu1 %8942  ;;  %v8689_v4 = vpop.permute.xlu0 %8688 }
 0x6ae   : > { %v18163_v38 = vsel %vm9420_vm3, %v9405_v28, %v8943_v58  ;;  %9198 = vrot.lane.b32.xlu1 %v8253_v23, %s11857_s15  ;;  %v9406_v13 = vsel %vm7371_vm1, %v9342_v17, %v8689_v4  ;;  %v20464_v28 = vld [vmem:[#allocation20_spill] sm:$0xff]  ;;  %v8259_v4 = vmul.f32 %v20465_v53, %v17823_v16  ;;  %v20475_v53 = vld [vmem:[#allocation251_spill] sm:$0xff] }
 0x6af   : > { %9192 = vrot.lane.b32.xlu0 %v8250_v41, %s11857_s15  ;;  %v20463_v41 = vld [vmem:[#allocation244_spill] sm:$0xff] }
 0x6b0   : > { %v9344_v58 = vsel %vm7306_vm2, %v20464_v28, %v20463_v41  ;;  %v20469_v16 = vld [vmem:[#allocation192_spill] sm:$0xff] }
 0x6b1   : > { %v8691_v9 = vpop.permute.xlu1 %8690  ;;  %v8945_v27 = vpop.permute.xlu0 %8944 }
 0x6b2   : > { %v18176_v62 = vsel %vm9420_vm3, %v9406_v13, %v8945_v27  ;;  %9202 = vrot.lane.b32.xlu1 %v8255_v8, %s11857_s15  ;;  %v9407_v59 = vsel %vm7371_vm1, %v9343_v32, %v8691_v9  ;;  %v8261_v9 = vmul.f32 %v20469_v16, %v17853_v36  ;;  %v8258_v27 = vmul.f32 %v20470_v26, %v17844_v40  ;;  %v20473_v36 = vld [vmem:[#allocation205_spill] sm:$0xff]  ;;  %v20474_v40 = vld [vmem:[#allocation195_spill] sm:$0xff]  ;;  %v20480_v16 = vld [vmem:[#allocation76_spill] sm:$0xff] }
 0x6b3   : > { %9196 = vrot.lane.b32.xlu0 %v8252_v20, %s11857_s15  ;;  %v20468_v20 = vld [vmem:[#allocation179_spill] sm:$0xff] }
 0x6b4   : > { %v9345_v13 = vsel %vm7306_vm2, %v20468_v20, %v20467_v33 }
 0x6b5   : > { %v8947_v3 = vpop.permute.xlu1 %8946  ;;  %v8693_v23 = vpop.permute.xlu0 %8692 }
 0x6b6   : > { %v18189_v2 = vsel %vm9420_vm3, %v9407_v59, %v8947_v3  ;;  %9206 = vrot.lane.b32.xlu1 %v8257_v34, %s11857_s15  ;;  %v9408_v6 = vsel %vm7371_vm1, %v9344_v58, %v8693_v23  ;;  %v20471_v34 = vld [vmem:[#allocation246_spill] sm:$0xff]  ;;  %v8263_v59 = vmul.f32 %v20473_v36, %v17883_v12  ;;  %v8260_v3 = vmul.f32 %v20474_v40, %v17874_v0  ;;  %v20477_v12 = vld [vmem:[#allocation215_spill] sm:$0xff]  ;;  %v20478_v0 = vld [vmem:[#allocation201_spill] sm:$0xff] }
 0x6b7   : > { %9200 = vrot.lane.b32.xlu0 %v8254_v15, %s11857_s15  ;;  %v9346_v15 = vsel %vm7306_vm2, %v20472_v61, %v20471_v34  ;;  %v20483_v61 = vld [vmem:[#allocation253_spill] sm:$0xff] }
 0x6b9   : > { %v8695_v17 = vpop.permute.xlu1 %8694  ;;  %v8949_v55 = vpop.permute.xlu0 %8948 }
 0x6ba   : > { %v18202_v8 = vsel %vm9420_vm3, %v9408_v6, %v8949_v55  ;;  %9210 = vrot.lane.b32.xlu1 %v8259_v4, %s11857_s15  ;;  %v9409_v19 = vsel %vm7371_vm1, %v9345_v13, %v8695_v17  ;;  %v20476_v4 = vld [vmem:[#allocation181_spill] sm:$0xff]  ;;  %v8262_v6 = vmul.f32 %v20478_v0, %v17904_v57  ;;  %v20479_v13 = vld [vmem:[#allocation248_spill] sm:$0xff]  ;;  %v20489_v0 = vld [vmem:[#allocation115_spill] sm:$0xff] }
 0x6bb   : > { %9204 = vrot.lane.b32.xlu0 %v8256_v11, %s11857_s15  ;;  %v9347_v24 = vsel %vm7306_vm2, %v20476_v4, %v20475_v53  ;;  %v8265_v11 = vmul.f32 %v20477_v12, %v17915_v44  ;;  %v20481_v44 = vld [vmem:[#allocation110_spill] sm:$0xff]  ;;  %v20482_v57 = vld [vmem:[#allocation12_spill] sm:$0xff] }
 0x6bc   : > { %v8267_v26 = vmul.f32 %v20481_v44, %v17945_v46  ;;  %v20485_v46 = vld [vmem:[#allocation214_spill] sm:$0xff] }
 0x6bd   : > { %v8951_v30 = vpop.permute.xlu1 %8950  ;;  %v8697_v32 = vpop.permute.xlu0 %8696 }
 0x6be   : > { %v18215_v42 = vsel %vm9420_vm3, %v9409_v19, %v8951_v30  ;;  %9214 = vrot.lane.b32.xlu1 %v8261_v9, %s11857_s15  ;;  %v9410_v23 = vsel %vm7371_vm1, %v9346_v15, %v8697_v32  ;;  %v9348_v9 = vsel %vm7306_vm2, %v20480_v16, %v20479_v13  ;;  %v20484_v15 = vld [vmem:[#allocation18_spill] sm:$0xff]  ;;  %v20490_v16 = vld [vmem:[#allocation252_spill] sm:$0xff] }
 0x6bf   : > { %9208 = vrot.lane.b32.xlu0 %v8258_v27, %s11857_s15  ;;  %v8264_v27 = vmul.f32 %v20482_v57, %v17934_v56  ;;  %v9349_v36 = vsel %vm7306_vm2, %v20484_v15, %v20483_v61 }
 0x6c1   : > { %v8699_v41 = vpop.permute.xlu1 %8698  ;;  %v8953_v28 = vpop.permute.xlu0 %8952 }
 0x6c2   : > { %v18228_v58 = vsel %vm9420_vm3, %v9410_v23, %v8953_v28  ;;  %9218 = vrot.lane.b32.xlu1 %v8263_v59, %s11857_s15  ;;  %v9411_v17 = vsel %vm7371_vm1, %v9347_v24, %v8699_v41  ;;  %v8266_v59 = vmul.f32 %v20485_v46, %v17964_v54  ;;  %v20486_v41 = vld [vmem:[#allocation250_spill] sm:$0xff]  ;;  %v20488_v54 = vld [vmem:[#allocation255_spill] sm:$0xff] }
 0x6c3   : > { %9212 = vrot.lane.b32.xlu0 %v8260_v3, %s11857_s15  ;;  %v20487_v28 = vld [vmem:[#allocation122_spill] sm:$0xff] }
 0x6c4   : > { %v9350_v53 = vsel %vm7306_vm2, %v20487_v28, %v20486_v41 }
 0x6c5   : > { %v8955_v55 = vpop.permute.xlu1 %8954  ;;  %v8701_v33 = vpop.permute.xlu0 %8700 }
 0x6c6   : > { %v18241_v20 = vsel %vm9420_vm3, %v9411_v17, %v8955_v55  ;;  %9222 = vrot.lane.b32.xlu1 %v8265_v11, %s11857_s15  ;;  %v9412_v19 = vsel %vm7371_vm1, %v9348_v9, %v8701_v33  ;;  %v20491_v9 = vld [vmem:[#allocation66_spill] sm:$0xff] }
 0x6c7   : > { %9216 = vrot.lane.b32.xlu0 %v8262_v6, %s11857_s15  ;;  %v9351_v6 = vsel %vm7306_vm2, %v20489_v0, %v20488_v54  ;;  %v9352_v44 = vsel %vm7306_vm2, %v20491_v9, %v20490_v16  ;;  %v20498_v0 = vld [vmem:[#allocation174_spill] sm:$0xff] }
 0x6c9   : > { %v8703_v30 = vpop.permute.xlu1 %8702  ;;  %v8957_v32 = vpop.permute.xlu0 %8956 }
 0x6ca   : > { %v18254_v34 = vsel %vm9420_vm3, %v9412_v19, %v8957_v32  ;;  %9226 = vrot.lane.b32.xlu1 %v8267_v26, %s11857_s15  ;;  %v9413_v56 = vsel %vm7371_vm1, %v9349_v36, %v8703_v30  ;;  %v20492_v30 = vld [vmem:[#allocation256_spill] sm:$0xff]  ;;  %v20493_v32 = vld [vmem:[#allocation69_spill] sm:$0xff] }
 0x6cb   : > { %9220 = vrot.lane.b32.xlu0 %v8264_v27, %s11857_s15  ;;  %v9353_v61 = vsel %vm7306_vm2, %v20493_v32, %v20492_v30  ;;  %v20501_v30 = vld [vmem:[#allocation61_spill] sm:$0xff] }
 0x6cd   : > { %v8959_v40 = vpop.permute.xlu1 %8958  ;;  %v8705_v3 = vpop.permute.xlu0 %8704 }
 0x6ce   : > { %v18265_v23 = vsel %vm9420_vm3, %v9413_v56, %v8959_v40  ;;  %v9414_v4 = vsel %vm7371_vm1, %v9350_v53, %v8705_v3  ;;  %v20494_v56 = vld [vmem:[#allocation254_spill] sm:$0xff]  ;;  %v20495_v40 = vld [vmem:[#allocation135_spill] sm:$0xff] }
 0x6cf   : > { %9224 = vrot.lane.b32.xlu0 %v8266_v59, %s11857_s15  ;;  %v9354_v3 = vsel %vm7306_vm2, %v20495_v40, %v20494_v56 }
 0x6d1   : > { %v8707_v24 = vpop.permute.xlu1 %8706  ;;  %v8961_v12 = vpop.permute.xlu0 %8960 }
 0x6d2   : > { %v18273_v11 = vsel %vm9420_vm3, %v9414_v4, %v8961_v12  ;;  %v9415_v17 = vsel %vm7371_vm1, %v9351_v6, %v8707_v24  ;;  %v20496_v24 = vld [vmem:[#allocation131_spill] sm:$0xff]  ;;  %v20497_v12 = vld [vmem:[#allocation8_spill] sm:$0xff] }
 0x6d3   : > { %v9308_v54 = vsel %vm7306_vm2, %v20497_v12, %v20496_v24  ;;  %v20499_v6 = vld [vmem:[#allocation87_spill] sm:$0xff] }
 0x6d4   : > { %v20504_v24 = vld [vmem:[#allocation75_spill] sm:$0xff] }
 0x6d5   : > { %v8963_v55 = vpop.permute.xlu1 %8962  ;;  %v8709_v33 = vpop.permute.xlu0 %8708 }
 0x6d6   : > { %v18280_v13 = vsel %vm9420_vm3, %v9415_v17, %v8963_v55  ;;  %v9416_v26 = vsel %vm7371_vm1, %v9352_v44, %v8709_v33  ;;  %v9355_v17 = vsel %vm7306_vm2, %v20499_v6, %v20498_v0  ;;  %v9372_v55 = vsel %vm7371_vm1, %v9308_v54, %v17705_v35  ;;  %v20506_v54 = vld [vmem:[#allocation91_spill] sm:$0xff] }
 0x6d7   : > { %v9437_v33 = vsel %vm9420_vm3, %v9372_v55, %v17720_v50 }
 0x6d9   : > { %v8711_v57 = vpop.permute.xlu1 %8710  ;;  %v8965_v27 = vpop.permute.xlu0 %8964 }
 0x6da   : > { %v18287_v19 = vsel %vm9420_vm3, %v9416_v26, %v8965_v27  ;;  %v9417_v15 = vsel %vm7371_vm1, %v9353_v61, %v8711_v57  ;;  %v20500_v27 = vld [vmem:[#allocation120_spill] sm:$0xff]  ;;  %v20502_v61 = vld [vmem:[#allocation125_spill] sm:$0xff] }
 0x6db   : > { %v9310_v32 = vsel %vm7306_vm2, %v20501_v30, %v20500_v27 }
 0x6dd   : > { %v8967_v36 = vpop.permute.xlu1 %8966  ;;  %v8713_v46 = vpop.permute.xlu0 %8712 }
 0x6de   : > { %v18294_v59 = vsel %vm9420_vm3, %v9417_v15, %v8967_v36  ;;  %v9418_v41 = vsel %vm7371_vm1, %v9354_v3, %v8713_v46  ;;  %v20503_v15 = vld [vmem:[#allocation114_spill] sm:$0xff]  ;;  %v9374_v46 = vsel %vm7371_vm1, %v9310_v32, %v17739_v37  ;;  %v20507_v37 = vld [vmem:[#allocation63_spill] sm:$0xff]  ;;  %v20511_v32 = vld [vmem:[#allocation77_spill] sm:$0xff] }
 0x6df   : > { %v9309_v35 = vsel %vm7306_vm2, %v20503_v15, %v20502_v61  ;;  %v9439_v40 = vsel %vm9420_vm3, %v9374_v46, %v17750_v7  ;;  %v9311_v0 = vsel %vm7306_vm2, %v20507_v37, %v20506_v54  ;;  %v20512_v61 = vld [vmem:[#allocation109_spill] sm:$0xff] }
 0x6e0   : > { %v9373_v50 = vsel %vm7371_vm1, %v9309_v35, %v17718_v5  ;;  %v20505_v5 = vld [vmem:[#allocation118_spill] sm:$0xff]  ;;  %v9375_v7 = vsel %vm7371_vm1, %v9311_v0, %v17748_v52  ;;  %v9314_v15 = vsel %vm7306_vm2, %v20512_v61, %v20511_v32  ;;  %v20513_v35 = vld [vmem:[#allocation217_spill] sm:$0xff] }
 0x6e1   : > { %v8715_v28 = vpop.permute.xlu1 %8714  ;;  %v8969_v53 = vpop.permute.xlu0 %8968  ;;  %v9438_v56 = vsel %vm9420_vm3, %v9373_v50, %v17737_v1  ;;  %v9312_v12 = vsel %vm7306_vm2, %v20505_v5, %v20504_v24  ;;  %v20518_v5 = vld [vmem:[#allocation188_spill] sm:$0xff]  ;;  %v20525_v32 = vld [vmem:[#allocation198_spill] sm:$0xff] }
 0x6e2   : > { %v18301_v4 = vsel %vm9420_vm3, %v9418_v41, %v8969_v53  ;;  %v9419_v16 = vsel %vm7371_vm1, %v9355_v17, %v8715_v28  ;;  %v20508_v17 = vld [vmem:[#allocation189_spill] sm:$0xff] }
 0x6e3   : > { %v9376_v55 = vsel %vm7371_vm1, %v9312_v12, %v20508_v17 }
 0x6e5   : > { %v8971_v9 = vpop.permute.xlu1 %8970  ;;  %v9133_v44 = vpop.permute.xlu0 %9132 }
 0x6e6   : > { %v18315_v26 = vsel %vm9420_vm3, %v9419_v16, %v8971_v9  ;;  %v9502_v57 = vsel %vm9485_vm4, %v9437_v33, %v9133_v44  ;;  %v20509_v33 = vld [vmem:[#allocation185_spill] sm:$0xff]  ;;  %v20510_v9 = vld [vmem:[#allocation56_spill] sm:$0xff] }
 0x6e7   : > { %v9567_v36 = vsel %vm9550_vm5, %v9502_v57, 0.0  ;;  %v9440_v16 = vsel %vm9420_vm3, %v9375_v7, %v20509_v33  ;;  %v9441_v44 = vsel %vm9420_vm3, %v9376_v55, %v20510_v9  ;;  %v20520_v7 = vld [vmem:[#allocation127_spill] sm:$0xff]  ;;  %v20522_v33 = vld [vmem:[#allocation126_spill] sm:$0xff] }
 0x6e8   : > { %9632 = vst.msk [vmem:[%s17310_s18 + $0x80] sm:$0xff] %vm9615_vm6, %v9567_v36  ;;  %v20514_v36 = vld [vmem:[#allocation124_spill] sm:$0xff]  ;;  %v20521_v55 = vld [vmem:[#allocation219_spill] sm:$0xff] }
 0x6e9   : > { %v9135_v3 = vpop.permute.xlu1 %9134  ;;  %v9137_v41 = vpop.permute.xlu0 %9136  ;;  %v9313_v50 = vsel %vm7306_vm2, %v20514_v36, %v20513_v35 }
 0x6ea   : > { %v9503_v28 = vsel %vm9485_vm4, %v9438_v56, %v9135_v3  ;;  %v9504_v53 = vsel %vm9485_vm4, %v9439_v40, %v9137_v41  ;;  %v20515_v40 = vld [vmem:[#allocation164_spill] sm:$0xff]  ;;  %v20516_v41 = vld [vmem:[#allocation194_spill] sm:$0xff] }
 0x6eb   : > { %v9568_v6 = vsel %vm9550_vm5, %v9503_v28, 0.0  ;;  %v9569_v1 = vsel %vm9550_vm5, %v9504_v53, 0.0  ;;  %v9377_v3 = vsel %vm7371_vm1, %v9313_v50, %v20515_v40  ;;  %v9378_v28 = vsel %vm7371_vm1, %v9314_v15, %v20516_v41  ;;  %v20517_v53 = vld [vmem:[#allocation191_spill] sm:$0xff]  ;;  %v20526_v15 = vld [vmem:[#allocation193_spill] sm:$0xff]  ;;  %v20527_v40 = vld [vmem:[#allocation218_spill] sm:$0xff] }
 0x6ec   : > { %9633 = vst.msk [vmem:[%s17310_s18 + $0x88] sm:$0xff] %vm9615_vm6, %v9568_v6  ;;  %9634 = vst.msk [vmem:[%s17310_s18 + $0x90] sm:$0xff] %vm9615_vm6, %v9569_v1  ;;  %v9442_v24 = vsel %vm9420_vm3, %v9377_v3, %v20517_v53  ;;  %v9443_v12 = vsel %vm9420_vm3, %v9378_v28, %v20518_v5  ;;  %v20519_v1 = vld [vmem:[#allocation216_spill] sm:$0xff]  ;;  %v20528_v3 = vld [vmem:[#allocation133_spill] sm:$0xff] }
 0x6ed   : > { %v9139_v57 = vpop.permute.xlu1 %9138  ;;  %v9141_v27 = vpop.permute.xlu0 %9140  ;;  %v9316_v17 = vsel %vm7306_vm2, %v20520_v7, %v20519_v1  ;;  %v9318_v41 = vsel %vm7306_vm2, %v20528_v3, %v20527_v40  ;;  %v20529_v28 = vld [vmem:[#allocation221_spill] sm:$0xff]  ;;  %v20533_v1 = vld [vmem:[#allocation207_spill] sm:$0xff] }
 0x6ee   : > { %v9505_v30 = vsel %vm9485_vm4, %v9440_v16, %v9139_v57  ;;  %v9506_v52 = vsel %vm9485_vm4, %v9441_v44, %v9141_v27  ;;  %v9315_v16 = vsel %vm7306_vm2, %v20522_v33, %v20521_v55  ;;  %v20523_v57 = vld [vmem:[#allocation4_spill] sm:$0xff]  ;;  %v20530_v53 = vld [vmem:[#allocation117_spill] sm:$0xff] }
 0x6ef   : > { %v9570_v46 = vsel %vm9550_vm5, %v9505_v30, 0.0  ;;  %v9571_v56 = vsel %vm9550_vm5, %v9506_v52, 0.0  ;;  %v9379_v27 = vsel %vm7371_vm1, %v9315_v16, %v20523_v57  ;;  %v20524_v30 = vld [vmem:[#allocation204_spill] sm:$0xff]  ;;  %v20541_v40 = vld [vmem:[#allocation173_spill] sm:$0xff] }
 0x6f0   : > { %9635 = vst.msk [vmem:[%s17310_s18 + $0x98] sm:$0xff] %vm9615_vm6, %v9570_v46  ;;  %9636 = vst.msk [vmem:[%s17310_s18 + $0xa0] sm:$0xff] %vm9615_vm6, %v9571_v56  ;;  %v9380_v52 = vsel %vm7371_vm1, %v9316_v17, %v20524_v30  ;;  %v9444_v61 = vsel %vm9420_vm3, %v9379_v27, %v20525_v32  ;;  %v20534_v17 = vld [vmem:[#allocation203_spill] sm:$0xff]  ;;  %v20535_v57 = vld [vmem:[#allocation220_spill] sm:$0xff] }
 0x6f1   : > { %v9143_v54 = vpop.permute.xlu1 %9142  ;;  %v9145_v37 = vpop.permute.xlu0 %9144  ;;  %v9445_v35 = vsel %vm9420_vm3, %v9380_v52, %v20526_v15  ;;  %v20536_v27 = vld [vmem:[#allocation134_spill] sm:$0xff]  ;;  %v20537_v52 = vld [vmem:[#allocation223_spill] sm:$0xff]  ;;  %v20538_v32 = vld [vmem:[#allocation72_spill] sm:$0xff] }
 0x6f2   : > { %v9507_v0 = vsel %vm9485_vm4, %v9442_v24, %v9143_v54  ;;  %v9508_v6 = vsel %vm9485_vm4, %v9443_v12, %v9145_v37  ;;  %v9317_v24 = vsel %vm7306_vm2, %v20530_v53, %v20529_v28  ;;  %v20531_v54 = vld [vmem:[#allocation190_spill] sm:$0xff]  ;;  %v9320_v30 = vsel %vm7306_vm2, %v20536_v27, %v20535_v57  ;;  %v20549_v57 = vld [vmem:[#allocation17_spill] sm:$0xff] }
 0x6f3   : > { %v9572_v9 = vsel %vm9550_vm5, %v9507_v0, 0.0  ;;  %v9573_v44 = vsel %vm9550_vm5, %v9508_v6, 0.0  ;;  %v9381_v37 = vsel %vm7371_vm1, %v9317_v24, %v20531_v54  ;;  %v20532_v0 = vld [vmem:[#allocation213_spill] sm:$0xff]  ;;  %v20543_v54 = vld [vmem:[#allocation222_spill] sm:$0xff] }
 0x6f4   : > { %9637 = vst.msk [vmem:[%s17310_s18 + $0xa8] sm:$0xff] %vm9615_vm6, %v9572_v9  ;;  %9638 = vst.msk [vmem:[%s17310_s18 + $0xb0] sm:$0xff] %vm9615_vm6, %v9573_v44  ;;  %v9382_v6 = vsel %vm7371_vm1, %v9318_v41, %v20532_v0  ;;  %v9446_v7 = vsel %vm9420_vm3, %v9381_v37, %v20533_v1  ;;  %v20542_v41 = vld [vmem:[#allocation212_spill] sm:$0xff]  ;;  %v20544_v37 = vld [vmem:[#allocation53_spill] sm:$0xff] }
 0x6f5   : > { %v9147_v36 = vpop.permute.xlu1 %9146  ;;  %v9149_v50 = vpop.permute.xlu0 %9148  ;;  %v9447_v55 = vsel %vm9420_vm3, %v9382_v6, %v20534_v17  ;;  %v9322_v0 = vsel %vm7306_vm2, %v20544_v37, %v20543_v54  ;;  %v20545_v6 = vld [vmem:[#allocation225_spill] sm:$0xff]  ;;  %v20546_v1 = vld [vmem:[#allocation138_spill] sm:$0xff]  ;;  %v20557_v54 = vld [vmem:[#allocation112_spill] sm:$0xff] }
 0x6f6   : > { %v9509_v46 = vsel %vm9485_vm4, %v9444_v61, %v9147_v36  ;;  %v9510_v56 = vsel %vm9485_vm4, %v9445_v35, %v9149_v50  ;;  %v9319_v61 = vsel %vm7306_vm2, %v20538_v32, %v20537_v52  ;;  %v20539_v36 = vld [vmem:[#allocation197_spill] sm:$0xff] }
 0x6f7   : > { %v9574_v5 = vsel %vm9550_vm5, %v9509_v46, 0.0  ;;  %v9575_v12 = vsel %vm9550_vm5, %v9510_v56, 0.0  ;;  %v9383_v50 = vsel %vm7371_vm1, %v9319_v61, %v20539_v36  ;;  %v20540_v46 = vld [vmem:[#allocation21_spill] sm:$0xff]  ;;  %v20551_v36 = vld [vmem:[#allocation224_spill] sm:$0xff] }
 0x6f8   : > { %9639 = vst.msk [vmem:[%s17310_s18 + $0xb8] sm:$0xff] %vm9615_vm6, %v9574_v5  ;;  %9640 = vst.msk [vmem:[%s17310_s18 + $0xc0] sm:$0xff] %vm9615_vm6, %v9575_v12  ;;  %v9384_v56 = vsel %vm7371_vm1, %v9320_v30, %v20540_v46  ;;  %v9448_v3 = vsel %vm9420_vm3, %v9383_v50, %v20541_v40  ;;  %v20550_v30 = vld [vmem:[#allocation102_spill] sm:$0xff]  ;;  %v20552_v50 = vld [vmem:[#allocation80_spill] sm:$0xff] }
 0x6f9   : > { %v9151_v33 = vpop.permute.xlu1 %9150  ;;  %v9153_v16 = vpop.permute.xlu0 %9152  ;;  %v9449_v28 = vsel %vm9420_vm3, %v9384_v56, %v20542_v41  ;;  %v9324_v46 = vsel %vm7306_vm2, %v20552_v50, %v20551_v36  ;;  %v20553_v56 = vld [vmem:[#allocation227_spill] sm:$0xff]  ;;  %v20554_v40 = vld [vmem:[#allocation129_spill] sm:$0xff]  ;;  %v20565_v36 = vld [vmem:[#allocation88_spill] sm:$0xff] }
 0x6fa   : > { %v9511_v9 = vsel %vm9485_vm4, %v9446_v7, %v9151_v33  ;;  %v9512_v44 = vsel %vm9485_vm4, %v9447_v55, %v9153_v16  ;;  %v9321_v7 = vsel %vm7306_vm2, %v20546_v1, %v20545_v6  ;;  %v20547_v33 = vld [vmem:[#allocation206_spill] sm:$0xff] }
 0x6fb   : > { %v9576_v15 = vsel %vm9550_vm5, %v9511_v9, 0.0  ;;  %v9577_v35 = vsel %vm9550_vm5, %v9512_v44, 0.0  ;;  %v9385_v16 = vsel %vm7371_vm1, %v9321_v7, %v20547_v33  ;;  %v20548_v9 = vld [vmem:[#allocation55_spill] sm:$0xff]  ;;  %v20559_v33 = vld [vmem:[#allocation226_spill] sm:$0xff] }
 0x6fc   : > { %9641 = vst.msk [vmem:[%s17310_s18 + $0xc8] sm:$0xff] %vm9615_vm6, %v9576_v15  ;;  %9642 = vst.msk [vmem:[%s17310_s18 + $0xd0] sm:$0xff] %vm9615_vm6, %v9577_v35  ;;  %v9386_v44 = vsel %vm7371_vm1, %v9322_v0, %v20548_v9  ;;  %v9450_v27 = vsel %vm9420_vm3, %v9385_v16, %v20549_v57  ;;  %v20558_v0 = vld [vmem:[#allocation30_spill] sm:$0xff]  ;;  %v20560_v16 = vld [vmem:[#allocation143_spill] sm:$0xff] }
 0x6fd   : > { %v9155_v53 = vpop.permute.xlu1 %9154  ;;  %v9157_v24 = vpop.permute.xlu0 %9156  ;;  %v9451_v52 = vsel %vm9420_vm3, %v9386_v44, %v20550_v30  ;;  %v9326_v9 = vsel %vm7306_vm2, %v20560_v16, %v20559_v33  ;;  %v20561_v44 = vld [vmem:[#allocation229_spill] sm:$0xff]  ;;  %v20562_v57 = vld [vmem:[#allocation148_spill] sm:$0xff] }
 0x6fe   : > { %v9513_v5 = vsel %vm9485_vm4, %v9448_v3, %v9155_v53  ;;  %v9514_v12 = vsel %vm9485_vm4, %v9449_v28, %v9157_v24  ;;  %v9323_v3 = vsel %vm7306_vm2, %v20554_v40, %v20553_v56  ;;  %v20555_v53 = vld [vmem:[#allocation106_spill] sm:$0xff] }
 0x6ff   : > { %v9578_v17 = vsel %vm9550_vm5, %v9513_v5, 0.0  ;;  %v9579_v55 = vsel %vm9550_vm5, %v9514_v12, 0.0  ;;  %v9387_v24 = vsel %vm7371_vm1, %v9323_v3, %v20555_v53  ;;  %v20556_v5 = vld [vmem:[#allocation176_spill] sm:$0xff] }
 0x700   : > { %9643 = vst.msk [vmem:[%s17310_s18 + $0xd8] sm:$0xff] %vm9615_vm6, %v9578_v17  ;;  %9644 = vst.msk [vmem:[%s17310_s18 + $0xe0] sm:$0xff] %vm9615_vm6, %v9579_v55  ;;  %v9388_v12 = vsel %vm7371_vm1, %v9324_v46, %v20556_v5  ;;  %v9452_v37 = vsel %vm9420_vm3, %v9387_v24, %v20557_v54  ;;  %v20567_v53 = vld [vmem:[#allocation36_spill] sm:$0xff]  ;;  %v20568_v5 = vld [vmem:[#allocation231_spill] sm:$0xff] }
 0x701   : > { %v9159_v32 = vpop.permute.xlu1 %9158  ;;  %v9161_v61 = vpop.permute.xlu0 %9160  ;;  %v9453_v6 = vsel %vm9420_vm3, %v9388_v12, %v20558_v0  ;;  %v20569_v12 = vld [vmem:[#allocation157_spill] sm:$0xff] }
 0x702   : > { %v9515_v15 = vsel %vm9485_vm4, %v9450_v27, %v9159_v32  ;;  %v9516_v35 = vsel %vm9485_vm4, %v9451_v52, %v9161_v61  ;;  %v9325_v27 = vsel %vm7306_vm2, %v20562_v57, %v20561_v44  ;;  %v20563_v32 = vld [vmem:[#allocation104_spill] sm:$0xff]  ;;  %v9327_v54 = vsel %vm7306_vm2, %v20569_v12, %v20568_v5  ;;  %v20571_v44 = vld [vmem:[#allocation230_spill] sm:$0xff] }
 0x703   : > { %v9580_v41 = vsel %vm9550_vm5, %v9515_v15, 0.0  ;;  %v9581_v28 = vsel %vm9550_vm5, %v9516_v35, 0.0  ;;  %v9389_v61 = vsel %vm7371_vm1, %v9325_v27, %v20563_v32  ;;  %v20564_v15 = vld [vmem:[#allocation13_spill] sm:$0xff]  ;;  %v20572_v57 = vld [vmem:[#allocation166_spill] sm:$0xff] }
 0x704   : > { %9645 = vst.msk [vmem:[%s17310_s18 + $0xe8] sm:$0xff] %vm9615_vm6, %v9580_v41  ;;  %9646 = vst.msk [vmem:[%s17310_s18 + $0xf0] sm:$0xff] %vm9615_vm6, %v9581_v28  ;;  %v9390_v35 = vsel %vm7371_vm1, %v9326_v9, %v20564_v15  ;;  %v9454_v50 = vsel %vm9420_vm3, %v9389_v61, %v20565_v36  ;;  %v20566_v28 = vld [vmem:[#allocation228_spill] sm:$0xff]  ;;  %v20573_v27 = vld [vmem:[#allocation233_spill] sm:$0xff] }
 0x705   : > { %v9163_v1 = vpop.permute.xlu1 %9162  ;;  %v9165_v7 = vpop.permute.xlu0 %9164  ;;  %v9455_v46 = vsel %vm9420_vm3, %v9390_v35, %v17985_v63  ;;  %v9328_v24 = vsel %vm7306_vm2, %v20567_v53, %v20566_v28 }
 0x706   : > { %v9517_v17 = vsel %vm9485_vm4, %v9452_v37, %v9163_v1  ;;  %v9518_v55 = vsel %vm9485_vm4, %v9453_v6, %v9165_v7  ;;  %v20570_v6 = vld [vmem:[#allocation178_spill] sm:$0xff]  ;;  %v9392_v1 = vsel %vm7371_vm1, %v9328_v24, %v17995_v25  ;;  %v9330_v25 = vsel %vm7306_vm2, %v20572_v57, %v20571_v44 }
 0x707   : > { %v9582_v30 = vsel %vm9550_vm5, %v9517_v17, 0.0  ;;  %v9583_v52 = vsel %vm9550_vm5, %v9518_v55, 0.0  ;;  %v9391_v63 = vsel %vm7371_vm1, %v9327_v54, %v20570_v6  ;;  %v9457_v17 = vsel %vm9420_vm3, %v9392_v1, %v18005_v48 }
 0x708   : > { %9647 = vst.msk [vmem:[%s17310_s18 + $0xf8] sm:$0xff] %vm9615_vm6, %v9582_v30  ;;  %9648 = vst.msk [vmem:[%s17310_s18 + $0x100] sm:$0xff] %vm9615_vm6, %v9583_v52  ;;  %v9456_v7 = vsel %vm9420_vm3, %v9391_v63, %v17993_v45  ;;  %v20574_v30 = vld [vmem:[#allocation49_spill] sm:$0xff]  ;;  %v9394_v61 = vsel %vm7371_vm1, %v9330_v25, %v18015_v60  ;;  %v20576_v60 = vld [vmem:[#allocation59_spill] sm:$0xff] }
 0x709   : > { %v9167_v56 = vpop.permute.xlu1 %9166  ;;  %v9169_v40 = vpop.permute.xlu0 %9168  ;;  %v9329_v52 = vsel %vm7306_vm2, %v20574_v30, %v20573_v27  ;;  %v9459_v35 = vsel %vm9420_vm3, %v9394_v61, %v18025_v31  ;;  %v20578_v31 = vld [vmem:[#allocation180_spill] sm:$0xff] }
 0x70a   : > { %v9519_v3 = vsel %vm9485_vm4, %v9454_v50, %v9167_v56  ;;  %v9520_v41 = vsel %vm9485_vm4, %v9455_v46, %v9169_v40  ;;  %v9393_v48 = vsel %vm7371_vm1, %v9329_v52, %v18003_v10  ;;  %v20575_v56 = vld [vmem:[#allocation235_spill] sm:$0xff] }
 0x70b   : > { %v9584_v37 = vsel %vm9550_vm5, %v9519_v3, 0.0  ;;  %v9585_v0 = vsel %vm9550_vm5, %v9520_v41, 0.0  ;;  %v9458_v15 = vsel %vm9420_vm3, %v9393_v48, %v18013_v14  ;;  %v9331_v40 = vsel %vm7306_vm2, %v20576_v60, %v20575_v56  ;;  %v20577_v14 = vld [vmem:[#allocation82_spill] sm:$0xff] }
 0x70c   : > { %9649 = vst.msk [vmem:[%s17310_s18 + $0x108] sm:$0xff] %vm9615_vm6, %v9584_v37  ;;  %9650 = vst.msk [vmem:[%s17310_s18 + $0x110] sm:$0xff] %vm9615_vm6, %v9585_v0  ;;  %v9395_v28 = vsel %vm7371_vm1, %v9331_v40, %v20577_v14 }
 0x70d   : > { %v9171_v55 = vpop.permute.xlu1 %9170  ;;  %v9173_v33 = vpop.permute.xlu0 %9172  ;;  %v9460_v53 = vsel %vm9420_vm3, %v9395_v28, %v20578_v31 }
 0x70e   : > { %v9521_v16 = vsel %vm9485_vm4, %v9456_v7, %v9171_v55  ;;  %v9522_v9 = vsel %vm9485_vm4, %v9457_v17, %v9173_v33 }
 0x70f   : > { %v9586_v32 = vsel %vm9550_vm5, %v9521_v16, 0.0  ;;  %v9587_v45 = vsel %vm9550_vm5, %v9522_v9, 0.0 }
 0x710   : > { %9651 = vst.msk [vmem:[%s17310_s18 + $0x118] sm:$0xff] %vm9615_vm6, %v9586_v32  ;;  %9652 = vst.msk [vmem:[%s17310_s18 + $0x120] sm:$0xff] %vm9615_vm6, %v9587_v45 }
 0x711   : > { %v9175_v36 = vpop.permute.xlu1 %9174  ;;  %v9177_v50 = vpop.permute.xlu0 %9176 }
 0x712   : > { %v9523_v46 = vsel %vm9485_vm4, %v9458_v15, %v9175_v36  ;;  %v9524_v10 = vsel %vm9485_vm4, %v9459_v35, %v9177_v50 }
 0x713   : > { %v9588_v3 = vsel %vm9550_vm5, %v9523_v46, 0.0  ;;  %v9589_v41 = vsel %vm9550_vm5, %v9524_v10, 0.0 }
 0x714   : > { %9653 = vst.msk [vmem:[%s17310_s18 + $0x128] sm:$0xff] %vm9615_vm6, %v9588_v3  ;;  %9654 = vst.msk [vmem:[%s17310_s18 + $0x130] sm:$0xff] %vm9615_vm6, %v9589_v41 }
 0x715   : > { %v9179_v24 = vpop.permute.xlu1 %9178  ;;  %v9181_v5 = vpop.permute.xlu0 %9180 }
 0x716   : > { %v9525_v12 = vsel %vm9485_vm4, %v9460_v53, %v9179_v24  ;;  %v9526_v54 = vsel %vm9485_vm4, %v18046_v22, %v9181_v5 }
 0x717   : > { %v9590_v37 = vsel %vm9550_vm5, %v9525_v12, 0.0  ;;  %v9591_v0 = vsel %vm9550_vm5, %v9526_v54, 0.0 }
 0x718   : > { %9655 = vst.msk [vmem:[%s17310_s18 + $0x138] sm:$0xff] %vm9615_vm6, %v9590_v37  ;;  %9656 = vst.msk [vmem:[%s17310_s18 + $0x140] sm:$0xff] %vm9615_vm6, %v9591_v0 }
 0x719   : > { %v9183_v6 = vpop.permute.xlu1 %9182  ;;  %v9185_v63 = vpop.permute.xlu0 %9184 }
 0x71a   : > { %v9527_v1 = vsel %vm9485_vm4, %v18059_v39, %v9183_v6  ;;  %v9528_v7 = vsel %vm9485_vm4, %v18072_v29, %v9185_v63 }
 0x71b   : > { %v9592_v22 = vsel %vm9550_vm5, %v9527_v1, 0.0  ;;  %v9593_v17 = vsel %vm9550_vm5, %v9528_v7, 0.0 }
 0x71c   : > { %9657 = vst.msk [vmem:[%s17310_s18 + $0x148] sm:$0xff] %vm9615_vm6, %v9592_v22  ;;  %9658 = vst.msk [vmem:[%s17310_s18 + $0x150] sm:$0xff] %vm9615_vm6, %v9593_v17 }
 0x71d   : > { %v9187_v55 = vpop.permute.xlu1 %9186  ;;  %v9189_v33 = vpop.permute.xlu0 %9188 }
 0x71e   : > { %v9529_v16 = vsel %vm9485_vm4, %v18085_v18, %v9187_v55  ;;  %v9530_v39 = vsel %vm9485_vm4, %v18098_v43, %v9189_v33 }
 0x71f   : > { %v9594_v29 = vsel %vm9550_vm5, %v9529_v16, 0.0  ;;  %v9595_v9 = vsel %vm9550_vm5, %v9530_v39, 0.0 }
 0x720   : > { %9659 = vst.msk [vmem:[%s17310_s18 + $0x158] sm:$0xff] %vm9615_vm6, %v9594_v29  ;;  %9660 = vst.msk [vmem:[%s17310_s18 + $0x160] sm:$0xff] %vm9615_vm6, %v9595_v9 }
 0x721   : > { %v9191_v44 = vpop.permute.xlu1 %9190  ;;  %v9193_v57 = vpop.permute.xlu0 %9192 }
 0x722   : > { %v9531_v25 = vsel %vm9485_vm4, %v18111_v49, %v9191_v44  ;;  %v9532_v18 = vsel %vm9485_vm4, %v18124_v51, %v9193_v57 }
 0x723   : > { %v9596_v43 = vsel %vm9550_vm5, %v9531_v25, 0.0  ;;  %v9597_v27 = vsel %vm9550_vm5, %v9532_v18, 0.0 }
 0x724   : > { %9661 = vst.msk [vmem:[%s17310_s18 + $0x168] sm:$0xff] %vm9615_vm6, %v9596_v43  ;;  %9662 = vst.msk [vmem:[%s17310_s18 + $0x170] sm:$0xff] %vm9615_vm6, %v9597_v27 }
 0x725   : > { %v9195_v30 = vpop.permute.xlu1 %9194  ;;  %v9197_v52 = vpop.permute.xlu0 %9196 }
 0x726   : > { %v9533_v32 = vsel %vm9485_vm4, %v18137_v47, %v9195_v30  ;;  %v9534_v49 = vsel %vm9485_vm4, %v18150_v21, %v9197_v52 }
 0x727   : > { %v9598_v51 = vsel %vm9550_vm5, %v9533_v32, 0.0  ;;  %v9599_v45 = vsel %vm9550_vm5, %v9534_v49, 0.0 }
 0x728   : > { %9663 = vst.msk [vmem:[%s17310_s18 + $0x178] sm:$0xff] %vm9615_vm6, %v9598_v51  ;;  %9664 = vst.msk [vmem:[%s17310_s18 + $0x180] sm:$0xff] %vm9615_vm6, %v9599_v45 }
 0x729   : > { %v9199_v48 = vpop.permute.xlu1 %9198  ;;  %v9201_v61 = vpop.permute.xlu0 %9200 }
 0x72a   : > { %v9535_v15 = vsel %vm9485_vm4, %v18163_v38, %v9199_v48  ;;  %v9536_v47 = vsel %vm9485_vm4, %v18176_v62, %v9201_v61 }
 0x72b   : > { %v9600_v21 = vsel %vm9550_vm5, %v9535_v15, 0.0  ;;  %v9601_v35 = vsel %vm9550_vm5, %v9536_v47, 0.0 }
 0x72c   : > { %9665 = vst.msk [vmem:[%s17310_s18 + $0x188] sm:$0xff] %vm9615_vm6, %v9600_v21  ;;  %9666 = vst.msk [vmem:[%s17310_s18 + $0x190] sm:$0xff] %vm9615_vm6, %v9601_v35 }
 0x72d   : > { %v9203_v36 = vpop.permute.xlu1 %9202  ;;  %v9205_v50 = vpop.permute.xlu0 %9204 }
 0x72e   : > { %v9537_v46 = vsel %vm9485_vm4, %v18189_v2, %v9203_v36  ;;  %v9538_v38 = vsel %vm9485_vm4, %v18202_v8, %v9205_v50 }
 0x72f   : > { %v9602_v62 = vsel %vm9550_vm5, %v9537_v46, 0.0  ;;  %v9603_v10 = vsel %vm9550_vm5, %v9538_v38, 0.0 }
 0x730   : > { %9667 = vst.msk [vmem:[%s17310_s18 + $0x198] sm:$0xff] %vm9615_vm6, %v9602_v62  ;;  %9668 = vst.msk [vmem:[%s17310_s18 + $0x1a0] sm:$0xff] %vm9615_vm6, %v9603_v10 }
 0x731   : > { %v9207_v56 = vpop.permute.xlu1 %9206  ;;  %v9209_v60 = vpop.permute.xlu0 %9208 }
 0x732   : > { %v9539_v40 = vsel %vm9485_vm4, %v18215_v42, %v9207_v56  ;;  %v9540_v2 = vsel %vm9485_vm4, %v18228_v58, %v9209_v60 }
 0x733   : > { %v9604_v8 = vsel %vm9550_vm5, %v9539_v40, 0.0  ;;  %v9605_v3 = vsel %vm9550_vm5, %v9540_v2, 0.0 }
 0x734   : > { %9669 = vst.msk [vmem:[%s17310_s18 + $0x1a8] sm:$0xff] %vm9615_vm6, %v9604_v8  ;;  %9670 = vst.msk [vmem:[%s17310_s18 + $0x1b0] sm:$0xff] %vm9615_vm6, %v9605_v3 }
 0x735   : > { %v9211_v41 = vpop.permute.xlu1 %9210  ;;  %v9213_v14 = vpop.permute.xlu0 %9212 }
 0x736   : > { %v9541_v28 = vsel %vm9485_vm4, %v18241_v20, %v9211_v41  ;;  %v9542_v42 = vsel %vm9485_vm4, %v18254_v34, %v9213_v14 }
 0x737   : > { %v9606_v58 = vsel %vm9550_vm5, %v9541_v28, 0.0  ;;  %v9607_v31 = vsel %vm9550_vm5, %v9542_v42, 0.0 }
 0x738   : > { %9671 = vst.msk [vmem:[%s17310_s18 + $0x1b8] sm:$0xff] %vm9615_vm6, %v9606_v58  ;;  %9672 = vst.msk [vmem:[%s17310_s18 + $0x1c0] sm:$0xff] %vm9615_vm6, %v9607_v31 }
 0x739   : > { %v9215_v53 = vpop.permute.xlu1 %9214  ;;  %v9217_v24 = vpop.permute.xlu0 %9216 }
 0x73a   : > { %v9543_v5 = vsel %vm9485_vm4, %v18265_v23, %v9215_v53  ;;  %v9544_v20 = vsel %vm9485_vm4, %v18273_v11, %v9217_v24 }
 0x73b   : > { %v9608_v34 = vsel %vm9550_vm5, %v9543_v5, 0.0  ;;  %v9609_v12 = vsel %vm9550_vm5, %v9544_v20, 0.0 }
 0x73c   : > { %9673 = vst.msk [vmem:[%s17310_s18 + $0x1c8] sm:$0xff] %vm9615_vm6, %v9608_v34  ;;  %9674 = vst.msk [vmem:[%s17310_s18 + $0x1d0] sm:$0xff] %vm9615_vm6, %v9609_v12 }
 0x73d   : > { %v9219_v54 = vpop.permute.xlu1 %9218  ;;  %v9221_v37 = vpop.permute.xlu0 %9220 }
 0x73e   : > { %v9545_v0 = vsel %vm9485_vm4, %v18280_v13, %v9219_v54  ;;  %v9546_v23 = vsel %vm9485_vm4, %v18287_v19, %v9221_v37 }
 0x73f   : > { %v9610_v11 = vsel %vm9550_vm5, %v9545_v0, 0.0  ;;  %v9611_v6 = vsel %vm9550_vm5, %v9546_v23, 0.0 }
 0x740   : > { %9675 = vst.msk [vmem:[%s17310_s18 + $0x1d8] sm:$0xff] %vm9615_vm6, %v9610_v11  ;;  %9676 = vst.msk [vmem:[%s17310_s18 + $0x1e0] sm:$0xff] %vm9615_vm6, %v9611_v6 }
 0x741   : > { %v9223_v63 = vpop.permute.xlu1 %9222  ;;  %v9225_v1 = vpop.permute.xlu0 %9224 }
 0x742   : > { %v9547_v7 = vsel %vm9485_vm4, %v18294_v59, %v9223_v63  ;;  %v9548_v13 = vsel %vm9485_vm4, %v18301_v4, %v9225_v1 }
 0x743   : > { %v9612_v22 = vsel %vm9550_vm5, %v9547_v7, 0.0  ;;  %v9613_v19 = vsel %vm9550_vm5, %v9548_v13, 0.0 }
 0x744   : > { %9677 = vst.msk [vmem:[%s17310_s18 + $0x1e8] sm:$0xff] %vm9615_vm6, %v9612_v22  ;;  %9678 = vst.msk [vmem:[%s17310_s18 + $0x1f0] sm:$0xff] %vm9615_vm6, %v9613_v19 }
 0x745   : > { %v9227_v17 = vpop.permute.xlu1 %9226 }
 0x746   : > { %v9549_v55 = vsel %vm9485_vm4, %v18315_v26, %v9227_v17 }
 0x747   : > { %v9614_v33 = vsel %vm9550_vm5, %v9549_v55, 0.0 }
 0x748   : > { %9679 = vst.msk [vmem:[%s17310_s18 + $0x1f8] sm:$0xff] %vm9615_vm6, %v9614_v33 }
 0x749 PF: > { %s19_s26 = sadd.s32 1, %s11850_s26  }
 0x74a   : > { %p16_p4 = scmp.ge.s32.totalorder %s19_s26, 4  }
 0x74c   :  { %18 = sbr.rel (!%p16_p4) target bundleno = 3 (0x3), region = 78 }

</bundles_post_ra>
